<compile_context>
chip_gen: v6e
topology: v6e:2x2x1
jax: 0.10.0
libtpu: 0.0.40
codegen_flags: <defaults>
</compile_context>

<pallas_src>
import numpy as np
import jax
import jax.numpy as jnp
from jax.experimental import pallas as pl
from jax.experimental.pallas import tpu as pltpu

# ----------------------------------------------------------------------------
# Configuration (embed_dim % 12 == 0, act='tanh', multimodal mode).
# ----------------------------------------------------------------------------
BATCH       = 2
IN_CH       = 3
IMG         = 32
PATCH       = 4
EMBED       = 24            # divisible by 12
DEPTHS      = (2, 2)
HEADS       = (2, 4)
WINDOW      = (4, 4)
MLP_RATIO   = 4.0
NUM_CLIN    = 10            # num_clinical_features == num_vision_features
NUM_CLASSES = 1
LN_EPS      = 1e-5
NEG_INF     = -1.0e9        # hard cross-window mask -> exp underflows to exactly 0


# ----------------------------------------------------------------------------
# In-kernel math helpers
# ----------------------------------------------------------------------------
def _ln(x, g, b):
    mu = jnp.mean(x, axis=-1, keepdims=True)
    var = jnp.mean((x - mu) ** 2, axis=-1, keepdims=True)
    return (x - mu) * jax.lax.rsqrt(var + LN_EPS) * g + b


# TODO(synk): switch to jax.lax.erf once its Mosaic lowering is guaranteed; this
# A&S 7.1.26 surrogate matches erf to <=1.5e-7 using only exp/div/where/mul ops.
def _erf(x):
    a1, a2, a3, a4, a5 = 0.254829592, -0.284496736, 1.421413741, -1.453152027, 1.061405429
    p = 0.3275911
    sgn = jnp.where(x >= 0.0, 1.0, -1.0)
    ax = x * sgn
    t = 1.0 / (1.0 + p * ax)
    poly = ((((a5 * t + a4) * t + a3) * t + a2) * t + a1) * t
    return sgn * (1.0 - poly * jnp.exp(-ax * ax))


def _gelu(x):
    return 0.5 * x * (1.0 + _erf(x * 0.7071067811865476))


def _full_spec(shape):
    n = len(shape)
    return pl.BlockSpec(shape, lambda i, _n=n: (0,) * _n)


# ----------------------------------------------------------------------------
# Fused Swin block kernel (one per transformer block, grid over batch images)
# ----------------------------------------------------------------------------
def _make_swin_block_kernel(num_heads, head_dim):
    scale = float(head_dim) ** -0.5

    def kernel(x_ref, n1g, n1b, qw, qb, kw, kb, vw, vb, bias,
               pw, pb, n2g, n2b, w1, b1, w2, b2, o_ref):
        x = x_ref[0]                                                    # (M, C) tokens of one image
        xn = _ln(x, n1g[...], n1b[...])

        acc = jnp.zeros_like(x)
        for h in range(num_heads):                                      # statically unrolled
            q = (jnp.dot(xn, qw[h], preferred_element_type=jnp.float32) + qb[h]) * scale
            k = jnp.dot(xn, kw[h], preferred_element_type=jnp.float32) + kb[h]
            v = jnp.dot(xn, vw[h], preferred_element_type=jnp.float32) + vb[h]
            # full-token QK^T; bias[h] = rel-pos bias + shift mask on diag window
            # blocks, -1e9 off-diagonal -> exactly per-window softmax.
            s = jax.lax.dot_general(q, k, (((1,), (1,)), ((), ())),
                                    preferred_element_type=jnp.float32)
            s = s + bias[h]
            m = jnp.max(s, axis=-1, keepdims=True)
            e = jnp.exp(s - m)
            prob = e * pl.reciprocal(jnp.sum(e, axis=-1, keepdims=True), approx=True)
            o = jnp.dot(prob, v, preferred_element_type=jnp.float32)    # (M, hd)
            acc = acc + jnp.dot(o, pw[h], preferred_element_type=jnp.float32)

        x1 = x + acc + pb[...]                                          # attention residual
        xn2 = _ln(x1, n2g[...], n2b[...])
        hmid = _gelu(jnp.dot(xn2, w1[...], preferred_element_type=jnp.float32) + b1[...])
        out = jnp.dot(hmid, w2[...], preferred_element_type=jnp.float32) + b2[...]
        o_ref[0] = (x1 + out).astype(o_ref.dtype)                       # MLP residual

    return kernel


def pl_swin_block(xw, bp, num_heads):
    """xw: (B, M, C) windowed+rolled tokens of each image -> same shape."""
    B, Mi, C = xw.shape
    hd = C // num_heads
    Hh = num_heads
    mdim = bp['mlp_w1'].shape[1]

    flops = int(2 * B * Mi * C * (12 * C) + 4 * B * Hh * Mi * Mi * hd)
    transc = int(B * (Hh * Mi * Mi + Mi * mdim))
    bytes_acc = int(4 * (2 * B * Mi * C + 2 * Hh * Mi * Mi + 14 * C * C))

    return pl.pallas_call(
        _make_swin_block_kernel(num_heads, hd),
        grid=(B,),
        in_specs=[
            pl.BlockSpec((1, Mi, C), lambda b: (b, 0, 0)),
            _full_spec((1, C)), _full_spec((1, C)),                      # norm1
            _full_spec((Hh, C, hd)), _full_spec((Hh, 1, hd)),            # q
            _full_spec((Hh, C, hd)), _full_spec((Hh, 1, hd)),            # k
            _full_spec((Hh, C, hd)), _full_spec((Hh, 1, hd)),            # v
            _full_spec((Hh, Mi, Mi)),                                    # combined attn bias
            _full_spec((Hh, hd, C)), _full_spec((1, C)),                 # proj
            _full_spec((1, C)), _full_spec((1, C)),                      # norm2
            _full_spec((C, mdim)), _full_spec((1, mdim)),                # mlp1
            _full_spec((mdim, C)), _full_spec((1, C)),                   # mlp2
        ],
        out_specs=pl.BlockSpec((1, Mi, C), lambda b: (b, 0, 0)),
        out_shape=jax.ShapeDtypeStruct((B, Mi, C), jnp.float32),
        compiler_params=pltpu.CompilerParams(dimension_semantics=("parallel",)),
        cost_estimate=pl.CostEstimate(flops=flops, transcendentals=transc,
                                      bytes_accessed=bytes_acc),
    )(xw, bp['norm1_g'], bp['norm1_b'],
      bp['q_w'], bp['q_b'], bp['k_w'], bp['k_b'], bp['v_w'], bp['v_b'],
      bp['attn_bias'],
      bp['proj_w'], bp['proj_b'],
      bp['norm2_g'], bp['norm2_b'],
      bp['mlp_w1'], bp['mlp_b1'], bp['mlp_w2'], bp['mlp_b2'])


# ----------------------------------------------------------------------------
# Fused patch-embed (conv-as-matmul + LN) and patch-merging (LN + linear) kernels
# ----------------------------------------------------------------------------
def _patch_embed_kernel(x_ref, w_ref, b_ref, g_ref, bb_ref, o_ref):
    y = jnp.dot(x_ref[...], w_ref[...], preferred_element_type=jnp.float32) + b_ref[...]
    o_ref[...] = _ln(y, g_ref[...], bb_ref[...]).astype(o_ref.dtype)


def pl_patch_embed(x2d, p):
    M, K = x2d.shape
    N = p['patch_w'].shape[1]
    return pl.pallas_call(
        _patch_embed_kernel,
        grid=(1,),
        in_specs=[_full_spec((M, K)), _full_spec((K, N)),
                  _full_spec((1, N)), _full_spec((1, N)), _full_spec((1, N))],
        out_specs=_full_spec((M, N)),
        out_shape=jax.ShapeDtypeStruct((M, N), jnp.float32),
    )(x2d, p['patch_w'], p['patch_b'], p['patch_ln_g'], p['patch_ln_b'])


def _patch_merge_kernel(x_ref, g_ref, b_ref, w_ref, o_ref):
    y = _ln(x_ref[...], g_ref[...], b_ref[...])
    o_ref[...] = jnp.dot(y, w_ref[...], preferred_element_type=jnp.float32).astype(o_ref.dtype)


def patch_merging(x, mp):
    B, H, W, C = x.shape
    assert H % 2 == 0 and W % 2 == 0  # TODO(synk): odd-spatial pad path unused at this config
    x0 = x[:, 0::2, 0::2, :]
    x1 = x[:, 1::2, 0::2, :]
    x2 = x[:, 0::2, 1::2, :]
    x3 = x[:, 1::2, 1::2, :]
    xc = jnp.concatenate([x0, x1, x2, x3], axis=-1).reshape(-1, 4 * C)
    M = xc.shape[0]
    y = pl.pallas_call(
        _patch_merge_kernel,
        grid=(1,),
        in_specs=[_full_spec((M, 4 * C)), _full_spec((1, 4 * C)),
                  _full_spec((1, 4 * C)), _full_spec((4 * C, 2 * C))],
        out_specs=_full_spec((M, 2 * C)),
        out_shape=jax.ShapeDtypeStruct((M, 2 * C), jnp.float32),
    )(xc, mp['norm_g'], mp['norm_b'], mp['red_w'])
    return y.reshape(B, H // 2, W // 2, 2 * C)


# ----------------------------------------------------------------------------
# Fused network tail: final LN + pool + head/Tanh | clinical MLP/Tanh | fusion | classifier
# ----------------------------------------------------------------------------
def _tail_kernel(xv_ref, clin_ref, ng, nb, hw, hb, cw1, cb1, cw2, cb2,
                 fw1v, fw1t, fb1, fw2, fb2, clsw, clsb, o_ref):
    xv = xv_ref[0]                                                      # (S, Cc) tokens of one image
    xn = _ln(xv, ng[...], nb[...])
    pooled = jnp.mean(xn, axis=0, keepdims=True)                        # AdaptiveAvgPool2d(1)
    vis = jnp.tanh(jnp.dot(pooled, hw[...], preferred_element_type=jnp.float32) + hb[...])
    clin = clin_ref[0]                                                  # (1, NC)
    t = _gelu(jnp.dot(clin, cw1[...], preferred_element_type=jnp.float32) + cb1[...])
    tab = jnp.tanh(jnp.dot(t, cw2[...], preferred_element_type=jnp.float32) + cb2[...])
    # concat([vis, tab]) @ fus_w1  ==  vis @ fus_w1[:NC] + tab @ fus_w1[NC:]
    f = _gelu(jnp.dot(vis, fw1v[...], preferred_element_type=jnp.float32)
              + jnp.dot(tab, fw1t[...], preferred_element_type=jnp.float32) + fb1[...])
    f2 = jnp.dot(f, fw2[...], preferred_element_type=jnp.float32) + fb2[...]
    logit = jnp.dot(f2, clsw[...], preferred_element_type=jnp.float32) + clsb[...]
    o_ref[0] = jax.nn.sigmoid(logit).astype(o_ref.dtype)


def pl_tail(x_tokens, clinical, params):
    sw = params['swin']
    B, S, Cc = x_tokens.shape
    NC = NUM_CLIN
    fd = 2 * NC
    clin3 = clinical.reshape(B, 1, NC)
    out = pl.pallas_call(
        _tail_kernel,
        grid=(B,),
        in_specs=[
            pl.BlockSpec((1, S, Cc), lambda b: (b, 0, 0)),
            pl.BlockSpec((1, 1, NC), lambda b: (b, 0, 0)),
            _full_spec((1, Cc)), _full_spec((1, Cc)),
            _full_spec((Cc, NC)), _full_spec((1, NC)),
            _full_spec((NC, 4 * NC)), _full_spec((1, 4 * NC)),
            _full_spec((4 * NC, NC)), _full_spec((1, NC)),
            _full_spec((NC, 4 * fd)), _full_spec((NC, 4 * fd)), _full_spec((1, 4 * fd)),
            _full_spec((4 * fd, fd)), _full_spec((1, fd)),
            _full_spec((fd, NUM_CLASSES)), _full_spec((1, NUM_CLASSES)),
        ],
        out_specs=pl.BlockSpec((1, 1, NUM_CLASSES), lambda b: (b, 0, 0)),
        out_shape=jax.ShapeDtypeStruct((B, 1, NUM_CLASSES), jnp.float32),
        compiler_params=pltpu.CompilerParams(dimension_semantics=("parallel",)),
    )(x_tokens, clin3,
      sw['norm_g'], sw['norm_b'], sw['head_w'], sw['head_b'],
      params['clin_w1'], params['clin_b1'], params['clin_w2'], params['clin_b2'],
      params['fus_w1_v'], params['fus_w1_t'], params['fus_b1'],
      params['fus_w2'], params['fus_b2'],
      params['cls_w'], params['cls_b'])
    return out.reshape(B, NUM_CLASSES)


# ----------------------------------------------------------------------------
# Static (trace/init-time) helpers
# ----------------------------------------------------------------------------
def _rel_pos_index(ws0, ws1):
    coords = np.stack(np.meshgrid(np.arange(ws0), np.arange(ws1), indexing='ij'))
    cf = coords.reshape(2, -1)
    rel = (cf[:, :, None] - cf[:, None, :]).transpose(1, 2, 0).astype(np.int64)
    rel[:, :, 0] += ws0 - 1
    rel[:, :, 1] += ws1 - 1
    rel[:, :, 0] *= 2 * ws1 - 1
    return rel.sum(-1)                                                  # (T, T)


def _build_attn_mask(pH, pW, window, shift):
    """torchvision-style shifted-window attention mask: (nW, T, T) of {0,-100}."""
    ws0, ws1 = window
    s0, s1 = shift
    mask = np.zeros((pH, pW), np.float32)
    h_slices = ((0, -ws0), (-ws0, -s0), (-s0, None))
    w_slices = ((0, -ws1), (-ws1, -s1), (-s1, None))
    cnt = 0
    for h in h_slices:
        for w in w_slices:
            mask[h[0]:h[1], w[0]:w[1]] = cnt
            cnt += 1
    nH, nW_ = pH // ws0, pW // ws1
    m = mask.reshape(nH, ws0, nW_, ws1).transpose(0, 2, 1, 3).reshape(nH * nW_, ws0 * ws1)
    diff = m[:, None, :] - m[:, :, None]
    return np.where(diff != 0, -100.0, 0.0).astype(np.float32)


# ----------------------------------------------------------------------------
# Model forward (eval mode)
# ----------------------------------------------------------------------------
def swin_block_fwd(x, bp, num_heads, blk_idx):
    B, H, W, C = x.shape
    ws0, ws1 = WINDOW
    assert H % ws0 == 0 and W % ws1 == 0  # TODO(synk): window-pad path unused at this config
    shifted = (blk_idx % 2 == 1)
    s0 = ws0 // 2 if (shifted and ws0 < H) else 0
    s1 = ws1 // 2 if (shifted and ws1 < W) else 0
    if s0 or s1:
        x = jnp.roll(x, shift=(-s0, -s1), axis=(1, 2))
    nH, nW = H // ws0, W // ws1
    xw = x.reshape(B, nH, ws0, nW, ws1, C).transpose(0, 1, 3, 2, 4, 5)
    xw = xw.reshape(B, nH * nW * ws0 * ws1, C)
    yw = pl_swin_block(xw, bp, num_heads)
    y = yw.reshape(B, nH, nW, ws0, ws1, C).transpose(0, 1, 3, 2, 4, 5).reshape(B, H, W, C)
    if s0 or s1:
        y = jnp.roll(y, shift=(s0, s1), axis=(1, 2))
    return y


def swin_forward(p, img):
    B, Cin, H, W = img.shape
    ps = PATCH
    Hp, Wp = H // ps, W // ps
    # Patch embedding: Conv2d(k=ps, stride=ps) == patch-flatten + matmul; LN fused in-kernel.
    x = img.reshape(B, Cin, Hp, ps, Wp, ps).transpose(0, 2, 4, 1, 3, 5)
    x = x.reshape(B * Hp * Wp, Cin * ps * ps)
    x = pl_patch_embed(x, p).reshape(B, Hp, Wp, EMBED)

    for s in range(len(DEPTHS)):
        for blk in range(DEPTHS[s]):
            x = swin_block_fwd(x, p['blocks'][s][blk], HEADS[s], blk)
        if s < len(DEPTHS) - 1:
            x = patch_merging(x, p['merge'][s])
    return x                                                            # (B, Hc, Wc, Cc)


def model_forward(params, clinical_info, img):
    x = swin_forward(params['swin'], img)
    B, Hc, Wc, Cc = x.shape
    x_tokens = x.reshape(B, Hc * Wc, Cc)
    # Fused tail: final LN + avg-pool + head Linear + Tanh, clinical MLPBlock + Tanh,
    # concat + fusion MLPBlock, classifier Linear + Sigmoid.
    return pl_tail(x_tokens, clinical_info, params)


# ----------------------------------------------------------------------------
# Deterministic synthetic parameter init (pre-arranged for the fused kernels)
# ----------------------------------------------------------------------------
def init_params(key):
    keys = iter(jax.random.split(key, 40))

    def dense(fi, fo):
        return jax.random.normal(next(keys), (fi, fo), jnp.float32) * 0.02

    T = WINDOW[0] * WINDOW[1]
    idx = _rel_pos_index(*WINDOW)

    swin = {
        'patch_w': dense(IN_CH * PATCH * PATCH, EMBED),
        'patch_b': jnp.zeros((1, EMBED), jnp.float32),
        'patch_ln_g': jnp.ones((1, EMBED), jnp.float32),
        'patch_ln_b': jnp.zeros((1, EMBED), jnp.float32),
    }

    blocks, merges = [], []
    for s, depth in enumerate(DEPTHS):
        dim = EMBED * (2 ** s)
        heads = HEADS[s]
        hd = dim // heads
        mdim = int(MLP_RATIO * dim)
        pH = pW = (IMG // PATCH) // (2 ** s)
        nWin = (pH // WINDOW[0]) * (pW // WINDOW[1])
        Mi = nWin * T
        stage_blocks = []
        for blk in range(depth):
            shifted = (blk % 2 == 1)
            s0 = WINDOW[0] // 2 if (shifted and WINDOW[0] < pH) else 0
            s1 = WINDOW[1] // 2 if (shifted and WINDOW[1] < pW) else 0

            table = jax.random.normal(
                next(keys), ((2 * WINDOW[0] - 1) * (2 * WINDOW[1] - 1), heads),
                jnp.float32) * 0.02
            rel_bias = table[idx.reshape(-1)].reshape(T, T, heads).transpose(2, 0, 1)

            if s0 or s1:
                smask = _build_attn_mask(pH, pW, WINDOW, (s0, s1))       # (nWin, T, T)
            else:
                smask = np.zeros((nWin, T, T), np.float32)

            # Combined additive bias over all M tokens of one image: rel-pos bias +
            # shift mask on diagonal window blocks, hard -1e9 mask off-diagonal.
            bias_full = jnp.full((heads, Mi, Mi), NEG_INF, jnp.float32)
            for w in range(nWin):
                sl = slice(w * T, (w + 1) * T)
                bias_full = bias_full.at[:, sl, sl].set(rel_bias + jnp.asarray(smask[w])[None])

            qkv_w = dense(dim, 3 * dim)
            qkv_b = jnp.zeros((3 * dim,), jnp.float32)
            proj_w = dense(dim, dim)
            stage_blocks.append(dict(
                norm1_g=jnp.ones((1, dim), jnp.float32), norm1_b=jnp.zeros((1, dim), jnp.float32),
                q_w=qkv_w[:, :dim].reshape(dim, heads, hd).transpose(1, 0, 2),
                k_w=qkv_w[:, dim:2 * dim].reshape(dim, heads, hd).transpose(1, 0, 2),
                v_w=qkv_w[:, 2 * dim:].reshape(dim, heads, hd).transpose(1, 0, 2),
                q_b=qkv_b[:dim].reshape(heads, 1, hd),
                k_b=qkv_b[dim:2 * dim].reshape(heads, 1, hd),
                v_b=qkv_b[2 * dim:].reshape(heads, 1, hd),
                attn_bias=bias_full,
                proj_w=proj_w.reshape(heads, hd, dim),
                proj_b=jnp.zeros((1, dim), jnp.float32),
                norm2_g=jnp.ones((1, dim), jnp.float32), norm2_b=jnp.zeros((1, dim), jnp.float32),
                mlp_w1=dense(dim, mdim), mlp_b1=jnp.zeros((1, mdim), jnp.float32),
                mlp_w2=dense(mdim, dim), mlp_b2=jnp.zeros((1, dim), jnp.float32),
            ))
        blocks.append(stage_blocks)
        if s < len(DEPTHS) - 1:
            merges.append(dict(
                norm_g=jnp.ones((1, 4 * dim), jnp.float32),
                norm_b=jnp.zeros((1, 4 * dim), jnp.float32),
                red_w=dense(4 * dim, 2 * dim)))               # Linear(4C, 2C, bias=False)

    swin['blocks'] = blocks
    swin['merge'] = merges
    final_dim = EMBED * (2 ** (len(DEPTHS) - 1))
    swin['norm_g'] = jnp.ones((1, final_dim), jnp.float32)
    swin['norm_b'] = jnp.zeros((1, final_dim), jnp.float32)
    swin['head_w'] = dense(final_dim, NUM_CLIN)
    swin['head_b'] = jnp.zeros((1, NUM_CLIN), jnp.float32)

    fd = 2 * NUM_CLIN
    fus_w1 = dense(fd, 4 * fd)
    params = dict(
        swin=swin,
        clin_w1=dense(NUM_CLIN, 4 * NUM_CLIN), clin_b1=jnp.zeros((1, 4 * NUM_CLIN), jnp.float32),
        clin_w2=dense(4 * NUM_CLIN, NUM_CLIN), clin_b2=jnp.zeros((1, NUM_CLIN), jnp.float32),
        fus_w1_v=fus_w1[:NUM_CLIN], fus_w1_t=fus_w1[NUM_CLIN:],
        fus_b1=jnp.zeros((1, 4 * fd), jnp.float32),
        fus_w2=dense(4 * fd, fd), fus_b2=jnp.zeros((1, fd), jnp.float32),
        cls_w=dense(fd, NUM_CLASSES), cls_b=jnp.zeros((1, NUM_CLASSES), jnp.float32),
    )
    return params


if __name__ == "__main__":
    key = jax.random.PRNGKey(0)
    pkey, ckey, ikey = jax.random.split(key, 3)
    params = init_params(pkey)
    clinical = jax.random.normal(ckey, (BATCH, NUM_CLIN), jnp.float32)
    img = jax.random.normal(ikey, (BATCH, IN_CH, IMG, IMG), jnp.float32)

    fwd = jax.jit(model_forward)
    out = jax.block_until_ready(fwd(params, clinical, img))

    assert out.shape == (BATCH, NUM_CLASSES), out.shape
    assert bool(jnp.all(jnp.isfinite(out)))
    assert bool(jnp.all((out > 0.0) & (out < 1.0)))   # sigmoid output range
    print("KERNEL_OK")
</pallas_src>

<mosaic_0001>
module attributes {stable_mosaic.version = 11 : i64} {
  func.func @_patch_embed_kernel(%arg0: i32, %arg1: memref<128x48xf32, #tpu.memory_space<vmem>>, %arg2: memref<48x24xf32, #tpu.memory_space<vmem>>, %arg3: memref<1x24xf32, #tpu.memory_space<vmem>>, %arg4: memref<1x24xf32, #tpu.memory_space<vmem>>, %arg5: memref<1x24xf32, #tpu.memory_space<vmem>>, %arg6: memref<128x24xf32, #tpu.memory_space<vmem>>) attributes {dimension_semantics = [#tpu.dimension_semantics<arbitrary>], iteration_bounds = array<i64: 1>, scalar_prefetch = 0 : i64, scratch_operands = 0 : i64, tpu.core_type = #tpu.core_type<tc>, window_params = [{pipeline_mode = #tpu.pipeline_mode<synchronous>, transform_indices = @transform_0, window_bounds = array<i64: 128, 48>}, {pipeline_mode = #tpu.pipeline_mode<synchronous>, transform_indices = @transform_1, window_bounds = array<i64: 48, 24>}, {pipeline_mode = #tpu.pipeline_mode<synchronous>, transform_indices = @transform_2, window_bounds = array<i64: 1, 24>}, {pipeline_mode = #tpu.pipeline_mode<synchronous>, transform_indices = @transform_3, window_bounds = array<i64: 1, 24>}, {pipeline_mode = #tpu.pipeline_mode<synchronous>, transform_indices = @transform_4, window_bounds = array<i64: 1, 24>}, {pipeline_mode = #tpu.pipeline_mode<synchronous>, transform_indices = @transform_5, window_bounds = array<i64: 128, 24>}]} {
    %c0 = arith.constant 0 : index
    %c0_0 = arith.constant 0 : index
    %0 = vector.load %arg1[%c0, %c0_0] : memref<128x48xf32, #tpu.memory_space<vmem>>, vector<128x48xf32>
    %c0_1 = arith.constant 0 : index
    %c0_2 = arith.constant 0 : index
    %1 = vector.load %arg2[%c0_1, %c0_2] : memref<48x24xf32, #tpu.memory_space<vmem>>, vector<48x24xf32>
    %cst = arith.constant dense<0.000000e+00> : vector<128x24xf32>
    %2 = tpu.matmul %0, %1, %cst {dimension_numbers = #tpu.dot_dimension_numbers<[1], [0], [0], [1], [0, 0, 1, 1], [], []>} : vector<128x48xf32>, vector<48x24xf32>, vector<128x24xf32> -> vector<128x24xf32>
    %c0_3 = arith.constant 0 : index
    %c0_4 = arith.constant 0 : index
    %3 = vector.load %arg3[%c0_3, %c0_4] : memref<1x24xf32, #tpu.memory_space<vmem>>, vector<1x24xf32>
    %4 = vector.broadcast %3 : vector<1x24xf32> to vector<128x24xf32>
    %5 = arith.addf %2, %4 : vector<128x24xf32>
    %c0_5 = arith.constant 0 : index
    %c0_6 = arith.constant 0 : index
    %6 = vector.load %arg4[%c0_5, %c0_6] : memref<1x24xf32, #tpu.memory_space<vmem>>, vector<1x24xf32>
    %c0_7 = arith.constant 0 : index
    %c0_8 = arith.constant 0 : index
    %7 = vector.load %arg5[%c0_7, %c0_8] : memref<1x24xf32, #tpu.memory_space<vmem>>, vector<1x24xf32>
    %cst_9 = arith.constant dense<0.000000e+00> : vector<128xf32>
    %8 = vector.multi_reduction <add>, %5, %cst_9 [1] : vector<128x24xf32> to vector<128xf32>
    %9 = vector.shape_cast %8 : vector<128xf32> to vector<128x1xf32>
    %cst_10 = arith.constant 2.400000e+01 : f32
    %10 = vector.broadcast %cst_10 : f32 to vector<128x1xf32>
    %11 = arith.divf %9, %10 : vector<128x1xf32>
    %12 = vector.broadcast %11 : vector<128x1xf32> to vector<128x24xf32>
    %13 = arith.subf %5, %12 : vector<128x24xf32>
    %14 = arith.mulf %13, %13 : vector<128x24xf32>
    %cst_11 = arith.constant dense<0.000000e+00> : vector<128xf32>
    %15 = vector.multi_reduction <add>, %14, %cst_11 [1] : vector<128x24xf32> to vector<128xf32>
    %16 = vector.shape_cast %15 : vector<128xf32> to vector<128x1xf32>
    %cst_12 = arith.constant 2.400000e+01 : f32
    %17 = vector.broadcast %cst_12 : f32 to vector<128x1xf32>
    %18 = arith.divf %16, %17 : vector<128x1xf32>
    %19 = vector.broadcast %11 : vector<128x1xf32> to vector<128x24xf32>
    %20 = arith.subf %5, %19 : vector<128x24xf32>
    %cst_13 = arith.constant 9.99999974E-6 : f32
    %21 = vector.broadcast %cst_13 : f32 to vector<128x1xf32>
    %22 = arith.addf %18, %21 : vector<128x1xf32>
    %23 = math.rsqrt %22 : vector<128x1xf32>
    %24 = vector.broadcast %23 : vector<128x1xf32> to vector<128x24xf32>
    %25 = arith.mulf %20, %24 : vector<128x24xf32>
    %26 = vector.broadcast %6 : vector<1x24xf32> to vector<128x24xf32>
    %27 = arith.mulf %25, %26 : vector<128x24xf32>
    %28 = vector.broadcast %7 : vector<1x24xf32> to vector<128x24xf32>
    %29 = arith.addf %27, %28 : vector<128x24xf32>
    %c0_14 = arith.constant 0 : index
    %c0_15 = arith.constant 0 : index
    %30 = vector.load %arg6[%c0_14, %c0_15] : memref<128x24xf32, #tpu.memory_space<vmem>>, vector<128x24xf32>
    tpu.vector_store %arg6[%c0_14, %c0_15], %29 {strides = array<i32>} : memref<128x24xf32, #tpu.memory_space<vmem>>, vector<128x24xf32>,
    return
  }
  func.func @transform_0(%arg0: i32) -> (i32, i32) {
    %c0_i32 = arith.constant 0 : i32
    %c0_i32_0 = arith.constant 0 : i32
    %c0_i32_1 = arith.constant 0 : i32
    return %c0_i32, %c0_i32_0 : i32, i32
  }
  func.func @transform_1(%arg0: i32) -> (i32, i32) {
    %c0_i32 = arith.constant 0 : i32
    %c0_i32_0 = arith.constant 0 : i32
    %c0_i32_1 = arith.constant 0 : i32
    return %c0_i32, %c0_i32_0 : i32, i32
  }
  func.func @transform_2(%arg0: i32) -> (i32, i32) {
    %c0_i32 = arith.constant 0 : i32
    %c0_i32_0 = arith.constant 0 : i32
    %c0_i32_1 = arith.constant 0 : i32
    return %c0_i32, %c0_i32_0 : i32, i32
  }
  func.func @transform_3(%arg0: i32) -> (i32, i32) {
    %c0_i32 = arith.constant 0 : i32
    %c0_i32_0 = arith.constant 0 : i32
    %c0_i32_1 = arith.constant 0 : i32
    return %c0_i32, %c0_i32_0 : i32, i32
  }
  func.func @transform_4(%arg0: i32) -> (i32, i32) {
    %c0_i32 = arith.constant 0 : i32
    %c0_i32_0 = arith.constant 0 : i32
    %c0_i32_1 = arith.constant 0 : i32
    return %c0_i32, %c0_i32_0 : i32, i32
  }
  func.func @transform_5(%arg0: i32) -> (i32, i32) {
    %c0_i32 = arith.constant 0 : i32
    %c0_i32_0 = arith.constant 0 : i32
    %c0_i32_1 = arith.constant 0 : i32
    return %c0_i32, %c0_i32_0 : i32, i32
  }
}

module attributes {stable_mosaic.version = 11 : i64} {
  func.func @kernel(%arg0: i32, %arg1: memref<1x64x24xf32, #tpu.memory_space<vmem>>, %arg2: memref<1x24xf32, #tpu.memory_space<vmem>>, %arg3: memref<1x24xf32, #tpu.memory_space<vmem>>, %arg4: memref<2x24x12xf32, #tpu.memory_space<vmem>>, %arg5: memref<2x1x12xf32, #tpu.memory_space<vmem>>, %arg6: memref<2x24x12xf32, #tpu.memory_space<vmem>>, %arg7: memref<2x1x12xf32, #tpu.memory_space<vmem>>, %arg8: memref<2x24x12xf32, #tpu.memory_space<vmem>>, %arg9: memref<2x1x12xf32, #tpu.memory_space<vmem>>, %arg10: memref<2x64x64xf32, #tpu.memory_space<vmem>>, %arg11: memref<2x12x24xf32, #tpu.memory_space<vmem>>, %arg12: memref<1x24xf32, #tpu.memory_space<vmem>>, %arg13: memref<1x24xf32, #tpu.memory_space<vmem>>, %arg14: memref<1x24xf32, #tpu.memory_space<vmem>>, %arg15: memref<24x96xf32, #tpu.memory_space<vmem>>, %arg16: memref<1x96xf32, #tpu.memory_space<vmem>>, %arg17: memref<96x24xf32, #tpu.memory_space<vmem>>, %arg18: memref<1x24xf32, #tpu.memory_space<vmem>>, %arg19: memref<1x64x24xf32, #tpu.memory_space<vmem>>) attributes {dimension_semantics = [#tpu.dimension_semantics<parallel>], iteration_bounds = array<i64: 2>, scalar_prefetch = 0 : i64, scratch_operands = 0 : i64, tpu.core_type = #tpu.core_type<tc>, window_params = [{transform_indices = @transform_0, window_bounds = array<i64: 1, 64, 24>}, {pipeline_mode = #tpu.pipeline_mode<synchronous>, transform_indices = @transform_1, window_bounds = array<i64: 1, 24>}, {pipeline_mode = #tpu.pipeline_mode<synchronous>, transform_indices = @transform_2, window_bounds = array<i64: 1, 24>}, {pipeline_mode = #tpu.pipeline_mode<synchronous>, transform_indices = @transform_3, window_bounds = array<i64: 2, 24, 12>}, {pipeline_mode = #tpu.pipeline_mode<synchronous>, transform_indices = @transform_4, window_bounds = array<i64: 2, 1, 12>}, {pipeline_mode = #tpu.pipeline_mode<synchronous>, transform_indices = @transform_5, window_bounds = array<i64: 2, 24, 12>}, {pipeline_mode = #tpu.pipeline_mode<synchronous>, transform_indices = @transform_6, window_bounds = array<i64: 2, 1, 12>}, {pipeline_mode = #tpu.pipeline_mode<synchronous>, transform_indices = @transform_7, window_bounds = array<i64: 2, 24, 12>}, {pipeline_mode = #tpu.pipeline_mode<synchronous>, transform_indices = @transform_8, window_bounds = array<i64: 2, 1, 12>}, {pipeline_mode = #tpu.pipeline_mode<synchronous>, transform_indices = @transform_9, window_bounds = array<i64: 2, 64, 64>}, {pipeline_mode = #tpu.pipeline_mode<synchronous>, transform_indices = @transform_10, window_bounds = array<i64: 2, 12, 24>}, {pipeline_mode = #tpu.pipeline_mode<synchronous>, transform_indices = @transform_11, window_bounds = array<i64: 1, 24>}, {pipeline_mode = #tpu.pipeline_mode<synchronous>, transform_indices = @transform_12, window_bounds = array<i64: 1, 24>}, {pipeline_mode = #tpu.pipeline_mode<synchronous>, transform_indices = @transform_13, window_bounds = array<i64: 1, 24>}, {pipeline_mode = #tpu.pipeline_mode<synchronous>, transform_indices = @transform_14, window_bounds = array<i64: 24, 96>}, {pipeline_mode = #tpu.pipeline_mode<synchronous>, transform_indices = @transform_15, window_bounds = array<i64: 1, 96>}, {pipeline_mode = #tpu.pipeline_mode<synchronous>, transform_indices = @transform_16, window_bounds = array<i64: 96, 24>}, {pipeline_mode = #tpu.pipeline_mode<synchronous>, transform_indices = @transform_17, window_bounds = array<i64: 1, 24>}, {transform_indices = @transform_18, window_bounds = array<i64: 1, 64, 24>}]} {
    %c0 = arith.constant 0 : index
    %c0_0 = arith.constant 0 : index
    %c0_1 = arith.constant 0 : index
    %0 = vector.load %arg1[%c0, %c0_0, %c0_1] : memref<1x64x24xf32, #tpu.memory_space<vmem>>, vector<1x64x24xf32>
    %1 = vector.shape_cast %0 : vector<1x64x24xf32> to vector<64x24xf32>
    %c0_2 = arith.constant 0 : index
    %c0_3 = arith.constant 0 : index
    %2 = vector.load %arg2[%c0_2, %c0_3] : memref<1x24xf32, #tpu.memory_space<vmem>>, vector<1x24xf32>
    %c0_4 = arith.constant 0 : index
    %c0_5 = arith.constant 0 : index
    %3 = vector.load %arg3[%c0_4, %c0_5] : memref<1x24xf32, #tpu.memory_space<vmem>>, vector<1x24xf32>
    %cst = arith.constant dense<0.000000e+00> : vector<64xf32>
    %4 = vector.multi_reduction <add>, %1, %cst [1] : vector<64x24xf32> to vector<64xf32>
    %5 = vector.shape_cast %4 : vector<64xf32> to vector<64x1xf32>
    %cst_6 = arith.constant 2.400000e+01 : f32
    %6 = vector.broadcast %cst_6 : f32 to vector<64x1xf32>
    %7 = arith.divf %5, %6 : vector<64x1xf32>
    %8 = vector.broadcast %7 : vector<64x1xf32> to vector<64x24xf32>
    %9 = arith.subf %1, %8 : vector<64x24xf32>
    %10 = arith.mulf %9, %9 : vector<64x24xf32>
    %cst_7 = arith.constant dense<0.000000e+00> : vector<64xf32>
    %11 = vector.multi_reduction <add>, %10, %cst_7 [1] : vector<64x24xf32> to vector<64xf32>
    %12 = vector.shape_cast %11 : vector<64xf32> to vector<64x1xf32>
    %cst_8 = arith.constant 2.400000e+01 : f32
    %13 = vector.broadcast %cst_8 : f32 to vector<64x1xf32>
    %14 = arith.divf %12, %13 : vector<64x1xf32>
    %15 = vector.broadcast %7 : vector<64x1xf32> to vector<64x24xf32>
    %16 = arith.subf %1, %15 : vector<64x24xf32>
    %cst_9 = arith.constant 9.99999974E-6 : f32
    %17 = vector.broadcast %cst_9 : f32 to vector<64x1xf32>
    %18 = arith.addf %14, %17 : vector<64x1xf32>
    %19 = math.rsqrt %18 : vector<64x1xf32>
    %20 = vector.broadcast %19 : vector<64x1xf32> to vector<64x24xf32>
    %21 = arith.mulf %16, %20 : vector<64x24xf32>
    %22 = vector.broadcast %2 : vector<1x24xf32> to vector<64x24xf32>
    %23 = arith.mulf %21, %22 : vector<64x24xf32>
    %24 = vector.broadcast %3 : vector<1x24xf32> to vector<64x24xf32>
    %25 = arith.addf %23, %24 : vector<64x24xf32>
    %cst_10 = arith.constant 0.000000e+00 : f32
    %26 = vector.broadcast %cst_10 : f32 to vector<64x24xf32>
    %c0_11 = arith.constant 0 : index
    %c0_12 = arith.constant 0 : index
    %c0_13 = arith.constant 0 : index
    %27 = vector.load %arg4[%c0_11, %c0_12, %c0_13] : memref<2x24x12xf32, #tpu.memory_space<vmem>>, vector<1x24x12xf32>
    %28 = vector.shape_cast %27 : vector<1x24x12xf32> to vector<24x12xf32>
    %cst_14 = arith.constant dense<0.000000e+00> : vector<64x12xf32>
    %29 = tpu.matmul %25, %28, %cst_14 {dimension_numbers = #tpu.dot_dimension_numbers<[1], [0], [0], [1], [0, 0, 1, 1], [], []>} : vector<64x24xf32>, vector<24x12xf32>, vector<64x12xf32> -> vector<64x12xf32>
    %c0_15 = arith.constant 0 : index
    %c0_16 = arith.constant 0 : index
    %c0_17 = arith.constant 0 : index
    %30 = vector.load %arg5[%c0_15, %c0_16, %c0_17] : memref<2x1x12xf32, #tpu.memory_space<vmem>>, vector<1x1x12xf32>
    %31 = vector.shape_cast %30 : vector<1x1x12xf32> to vector<1x12xf32>
    %32 = vector.broadcast %31 : vector<1x12xf32> to vector<64x12xf32>
    %33 = arith.addf %29, %32 : vector<64x12xf32>
    %cst_18 = arith.constant 0.288675129 : f32
    %34 = vector.broadcast %cst_18 : f32 to vector<64x12xf32>
    %35 = arith.mulf %33, %34 : vector<64x12xf32>
    %c0_19 = arith.constant 0 : index
    %c0_20 = arith.constant 0 : index
    %c0_21 = arith.constant 0 : index
    %36 = vector.load %arg6[%c0_19, %c0_20, %c0_21] : memref<2x24x12xf32, #tpu.memory_space<vmem>>, vector<1x24x12xf32>
    %37 = vector.shape_cast %36 : vector<1x24x12xf32> to vector<24x12xf32>
    %cst_22 = arith.constant dense<0.000000e+00> : vector<64x12xf32>
    %38 = tpu.matmul %25, %37, %cst_22 {dimension_numbers = #tpu.dot_dimension_numbers<[1], [0], [0], [1], [0, 0, 1, 1], [], []>} : vector<64x24xf32>, vector<24x12xf32>, vector<64x12xf32> -> vector<64x12xf32>
    %c0_23 = arith.constant 0 : index
    %c0_24 = arith.constant 0 : index
    %c0_25 = arith.constant 0 : index
    %39 = vector.load %arg7[%c0_23, %c0_24, %c0_25] : memref<2x1x12xf32, #tpu.memory_space<vmem>>, vector<1x1x12xf32>
    %40 = vector.shape_cast %39 : vector<1x1x12xf32> to vector<1x12xf32>
    %41 = vector.broadcast %40 : vector<1x12xf32> to vector<64x12xf32>
    %42 = arith.addf %38, %41 : vector<64x12xf32>
    %c0_26 = arith.constant 0 : index
    %c0_27 = arith.constant 0 : index
    %c0_28 = arith.constant 0 : index
    %43 = vector.load %arg8[%c0_26, %c0_27, %c0_28] : memref<2x24x12xf32, #tpu.memory_space<vmem>>, vector<1x24x12xf32>
    %44 = vector.shape_cast %43 : vector<1x24x12xf32> to vector<24x12xf32>
    %cst_29 = arith.constant dense<0.000000e+00> : vector<64x12xf32>
    %45 = tpu.matmul %25, %44, %cst_29 {dimension_numbers = #tpu.dot_dimension_numbers<[1], [0], [0], [1], [0, 0, 1, 1], [], []>} : vector<64x24xf32>, vector<24x12xf32>, vector<64x12xf32> -> vector<64x12xf32>
    %c0_30 = arith.constant 0 : index
    %c0_31 = arith.constant 0 : index
    %c0_32 = arith.constant 0 : index
    %46 = vector.load %arg9[%c0_30, %c0_31, %c0_32] : memref<2x1x12xf32, #tpu.memory_space<vmem>>, vector<1x1x12xf32>
    %47 = vector.shape_cast %46 : vector<1x1x12xf32> to vector<1x12xf32>
    %48 = vector.broadcast %47 : vector<1x12xf32> to vector<64x12xf32>
    %49 = arith.addf %45, %48 : vector<64x12xf32>
    %cst_33 = arith.constant dense<0.000000e+00> : vector<64x64xf32>
    %50 = tpu.matmul %35, %42, %cst_33 {dimension_numbers = #tpu.dot_dimension_numbers<[1], [1], [0], [0], [0, 0, 1, 0], [], []>} : vector<64x12xf32>, vector<64x12xf32>, vector<64x64xf32> -> vector<64x64xf32>
    %c0_34 = arith.constant 0 : index
    %c0_35 = arith.constant 0 : index
    %c0_36 = arith.constant 0 : index
    %51 = vector.load %arg10[%c0_34, %c0_35, %c0_36] : memref<2x64x64xf32, #tpu.memory_space<vmem>>, vector<1x64x64xf32>
    %52 = vector.shape_cast %51 : vector<1x64x64xf32> to vector<64x64xf32>
    %53 = arith.addf %50, %52 : vector<64x64xf32>
    %cst_37 = arith.constant dense<0xFF800000> : vector<64xf32>
    %54 = vector.multi_reduction <maximumf>, %53, %cst_37 [1] : vector<64x64xf32> to vector<64xf32>
    %55 = vector.shape_cast %54 : vector<64xf32> to vector<64x1xf32>
    %56 = vector.broadcast %55 : vector<64x1xf32> to vector<64x64xf32>
    %57 = arith.subf %53, %56 : vector<64x64xf32>
    %58 = math.exp %57 : vector<64x64xf32>
    %cst_38 = arith.constant dense<0.000000e+00> : vector<64xf32>
    %59 = vector.multi_reduction <add>, %58, %cst_38 [1] : vector<64x64xf32> to vector<64xf32>
    %60 = vector.shape_cast %59 : vector<64xf32> to vector<64x1xf32>
    %61 = tpu.reciprocal %60 {approx = true} : vector<64x1xf32> -> vector<64x1xf32>
    %62 = vector.broadcast %61 : vector<64x1xf32> to vector<64x64xf32>
    %63 = arith.mulf %58, %62 : vector<64x64xf32>
    %cst_39 = arith.constant dense<0.000000e+00> : vector<64x12xf32>
    %64 = tpu.matmul %63, %49, %cst_39 {dimension_numbers = #tpu.dot_dimension_numbers<[1], [0], [0], [1], [0, 0, 1, 1], [], []>} : vector<64x64xf32>, vector<64x12xf32>, vector<64x12xf32> -> vector<64x12xf32>
    %c0_40 = arith.constant 0 : index
    %c0_41 = arith.constant 0 : index
    %c0_42 = arith.constant 0 : index
    %65 = vector.load %arg11[%c0_40, %c0_41, %c0_42] : memref<2x12x24xf32, #tpu.memory_space<vmem>>, vector<1x12x24xf32>
    %66 = vector.shape_cast %65 : vector<1x12x24xf32> to vector<12x24xf32>
    %cst_43 = arith.constant dense<0.000000e+00> : vector<64x24xf32>
    %67 = tpu.matmul %64, %66, %cst_43 {dimension_numbers = #tpu.dot_dimension_numbers<[1], [0], [0], [1], [0, 0, 1, 1], [], []>} : vector<64x12xf32>, vector<12x24xf32>, vector<64x24xf32> -> vector<64x24xf32>
    %68 = arith.addf %26, %67 : vector<64x24xf32>
    %c1 = arith.constant 1 : index
    %c0_44 = arith.constant 0 : index
    %c0_45 = arith.constant 0 : index
    %69 = vector.load %arg4[%c1, %c0_44, %c0_45] : memref<2x24x12xf32, #tpu.memory_space<vmem>>, vector<1x24x12xf32>
    %70 = vector.shape_cast %69 : vector<1x24x12xf32> to vector<24x12xf32>
    %cst_46 = arith.constant dense<0.000000e+00> : vector<64x12xf32>
    %71 = tpu.matmul %25, %70, %cst_46 {dimension_numbers = #tpu.dot_dimension_numbers<[1], [0], [0], [1], [0, 0, 1, 1], [], []>} : vector<64x24xf32>, vector<24x12xf32>, vector<64x12xf32> -> vector<64x12xf32>
    %c1_47 = arith.constant 1 : index
    %c0_48 = arith.constant 0 : index
    %c0_49 = arith.constant 0 : index
    %72 = vector.load %arg5[%c1_47, %c0_48, %c0_49] : memref<2x1x12xf32, #tpu.memory_space<vmem>>, vector<1x1x12xf32>
    %73 = vector.shape_cast %72 : vector<1x1x12xf32> to vector<1x12xf32>
    %74 = vector.broadcast %73 : vector<1x12xf32> to vector<64x12xf32>
    %75 = arith.addf %71, %74 : vector<64x12xf32>
    %cst_50 = arith.constant 0.288675129 : f32
    %76 = vector.broadcast %cst_50 : f32 to vector<64x12xf32>
    %77 = arith.mulf %75, %76 : vector<64x12xf32>
    %c1_51 = arith.constant 1 : index
    %c0_52 = arith.constant 0 : index
    %c0_53 = arith.constant 0 : index
    %78 = vector.load %arg6[%c1_51, %c0_52, %c0_53] : memref<2x24x12xf32, #tpu.memory_space<vmem>>, vector<1x24x12xf32>
    %79 = vector.shape_cast %78 : vector<1x24x12xf32> to vector<24x12xf32>
    %cst_54 = arith.constant dense<0.000000e+00> : vector<64x12xf32>
    %80 = tpu.matmul %25, %79, %cst_54 {dimension_numbers = #tpu.dot_dimension_numbers<[1], [0], [0], [1], [0, 0, 1, 1], [], []>} : vector<64x24xf32>, vector<24x12xf32>, vector<64x12xf32> -> vector<64x12xf32>
    %c1_55 = arith.constant 1 : index
    %c0_56 = arith.constant 0 : index
    %c0_57 = arith.constant 0 : index
    %81 = vector.load %arg7[%c1_55, %c0_56, %c0_57] : memref<2x1x12xf32, #tpu.memory_space<vmem>>, vector<1x1x12xf32>
    %82 = vector.shape_cast %81 : vector<1x1x12xf32> to vector<1x12xf32>
    %83 = vector.broadcast %82 : vector<1x12xf32> to vector<64x12xf32>
    %84 = arith.addf %80, %83 : vector<64x12xf32>
    %c1_58 = arith.constant 1 : index
    %c0_59 = arith.constant 0 : index
    %c0_60 = arith.constant 0 : index
    %85 = vector.load %arg8[%c1_58, %c0_59, %c0_60] : memref<2x24x12xf32, #tpu.memory_space<vmem>>, vector<1x24x12xf32>
    %86 = vector.shape_cast %85 : vector<1x24x12xf32> to vector<24x12xf32>
    %cst_61 = arith.constant dense<0.000000e+00> : vector<64x12xf32>
    %87 = tpu.matmul %25, %86, %cst_61 {dimension_numbers = #tpu.dot_dimension_numbers<[1], [0], [0], [1], [0, 0, 1, 1], [], []>} : vector<64x24xf32>, vector<24x12xf32>, vector<64x12xf32> -> vector<64x12xf32>
    %c1_62 = arith.constant 1 : index
    %c0_63 = arith.constant 0 : index
    %c0_64 = arith.constant 0 : index
    %88 = vector.load %arg9[%c1_62, %c0_63, %c0_64] : memref<2x1x12xf32, #tpu.memory_space<vmem>>, vector<1x1x12xf32>
    %89 = vector.shape_cast %88 : vector<1x1x12xf32> to vector<1x12xf32>
    %90 = vector.broadcast %89 : vector<1x12xf32> to vector<64x12xf32>
    %91 = arith.addf %87, %90 : vector<64x12xf32>
    %cst_65 = arith.constant dense<0.000000e+00> : vector<64x64xf32>
    %92 = tpu.matmul %77, %84, %cst_65 {dimension_numbers = #tpu.dot_dimension_numbers<[1], [1], [0], [0], [0, 0, 1, 0], [], []>} : vector<64x12xf32>, vector<64x12xf32>, vector<64x64xf32> -> vector<64x64xf32>
    %c1_66 = arith.constant 1 : index
    %c0_67 = arith.constant 0 : index
    %c0_68 = arith.constant 0 : index
    %93 = vector.load %arg10[%c1_66, %c0_67, %c0_68] : memref<2x64x64xf32, #tpu.memory_space<vmem>>, vector<1x64x64xf32>
    %94 = vector.shape_cast %93 : vector<1x64x64xf32> to vector<64x64xf32>
    %95 = arith.addf %92, %94 : vector<64x64xf32>
    %cst_69 = arith.constant dense<0xFF800000> : vector<64xf32>
    %96 = vector.multi_reduction <maximumf>, %95, %cst_69 [1] : vector<64x64xf32> to vector<64xf32>
    %97 = vector.shape_cast %96 : vector<64xf32> to vector<64x1xf32>
    %98 = vector.broadcast %97 : vector<64x1xf32> to vector<64x64xf32>
    %99 = arith.subf %95, %98 : vector<64x64xf32>
    %100 = math.exp %99 : vector<64x64xf32>
    %cst_70 = arith.constant dense<0.000000e+00> : vector<64xf32>
    %101 = vector.multi_reduction <add>, %100, %cst_70 [1] : vector<64x64xf32> to vector<64xf32>
    %102 = vector.shape_cast %101 : vector<64xf32> to vector<64x1xf32>
    %103 = tpu.reciprocal %102 {approx = true} : vector<64x1xf32> -> vector<64x1xf32>
    %104 = vector.broadcast %103 : vector<64x1xf32> to vector<64x64xf32>
    %105 = arith.mulf %100, %104 : vector<64x64xf32>
    %cst_71 = arith.constant dense<0.000000e+00> : vector<64x12xf32>
    %106 = tpu.matmul %105, %91, %cst_71 {dimension_numbers = #tpu.dot_dimension_numbers<[1], [0], [0], [1], [0, 0, 1, 1], [], []>} : vector<64x64xf32>, vector<64x12xf32>, vector<64x12xf32> -> vector<64x12xf32>
    %c1_72 = arith.constant 1 : index
    %c0_73 = arith.constant 0 : index
    %c0_74 = arith.constant 0 : index
    %107 = vector.load %arg11[%c1_72, %c0_73, %c0_74] : memref<2x12x24xf32, #tpu.memory_space<vmem>>, vector<1x12x24xf32>
    %108 = vector.shape_cast %107 : vector<1x12x24xf32> to vector<12x24xf32>
    %cst_75 = arith.constant dense<0.000000e+00> : vector<64x24xf32>
    %109 = tpu.matmul %106, %108, %cst_75 {dimension_numbers = #tpu.dot_dimension_numbers<[1], [0], [0], [1], [0, 0, 1, 1], [], []>} : vector<64x12xf32>, vector<12x24xf32>, vector<64x24xf32> -> vector<64x24xf32>
    %110 = arith.addf %68, %109 : vector<64x24xf32>
    %111 = arith.addf %1, %110 : vector<64x24xf32>
    %c0_76 = arith.constant 0 : index
    %c0_77 = arith.constant 0 : index
    %112 = vector.load %arg12[%c0_76, %c0_77] : memref<1x24xf32, #tpu.memory_space<vmem>>, vector<1x24xf32>
    %113 = vector.broadcast %112 : vector<1x24xf32> to vector<64x24xf32>
    %114 = arith.addf %111, %113 : vector<64x24xf32>
    %c0_78 = arith.constant 0 : index
    %c0_79 = arith.constant 0 : index
    %115 = vector.load %arg13[%c0_78, %c0_79] : memref<1x24xf32, #tpu.memory_space<vmem>>, vector<1x24xf32>
    %c0_80 = arith.constant 0 : index
    %c0_81 = arith.constant 0 : index
    %116 = vector.load %arg14[%c0_80, %c0_81] : memref<1x24xf32, #tpu.memory_space<vmem>>, vector<1x24xf32>
    %cst_82 = arith.constant dense<0.000000e+00> : vector<64xf32>
    %117 = vector.multi_reduction <add>, %114, %cst_82 [1] : vector<64x24xf32> to vector<64xf32>
    %118 = vector.shape_cast %117 : vector<64xf32> to vector<64x1xf32>
    %cst_83 = arith.constant 2.400000e+01 : f32
    %119 = vector.broadcast %cst_83 : f32 to vector<64x1xf32>
    %120 = arith.divf %118, %119 : vector<64x1xf32>
    %121 = vector.broadcast %120 : vector<64x1xf32> to vector<64x24xf32>
    %122 = arith.subf %114, %121 : vector<64x24xf32>
    %123 = arith.mulf %122, %122 : vector<64x24xf32>
    %cst_84 = arith.constant dense<0.000000e+00> : vector<64xf32>
    %124 = vector.multi_reduction <add>, %123, %cst_84 [1] : vector<64x24xf32> to vector<64xf32>
    %125 = vector.shape_cast %124 : vector<64xf32> to vector<64x1xf32>
    %cst_85 = arith.constant 2.400000e+01 : f32
    %126 = vector.broadcast %cst_85 : f32 to vector<64x1xf32>
    %127 = arith.divf %125, %126 : vector<64x1xf32>
    %128 = vector.broadcast %120 : vector<64x1xf32> to vector<64x24xf32>
    %129 = arith.subf %114, %128 : vector<64x24xf32>
    %cst_86 = arith.constant 9.99999974E-6 : f32
    %130 = vector.broadcast %cst_86 : f32 to vector<64x1xf32>
    %131 = arith.addf %127, %130 : vector<64x1xf32>
    %132 = math.rsqrt %131 : vector<64x1xf32>
    %133 = vector.broadcast %132 : vector<64x1xf32> to vector<64x24xf32>
    %134 = arith.mulf %129, %133 : vector<64x24xf32>
    %135 = vector.broadcast %115 : vector<1x24xf32> to vector<64x24xf32>
    %136 = arith.mulf %134, %135 : vector<64x24xf32>
    %137 = vector.broadcast %116 : vector<1x24xf32> to vector<64x24xf32>
    %138 = arith.addf %136, %137 : vector<64x24xf32>
    %c0_87 = arith.constant 0 : index
    %c0_88 = arith.constant 0 : index
    %139 = vector.load %arg15[%c0_87, %c0_88] : memref<24x96xf32, #tpu.memory_space<vmem>>, vector<24x96xf32>
    %cst_89 = arith.constant dense<0.000000e+00> : vector<64x96xf32>
    %140 = tpu.matmul %138, %139, %cst_89 {dimension_numbers = #tpu.dot_dimension_numbers<[1], [0], [0], [1], [0, 0, 1, 1], [], []>} : vector<64x24xf32>, vector<24x96xf32>, vector<64x96xf32> -> vector<64x96xf32>
    %c0_90 = arith.constant 0 : index
    %c0_91 = arith.constant 0 : index
    %141 = vector.load %arg16[%c0_90, %c0_91] : memref<1x96xf32, #tpu.memory_space<vmem>>, vector<1x96xf32>
    %142 = vector.broadcast %141 : vector<1x96xf32> to vector<64x96xf32>
    %143 = arith.addf %140, %142 : vector<64x96xf32>
    %cst_92 = arith.constant 5.000000e-01 : f32
    %144 = vector.broadcast %cst_92 : f32 to vector<64x96xf32>
    %145 = arith.mulf %144, %143 : vector<64x96xf32>
    %cst_93 = arith.constant 0.707106769 : f32
    %146 = vector.broadcast %cst_93 : f32 to vector<64x96xf32>
    %147 = arith.mulf %143, %146 : vector<64x96xf32>
    %cst_94 = arith.constant 0.000000e+00 : f32
    %148 = vector.broadcast %cst_94 : f32 to vector<64x96xf32>
    %149 = arith.cmpf oge, %147, %148 : vector<64x96xf32>
    %cst_95 = arith.constant 1.000000e+00 : f32
    %cst_96 = arith.constant -1.000000e+00 : f32
    %150 = vector.broadcast %cst_95 : f32 to vector<64x96xf32>
    %151 = vector.broadcast %cst_96 : f32 to vector<64x96xf32>
    %152 = arith.select %149, %150, %151 : vector<64x96xi1>, vector<64x96xf32>
    %153 = arith.mulf %147, %152 : vector<64x96xf32>
    %cst_97 = arith.constant 0.327591091 : f32
    %154 = vector.broadcast %cst_97 : f32 to vector<64x96xf32>
    %155 = arith.mulf %154, %153 : vector<64x96xf32>
    %cst_98 = arith.constant 1.000000e+00 : f32
    %156 = vector.broadcast %cst_98 : f32 to vector<64x96xf32>
    %157 = arith.addf %156, %155 : vector<64x96xf32>
    %cst_99 = arith.constant 1.000000e+00 : f32
    %158 = vector.broadcast %cst_99 : f32 to vector<64x96xf32>
    %159 = arith.divf %158, %157 : vector<64x96xf32>
    %cst_100 = arith.constant 1.06140542 : f32
    %160 = vector.broadcast %cst_100 : f32 to vector<64x96xf32>
    %161 = arith.mulf %160, %159 : vector<64x96xf32>
    %cst_101 = arith.constant -1.45315206 : f32
    %162 = vector.broadcast %cst_101 : f32 to vector<64x96xf32>
    %163 = arith.addf %161, %162 : vector<64x96xf32>
    %164 = arith.mulf %163, %159 : vector<64x96xf32>
    %cst_102 = arith.constant 1.42141378 : f32
    %165 = vector.broadcast %cst_102 : f32 to vector<64x96xf32>
    %166 = arith.addf %164, %165 : vector<64x96xf32>
    %167 = arith.mulf %166, %159 : vector<64x96xf32>
    %cst_103 = arith.constant -0.284496725 : f32
    %168 = vector.broadcast %cst_103 : f32 to vector<64x96xf32>
    %169 = arith.addf %167, %168 : vector<64x96xf32>
    %170 = arith.mulf %169, %159 : vector<64x96xf32>
    %cst_104 = arith.constant 0.254829586 : f32
    %171 = vector.broadcast %cst_104 : f32 to vector<64x96xf32>
    %172 = arith.addf %170, %171 : vector<64x96xf32>
    %173 = arith.mulf %172, %159 : vector<64x96xf32>
    %cst_105 = arith.constant 0.000000e+00 : f32
    %174 = vector.broadcast %cst_105 : f32 to vector<64x96xf32>
    %175 = arith.subf %174, %153 : vector<64x96xf32>
    %176 = arith.mulf %175, %153 : vector<64x96xf32>
    %177 = math.exp %176 : vector<64x96xf32>
    %178 = arith.mulf %173, %177 : vector<64x96xf32>
    %cst_106 = arith.constant 1.000000e+00 : f32
    %179 = vector.broadcast %cst_106 : f32 to vector<64x96xf32>
    %180 = arith.subf %179, %178 : vector<64x96xf32>
    %181 = arith.mulf %152, %180 : vector<64x96xf32>
    %cst_107 = arith.constant 1.000000e+00 : f32
    %182 = vector.broadcast %cst_107 : f32 to vector<64x96xf32>
    %183 = arith.addf %182, %181 : vector<64x96xf32>
    %184 = arith.mulf %145, %183 : vector<64x96xf32>
    %c0_108 = arith.constant 0 : index
    %c0_109 = arith.constant 0 : index
    %185 = vector.load %arg17[%c0_108, %c0_109] : memref<96x24xf32, #tpu.memory_space<vmem>>, vector<96x24xf32>
    %cst_110 = arith.constant dense<0.000000e+00> : vector<64x24xf32>
    %186 = tpu.matmul %184, %185, %cst_110 {dimension_numbers = #tpu.dot_dimension_numbers<[1], [0], [0], [1], [0, 0, 1, 1], [], []>} : vector<64x96xf32>, vector<96x24xf32>, vector<64x24xf32> -> vector<64x24xf32>
    %c0_111 = arith.constant 0 : index
    %c0_112 = arith.constant 0 : index
    %187 = vector.load %arg18[%c0_111, %c0_112] : memref<1x24xf32, #tpu.memory_space<vmem>>, vector<1x24xf32>
    %188 = vector.broadcast %187 : vector<1x24xf32> to vector<64x24xf32>
    %189 = arith.addf %186, %188 : vector<64x24xf32>
    %190 = arith.addf %114, %189 : vector<64x24xf32>
    %c0_113 = arith.constant 0 : index
    %c0_114 = arith.constant 0 : index
    %c0_115 = arith.constant 0 : index
    %191 = vector.load %arg19[%c0_113, %c0_114, %c0_115] : memref<1x64x24xf32, #tpu.memory_space<vmem>>, vector<1x64x24xf32>
    %192 = vector.shape_cast %191 : vector<1x64x24xf32> to vector<64x24xf32>
    %193 = vector.shape_cast %190 : vector<64x24xf32> to vector<1x64x24xf32>
    tpu.vector_store %arg19[%c0_113, %c0_114, %c0_115], %193 {strides = array<i32>} : memref<1x64x24xf32, #tpu.memory_space<vmem>>, vector<1x64x24xf32>,
    return
  }
  func.func @transform_0(%arg0: i32) -> (i32, i32, i32) {
    %c0_i32 = arith.constant 0 : i32
    %c0_i32_0 = arith.constant 0 : i32
    %c0_i32_1 = arith.constant 0 : i32
    return %arg0, %c0_i32, %c0_i32_0 : i32, i32, i32
  }
  func.func @transform_1(%arg0: i32) -> (i32, i32) {
    %c0_i32 = arith.constant 0 : i32
    %c0_i32_0 = arith.constant 0 : i32
    %c0_i32_1 = arith.constant 0 : i32
    return %c0_i32, %c0_i32_0 : i32, i32
  }
  func.func @transform_2(%arg0: i32) -> (i32, i32) {
    %c0_i32 = arith.constant 0 : i32
    %c0_i32_0 = arith.constant 0 : i32
    %c0_i32_1 = arith.constant 0 : i32
    return %c0_i32, %c0_i32_0 : i32, i32
  }
  func.func @transform_3(%arg0: i32) -> (i32, i32, i32) {
    %c0_i32 = arith.constant 0 : i32
    %c0_i32_0 = arith.constant 0 : i32
    %c0_i32_1 = arith.constant 0 : i32
    %c0_i32_2 = arith.constant 0 : i32
    return %c0_i32, %c0_i32_0, %c0_i32_1 : i32, i32, i32
  }
  func.func @transform_4(%arg0: i32) -> (i32, i32, i32) {
    %c0_i32 = arith.constant 0 : i32
    %c0_i32_0 = arith.constant 0 : i32
    %c0_i32_1 = arith.constant 0 : i32
    %c0_i32_2 = arith.constant 0 : i32
    return %c0_i32, %c0_i32_0, %c0_i32_1 : i32, i32, i32
  }
  func.func @transform_5(%arg0: i32) -> (i32, i32, i32) {
    %c0_i32 = arith.constant 0 : i32
    %c0_i32_0 = arith.constant 0 : i32
    %c0_i32_1 = arith.constant 0 : i32
    %c0_i32_2 = arith.constant 0 : i32
    return %c0_i32, %c0_i32_0, %c0_i32_1 : i32, i32, i32
  }
  func.func @transform_6(%arg0: i32) -> (i32, i32, i32) {
    %c0_i32 = arith.constant 0 : i32
    %c0_i32_0 = arith.constant 0 : i32
    %c0_i32_1 = arith.constant 0 : i32
    %c0_i32_2 = arith.constant 0 : i32
    return %c0_i32, %c0_i32_0, %c0_i32_1 : i32, i32, i32
  }
  func.func @transform_7(%arg0: i32) -> (i32, i32, i32) {
    %c0_i32 = arith.constant 0 : i32
    %c0_i32_0 = arith.constant 0 : i32
    %c0_i32_1 = arith.constant 0 : i32
    %c0_i32_2 = arith.constant 0 : i32
    return %c0_i32, %c0_i32_0, %c0_i32_1 : i32, i32, i32
  }
  func.func @transform_8(%arg0: i32) -> (i32, i32, i32) {
    %c0_i32 = arith.constant 0 : i32
    %c0_i32_0 = arith.constant 0 : i32
    %c0_i32_1 = arith.constant 0 : i32
    %c0_i32_2 = arith.constant 0 : i32
    return %c0_i32, %c0_i32_0, %c0_i32_1 : i32, i32, i32
  }
  func.func @transform_9(%arg0: i32) -> (i32, i32, i32) {
    %c0_i32 = arith.constant 0 : i32
    %c0_i32_0 = arith.constant 0 : i32
    %c0_i32_1 = arith.constant 0 : i32
    %c0_i32_2 = arith.constant 0 : i32
    return %c0_i32, %c0_i32_0, %c0_i32_1 : i32, i32, i32
  }
  func.func @transform_10(%arg0: i32) -> (i32, i32, i32) {
    %c0_i32 = arith.constant 0 : i32
    %c0_i32_0 = arith.constant 0 : i32
    %c0_i32_1 = arith.constant 0 : i32
    %c0_i32_2 = arith.constant 0 : i32
    return %c0_i32, %c0_i32_0, %c0_i32_1 : i32, i32, i32
  }
  func.func @transform_11(%arg0: i32) -> (i32, i32) {
    %c0_i32 = arith.constant 0 : i32
    %c0_i32_0 = arith.constant 0 : i32
    %c0_i32_1 = arith.constant 0 : i32
    return %c0_i32, %c0_i32_0 : i32, i32
  }
  func.func @transform_12(%arg0: i32) -> (i32, i32) {
    %c0_i32 = arith.constant 0 : i32
    %c0_i32_0 = arith.constant 0 : i32
    %c0_i32_1 = arith.constant 0 : i32
    return %c0_i32, %c0_i32_0 : i32, i32
  }
  func.func @transform_13(%arg0: i32) -> (i32, i32) {
    %c0_i32 = arith.constant 0 : i32
    %c0_i32_0 = arith.constant 0 : i32
    %c0_i32_1 = arith.constant 0 : i32
    return %c0_i32, %c0_i32_0 : i32, i32
  }
  func.func @transform_14(%arg0: i32) -> (i32, i32) {
    %c0_i32 = arith.constant 0 : i32
    %c0_i32_0 = arith.constant 0 : i32
    %c0_i32_1 = arith.constant 0 : i32
    return %c0_i32, %c0_i32_0 : i32, i32
  }
  func.func @transform_15(%arg0: i32) -> (i32, i32) {
    %c0_i32 = arith.constant 0 : i32
    %c0_i32_0 = arith.constant 0 : i32
    %c0_i32_1 = arith.constant 0 : i32
    return %c0_i32, %c0_i32_0 : i32, i32
  }
  func.func @transform_16(%arg0: i32) -> (i32, i32) {
    %c0_i32 = arith.constant 0 : i32
    %c0_i32_0 = arith.constant 0 : i32
    %c0_i32_1 = arith.constant 0 : i32
    return %c0_i32, %c0_i32_0 : i32, i32
  }
  func.func @transform_17(%arg0: i32) -> (i32, i32) {
    %c0_i32 = arith.constant 0 : i32
    %c0_i32_0 = arith.constant 0 : i32
    %c0_i32_1 = arith.constant 0 : i32
    return %c0_i32, %c0_i32_0 : i32, i32
  }
  func.func @transform_18(%arg0: i32) -> (i32, i32, i32) {
    %c0_i32 = arith.constant 0 : i32
    %c0_i32_0 = arith.constant 0 : i32
    %c0_i32_1 = arith.constant 0 : i32
    return %arg0, %c0_i32, %c0_i32_0 : i32, i32, i32
  }
}

module attributes {stable_mosaic.version = 11 : i64} {
  func.func @_patch_merge_kernel(%arg0: i32, %arg1: memref<32x96xf32, #tpu.memory_space<vmem>>, %arg2: memref<1x96xf32, #tpu.memory_space<vmem>>, %arg3: memref<1x96xf32, #tpu.memory_space<vmem>>, %arg4: memref<96x48xf32, #tpu.memory_space<vmem>>, %arg5: memref<32x48xf32, #tpu.memory_space<vmem>>) attributes {dimension_semantics = [#tpu.dimension_semantics<arbitrary>], iteration_bounds = array<i64: 1>, scalar_prefetch = 0 : i64, scratch_operands = 0 : i64, tpu.core_type = #tpu.core_type<tc>, window_params = [{pipeline_mode = #tpu.pipeline_mode<synchronous>, transform_indices = @transform_0, window_bounds = array<i64: 32, 96>}, {pipeline_mode = #tpu.pipeline_mode<synchronous>, transform_indices = @transform_1, window_bounds = array<i64: 1, 96>}, {pipeline_mode = #tpu.pipeline_mode<synchronous>, transform_indices = @transform_2, window_bounds = array<i64: 1, 96>}, {pipeline_mode = #tpu.pipeline_mode<synchronous>, transform_indices = @transform_3, window_bounds = array<i64: 96, 48>}, {pipeline_mode = #tpu.pipeline_mode<synchronous>, transform_indices = @transform_4, window_bounds = array<i64: 32, 48>}]} {
    %c0 = arith.constant 0 : index
    %c0_0 = arith.constant 0 : index
    %0 = vector.load %arg1[%c0, %c0_0] : memref<32x96xf32, #tpu.memory_space<vmem>>, vector<32x96xf32>
    %c0_1 = arith.constant 0 : index
    %c0_2 = arith.constant 0 : index
    %1 = vector.load %arg2[%c0_1, %c0_2] : memref<1x96xf32, #tpu.memory_space<vmem>>, vector<1x96xf32>
    %c0_3 = arith.constant 0 : index
    %c0_4 = arith.constant 0 : index
    %2 = vector.load %arg3[%c0_3, %c0_4] : memref<1x96xf32, #tpu.memory_space<vmem>>, vector<1x96xf32>
    %cst = arith.constant dense<0.000000e+00> : vector<32xf32>
    %3 = vector.multi_reduction <add>, %0, %cst [1] : vector<32x96xf32> to vector<32xf32>
    %4 = vector.shape_cast %3 : vector<32xf32> to vector<32x1xf32>
    %cst_5 = arith.constant 9.600000e+01 : f32
    %5 = vector.broadcast %cst_5 : f32 to vector<32x1xf32>
    %6 = arith.divf %4, %5 : vector<32x1xf32>
    %7 = vector.broadcast %6 : vector<32x1xf32> to vector<32x96xf32>
    %8 = arith.subf %0, %7 : vector<32x96xf32>
    %9 = arith.mulf %8, %8 : vector<32x96xf32>
    %cst_6 = arith.constant dense<0.000000e+00> : vector<32xf32>
    %10 = vector.multi_reduction <add>, %9, %cst_6 [1] : vector<32x96xf32> to vector<32xf32>
    %11 = vector.shape_cast %10 : vector<32xf32> to vector<32x1xf32>
    %cst_7 = arith.constant 9.600000e+01 : f32
    %12 = vector.broadcast %cst_7 : f32 to vector<32x1xf32>
    %13 = arith.divf %11, %12 : vector<32x1xf32>
    %14 = vector.broadcast %6 : vector<32x1xf32> to vector<32x96xf32>
    %15 = arith.subf %0, %14 : vector<32x96xf32>
    %cst_8 = arith.constant 9.99999974E-6 : f32
    %16 = vector.broadcast %cst_8 : f32 to vector<32x1xf32>
    %17 = arith.addf %13, %16 : vector<32x1xf32>
    %18 = math.rsqrt %17 : vector<32x1xf32>
    %19 = vector.broadcast %18 : vector<32x1xf32> to vector<32x96xf32>
    %20 = arith.mulf %15, %19 : vector<32x96xf32>
    %21 = vector.broadcast %1 : vector<1x96xf32> to vector<32x96xf32>
    %22 = arith.mulf %20, %21 : vector<32x96xf32>
    %23 = vector.broadcast %2 : vector<1x96xf32> to vector<32x96xf32>
    %24 = arith.addf %22, %23 : vector<32x96xf32>
    %c0_9 = arith.constant 0 : index
    %c0_10 = arith.constant 0 : index
    %25 = vector.load %arg4[%c0_9, %c0_10] : memref<96x48xf32, #tpu.memory_space<vmem>>, vector<96x48xf32>
    %cst_11 = arith.constant dense<0.000000e+00> : vector<32x48xf32>
    %26 = tpu.matmul %24, %25, %cst_11 {dimension_numbers = #tpu.dot_dimension_numbers<[1], [0], [0], [1], [0, 0, 1, 1], [], []>} : vector<32x96xf32>, vector<96x48xf32>, vector<32x48xf32> -> vector<32x48xf32>
    %c0_12 = arith.constant 0 : index
    %c0_13 = arith.constant 0 : index
    %27 = vector.load %arg5[%c0_12, %c0_13] : memref<32x48xf32, #tpu.memory_space<vmem>>, vector<32x48xf32>
    tpu.vector_store %arg5[%c0_12, %c0_13], %26 {strides = array<i32>} : memref<32x48xf32, #tpu.memory_space<vmem>>, vector<32x48xf32>,
    return
  }
  func.func @transform_0(%arg0: i32) -> (i32, i32) {
    %c0_i32 = arith.constant 0 : i32
    %c0_i32_0 = arith.constant 0 : i32
    %c0_i32_1 = arith.constant 0 : i32
    return %c0_i32, %c0_i32_0 : i32, i32
  }
  func.func @transform_1(%arg0: i32) -> (i32, i32) {
    %c0_i32 = arith.constant 0 : i32
    %c0_i32_0 = arith.constant 0 : i32
    %c0_i32_1 = arith.constant 0 : i32
    return %c0_i32, %c0_i32_0 : i32, i32
  }
  func.func @transform_2(%arg0: i32) -> (i32, i32) {
    %c0_i32 = arith.constant 0 : i32
    %c0_i32_0 = arith.constant 0 : i32
    %c0_i32_1 = arith.constant 0 : i32
    return %c0_i32, %c0_i32_0 : i32, i32
  }
  func.func @transform_3(%arg0: i32) -> (i32, i32) {
    %c0_i32 = arith.constant 0 : i32
    %c0_i32_0 = arith.constant 0 : i32
    %c0_i32_1 = arith.constant 0 : i32
    return %c0_i32, %c0_i32_0 : i32, i32
  }
  func.func @transform_4(%arg0: i32) -> (i32, i32) {
    %c0_i32 = arith.constant 0 : i32
    %c0_i32_0 = arith.constant 0 : i32
    %c0_i32_1 = arith.constant 0 : i32
    return %c0_i32, %c0_i32_0 : i32, i32
  }
}

module attributes {stable_mosaic.version = 11 : i64} {
  func.func @kernel(%arg0: i32, %arg1: memref<1x16x48xf32, #tpu.memory_space<vmem>>, %arg2: memref<1x48xf32, #tpu.memory_space<vmem>>, %arg3: memref<1x48xf32, #tpu.memory_space<vmem>>, %arg4: memref<4x48x12xf32, #tpu.memory_space<vmem>>, %arg5: memref<4x1x12xf32, #tpu.memory_space<vmem>>, %arg6: memref<4x48x12xf32, #tpu.memory_space<vmem>>, %arg7: memref<4x1x12xf32, #tpu.memory_space<vmem>>, %arg8: memref<4x48x12xf32, #tpu.memory_space<vmem>>, %arg9: memref<4x1x12xf32, #tpu.memory_space<vmem>>, %arg10: memref<4x16x16xf32, #tpu.memory_space<vmem>>, %arg11: memref<4x12x48xf32, #tpu.memory_space<vmem>>, %arg12: memref<1x48xf32, #tpu.memory_space<vmem>>, %arg13: memref<1x48xf32, #tpu.memory_space<vmem>>, %arg14: memref<1x48xf32, #tpu.memory_space<vmem>>, %arg15: memref<48x192xf32, #tpu.memory_space<vmem>>, %arg16: memref<1x192xf32, #tpu.memory_space<vmem>>, %arg17: memref<192x48xf32, #tpu.memory_space<vmem>>, %arg18: memref<1x48xf32, #tpu.memory_space<vmem>>, %arg19: memref<1x16x48xf32, #tpu.memory_space<vmem>>) attributes {dimension_semantics = [#tpu.dimension_semantics<parallel>], iteration_bounds = array<i64: 2>, scalar_prefetch = 0 : i64, scratch_operands = 0 : i64, tpu.core_type = #tpu.core_type<tc>, window_params = [{transform_indices = @transform_0, window_bounds = array<i64: 1, 16, 48>}, {pipeline_mode = #tpu.pipeline_mode<synchronous>, transform_indices = @transform_1, window_bounds = array<i64: 1, 48>}, {pipeline_mode = #tpu.pipeline_mode<synchronous>, transform_indices = @transform_2, window_bounds = array<i64: 1, 48>}, {pipeline_mode = #tpu.pipeline_mode<synchronous>, transform_indices = @transform_3, window_bounds = array<i64: 4, 48, 12>}, {pipeline_mode = #tpu.pipeline_mode<synchronous>, transform_indices = @transform_4, window_bounds = array<i64: 4, 1, 12>}, {pipeline_mode = #tpu.pipeline_mode<synchronous>, transform_indices = @transform_5, window_bounds = array<i64: 4, 48, 12>}, {pipeline_mode = #tpu.pipeline_mode<synchronous>, transform_indices = @transform_6, window_bounds = array<i64: 4, 1, 12>}, {pipeline_mode = #tpu.pipeline_mode<synchronous>, transform_indices = @transform_7, window_bounds = array<i64: 4, 48, 12>}, {pipeline_mode = #tpu.pipeline_mode<synchronous>, transform_indices = @transform_8, window_bounds = array<i64: 4, 1, 12>}, {pipeline_mode = #tpu.pipeline_mode<synchronous>, transform_indices = @transform_9, window_bounds = array<i64: 4, 16, 16>}, {pipeline_mode = #tpu.pipeline_mode<synchronous>, transform_indices = @transform_10, window_bounds = array<i64: 4, 12, 48>}, {pipeline_mode = #tpu.pipeline_mode<synchronous>, transform_indices = @transform_11, window_bounds = array<i64: 1, 48>}, {pipeline_mode = #tpu.pipeline_mode<synchronous>, transform_indices = @transform_12, window_bounds = array<i64: 1, 48>}, {pipeline_mode = #tpu.pipeline_mode<synchronous>, transform_indices = @transform_13, window_bounds = array<i64: 1, 48>}, {pipeline_mode = #tpu.pipeline_mode<synchronous>, transform_indices = @transform_14, window_bounds = array<i64: 48, 192>}, {pipeline_mode = #tpu.pipeline_mode<synchronous>, transform_indices = @transform_15, window_bounds = array<i64: 1, 192>}, {pipeline_mode = #tpu.pipeline_mode<synchronous>, transform_indices = @transform_16, window_bounds = array<i64: 192, 48>}, {pipeline_mode = #tpu.pipeline_mode<synchronous>, transform_indices = @transform_17, window_bounds = array<i64: 1, 48>}, {transform_indices = @transform_18, window_bounds = array<i64: 1, 16, 48>}]} {
    %c0 = arith.constant 0 : index
    %c0_0 = arith.constant 0 : index
    %c0_1 = arith.constant 0 : index
    %0 = vector.load %arg1[%c0, %c0_0, %c0_1] : memref<1x16x48xf32, #tpu.memory_space<vmem>>, vector<1x16x48xf32>
    %1 = vector.shape_cast %0 : vector<1x16x48xf32> to vector<16x48xf32>
    %c0_2 = arith.constant 0 : index
    %c0_3 = arith.constant 0 : index
    %2 = vector.load %arg2[%c0_2, %c0_3] : memref<1x48xf32, #tpu.memory_space<vmem>>, vector<1x48xf32>
    %c0_4 = arith.constant 0 : index
    %c0_5 = arith.constant 0 : index
    %3 = vector.load %arg3[%c0_4, %c0_5] : memref<1x48xf32, #tpu.memory_space<vmem>>, vector<1x48xf32>
    %cst = arith.constant dense<0.000000e+00> : vector<16xf32>
    %4 = vector.multi_reduction <add>, %1, %cst [1] : vector<16x48xf32> to vector<16xf32>
    %5 = vector.shape_cast %4 : vector<16xf32> to vector<16x1xf32>
    %cst_6 = arith.constant 4.800000e+01 : f32
    %6 = vector.broadcast %cst_6 : f32 to vector<16x1xf32>
    %7 = arith.divf %5, %6 : vector<16x1xf32>
    %8 = vector.broadcast %7 : vector<16x1xf32> to vector<16x48xf32>
    %9 = arith.subf %1, %8 : vector<16x48xf32>
    %10 = arith.mulf %9, %9 : vector<16x48xf32>
    %cst_7 = arith.constant dense<0.000000e+00> : vector<16xf32>
    %11 = vector.multi_reduction <add>, %10, %cst_7 [1] : vector<16x48xf32> to vector<16xf32>
    %12 = vector.shape_cast %11 : vector<16xf32> to vector<16x1xf32>
    %cst_8 = arith.constant 4.800000e+01 : f32
    %13 = vector.broadcast %cst_8 : f32 to vector<16x1xf32>
    %14 = arith.divf %12, %13 : vector<16x1xf32>
    %15 = vector.broadcast %7 : vector<16x1xf32> to vector<16x48xf32>
    %16 = arith.subf %1, %15 : vector<16x48xf32>
    %cst_9 = arith.constant 9.99999974E-6 : f32
    %17 = vector.broadcast %cst_9 : f32 to vector<16x1xf32>
    %18 = arith.addf %14, %17 : vector<16x1xf32>
    %19 = math.rsqrt %18 : vector<16x1xf32>
    %20 = vector.broadcast %19 : vector<16x1xf32> to vector<16x48xf32>
    %21 = arith.mulf %16, %20 : vector<16x48xf32>
    %22 = vector.broadcast %2 : vector<1x48xf32> to vector<16x48xf32>
    %23 = arith.mulf %21, %22 : vector<16x48xf32>
    %24 = vector.broadcast %3 : vector<1x48xf32> to vector<16x48xf32>
    %25 = arith.addf %23, %24 : vector<16x48xf32>
    %cst_10 = arith.constant 0.000000e+00 : f32
    %26 = vector.broadcast %cst_10 : f32 to vector<16x48xf32>
    %c0_11 = arith.constant 0 : index
    %c0_12 = arith.constant 0 : index
    %c0_13 = arith.constant 0 : index
    %27 = vector.load %arg4[%c0_11, %c0_12, %c0_13] : memref<4x48x12xf32, #tpu.memory_space<vmem>>, vector<1x48x12xf32>
    %28 = vector.shape_cast %27 : vector<1x48x12xf32> to vector<48x12xf32>
    %cst_14 = arith.constant dense<0.000000e+00> : vector<16x12xf32>
    %29 = tpu.matmul %25, %28, %cst_14 {dimension_numbers = #tpu.dot_dimension_numbers<[1], [0], [0], [1], [0, 0, 1, 1], [], []>} : vector<16x48xf32>, vector<48x12xf32>, vector<16x12xf32> -> vector<16x12xf32>
    %c0_15 = arith.constant 0 : index
    %c0_16 = arith.constant 0 : index
    %c0_17 = arith.constant 0 : index
    %30 = vector.load %arg5[%c0_15, %c0_16, %c0_17] : memref<4x1x12xf32, #tpu.memory_space<vmem>>, vector<1x1x12xf32>
    %31 = vector.shape_cast %30 : vector<1x1x12xf32> to vector<1x12xf32>
    %32 = vector.broadcast %31 : vector<1x12xf32> to vector<16x12xf32>
    %33 = arith.addf %29, %32 : vector<16x12xf32>
    %cst_18 = arith.constant 0.288675129 : f32
    %34 = vector.broadcast %cst_18 : f32 to vector<16x12xf32>
    %35 = arith.mulf %33, %34 : vector<16x12xf32>
    %c0_19 = arith.constant 0 : index
    %c0_20 = arith.constant 0 : index
    %c0_21 = arith.constant 0 : index
    %36 = vector.load %arg6[%c0_19, %c0_20, %c0_21] : memref<4x48x12xf32, #tpu.memory_space<vmem>>, vector<1x48x12xf32>
    %37 = vector.shape_cast %36 : vector<1x48x12xf32> to vector<48x12xf32>
    %cst_22 = arith.constant dense<0.000000e+00> : vector<16x12xf32>
    %38 = tpu.matmul %25, %37, %cst_22 {dimension_numbers = #tpu.dot_dimension_numbers<[1], [0], [0], [1], [0, 0, 1, 1], [], []>} : vector<16x48xf32>, vector<48x12xf32>, vector<16x12xf32> -> vector<16x12xf32>
    %c0_23 = arith.constant 0 : index
    %c0_24 = arith.constant 0 : index
    %c0_25 = arith.constant 0 : index
    %39 = vector.load %arg7[%c0_23, %c0_24, %c0_25] : memref<4x1x12xf32, #tpu.memory_space<vmem>>, vector<1x1x12xf32>
    %40 = vector.shape_cast %39 : vector<1x1x12xf32> to vector<1x12xf32>
    %41 = vector.broadcast %40 : vector<1x12xf32> to vector<16x12xf32>
    %42 = arith.addf %38, %41 : vector<16x12xf32>
    %c0_26 = arith.constant 0 : index
    %c0_27 = arith.constant 0 : index
    %c0_28 = arith.constant 0 : index
    %43 = vector.load %arg8[%c0_26, %c0_27, %c0_28] : memref<4x48x12xf32, #tpu.memory_space<vmem>>, vector<1x48x12xf32>
    %44 = vector.shape_cast %43 : vector<1x48x12xf32> to vector<48x12xf32>
    %cst_29 = arith.constant dense<0.000000e+00> : vector<16x12xf32>
    %45 = tpu.matmul %25, %44, %cst_29 {dimension_numbers = #tpu.dot_dimension_numbers<[1], [0], [0], [1], [0, 0, 1, 1], [], []>} : vector<16x48xf32>, vector<48x12xf32>, vector<16x12xf32> -> vector<16x12xf32>
    %c0_30 = arith.constant 0 : index
    %c0_31 = arith.constant 0 : index
    %c0_32 = arith.constant 0 : index
    %46 = vector.load %arg9[%c0_30, %c0_31, %c0_32] : memref<4x1x12xf32, #tpu.memory_space<vmem>>, vector<1x1x12xf32>
    %47 = vector.shape_cast %46 : vector<1x1x12xf32> to vector<1x12xf32>
    %48 = vector.broadcast %47 : vector<1x12xf32> to vector<16x12xf32>
    %49 = arith.addf %45, %48 : vector<16x12xf32>
    %cst_33 = arith.constant dense<0.000000e+00> : vector<16x16xf32>
    %50 = tpu.matmul %35, %42, %cst_33 {dimension_numbers = #tpu.dot_dimension_numbers<[1], [1], [0], [0], [0, 0, 1, 0], [], []>} : vector<16x12xf32>, vector<16x12xf32>, vector<16x16xf32> -> vector<16x16xf32>
    %c0_34 = arith.constant 0 : index
    %c0_35 = arith.constant 0 : index
    %c0_36 = arith.constant 0 : index
    %51 = vector.load %arg10[%c0_34, %c0_35, %c0_36] : memref<4x16x16xf32, #tpu.memory_space<vmem>>, vector<1x16x16xf32>
    %52 = vector.shape_cast %51 : vector<1x16x16xf32> to vector<16x16xf32>
    %53 = arith.addf %50, %52 : vector<16x16xf32>
    %cst_37 = arith.constant dense<0xFF800000> : vector<16xf32>
    %54 = vector.multi_reduction <maximumf>, %53, %cst_37 [1] : vector<16x16xf32> to vector<16xf32>
    %55 = vector.shape_cast %54 : vector<16xf32> to vector<16x1xf32>
    %56 = vector.broadcast %55 : vector<16x1xf32> to vector<16x16xf32>
    %57 = arith.subf %53, %56 : vector<16x16xf32>
    %58 = math.exp %57 : vector<16x16xf32>
    %cst_38 = arith.constant dense<0.000000e+00> : vector<16xf32>
    %59 = vector.multi_reduction <add>, %58, %cst_38 [1] : vector<16x16xf32> to vector<16xf32>
    %60 = vector.shape_cast %59 : vector<16xf32> to vector<16x1xf32>
    %61 = tpu.reciprocal %60 {approx = true} : vector<16x1xf32> -> vector<16x1xf32>
    %62 = vector.broadcast %61 : vector<16x1xf32> to vector<16x16xf32>
    %63 = arith.mulf %58, %62 : vector<16x16xf32>
    %cst_39 = arith.constant dense<0.000000e+00> : vector<16x12xf32>
    %64 = tpu.matmul %63, %49, %cst_39 {dimension_numbers = #tpu.dot_dimension_numbers<[1], [0], [0], [1], [0, 0, 1, 1], [], []>} : vector<16x16xf32>, vector<16x12xf32>, vector<16x12xf32> -> vector<16x12xf32>
    %c0_40 = arith.constant 0 : index
    %c0_41 = arith.constant 0 : index
    %c0_42 = arith.constant 0 : index
    %65 = vector.load %arg11[%c0_40, %c0_41, %c0_42] : memref<4x12x48xf32, #tpu.memory_space<vmem>>, vector<1x12x48xf32>
    %66 = vector.shape_cast %65 : vector<1x12x48xf32> to vector<12x48xf32>
    %cst_43 = arith.constant dense<0.000000e+00> : vector<16x48xf32>
    %67 = tpu.matmul %64, %66, %cst_43 {dimension_numbers = #tpu.dot_dimension_numbers<[1], [0], [0], [1], [0, 0, 1, 1], [], []>} : vector<16x12xf32>, vector<12x48xf32>, vector<16x48xf32> -> vector<16x48xf32>
    %68 = arith.addf %26, %67 : vector<16x48xf32>
    %c1 = arith.constant 1 : index
    %c0_44 = arith.constant 0 : index
    %c0_45 = arith.constant 0 : index
    %69 = vector.load %arg4[%c1, %c0_44, %c0_45] : memref<4x48x12xf32, #tpu.memory_space<vmem>>, vector<1x48x12xf32>
    %70 = vector.shape_cast %69 : vector<1x48x12xf32> to vector<48x12xf32>
    %cst_46 = arith.constant dense<0.000000e+00> : vector<16x12xf32>
    %71 = tpu.matmul %25, %70, %cst_46 {dimension_numbers = #tpu.dot_dimension_numbers<[1], [0], [0], [1], [0, 0, 1, 1], [], []>} : vector<16x48xf32>, vector<48x12xf32>, vector<16x12xf32> -> vector<16x12xf32>
    %c1_47 = arith.constant 1 : index
    %c0_48 = arith.constant 0 : index
    %c0_49 = arith.constant 0 : index
    %72 = vector.load %arg5[%c1_47, %c0_48, %c0_49] : memref<4x1x12xf32, #tpu.memory_space<vmem>>, vector<1x1x12xf32>
    %73 = vector.shape_cast %72 : vector<1x1x12xf32> to vector<1x12xf32>
    %74 = vector.broadcast %73 : vector<1x12xf32> to vector<16x12xf32>
    %75 = arith.addf %71, %74 : vector<16x12xf32>
    %cst_50 = arith.constant 0.288675129 : f32
    %76 = vector.broadcast %cst_50 : f32 to vector<16x12xf32>
    %77 = arith.mulf %75, %76 : vector<16x12xf32>
    %c1_51 = arith.constant 1 : index
    %c0_52 = arith.constant 0 : index
    %c0_53 = arith.constant 0 : index
    %78 = vector.load %arg6[%c1_51, %c0_52, %c0_53] : memref<4x48x12xf32, #tpu.memory_space<vmem>>, vector<1x48x12xf32>
    %79 = vector.shape_cast %78 : vector<1x48x12xf32> to vector<48x12xf32>
    %cst_54 = arith.constant dense<0.000000e+00> : vector<16x12xf32>
    %80 = tpu.matmul %25, %79, %cst_54 {dimension_numbers = #tpu.dot_dimension_numbers<[1], [0], [0], [1], [0, 0, 1, 1], [], []>} : vector<16x48xf32>, vector<48x12xf32>, vector<16x12xf32> -> vector<16x12xf32>
    %c1_55 = arith.constant 1 : index
    %c0_56 = arith.constant 0 : index
    %c0_57 = arith.constant 0 : index
    %81 = vector.load %arg7[%c1_55, %c0_56, %c0_57] : memref<4x1x12xf32, #tpu.memory_space<vmem>>, vector<1x1x12xf32>
    %82 = vector.shape_cast %81 : vector<1x1x12xf32> to vector<1x12xf32>
    %83 = vector.broadcast %82 : vector<1x12xf32> to vector<16x12xf32>
    %84 = arith.addf %80, %83 : vector<16x12xf32>
    %c1_58 = arith.constant 1 : index
    %c0_59 = arith.constant 0 : index
    %c0_60 = arith.constant 0 : index
    %85 = vector.load %arg8[%c1_58, %c0_59, %c0_60] : memref<4x48x12xf32, #tpu.memory_space<vmem>>, vector<1x48x12xf32>
    %86 = vector.shape_cast %85 : vector<1x48x12xf32> to vector<48x12xf32>
    %cst_61 = arith.constant dense<0.000000e+00> : vector<16x12xf32>
    %87 = tpu.matmul %25, %86, %cst_61 {dimension_numbers = #tpu.dot_dimension_numbers<[1], [0], [0], [1], [0, 0, 1, 1], [], []>} : vector<16x48xf32>, vector<48x12xf32>, vector<16x12xf32> -> vector<16x12xf32>
    %c1_62 = arith.constant 1 : index
    %c0_63 = arith.constant 0 : index
    %c0_64 = arith.constant 0 : index
    %88 = vector.load %arg9[%c1_62, %c0_63, %c0_64] : memref<4x1x12xf32, #tpu.memory_space<vmem>>, vector<1x1x12xf32>
    %89 = vector.shape_cast %88 : vector<1x1x12xf32> to vector<1x12xf32>
    %90 = vector.broadcast %89 : vector<1x12xf32> to vector<16x12xf32>
    %91 = arith.addf %87, %90 : vector<16x12xf32>
    %cst_65 = arith.constant dense<0.000000e+00> : vector<16x16xf32>
    %92 = tpu.matmul %77, %84, %cst_65 {dimension_numbers = #tpu.dot_dimension_numbers<[1], [1], [0], [0], [0, 0, 1, 0], [], []>} : vector<16x12xf32>, vector<16x12xf32>, vector<16x16xf32> -> vector<16x16xf32>
    %c1_66 = arith.constant 1 : index
    %c0_67 = arith.constant 0 : index
    %c0_68 = arith.constant 0 : index
    %93 = vector.load %arg10[%c1_66, %c0_67, %c0_68] : memref<4x16x16xf32, #tpu.memory_space<vmem>>, vector<1x16x16xf32>
    %94 = vector.shape_cast %93 : vector<1x16x16xf32> to vector<16x16xf32>
    %95 = arith.addf %92, %94 : vector<16x16xf32>
    %cst_69 = arith.constant dense<0xFF800000> : vector<16xf32>
    %96 = vector.multi_reduction <maximumf>, %95, %cst_69 [1] : vector<16x16xf32> to vector<16xf32>
    %97 = vector.shape_cast %96 : vector<16xf32> to vector<16x1xf32>
    %98 = vector.broadcast %97 : vector<16x1xf32> to vector<16x16xf32>
    %99 = arith.subf %95, %98 : vector<16x16xf32>
    %100 = math.exp %99 : vector<16x16xf32>
    %cst_70 = arith.constant dense<0.000000e+00> : vector<16xf32>
    %101 = vector.multi_reduction <add>, %100, %cst_70 [1] : vector<16x16xf32> to vector<16xf32>
    %102 = vector.shape_cast %101 : vector<16xf32> to vector<16x1xf32>
    %103 = tpu.reciprocal %102 {approx = true} : vector<16x1xf32> -> vector<16x1xf32>
    %104 = vector.broadcast %103 : vector<16x1xf32> to vector<16x16xf32>
    %105 = arith.mulf %100, %104 : vector<16x16xf32>
    %cst_71 = arith.constant dense<0.000000e+00> : vector<16x12xf32>
    %106 = tpu.matmul %105, %91, %cst_71 {dimension_numbers = #tpu.dot_dimension_numbers<[1], [0], [0], [1], [0, 0, 1, 1], [], []>} : vector<16x16xf32>, vector<16x12xf32>, vector<16x12xf32> -> vector<16x12xf32>
    %c1_72 = arith.constant 1 : index
    %c0_73 = arith.constant 0 : index
    %c0_74 = arith.constant 0 : index
    %107 = vector.load %arg11[%c1_72, %c0_73, %c0_74] : memref<4x12x48xf32, #tpu.memory_space<vmem>>, vector<1x12x48xf32>
    %108 = vector.shape_cast %107 : vector<1x12x48xf32> to vector<12x48xf32>
    %cst_75 = arith.constant dense<0.000000e+00> : vector<16x48xf32>
    %109 = tpu.matmul %106, %108, %cst_75 {dimension_numbers = #tpu.dot_dimension_numbers<[1], [0], [0], [1], [0, 0, 1, 1], [], []>} : vector<16x12xf32>, vector<12x48xf32>, vector<16x48xf32> -> vector<16x48xf32>
    %110 = arith.addf %68, %109 : vector<16x48xf32>
    %c2 = arith.constant 2 : index
    %c0_76 = arith.constant 0 : index
    %c0_77 = arith.constant 0 : index
    %111 = vector.load %arg4[%c2, %c0_76, %c0_77] : memref<4x48x12xf32, #tpu.memory_space<vmem>>, vector<1x48x12xf32>
    %112 = vector.shape_cast %111 : vector<1x48x12xf32> to vector<48x12xf32>
    %cst_78 = arith.constant dense<0.000000e+00> : vector<16x12xf32>
    %113 = tpu.matmul %25, %112, %cst_78 {dimension_numbers = #tpu.dot_dimension_numbers<[1], [0], [0], [1], [0, 0, 1, 1], [], []>} : vector<16x48xf32>, vector<48x12xf32>, vector<16x12xf32> -> vector<16x12xf32>
    %c2_79 = arith.constant 2 : index
    %c0_80 = arith.constant 0 : index
    %c0_81 = arith.constant 0 : index
    %114 = vector.load %arg5[%c2_79, %c0_80, %c0_81] : memref<4x1x12xf32, #tpu.memory_space<vmem>>, vector<1x1x12xf32>
    %115 = vector.shape_cast %114 : vector<1x1x12xf32> to vector<1x12xf32>
    %116 = vector.broadcast %115 : vector<1x12xf32> to vector<16x12xf32>
    %117 = arith.addf %113, %116 : vector<16x12xf32>
    %cst_82 = arith.constant 0.288675129 : f32
    %118 = vector.broadcast %cst_82 : f32 to vector<16x12xf32>
    %119 = arith.mulf %117, %118 : vector<16x12xf32>
    %c2_83 = arith.constant 2 : index
    %c0_84 = arith.constant 0 : index
    %c0_85 = arith.constant 0 : index
    %120 = vector.load %arg6[%c2_83, %c0_84, %c0_85] : memref<4x48x12xf32, #tpu.memory_space<vmem>>, vector<1x48x12xf32>
    %121 = vector.shape_cast %120 : vector<1x48x12xf32> to vector<48x12xf32>
    %cst_86 = arith.constant dense<0.000000e+00> : vector<16x12xf32>
    %122 = tpu.matmul %25, %121, %cst_86 {dimension_numbers = #tpu.dot_dimension_numbers<[1], [0], [0], [1], [0, 0, 1, 1], [], []>} : vector<16x48xf32>, vector<48x12xf32>, vector<16x12xf32> -> vector<16x12xf32>
    %c2_87 = arith.constant 2 : index
    %c0_88 = arith.constant 0 : index
    %c0_89 = arith.constant 0 : index
    %123 = vector.load %arg7[%c2_87, %c0_88, %c0_89] : memref<4x1x12xf32, #tpu.memory_space<vmem>>, vector<1x1x12xf32>
    %124 = vector.shape_cast %123 : vector<1x1x12xf32> to vector<1x12xf32>
    %125 = vector.broadcast %124 : vector<1x12xf32> to vector<16x12xf32>
    %126 = arith.addf %122, %125 : vector<16x12xf32>
    %c2_90 = arith.constant 2 : index
    %c0_91 = arith.constant 0 : index
    %c0_92 = arith.constant 0 : index
    %127 = vector.load %arg8[%c2_90, %c0_91, %c0_92] : memref<4x48x12xf32, #tpu.memory_space<vmem>>, vector<1x48x12xf32>
    %128 = vector.shape_cast %127 : vector<1x48x12xf32> to vector<48x12xf32>
    %cst_93 = arith.constant dense<0.000000e+00> : vector<16x12xf32>
    %129 = tpu.matmul %25, %128, %cst_93 {dimension_numbers = #tpu.dot_dimension_numbers<[1], [0], [0], [1], [0, 0, 1, 1], [], []>} : vector<16x48xf32>, vector<48x12xf32>, vector<16x12xf32> -> vector<16x12xf32>
    %c2_94 = arith.constant 2 : index
    %c0_95 = arith.constant 0 : index
    %c0_96 = arith.constant 0 : index
    %130 = vector.load %arg9[%c2_94, %c0_95, %c0_96] : memref<4x1x12xf32, #tpu.memory_space<vmem>>, vector<1x1x12xf32>
    %131 = vector.shape_cast %130 : vector<1x1x12xf32> to vector<1x12xf32>
    %132 = vector.broadcast %131 : vector<1x12xf32> to vector<16x12xf32>
    %133 = arith.addf %129, %132 : vector<16x12xf32>
    %cst_97 = arith.constant dense<0.000000e+00> : vector<16x16xf32>
    %134 = tpu.matmul %119, %126, %cst_97 {dimension_numbers = #tpu.dot_dimension_numbers<[1], [1], [0], [0], [0, 0, 1, 0], [], []>} : vector<16x12xf32>, vector<16x12xf32>, vector<16x16xf32> -> vector<16x16xf32>
    %c2_98 = arith.constant 2 : index
    %c0_99 = arith.constant 0 : index
    %c0_100 = arith.constant 0 : index
    %135 = vector.load %arg10[%c2_98, %c0_99, %c0_100] : memref<4x16x16xf32, #tpu.memory_space<vmem>>, vector<1x16x16xf32>
    %136 = vector.shape_cast %135 : vector<1x16x16xf32> to vector<16x16xf32>
    %137 = arith.addf %134, %136 : vector<16x16xf32>
    %cst_101 = arith.constant dense<0xFF800000> : vector<16xf32>
    %138 = vector.multi_reduction <maximumf>, %137, %cst_101 [1] : vector<16x16xf32> to vector<16xf32>
    %139 = vector.shape_cast %138 : vector<16xf32> to vector<16x1xf32>
    %140 = vector.broadcast %139 : vector<16x1xf32> to vector<16x16xf32>
    %141 = arith.subf %137, %140 : vector<16x16xf32>
    %142 = math.exp %141 : vector<16x16xf32>
    %cst_102 = arith.constant dense<0.000000e+00> : vector<16xf32>
    %143 = vector.multi_reduction <add>, %142, %cst_102 [1] : vector<16x16xf32> to vector<16xf32>
    %144 = vector.shape_cast %143 : vector<16xf32> to vector<16x1xf32>
    %145 = tpu.reciprocal %144 {approx = true} : vector<16x1xf32> -> vector<16x1xf32>
    %146 = vector.broadcast %145 : vector<16x1xf32> to vector<16x16xf32>
    %147 = arith.mulf %142, %146 : vector<16x16xf32>
    %cst_103 = arith.constant dense<0.000000e+00> : vector<16x12xf32>
    %148 = tpu.matmul %147, %133, %cst_103 {dimension_numbers = #tpu.dot_dimension_numbers<[1], [0], [0], [1], [0, 0, 1, 1], [], []>} : vector<16x16xf32>, vector<16x12xf32>, vector<16x12xf32> -> vector<16x12xf32>
    %c2_104 = arith.constant 2 : index
    %c0_105 = arith.constant 0 : index
    %c0_106 = arith.constant 0 : index
    %149 = vector.load %arg11[%c2_104, %c0_105, %c0_106] : memref<4x12x48xf32, #tpu.memory_space<vmem>>, vector<1x12x48xf32>
    %150 = vector.shape_cast %149 : vector<1x12x48xf32> to vector<12x48xf32>
    %cst_107 = arith.constant dense<0.000000e+00> : vector<16x48xf32>
    %151 = tpu.matmul %148, %150, %cst_107 {dimension_numbers = #tpu.dot_dimension_numbers<[1], [0], [0], [1], [0, 0, 1, 1], [], []>} : vector<16x12xf32>, vector<12x48xf32>, vector<16x48xf32> -> vector<16x48xf32>
    %152 = arith.addf %110, %151 : vector<16x48xf32>
    %c3 = arith.constant 3 : index
    %c0_108 = arith.constant 0 : index
    %c0_109 = arith.constant 0 : index
    %153 = vector.load %arg4[%c3, %c0_108, %c0_109] : memref<4x48x12xf32, #tpu.memory_space<vmem>>, vector<1x48x12xf32>
    %154 = vector.shape_cast %153 : vector<1x48x12xf32> to vector<48x12xf32>
    %cst_110 = arith.constant dense<0.000000e+00> : vector<16x12xf32>
    %155 = tpu.matmul %25, %154, %cst_110 {dimension_numbers = #tpu.dot_dimension_numbers<[1], [0], [0], [1], [0, 0, 1, 1], [], []>} : vector<16x48xf32>, vector<48x12xf32>, vector<16x12xf32> -> vector<16x12xf32>
    %c3_111 = arith.constant 3 : index
    %c0_112 = arith.constant 0 : index
    %c0_113 = arith.constant 0 : index
    %156 = vector.load %arg5[%c3_111, %c0_112, %c0_113] : memref<4x1x12xf32, #tpu.memory_space<vmem>>, vector<1x1x12xf32>
    %157 = vector.shape_cast %156 : vector<1x1x12xf32> to vector<1x12xf32>
    %158 = vector.broadcast %157 : vector<1x12xf32> to vector<16x12xf32>
    %159 = arith.addf %155, %158 : vector<16x12xf32>
    %cst_114 = arith.constant 0.288675129 : f32
    %160 = vector.broadcast %cst_114 : f32 to vector<16x12xf32>
    %161 = arith.mulf %159, %160 : vector<16x12xf32>
    %c3_115 = arith.constant 3 : index
    %c0_116 = arith.constant 0 : index
    %c0_117 = arith.constant 0 : index
    %162 = vector.load %arg6[%c3_115, %c0_116, %c0_117] : memref<4x48x12xf32, #tpu.memory_space<vmem>>, vector<1x48x12xf32>
    %163 = vector.shape_cast %162 : vector<1x48x12xf32> to vector<48x12xf32>
    %cst_118 = arith.constant dense<0.000000e+00> : vector<16x12xf32>
    %164 = tpu.matmul %25, %163, %cst_118 {dimension_numbers = #tpu.dot_dimension_numbers<[1], [0], [0], [1], [0, 0, 1, 1], [], []>} : vector<16x48xf32>, vector<48x12xf32>, vector<16x12xf32> -> vector<16x12xf32>
    %c3_119 = arith.constant 3 : index
    %c0_120 = arith.constant 0 : index
    %c0_121 = arith.constant 0 : index
    %165 = vector.load %arg7[%c3_119, %c0_120, %c0_121] : memref<4x1x12xf32, #tpu.memory_space<vmem>>, vector<1x1x12xf32>
    %166 = vector.shape_cast %165 : vector<1x1x12xf32> to vector<1x12xf32>
    %167 = vector.broadcast %166 : vector<1x12xf32> to vector<16x12xf32>
    %168 = arith.addf %164, %167 : vector<16x12xf32>
    %c3_122 = arith.constant 3 : index
    %c0_123 = arith.constant 0 : index
    %c0_124 = arith.constant 0 : index
    %169 = vector.load %arg8[%c3_122, %c0_123, %c0_124] : memref<4x48x12xf32, #tpu.memory_space<vmem>>, vector<1x48x12xf32>
    %170 = vector.shape_cast %169 : vector<1x48x12xf32> to vector<48x12xf32>
    %cst_125 = arith.constant dense<0.000000e+00> : vector<16x12xf32>
    %171 = tpu.matmul %25, %170, %cst_125 {dimension_numbers = #tpu.dot_dimension_numbers<[1], [0], [0], [1], [0, 0, 1, 1], [], []>} : vector<16x48xf32>, vector<48x12xf32>, vector<16x12xf32> -> vector<16x12xf32>
    %c3_126 = arith.constant 3 : index
    %c0_127 = arith.constant 0 : index
    %c0_128 = arith.constant 0 : index
    %172 = vector.load %arg9[%c3_126, %c0_127, %c0_128] : memref<4x1x12xf32, #tpu.memory_space<vmem>>, vector<1x1x12xf32>
    %173 = vector.shape_cast %172 : vector<1x1x12xf32> to vector<1x12xf32>
    %174 = vector.broadcast %173 : vector<1x12xf32> to vector<16x12xf32>
    %175 = arith.addf %171, %174 : vector<16x12xf32>
    %cst_129 = arith.constant dense<0.000000e+00> : vector<16x16xf32>
    %176 = tpu.matmul %161, %168, %cst_129 {dimension_numbers = #tpu.dot_dimension_numbers<[1], [1], [0], [0], [0, 0, 1, 0], [], []>} : vector<16x12xf32>, vector<16x12xf32>, vector<16x16xf32> -> vector<16x16xf32>
    %c3_130 = arith.constant 3 : index
    %c0_131 = arith.constant 0 : index
    %c0_132 = arith.constant 0 : index
    %177 = vector.load %arg10[%c3_130, %c0_131, %c0_132] : memref<4x16x16xf32, #tpu.memory_space<vmem>>, vector<1x16x16xf32>
    %178 = vector.shape_cast %177 : vector<1x16x16xf32> to vector<16x16xf32>
    %179 = arith.addf %176, %178 : vector<16x16xf32>
    %cst_133 = arith.constant dense<0xFF800000> : vector<16xf32>
    %180 = vector.multi_reduction <maximumf>, %179, %cst_133 [1] : vector<16x16xf32> to vector<16xf32>
    %181 = vector.shape_cast %180 : vector<16xf32> to vector<16x1xf32>
    %182 = vector.broadcast %181 : vector<16x1xf32> to vector<16x16xf32>
    %183 = arith.subf %179, %182 : vector<16x16xf32>
    %184 = math.exp %183 : vector<16x16xf32>
    %cst_134 = arith.constant dense<0.000000e+00> : vector<16xf32>
    %185 = vector.multi_reduction <add>, %184, %cst_134 [1] : vector<16x16xf32> to vector<16xf32>
    %186 = vector.shape_cast %185 : vector<16xf32> to vector<16x1xf32>
    %187 = tpu.reciprocal %186 {approx = true} : vector<16x1xf32> -> vector<16x1xf32>
    %188 = vector.broadcast %187 : vector<16x1xf32> to vector<16x16xf32>
    %189 = arith.mulf %184, %188 : vector<16x16xf32>
    %cst_135 = arith.constant dense<0.000000e+00> : vector<16x12xf32>
    %190 = tpu.matmul %189, %175, %cst_135 {dimension_numbers = #tpu.dot_dimension_numbers<[1], [0], [0], [1], [0, 0, 1, 1], [], []>} : vector<16x16xf32>, vector<16x12xf32>, vector<16x12xf32> -> vector<16x12xf32>
    %c3_136 = arith.constant 3 : index
    %c0_137 = arith.constant 0 : index
    %c0_138 = arith.constant 0 : index
    %191 = vector.load %arg11[%c3_136, %c0_137, %c0_138] : memref<4x12x48xf32, #tpu.memory_space<vmem>>, vector<1x12x48xf32>
    %192 = vector.shape_cast %191 : vector<1x12x48xf32> to vector<12x48xf32>
    %cst_139 = arith.constant dense<0.000000e+00> : vector<16x48xf32>
    %193 = tpu.matmul %190, %192, %cst_139 {dimension_numbers = #tpu.dot_dimension_numbers<[1], [0], [0], [1], [0, 0, 1, 1], [], []>} : vector<16x12xf32>, vector<12x48xf32>, vector<16x48xf32> -> vector<16x48xf32>
    %194 = arith.addf %152, %193 : vector<16x48xf32>
    %195 = arith.addf %1, %194 : vector<16x48xf32>
    %c0_140 = arith.constant 0 : index
    %c0_141 = arith.constant 0 : index
    %196 = vector.load %arg12[%c0_140, %c0_141] : memref<1x48xf32, #tpu.memory_space<vmem>>, vector<1x48xf32>
    %197 = vector.broadcast %196 : vector<1x48xf32> to vector<16x48xf32>
    %198 = arith.addf %195, %197 : vector<16x48xf32>
    %c0_142 = arith.constant 0 : index
    %c0_143 = arith.constant 0 : index
    %199 = vector.load %arg13[%c0_142, %c0_143] : memref<1x48xf32, #tpu.memory_space<vmem>>, vector<1x48xf32>
    %c0_144 = arith.constant 0 : index
    %c0_145 = arith.constant 0 : index
    %200 = vector.load %arg14[%c0_144, %c0_145] : memref<1x48xf32, #tpu.memory_space<vmem>>, vector<1x48xf32>
    %cst_146 = arith.constant dense<0.000000e+00> : vector<16xf32>
    %201 = vector.multi_reduction <add>, %198, %cst_146 [1] : vector<16x48xf32> to vector<16xf32>
    %202 = vector.shape_cast %201 : vector<16xf32> to vector<16x1xf32>
    %cst_147 = arith.constant 4.800000e+01 : f32
    %203 = vector.broadcast %cst_147 : f32 to vector<16x1xf32>
    %204 = arith.divf %202, %203 : vector<16x1xf32>
    %205 = vector.broadcast %204 : vector<16x1xf32> to vector<16x48xf32>
    %206 = arith.subf %198, %205 : vector<16x48xf32>
    %207 = arith.mulf %206, %206 : vector<16x48xf32>
    %cst_148 = arith.constant dense<0.000000e+00> : vector<16xf32>
    %208 = vector.multi_reduction <add>, %207, %cst_148 [1] : vector<16x48xf32> to vector<16xf32>
    %209 = vector.shape_cast %208 : vector<16xf32> to vector<16x1xf32>
    %cst_149 = arith.constant 4.800000e+01 : f32
    %210 = vector.broadcast %cst_149 : f32 to vector<16x1xf32>
    %211 = arith.divf %209, %210 : vector<16x1xf32>
    %212 = vector.broadcast %204 : vector<16x1xf32> to vector<16x48xf32>
    %213 = arith.subf %198, %212 : vector<16x48xf32>
    %cst_150 = arith.constant 9.99999974E-6 : f32
    %214 = vector.broadcast %cst_150 : f32 to vector<16x1xf32>
    %215 = arith.addf %211, %214 : vector<16x1xf32>
    %216 = math.rsqrt %215 : vector<16x1xf32>
    %217 = vector.broadcast %216 : vector<16x1xf32> to vector<16x48xf32>
    %218 = arith.mulf %213, %217 : vector<16x48xf32>
    %219 = vector.broadcast %199 : vector<1x48xf32> to vector<16x48xf32>
    %220 = arith.mulf %218, %219 : vector<16x48xf32>
    %221 = vector.broadcast %200 : vector<1x48xf32> to vector<16x48xf32>
    %222 = arith.addf %220, %221 : vector<16x48xf32>
    %c0_151 = arith.constant 0 : index
    %c0_152 = arith.constant 0 : index
    %223 = vector.load %arg15[%c0_151, %c0_152] : memref<48x192xf32, #tpu.memory_space<vmem>>, vector<48x192xf32>
    %cst_153 = arith.constant dense<0.000000e+00> : vector<16x192xf32>
    %224 = tpu.matmul %222, %223, %cst_153 {dimension_numbers = #tpu.dot_dimension_numbers<[1], [0], [0], [1], [0, 0, 1, 1], [], []>} : vector<16x48xf32>, vector<48x192xf32>, vector<16x192xf32> -> vector<16x192xf32>
    %c0_154 = arith.constant 0 : index
    %c0_155 = arith.constant 0 : index
    %225 = vector.load %arg16[%c0_154, %c0_155] : memref<1x192xf32, #tpu.memory_space<vmem>>, vector<1x192xf32>
    %226 = vector.broadcast %225 : vector<1x192xf32> to vector<16x192xf32>
    %227 = arith.addf %224, %226 : vector<16x192xf32>
    %cst_156 = arith.constant 5.000000e-01 : f32
    %228 = vector.broadcast %cst_156 : f32 to vector<16x192xf32>
    %229 = arith.mulf %228, %227 : vector<16x192xf32>
    %cst_157 = arith.constant 0.707106769 : f32
    %230 = vector.broadcast %cst_157 : f32 to vector<16x192xf32>
    %231 = arith.mulf %227, %230 : vector<16x192xf32>
    %cst_158 = arith.constant 0.000000e+00 : f32
    %232 = vector.broadcast %cst_158 : f32 to vector<16x192xf32>
    %233 = arith.cmpf oge, %231, %232 : vector<16x192xf32>
    %cst_159 = arith.constant 1.000000e+00 : f32
    %cst_160 = arith.constant -1.000000e+00 : f32
    %234 = vector.broadcast %cst_159 : f32 to vector<16x192xf32>
    %235 = vector.broadcast %cst_160 : f32 to vector<16x192xf32>
    %236 = arith.select %233, %234, %235 : vector<16x192xi1>, vector<16x192xf32>
    %237 = arith.mulf %231, %236 : vector<16x192xf32>
    %cst_161 = arith.constant 0.327591091 : f32
    %238 = vector.broadcast %cst_161 : f32 to vector<16x192xf32>
    %239 = arith.mulf %238, %237 : vector<16x192xf32>
    %cst_162 = arith.constant 1.000000e+00 : f32
    %240 = vector.broadcast %cst_162 : f32 to vector<16x192xf32>
    %241 = arith.addf %240, %239 : vector<16x192xf32>
    %cst_163 = arith.constant 1.000000e+00 : f32
    %242 = vector.broadcast %cst_163 : f32 to vector<16x192xf32>
    %243 = arith.divf %242, %241 : vector<16x192xf32>
    %cst_164 = arith.constant 1.06140542 : f32
    %244 = vector.broadcast %cst_164 : f32 to vector<16x192xf32>
    %245 = arith.mulf %244, %243 : vector<16x192xf32>
    %cst_165 = arith.constant -1.45315206 : f32
    %246 = vector.broadcast %cst_165 : f32 to vector<16x192xf32>
    %247 = arith.addf %245, %246 : vector<16x192xf32>
    %248 = arith.mulf %247, %243 : vector<16x192xf32>
    %cst_166 = arith.constant 1.42141378 : f32
    %249 = vector.broadcast %cst_166 : f32 to vector<16x192xf32>
    %250 = arith.addf %248, %249 : vector<16x192xf32>
    %251 = arith.mulf %250, %243 : vector<16x192xf32>
    %cst_167 = arith.constant -0.284496725 : f32
    %252 = vector.broadcast %cst_167 : f32 to vector<16x192xf32>
    %253 = arith.addf %251, %252 : vector<16x192xf32>
    %254 = arith.mulf %253, %243 : vector<16x192xf32>
    %cst_168 = arith.constant 0.254829586 : f32
    %255 = vector.broadcast %cst_168 : f32 to vector<16x192xf32>
    %256 = arith.addf %254, %255 : vector<16x192xf32>
    %257 = arith.mulf %256, %243 : vector<16x192xf32>
    %cst_169 = arith.constant 0.000000e+00 : f32
    %258 = vector.broadcast %cst_169 : f32 to vector<16x192xf32>
    %259 = arith.subf %258, %237 : vector<16x192xf32>
    %260 = arith.mulf %259, %237 : vector<16x192xf32>
    %261 = math.exp %260 : vector<16x192xf32>
    %262 = arith.mulf %257, %261 : vector<16x192xf32>
    %cst_170 = arith.constant 1.000000e+00 : f32
    %263 = vector.broadcast %cst_170 : f32 to vector<16x192xf32>
    %264 = arith.subf %263, %262 : vector<16x192xf32>
    %265 = arith.mulf %236, %264 : vector<16x192xf32>
    %cst_171 = arith.constant 1.000000e+00 : f32
    %266 = vector.broadcast %cst_171 : f32 to vector<16x192xf32>
    %267 = arith.addf %266, %265 : vector<16x192xf32>
    %268 = arith.mulf %229, %267 : vector<16x192xf32>
    %c0_172 = arith.constant 0 : index
    %c0_173 = arith.constant 0 : index
    %269 = vector.load %arg17[%c0_172, %c0_173] : memref<192x48xf32, #tpu.memory_space<vmem>>, vector<192x48xf32>
    %cst_174 = arith.constant dense<0.000000e+00> : vector<16x48xf32>
    %270 = tpu.matmul %268, %269, %cst_174 {dimension_numbers = #tpu.dot_dimension_numbers<[1], [0], [0], [1], [0, 0, 1, 1], [], []>} : vector<16x192xf32>, vector<192x48xf32>, vector<16x48xf32> -> vector<16x48xf32>
    %c0_175 = arith.constant 0 : index
    %c0_176 = arith.constant 0 : index
    %271 = vector.load %arg18[%c0_175, %c0_176] : memref<1x48xf32, #tpu.memory_space<vmem>>, vector<1x48xf32>
    %272 = vector.broadcast %271 : vector<1x48xf32> to vector<16x48xf32>
    %273 = arith.addf %270, %272 : vector<16x48xf32>
    %274 = arith.addf %198, %273 : vector<16x48xf32>
    %c0_177 = arith.constant 0 : index
    %c0_178 = arith.constant 0 : index
    %c0_179 = arith.constant 0 : index
    %275 = vector.load %arg19[%c0_177, %c0_178, %c0_179] : memref<1x16x48xf32, #tpu.memory_space<vmem>>, vector<1x16x48xf32>
    %276 = vector.shape_cast %275 : vector<1x16x48xf32> to vector<16x48xf32>
    %277 = vector.shape_cast %274 : vector<16x48xf32> to vector<1x16x48xf32>
    tpu.vector_store %arg19[%c0_177, %c0_178, %c0_179], %277 {strides = array<i32>} : memref<1x16x48xf32, #tpu.memory_space<vmem>>, vector<1x16x48xf32>,
    return
  }
  func.func @transform_0(%arg0: i32) -> (i32, i32, i32) {
    %c0_i32 = arith.constant 0 : i32
    %c0_i32_0 = arith.constant 0 : i32
    %c0_i32_1 = arith.constant 0 : i32
    return %arg0, %c0_i32, %c0_i32_0 : i32, i32, i32
  }
  func.func @transform_1(%arg0: i32) -> (i32, i32) {
    %c0_i32 = arith.constant 0 : i32
    %c0_i32_0 = arith.constant 0 : i32
    %c0_i32_1 = arith.constant 0 : i32
    return %c0_i32, %c0_i32_0 : i32, i32
  }
  func.func @transform_2(%arg0: i32) -> (i32, i32) {
    %c0_i32 = arith.constant 0 : i32
    %c0_i32_0 = arith.constant 0 : i32
    %c0_i32_1 = arith.constant 0 : i32
    return %c0_i32, %c0_i32_0 : i32, i32
  }
  func.func @transform_3(%arg0: i32) -> (i32, i32, i32) {
    %c0_i32 = arith.constant 0 : i32
    %c0_i32_0 = arith.constant 0 : i32
    %c0_i32_1 = arith.constant 0 : i32
    %c0_i32_2 = arith.constant 0 : i32
    return %c0_i32, %c0_i32_0, %c0_i32_1 : i32, i32, i32
  }
  func.func @transform_4(%arg0: i32) -> (i32, i32, i32) {
    %c0_i32 = arith.constant 0 : i32
    %c0_i32_0 = arith.constant 0 : i32
    %c0_i32_1 = arith.constant 0 : i32
    %c0_i32_2 = arith.constant 0 : i32
    return %c0_i32, %c0_i32_0, %c0_i32_1 : i32, i32, i32
  }
  func.func @transform_5(%arg0: i32) -> (i32, i32, i32) {
    %c0_i32 = arith.constant 0 : i32
    %c0_i32_0 = arith.constant 0 : i32
    %c0_i32_1 = arith.constant 0 : i32
    %c0_i32_2 = arith.constant 0 : i32
    return %c0_i32, %c0_i32_0, %c0_i32_1 : i32, i32, i32
  }
  func.func @transform_6(%arg0: i32) -> (i32, i32, i32) {
    %c0_i32 = arith.constant 0 : i32
    %c0_i32_0 = arith.constant 0 : i32
    %c0_i32_1 = arith.constant 0 : i32
    %c0_i32_2 = arith.constant 0 : i32
    return %c0_i32, %c0_i32_0, %c0_i32_1 : i32, i32, i32
  }
  func.func @transform_7(%arg0: i32) -> (i32, i32, i32) {
    %c0_i32 = arith.constant 0 : i32
    %c0_i32_0 = arith.constant 0 : i32
    %c0_i32_1 = arith.constant 0 : i32
    %c0_i32_2 = arith.constant 0 : i32
    return %c0_i32, %c0_i32_0, %c0_i32_1 : i32, i32, i32
  }
  func.func @transform_8(%arg0: i32) -> (i32, i32, i32) {
    %c0_i32 = arith.constant 0 : i32
    %c0_i32_0 = arith.constant 0 : i32
    %c0_i32_1 = arith.constant 0 : i32
    %c0_i32_2 = arith.constant 0 : i32
    return %c0_i32, %c0_i32_0, %c0_i32_1 : i32, i32, i32
  }
  func.func @transform_9(%arg0: i32) -> (i32, i32, i32) {
    %c0_i32 = arith.constant 0 : i32
    %c0_i32_0 = arith.constant 0 : i32
    %c0_i32_1 = arith.constant 0 : i32
    %c0_i32_2 = arith.constant 0 : i32
    return %c0_i32, %c0_i32_0, %c0_i32_1 : i32, i32, i32
  }
  func.func @transform_10(%arg0: i32) -> (i32, i32, i32) {
    %c0_i32 = arith.constant 0 : i32
    %c0_i32_0 = arith.constant 0 : i32
    %c0_i32_1 = arith.constant 0 : i32
    %c0_i32_2 = arith.constant 0 : i32
    return %c0_i32, %c0_i32_0, %c0_i32_1 : i32, i32, i32
  }
  func.func @transform_11(%arg0: i32) -> (i32, i32) {
    %c0_i32 = arith.constant 0 : i32
    %c0_i32_0 = arith.constant 0 : i32
    %c0_i32_1 = arith.constant 0 : i32
    return %c0_i32, %c0_i32_0 : i32, i32
  }
  func.func @transform_12(%arg0: i32) -> (i32, i32) {
    %c0_i32 = arith.constant 0 : i32
    %c0_i32_0 = arith.constant 0 : i32
    %c0_i32_1 = arith.constant 0 : i32
    return %c0_i32, %c0_i32_0 : i32, i32
  }
  func.func @transform_13(%arg0: i32) -> (i32, i32) {
    %c0_i32 = arith.constant 0 : i32
    %c0_i32_0 = arith.constant 0 : i32
    %c0_i32_1 = arith.constant 0 : i32
    return %c0_i32, %c0_i32_0 : i32, i32
  }
  func.func @transform_14(%arg0: i32) -> (i32, i32) {
    %c0_i32 = arith.constant 0 : i32
    %c0_i32_0 = arith.constant 0 : i32
    %c0_i32_1 = arith.constant 0 : i32
    return %c0_i32, %c0_i32_0 : i32, i32
  }
  func.func @transform_15(%arg0: i32) -> (i32, i32) {
    %c0_i32 = arith.constant 0 : i32
    %c0_i32_0 = arith.constant 0 : i32
    %c0_i32_1 = arith.constant 0 : i32
    return %c0_i32, %c0_i32_0 : i32, i32
  }
  func.func @transform_16(%arg0: i32) -> (i32, i32) {
    %c0_i32 = arith.constant 0 : i32
    %c0_i32_0 = arith.constant 0 : i32
    %c0_i32_1 = arith.constant 0 : i32
    return %c0_i32, %c0_i32_0 : i32, i32
  }
  func.func @transform_17(%arg0: i32) -> (i32, i32) {
    %c0_i32 = arith.constant 0 : i32
    %c0_i32_0 = arith.constant 0 : i32
    %c0_i32_1 = arith.constant 0 : i32
    return %c0_i32, %c0_i32_0 : i32, i32
  }
  func.func @transform_18(%arg0: i32) -> (i32, i32, i32) {
    %c0_i32 = arith.constant 0 : i32
    %c0_i32_0 = arith.constant 0 : i32
    %c0_i32_1 = arith.constant 0 : i32
    return %arg0, %c0_i32, %c0_i32_0 : i32, i32, i32
  }
}

module attributes {stable_mosaic.version = 11 : i64} {
  func.func @_tail_kernel(%arg0: i32, %arg1: memref<1x16x48xf32, #tpu.memory_space<vmem>>, %arg2: memref<1x1x10xf32, #tpu.memory_space<vmem>>, %arg3: memref<1x48xf32, #tpu.memory_space<vmem>>, %arg4: memref<1x48xf32, #tpu.memory_space<vmem>>, %arg5: memref<48x10xf32, #tpu.memory_space<vmem>>, %arg6: memref<1x10xf32, #tpu.memory_space<vmem>>, %arg7: memref<10x40xf32, #tpu.memory_space<vmem>>, %arg8: memref<1x40xf32, #tpu.memory_space<vmem>>, %arg9: memref<40x10xf32, #tpu.memory_space<vmem>>, %arg10: memref<1x10xf32, #tpu.memory_space<vmem>>, %arg11: memref<10x80xf32, #tpu.memory_space<vmem>>, %arg12: memref<10x80xf32, #tpu.memory_space<vmem>>, %arg13: memref<1x80xf32, #tpu.memory_space<vmem>>, %arg14: memref<80x20xf32, #tpu.memory_space<vmem>>, %arg15: memref<1x20xf32, #tpu.memory_space<vmem>>, %arg16: memref<20x1xf32, #tpu.memory_space<vmem>>, %arg17: memref<1x1xf32, #tpu.memory_space<vmem>>, %arg18: memref<1x1x1xf32, #tpu.memory_space<vmem>>) attributes {dimension_semantics = [#tpu.dimension_semantics<parallel>], iteration_bounds = array<i64: 2>, scalar_prefetch = 0 : i64, scratch_operands = 0 : i64, tpu.core_type = #tpu.core_type<tc>, window_params = [{transform_indices = @transform_0, window_bounds = array<i64: 1, 16, 48>}, {transform_indices = @transform_1, window_bounds = array<i64: 1, 1, 10>}, {pipeline_mode = #tpu.pipeline_mode<synchronous>, transform_indices = @transform_2, window_bounds = array<i64: 1, 48>}, {pipeline_mode = #tpu.pipeline_mode<synchronous>, transform_indices = @transform_3, window_bounds = array<i64: 1, 48>}, {pipeline_mode = #tpu.pipeline_mode<synchronous>, transform_indices = @transform_4, window_bounds = array<i64: 48, 10>}, {pipeline_mode = #tpu.pipeline_mode<synchronous>, transform_indices = @transform_5, window_bounds = array<i64: 1, 10>}, {pipeline_mode = #tpu.pipeline_mode<synchronous>, transform_indices = @transform_6, window_bounds = array<i64: 10, 40>}, {pipeline_mode = #tpu.pipeline_mode<synchronous>, transform_indices = @transform_7, window_bounds = array<i64: 1, 40>}, {pipeline_mode = #tpu.pipeline_mode<synchronous>, transform_indices = @transform_8, window_bounds = array<i64: 40, 10>}, {pipeline_mode = #tpu.pipeline_mode<synchronous>, transform_indices = @transform_9, window_bounds = array<i64: 1, 10>}, {pipeline_mode = #tpu.pipeline_mode<synchronous>, transform_indices = @transform_10, window_bounds = array<i64: 10, 80>}, {pipeline_mode = #tpu.pipeline_mode<synchronous>, transform_indices = @transform_11, window_bounds = array<i64: 10, 80>}, {pipeline_mode = #tpu.pipeline_mode<synchronous>, transform_indices = @transform_12, window_bounds = array<i64: 1, 80>}, {pipeline_mode = #tpu.pipeline_mode<synchronous>, transform_indices = @transform_13, window_bounds = array<i64: 80, 20>}, {pipeline_mode = #tpu.pipeline_mode<synchronous>, transform_indices = @transform_14, window_bounds = array<i64: 1, 20>}, {pipeline_mode = #tpu.pipeline_mode<synchronous>, transform_indices = @transform_15, window_bounds = array<i64: 20, 1>}, {pipeline_mode = #tpu.pipeline_mode<synchronous>, transform_indices = @transform_16, window_bounds = array<i64: 1, 1>}, {transform_indices = @transform_17, window_bounds = array<i64: 1, 1, 1>}]} {
    %c0 = arith.constant 0 : index
    %c0_0 = arith.constant 0 : index
    %c0_1 = arith.constant 0 : index
    %0 = vector.load %arg1[%c0, %c0_0, %c0_1] : memref<1x16x48xf32, #tpu.memory_space<vmem>>, vector<1x16x48xf32>
    %1 = vector.shape_cast %0 : vector<1x16x48xf32> to vector<16x48xf32>
    %c0_2 = arith.constant 0 : index
    %c0_3 = arith.constant 0 : index
    %2 = vector.load %arg3[%c0_2, %c0_3] : memref<1x48xf32, #tpu.memory_space<vmem>>, vector<1x48xf32>
    %c0_4 = arith.constant 0 : index
    %c0_5 = arith.constant 0 : index
    %3 = vector.load %arg4[%c0_4, %c0_5] : memref<1x48xf32, #tpu.memory_space<vmem>>, vector<1x48xf32>
    %cst = arith.constant dense<0.000000e+00> : vector<16xf32>
    %4 = vector.multi_reduction <add>, %1, %cst [1] : vector<16x48xf32> to vector<16xf32>
    %5 = vector.shape_cast %4 : vector<16xf32> to vector<16x1xf32>
    %cst_6 = arith.constant 4.800000e+01 : f32
    %6 = vector.broadcast %cst_6 : f32 to vector<16x1xf32>
    %7 = arith.divf %5, %6 : vector<16x1xf32>
    %8 = vector.broadcast %7 : vector<16x1xf32> to vector<16x48xf32>
    %9 = arith.subf %1, %8 : vector<16x48xf32>
    %10 = arith.mulf %9, %9 : vector<16x48xf32>
    %cst_7 = arith.constant dense<0.000000e+00> : vector<16xf32>
    %11 = vector.multi_reduction <add>, %10, %cst_7 [1] : vector<16x48xf32> to vector<16xf32>
    %12 = vector.shape_cast %11 : vector<16xf32> to vector<16x1xf32>
    %cst_8 = arith.constant 4.800000e+01 : f32
    %13 = vector.broadcast %cst_8 : f32 to vector<16x1xf32>
    %14 = arith.divf %12, %13 : vector<16x1xf32>
    %15 = vector.broadcast %7 : vector<16x1xf32> to vector<16x48xf32>
    %16 = arith.subf %1, %15 : vector<16x48xf32>
    %cst_9 = arith.constant 9.99999974E-6 : f32
    %17 = vector.broadcast %cst_9 : f32 to vector<16x1xf32>
    %18 = arith.addf %14, %17 : vector<16x1xf32>
    %19 = math.rsqrt %18 : vector<16x1xf32>
    %20 = vector.broadcast %19 : vector<16x1xf32> to vector<16x48xf32>
    %21 = arith.mulf %16, %20 : vector<16x48xf32>
    %22 = vector.broadcast %2 : vector<1x48xf32> to vector<16x48xf32>
    %23 = arith.mulf %21, %22 : vector<16x48xf32>
    %24 = vector.broadcast %3 : vector<1x48xf32> to vector<16x48xf32>
    %25 = arith.addf %23, %24 : vector<16x48xf32>
    %cst_10 = arith.constant dense<0.000000e+00> : vector<48xf32>
    %26 = vector.multi_reduction <add>, %25, %cst_10 [0] : vector<16x48xf32> to vector<48xf32>
    %27 = vector.shape_cast %26 : vector<48xf32> to vector<1x48xf32>
    %cst_11 = arith.constant 1.600000e+01 : f32
    %28 = vector.broadcast %cst_11 : f32 to vector<1x48xf32>
    %29 = arith.divf %27, %28 : vector<1x48xf32>
    %c0_12 = arith.constant 0 : index
    %c0_13 = arith.constant 0 : index
    %30 = vector.load %arg5[%c0_12, %c0_13] : memref<48x10xf32, #tpu.memory_space<vmem>>, vector<48x10xf32>
    %cst_14 = arith.constant dense<0.000000e+00> : vector<1x10xf32>
    %31 = tpu.matmul %29, %30, %cst_14 {dimension_numbers = #tpu.dot_dimension_numbers<[1], [0], [0], [1], [0, 0, 1, 1], [], []>} : vector<1x48xf32>, vector<48x10xf32>, vector<1x10xf32> -> vector<1x10xf32>
    %c0_15 = arith.constant 0 : index
    %c0_16 = arith.constant 0 : index
    %32 = vector.load %arg6[%c0_15, %c0_16] : memref<1x10xf32, #tpu.memory_space<vmem>>, vector<1x10xf32>
    %33 = arith.addf %31, %32 : vector<1x10xf32>
    %34 = math.tanh %33 : vector<1x10xf32>
    %c0_17 = arith.constant 0 : index
    %c0_18 = arith.constant 0 : index
    %c0_19 = arith.constant 0 : index
    %35 = vector.load %arg2[%c0_17, %c0_18, %c0_19] : memref<1x1x10xf32, #tpu.memory_space<vmem>>, vector<1x1x10xf32>
    %36 = vector.shape_cast %35 : vector<1x1x10xf32> to vector<1x10xf32>
    %c0_20 = arith.constant 0 : index
    %c0_21 = arith.constant 0 : index
    %37 = vector.load %arg7[%c0_20, %c0_21] : memref<10x40xf32, #tpu.memory_space<vmem>>, vector<10x40xf32>
    %cst_22 = arith.constant dense<0.000000e+00> : vector<1x40xf32>
    %38 = tpu.matmul %36, %37, %cst_22 {dimension_numbers = #tpu.dot_dimension_numbers<[1], [0], [0], [1], [0, 0, 1, 1], [], []>} : vector<1x10xf32>, vector<10x40xf32>, vector<1x40xf32> -> vector<1x40xf32>
    %c0_23 = arith.constant 0 : index
    %c0_24 = arith.constant 0 : index
    %39 = vector.load %arg8[%c0_23, %c0_24] : memref<1x40xf32, #tpu.memory_space<vmem>>, vector<1x40xf32>
    %40 = arith.addf %38, %39 : vector<1x40xf32>
    %cst_25 = arith.constant 5.000000e-01 : f32
    %41 = vector.broadcast %cst_25 : f32 to vector<1x40xf32>
    %42 = arith.mulf %41, %40 : vector<1x40xf32>
    %cst_26 = arith.constant 0.707106769 : f32
    %43 = vector.broadcast %cst_26 : f32 to vector<1x40xf32>
    %44 = arith.mulf %40, %43 : vector<1x40xf32>
    %cst_27 = arith.constant 0.000000e+00 : f32
    %45 = vector.broadcast %cst_27 : f32 to vector<1x40xf32>
    %46 = arith.cmpf oge, %44, %45 : vector<1x40xf32>
    %cst_28 = arith.constant 1.000000e+00 : f32
    %cst_29 = arith.constant -1.000000e+00 : f32
    %47 = vector.broadcast %cst_28 : f32 to vector<1x40xf32>
    %48 = vector.broadcast %cst_29 : f32 to vector<1x40xf32>
    %49 = arith.select %46, %47, %48 : vector<1x40xi1>, vector<1x40xf32>
    %50 = arith.mulf %44, %49 : vector<1x40xf32>
    %cst_30 = arith.constant 0.327591091 : f32
    %51 = vector.broadcast %cst_30 : f32 to vector<1x40xf32>
    %52 = arith.mulf %51, %50 : vector<1x40xf32>
    %cst_31 = arith.constant 1.000000e+00 : f32
    %53 = vector.broadcast %cst_31 : f32 to vector<1x40xf32>
    %54 = arith.addf %53, %52 : vector<1x40xf32>
    %cst_32 = arith.constant 1.000000e+00 : f32
    %55 = vector.broadcast %cst_32 : f32 to vector<1x40xf32>
    %56 = arith.divf %55, %54 : vector<1x40xf32>
    %cst_33 = arith.constant 1.06140542 : f32
    %57 = vector.broadcast %cst_33 : f32 to vector<1x40xf32>
    %58 = arith.mulf %57, %56 : vector<1x40xf32>
    %cst_34 = arith.constant -1.45315206 : f32
    %59 = vector.broadcast %cst_34 : f32 to vector<1x40xf32>
    %60 = arith.addf %58, %59 : vector<1x40xf32>
    %61 = arith.mulf %60, %56 : vector<1x40xf32>
    %cst_35 = arith.constant 1.42141378 : f32
    %62 = vector.broadcast %cst_35 : f32 to vector<1x40xf32>
    %63 = arith.addf %61, %62 : vector<1x40xf32>
    %64 = arith.mulf %63, %56 : vector<1x40xf32>
    %cst_36 = arith.constant -0.284496725 : f32
    %65 = vector.broadcast %cst_36 : f32 to vector<1x40xf32>
    %66 = arith.addf %64, %65 : vector<1x40xf32>
    %67 = arith.mulf %66, %56 : vector<1x40xf32>
    %cst_37 = arith.constant 0.254829586 : f32
    %68 = vector.broadcast %cst_37 : f32 to vector<1x40xf32>
    %69 = arith.addf %67, %68 : vector<1x40xf32>
    %70 = arith.mulf %69, %56 : vector<1x40xf32>
    %cst_38 = arith.constant 0.000000e+00 : f32
    %71 = vector.broadcast %cst_38 : f32 to vector<1x40xf32>
    %72 = arith.subf %71, %50 : vector<1x40xf32>
    %73 = arith.mulf %72, %50 : vector<1x40xf32>
    %74 = math.exp %73 : vector<1x40xf32>
    %75 = arith.mulf %70, %74 : vector<1x40xf32>
    %cst_39 = arith.constant 1.000000e+00 : f32
    %76 = vector.broadcast %cst_39 : f32 to vector<1x40xf32>
    %77 = arith.subf %76, %75 : vector<1x40xf32>
    %78 = arith.mulf %49, %77 : vector<1x40xf32>
    %cst_40 = arith.constant 1.000000e+00 : f32
    %79 = vector.broadcast %cst_40 : f32 to vector<1x40xf32>
    %80 = arith.addf %79, %78 : vector<1x40xf32>
    %81 = arith.mulf %42, %80 : vector<1x40xf32>
    %c0_41 = arith.constant 0 : index
    %c0_42 = arith.constant 0 : index
    %82 = vector.load %arg9[%c0_41, %c0_42] : memref<40x10xf32, #tpu.memory_space<vmem>>, vector<40x10xf32>
    %cst_43 = arith.constant dense<0.000000e+00> : vector<1x10xf32>
    %83 = tpu.matmul %81, %82, %cst_43 {dimension_numbers = #tpu.dot_dimension_numbers<[1], [0], [0], [1], [0, 0, 1, 1], [], []>} : vector<1x40xf32>, vector<40x10xf32>, vector<1x10xf32> -> vector<1x10xf32>
    %c0_44 = arith.constant 0 : index
    %c0_45 = arith.constant 0 : index
    %84 = vector.load %arg10[%c0_44, %c0_45] : memref<1x10xf32, #tpu.memory_space<vmem>>, vector<1x10xf32>
    %85 = arith.addf %83, %84 : vector<1x10xf32>
    %86 = math.tanh %85 : vector<1x10xf32>
    %c0_46 = arith.constant 0 : index
    %c0_47 = arith.constant 0 : index
    %87 = vector.load %arg11[%c0_46, %c0_47] : memref<10x80xf32, #tpu.memory_space<vmem>>, vector<10x80xf32>
    %cst_48 = arith.constant dense<0.000000e+00> : vector<1x80xf32>
    %88 = tpu.matmul %34, %87, %cst_48 {dimension_numbers = #tpu.dot_dimension_numbers<[1], [0], [0], [1], [0, 0, 1, 1], [], []>} : vector<1x10xf32>, vector<10x80xf32>, vector<1x80xf32> -> vector<1x80xf32>
    %c0_49 = arith.constant 0 : index
    %c0_50 = arith.constant 0 : index
    %89 = vector.load %arg12[%c0_49, %c0_50] : memref<10x80xf32, #tpu.memory_space<vmem>>, vector<10x80xf32>
    %cst_51 = arith.constant dense<0.000000e+00> : vector<1x80xf32>
    %90 = tpu.matmul %86, %89, %cst_51 {dimension_numbers = #tpu.dot_dimension_numbers<[1], [0], [0], [1], [0, 0, 1, 1], [], []>} : vector<1x10xf32>, vector<10x80xf32>, vector<1x80xf32> -> vector<1x80xf32>
    %91 = arith.addf %88, %90 : vector<1x80xf32>
    %c0_52 = arith.constant 0 : index
    %c0_53 = arith.constant 0 : index
    %92 = vector.load %arg13[%c0_52, %c0_53] : memref<1x80xf32, #tpu.memory_space<vmem>>, vector<1x80xf32>
    %93 = arith.addf %91, %92 : vector<1x80xf32>
    %cst_54 = arith.constant 5.000000e-01 : f32
    %94 = vector.broadcast %cst_54 : f32 to vector<1x80xf32>
    %95 = arith.mulf %94, %93 : vector<1x80xf32>
    %cst_55 = arith.constant 0.707106769 : f32
    %96 = vector.broadcast %cst_55 : f32 to vector<1x80xf32>
    %97 = arith.mulf %93, %96 : vector<1x80xf32>
    %cst_56 = arith.constant 0.000000e+00 : f32
    %98 = vector.broadcast %cst_56 : f32 to vector<1x80xf32>
    %99 = arith.cmpf oge, %97, %98 : vector<1x80xf32>
    %cst_57 = arith.constant 1.000000e+00 : f32
    %cst_58 = arith.constant -1.000000e+00 : f32
    %100 = vector.broadcast %cst_57 : f32 to vector<1x80xf32>
    %101 = vector.broadcast %cst_58 : f32 to vector<1x80xf32>
    %102 = arith.select %99, %100, %101 : vector<1x80xi1>, vector<1x80xf32>
    %103 = arith.mulf %97, %102 : vector<1x80xf32>
    %cst_59 = arith.constant 0.327591091 : f32
    %104 = vector.broadcast %cst_59 : f32 to vector<1x80xf32>
    %105 = arith.mulf %104, %103 : vector<1x80xf32>
    %cst_60 = arith.constant 1.000000e+00 : f32
    %106 = vector.broadcast %cst_60 : f32 to vector<1x80xf32>
    %107 = arith.addf %106, %105 : vector<1x80xf32>
    %cst_61 = arith.constant 1.000000e+00 : f32
    %108 = vector.broadcast %cst_61 : f32 to vector<1x80xf32>
    %109 = arith.divf %108, %107 : vector<1x80xf32>
    %cst_62 = arith.constant 1.06140542 : f32
    %110 = vector.broadcast %cst_62 : f32 to vector<1x80xf32>
    %111 = arith.mulf %110, %109 : vector<1x80xf32>
    %cst_63 = arith.constant -1.45315206 : f32
    %112 = vector.broadcast %cst_63 : f32 to vector<1x80xf32>
    %113 = arith.addf %111, %112 : vector<1x80xf32>
    %114 = arith.mulf %113, %109 : vector<1x80xf32>
    %cst_64 = arith.constant 1.42141378 : f32
    %115 = vector.broadcast %cst_64 : f32 to vector<1x80xf32>
    %116 = arith.addf %114, %115 : vector<1x80xf32>
    %117 = arith.mulf %116, %109 : vector<1x80xf32>
    %cst_65 = arith.constant -0.284496725 : f32
    %118 = vector.broadcast %cst_65 : f32 to vector<1x80xf32>
    %119 = arith.addf %117, %118 : vector<1x80xf32>
    %120 = arith.mulf %119, %109 : vector<1x80xf32>
    %cst_66 = arith.constant 0.254829586 : f32
    %121 = vector.broadcast %cst_66 : f32 to vector<1x80xf32>
    %122 = arith.addf %120, %121 : vector<1x80xf32>
    %123 = arith.mulf %122, %109 : vector<1x80xf32>
    %cst_67 = arith.constant 0.000000e+00 : f32
    %124 = vector.broadcast %cst_67 : f32 to vector<1x80xf32>
    %125 = arith.subf %124, %103 : vector<1x80xf32>
    %126 = arith.mulf %125, %103 : vector<1x80xf32>
    %127 = math.exp %126 : vector<1x80xf32>
    %128 = arith.mulf %123, %127 : vector<1x80xf32>
    %cst_68 = arith.constant 1.000000e+00 : f32
    %129 = vector.broadcast %cst_68 : f32 to vector<1x80xf32>
    %130 = arith.subf %129, %128 : vector<1x80xf32>
    %131 = arith.mulf %102, %130 : vector<1x80xf32>
    %cst_69 = arith.constant 1.000000e+00 : f32
    %132 = vector.broadcast %cst_69 : f32 to vector<1x80xf32>
    %133 = arith.addf %132, %131 : vector<1x80xf32>
    %134 = arith.mulf %95, %133 : vector<1x80xf32>
    %c0_70 = arith.constant 0 : index
    %c0_71 = arith.constant 0 : index
    %135 = vector.load %arg14[%c0_70, %c0_71] : memref<80x20xf32, #tpu.memory_space<vmem>>, vector<80x20xf32>
    %cst_72 = arith.constant dense<0.000000e+00> : vector<1x20xf32>
    %136 = tpu.matmul %134, %135, %cst_72 {dimension_numbers = #tpu.dot_dimension_numbers<[1], [0], [0], [1], [0, 0, 1, 1], [], []>} : vector<1x80xf32>, vector<80x20xf32>, vector<1x20xf32> -> vector<1x20xf32>
    %c0_73 = arith.constant 0 : index
    %c0_74 = arith.constant 0 : index
    %137 = vector.load %arg15[%c0_73, %c0_74] : memref<1x20xf32, #tpu.memory_space<vmem>>, vector<1x20xf32>
    %138 = arith.addf %136, %137 : vector<1x20xf32>
    %c0_75 = arith.constant 0 : index
    %c0_76 = arith.constant 0 : index
    %139 = vector.load %arg16[%c0_75, %c0_76] : memref<20x1xf32, #tpu.memory_space<vmem>>, vector<20x1xf32>
    %cst_77 = arith.constant dense<0.000000e+00> : vector<1x1xf32>
    %140 = tpu.matmul %138, %139, %cst_77 {dimension_numbers = #tpu.dot_dimension_numbers<[1], [0], [0], [1], [0, 0, 1, 1], [], []>} : vector<1x20xf32>, vector<20x1xf32>, vector<1x1xf32> -> vector<1x1xf32>
    %c0_78 = arith.constant 0 : index
    %c0_79 = arith.constant 0 : index
    %141 = vector.load %arg17[%c0_78, %c0_79] : memref<1x1xf32, #tpu.memory_space<vmem>>, vector<1x1xf32>
    %142 = arith.addf %140, %141 : vector<1x1xf32>
    %143 = arith.negf %142 : vector<1x1xf32>
    %144 = math.exp %143 : vector<1x1xf32>
    %cst_80 = arith.constant 1.000000e+00 : f32
    %145 = vector.broadcast %cst_80 : f32 to vector<1x1xf32>
    %146 = arith.addf %145, %144 : vector<1x1xf32>
    %147 = arith.divf %145, %146 : vector<1x1xf32>
    %c0_81 = arith.constant 0 : index
    %c0_82 = arith.constant 0 : index
    %c0_83 = arith.constant 0 : index
    %148 = vector.load %arg18[%c0_81, %c0_82, %c0_83] : memref<1x1x1xf32, #tpu.memory_space<vmem>>, vector<1x1x1xf32>
    %149 = vector.shape_cast %148 : vector<1x1x1xf32> to vector<1x1xf32>
    %150 = vector.shape_cast %147 : vector<1x1xf32> to vector<1x1x1xf32>
    tpu.vector_store %arg18[%c0_81, %c0_82, %c0_83], %150 {strides = array<i32>} : memref<1x1x1xf32, #tpu.memory_space<vmem>>, vector<1x1x1xf32>,
    return
  }
  func.func @transform_0(%arg0: i32) -> (i32, i32, i32) {
    %c0_i32 = arith.constant 0 : i32
    %c0_i32_0 = arith.constant 0 : i32
    %c0_i32_1 = arith.constant 0 : i32
    return %arg0, %c0_i32, %c0_i32_0 : i32, i32, i32
  }
  func.func @transform_1(%arg0: i32) -> (i32, i32, i32) {
    %c0_i32 = arith.constant 0 : i32
    %c0_i32_0 = arith.constant 0 : i32
    %c0_i32_1 = arith.constant 0 : i32
    return %arg0, %c0_i32, %c0_i32_0 : i32, i32, i32
  }
  func.func @transform_2(%arg0: i32) -> (i32, i32) {
    %c0_i32 = arith.constant 0 : i32
    %c0_i32_0 = arith.constant 0 : i32
    %c0_i32_1 = arith.constant 0 : i32
    return %c0_i32, %c0_i32_0 : i32, i32
  }
  func.func @transform_3(%arg0: i32) -> (i32, i32) {
    %c0_i32 = arith.constant 0 : i32
    %c0_i32_0 = arith.constant 0 : i32
    %c0_i32_1 = arith.constant 0 : i32
    return %c0_i32, %c0_i32_0 : i32, i32
  }
  func.func @transform_4(%arg0: i32) -> (i32, i32) {
    %c0_i32 = arith.constant 0 : i32
    %c0_i32_0 = arith.constant 0 : i32
    %c0_i32_1 = arith.constant 0 : i32
    return %c0_i32, %c0_i32_0 : i32, i32
  }
  func.func @transform_5(%arg0: i32) -> (i32, i32) {
    %c0_i32 = arith.constant 0 : i32
    %c0_i32_0 = arith.constant 0 : i32
    %c0_i32_1 = arith.constant 0 : i32
    return %c0_i32, %c0_i32_0 : i32, i32
  }
  func.func @transform_6(%arg0: i32) -> (i32, i32) {
    %c0_i32 = arith.constant 0 : i32
    %c0_i32_0 = arith.constant 0 : i32
    %c0_i32_1 = arith.constant 0 : i32
    return %c0_i32, %c0_i32_0 : i32, i32
  }
  func.func @transform_7(%arg0: i32) -> (i32, i32) {
    %c0_i32 = arith.constant 0 : i32
    %c0_i32_0 = arith.constant 0 : i32
    %c0_i32_1 = arith.constant 0 : i32
    return %c0_i32, %c0_i32_0 : i32, i32
  }
  func.func @transform_8(%arg0: i32) -> (i32, i32) {
    %c0_i32 = arith.constant 0 : i32
    %c0_i32_0 = arith.constant 0 : i32
    %c0_i32_1 = arith.constant 0 : i32
    return %c0_i32, %c0_i32_0 : i32, i32
  }
  func.func @transform_9(%arg0: i32) -> (i32, i32) {
    %c0_i32 = arith.constant 0 : i32
    %c0_i32_0 = arith.constant 0 : i32
    %c0_i32_1 = arith.constant 0 : i32
    return %c0_i32, %c0_i32_0 : i32, i32
  }
  func.func @transform_10(%arg0: i32) -> (i32, i32) {
    %c0_i32 = arith.constant 0 : i32
    %c0_i32_0 = arith.constant 0 : i32
    %c0_i32_1 = arith.constant 0 : i32
    return %c0_i32, %c0_i32_0 : i32, i32
  }
  func.func @transform_11(%arg0: i32) -> (i32, i32) {
    %c0_i32 = arith.constant 0 : i32
    %c0_i32_0 = arith.constant 0 : i32
    %c0_i32_1 = arith.constant 0 : i32
    return %c0_i32, %c0_i32_0 : i32, i32
  }
  func.func @transform_12(%arg0: i32) -> (i32, i32) {
    %c0_i32 = arith.constant 0 : i32
    %c0_i32_0 = arith.constant 0 : i32
    %c0_i32_1 = arith.constant 0 : i32
    return %c0_i32, %c0_i32_0 : i32, i32
  }
  func.func @transform_13(%arg0: i32) -> (i32, i32) {
    %c0_i32 = arith.constant 0 : i32
    %c0_i32_0 = arith.constant 0 : i32
    %c0_i32_1 = arith.constant 0 : i32
    return %c0_i32, %c0_i32_0 : i32, i32
  }
  func.func @transform_14(%arg0: i32) -> (i32, i32) {
    %c0_i32 = arith.constant 0 : i32
    %c0_i32_0 = arith.constant 0 : i32
    %c0_i32_1 = arith.constant 0 : i32
    return %c0_i32, %c0_i32_0 : i32, i32
  }
  func.func @transform_15(%arg0: i32) -> (i32, i32) {
    %c0_i32 = arith.constant 0 : i32
    %c0_i32_0 = arith.constant 0 : i32
    %c0_i32_1 = arith.constant 0 : i32
    return %c0_i32, %c0_i32_0 : i32, i32
  }
  func.func @transform_16(%arg0: i32) -> (i32, i32) {
    %c0_i32 = arith.constant 0 : i32
    %c0_i32_0 = arith.constant 0 : i32
    %c0_i32_1 = arith.constant 0 : i32
    return %c0_i32, %c0_i32_0 : i32, i32
  }
  func.func @transform_17(%arg0: i32) -> (i32, i32, i32) {
    %c0_i32 = arith.constant 0 : i32
    %c0_i32_0 = arith.constant 0 : i32
    %c0_i32_1 = arith.constant 0 : i32
    return %arg0, %c0_i32, %c0_i32_0 : i32, i32, i32
  }
}

</mosaic_0001>

<bundles_post_ra>
// kernel: model_forward.7
= control target key start
LH: loop header
LB: loop body
LE: loop exit
PB: predicated region body
PF: predicated region fallthrough
CT: control target
= control target key end

     0   :  { %vm49_vm0 = vcmask 392192   ;;  %vm245_vm1 = vcmask 195584   ;;  %s1033_s1 = inlined_call_operand.vmem [shape: f32[48,24], index: 1, kind: input, shape index: {}]   ;;  %s1034_s0 = inlined_call_operand.vmem [shape: f32[128,48], index: 0, kind: input, shape index: {}]   ;;  %s1035_s2 = inlined_call_operand.vmem [shape: f32[1,24], index: 2, kind: input, shape index: {}]   ;;  %s1036_s3 = inlined_call_operand.vmem [shape: f32[1,24], index: 3, kind: input, shape index: {}]   ;;  %s1037_s4 = inlined_call_operand.vmem [shape: f32[1,24], index: 4, kind: input, shape index: {}]   ;;  %s1038_s5 = inlined_call_operand.vmem [shape: f32[128,24], index: 5, kind: output, shape index: {}]  }
   0x1   :  { %v41_v0 = vld [vmem:[%s1033_s1 + $0x28] sm:$0xff]  ;;  %v40_v1 = vld [vmem:[%s1033_s1 + $0x20] sm:$0xff]  ;;  %v39_v2 = vld [vmem:[%s1033_s1 + $0x18] sm:$0xff] }
   0x2   :  { %560 = vmatprep.subr.mxu0 %v41_v0  ;;  %596 = vmatprep.subr.mxu1 %v41_v0  ;;  %v38_v3 = vld [vmem:[%s1033_s1 + $0x10] sm:$0xff]  ;;  %v37_v4 = vld [vmem:[%s1033_s1 + $0x8] sm:$0xff]  ;;  %v36_v5 = vld [vmem:[%s1033_s1] sm:$0xff] }
   0x3   :  { %561 = vmatpush3.msra.mxu0 %v41_v0  ;;  %602 = vmatpush3.msra.mxu1 %v41_v0  ;;  %v20_v6 = vld [vmem:[%s1034_s0] sm:$0xff]  ;;  %v21_v8 = vld [vmem:[%s1034_s0 + $0x8] sm:$0xff]  ;;  %v22_v10 = vld [vmem:[%s1034_s0 + $0x10] sm:$0xff] }
   0x4   :  { %562 = vmatprep.subr.mxu0 %v40_v1  ;;  %597 = vmatprep.subr.mxu1 %v40_v1  ;;  %v28_v7 = vld [vmem:[%s1034_s0 + $0x40] sm:$0xff]  ;;  %v29_v9 = vld [vmem:[%s1034_s0 + $0x48] sm:$0xff]  ;;  %v30_v11 = vld [vmem:[%s1034_s0 + $0x50] sm:$0xff] }
   0x5   :  { %563 = vmatpush3.msra.mxu0 %v40_v1  ;;  %603 = vmatpush3.msra.mxu1 %v40_v1  ;;  %v23_v12 = vld [vmem:[%s1034_s0 + $0x18] sm:$0xff]  ;;  %v24_v14 = vld [vmem:[%s1034_s0 + $0x20] sm:$0xff]  ;;  %v25_v16 = vld [vmem:[%s1034_s0 + $0x28] sm:$0xff] }
   0x6   :  { %564 = vmatprep.subr.mxu0 %v39_v2  ;;  %598 = vmatprep.subr.mxu1 %v39_v2  ;;  %v31_v13 = vld [vmem:[%s1034_s0 + $0x58] sm:$0xff]  ;;  %v32_v15 = vld [vmem:[%s1034_s0 + $0x60] sm:$0xff]  ;;  %v33_v17 = vld [vmem:[%s1034_s0 + $0x68] sm:$0xff] }
   0x7   :  { %565 = vmatpush3.msra.mxu0 %v39_v2  ;;  %604 = vmatpush3.msra.mxu1 %v39_v2  ;;  %v26_v18 = vld [vmem:[%s1034_s0 + $0x30] sm:$0xff]  ;;  %v27_v20 = vld [vmem:[%s1034_s0 + $0x38] sm:$0xff]  ;;  %v519_v22 = vld [vmem:[%s1035_s2] ss:$0 sm:$0xff] }
   0x8   :  { %566 = vmatprep.subr.mxu0 %v38_v3  ;;  %599 = vmatprep.subr.mxu1 %v38_v3  ;;  %v34_v19 = vld [vmem:[%s1034_s0 + $0x70] sm:$0xff]  ;;  %v35_v21 = vld [vmem:[%s1034_s0 + $0x78] sm:$0xff] }
   0x9   :  { %567 = vmatpush3.msra.mxu0 %v38_v3  ;;  %605 = vmatpush3.msra.mxu1 %v38_v3 }
   0xa   :  { %568 = vmatprep.subr.mxu0 %v37_v4  ;;  %600 = vmatprep.subr.mxu1 %v37_v4 }
   0xb   :  { %569 = vmatpush3.msra.mxu0 %v37_v4  ;;  %606 = vmatpush3.msra.mxu1 %v37_v4 }
   0xc   :  { %570 = vmatprep.subr.mxu0 %v36_v5  ;;  %601 = vmatprep.subr.mxu1 %v36_v5 }
   0xd   :  { %571 = vmatpush3.msra.mxu0 %v36_v5  ;;  %607 = vmatpush3.msra.mxu1 %v36_v5 }
   0xe   :  { %572 = vmatprep.mubr.msk.f32.mxu0 %vm49_vm0, %v20_v6  ;;  %584 = vmatprep.mubr.msk.f32.mxu1 %vm49_vm0, %v28_v7 }
   0xf   :  { %573 = vmatmul.mubr.msk.f32.vlgmr.msra.gmra.mxu0 %vm49_vm0, %v21_v8  ;;  %585 = vmatmul.mubr.msk.f32.vlgmr.msra.gmra.mxu1 %vm49_vm0, %v29_v9 }
  0x10   :  { %575 = vmatprep.mubr.msk.f32.mxu0 %vm49_vm0, %v22_v10  ;;  %587 = vmatprep.mubr.msk.f32.mxu1 %vm49_vm0, %v30_v11 }
  0x13   :  { %576 = vmatmul.mubr.msk.f32.gmra.mxu0 %vm49_vm0, %v23_v12  ;;  %588 = vmatmul.mubr.msk.f32.gmra.mxu1 %vm49_vm0, %v31_v13 }
  0x14   :  { %578 = vmatprep.mubr.msk.f32.mxu0 %vm49_vm0, %v24_v14  ;;  %590 = vmatprep.mubr.msk.f32.mxu1 %vm49_vm0, %v32_v15 }
  0x17   :  { %579 = vmatmul.mubr.msk.f32.gmra.mxu0 %vm49_vm0, %v25_v16  ;;  %591 = vmatmul.mubr.msk.f32.gmra.mxu1 %vm49_vm0, %v33_v17 }
  0x18   :  { %581 = vmatprep.mubr.msk.f32.mxu0 %vm49_vm0, %v26_v18  ;;  %593 = vmatprep.mubr.msk.f32.mxu1 %vm49_vm0, %v34_v19 }
  0x1b   :  { %582 = vmatmul.mubr.msk.f32.gmra.mxu0 %vm49_vm0, %v27_v20  ;;  %594 = vmatmul.mubr.msk.f32.gmra.mxu1 %vm49_vm0, %v35_v21 }
  0xcf   :  { %v574_v23 = vpop.f32.mrf.mxu0  ;;  %v586_v24 = vpop.f32.mrf.mxu1 }
  0xd0   :  { %v755_v25 = vadd.f32 %v574_v23, %v519_v22  ;;  %v757_v26 = vadd.f32 %v586_v24, %v519_v22 }
  0xd1   :  { %v164_v27 = vpop.f32.mrf.mxu0  ;;  %v204_v28 = vpop.f32.mrf.mxu1 }
  0xd2   :  { %v759_v29 = vadd.f32 %v519_v22, %v164_v27  ;;  %v273_v30 = vsel %vm245_vm1, %v757_v26, 0.0  ;;  %v249_v31 = vsel %vm245_vm1, %v755_v25, 0.0  ;;  %v767_v37 = vadd.f32 %v519_v22, %v204_v28 }
  0xd3   :  { %274 = vadd.xlane.f32.xlu1 %v273_v30  ;;  %250 = vadd.xlane.f32.xlu0 %v249_v31  ;;  %v577_v32 = vpop.f32.mrf.mxu0  ;;  %v589_v33 = vpop.f32.mrf.mxu1 }
  0xd4   :  { %v180_v34 = vadd.f32 %v577_v32, %v519_v22  ;;  %v765_v35 = vadd.f32 %v589_v33, %v519_v22  ;;  %v246_v39 = vsel %vm245_vm1, %v759_v29, 0.0  ;;  %v270_v47 = vsel %vm245_vm1, %v767_v37, 0.0 }
  0xd5   :  { %v174_v36 = vpop.f32.mrf.mxu0  ;;  %v214_v40 = vpop.f32.mrf.mxu1 }
  0xd6   :  { %v255_v38 = vsel %vm245_vm1, %v180_v34, 0.0  ;;  %v279_v42 = vsel %vm245_vm1, %v765_v35, 0.0  ;;  %v774_v45 = vadd.f32 %v519_v22, %v174_v36  ;;  %v776_v46 = vadd.f32 %v519_v22, %v214_v40 }
  0xd7   :  { %256 = vadd.xlane.f32.xlu1 %v255_v38  ;;  %247 = vadd.xlane.f32.xlu0 %v246_v39  ;;  %v580_v41 = vpop.f32.mrf.mxu0  ;;  %v592_v44 = vpop.f32.mrf.mxu1 }
  0xd8   :  { %v780_v48 = vadd.f32 %v580_v41, %v519_v22  ;;  %v252_v52 = vsel %vm245_vm1, %v774_v45, 0.0  ;;  %v276_v53 = vsel %vm245_vm1, %v776_v46, 0.0  ;;  %v788_v54 = vadd.f32 %v592_v44, %v519_v22 }
  0xd9   :  { %v184_v43 = vpop.f32.mrf.mxu0  ;;  %v224_v50 = vpop.f32.mrf.mxu1 }
  0xda   :  { %v782_v49 = vadd.f32 %v519_v22, %v184_v43  ;;  %v790_v55 = vadd.f32 %v519_v22, %v224_v50  ;;  %v261_v56 = vsel %vm245_vm1, %v780_v48, 0.0  ;;  %v285_v62 = vsel %vm245_vm1, %v788_v54, 0.0 }
  0xdb   :  { %280 = vadd.xlane.f32.xlu1 %v279_v42  ;;  %271 = vadd.xlane.f32.xlu0 %v270_v47  ;;  %v583_v51 = vpop.f32.mrf.mxu0  ;;  %v595_v59 = vpop.f32.mrf.mxu1 }
  0xdc   :  { %v258_v57 = vsel %vm245_vm1, %v782_v49, 0.0  ;;  %v796_v60 = vadd.f32 %v583_v51, %v519_v22  ;;  %v282_v63 = vsel %vm245_vm1, %v790_v55, 0.0  ;;  %v804_v1 = vadd.f32 %v595_v59, %v519_v22 }
  0xdd   :  { %v194_v58 = vpop.f32.mrf.mxu0  ;;  %v234_v0 = vpop.f32.mrf.mxu1 }
  0xde   :  { %v798_v61 = vadd.f32 %v519_v22, %v194_v58  ;;  %v806_v2 = vadd.f32 %v519_v22, %v234_v0  ;;  %v267_v3 = vsel %vm245_vm1, %v796_v60, 0.0  ;;  %v291_v5 = vsel %vm245_vm1, %v804_v1, 0.0 }
  0xdf   :  { %253 = vadd.xlane.f32.xlu1 %v252_v52  ;;  %277 = vadd.xlane.f32.xlu0 %v276_v53 }
  0xe0   :  { %v264_v4 = vsel %vm245_vm1, %v798_v61, 0.0  ;;  %v288_v6 = vsel %vm245_vm1, %v806_v2, 0.0 }
  0xe3   :  { %262 = vadd.xlane.f32.xlu1 %v261_v56  ;;  %259 = vadd.xlane.f32.xlu0 %v258_v57 }
  0xe7   :  { %286 = vadd.xlane.f32.xlu1 %v285_v62  ;;  %283 = vadd.xlane.f32.xlu0 %v282_v63 }
  0xeb   :  { %268 = vadd.xlane.f32.xlu1 %v267_v3  ;;  %265 = vadd.xlane.f32.xlu0 %v264_v4 }
  0xef   :  { %292 = vadd.xlane.f32.xlu1 %v291_v5  ;;  %289 = vadd.xlane.f32.xlu0 %v288_v6 }
 0x15c   :  { %v275_v7 = vpop.xlane.xlu1 %274  ;;  %v251_v8 = vpop.xlane.xlu0 %250 }
 0x15d   :  { %v304_v9 = vmul.f32 0.041666668, %v275_v7  ;;  %v296_v10 = vmul.f32 0.041666668, %v251_v8 }
 0x15f   :  { %v817_v11 = vsub.f32 %v757_v26, %v304_v9  ;;  %v820_v12 = vsub.f32 %v755_v25, %v296_v10 }
 0x160   :  { %v257_v13 = vpop.xlane.xlu1 %256  ;;  %v248_v14 = vpop.xlane.xlu0 %247 }
 0x161   :  { %v298_v15 = vmul.f32 0.041666668, %v257_v13  ;;  %v295_v16 = vmul.f32 0.041666668, %v248_v14  ;;  %v328_v17 = vmul.f32 %v820_v12, %v820_v12  ;;  %v336_v21 = vmul.f32 %v817_v11, %v817_v11 }
 0x163   :  { %v824_v18 = vsub.f32 %v180_v34, %v298_v15  ;;  %v827_v19 = vsub.f32 %v759_v29, %v295_v16  ;;  %v346_v20 = vsel %vm245_vm1, %v328_v17, 0.0  ;;  %v370_v30 = vsel %vm245_vm1, %v336_v21, 0.0 }
 0x164   :  { %v281_v22 = vpop.xlane.xlu1 %280  ;;  %347 = vadd.xlane.f32.xlu1 %v346_v20  ;;  %v272_v23 = vpop.xlane.xlu0 %271 }
 0x165   :  { %v306_v24 = vmul.f32 0.041666668, %v281_v22  ;;  %v303_v25 = vmul.f32 0.041666668, %v272_v23  ;;  %v327_v26 = vmul.f32 %v827_v19, %v827_v19  ;;  %v330_v27 = vmul.f32 %v824_v18, %v824_v18 }
 0x167   :  { %v837_v28 = vsub.f32 %v765_v35, %v306_v24  ;;  %v840_v29 = vsub.f32 %v767_v37, %v303_v25  ;;  %v343_v31 = vsel %vm245_vm1, %v327_v26, 0.0  ;;  %v352_v39 = vsel %vm245_vm1, %v330_v27, 0.0 }
 0x168   :  { %371 = vadd.xlane.f32.xlu1 %v370_v30  ;;  %v254_v32 = vpop.xlane.xlu1 %253  ;;  %344 = vadd.xlane.f32.xlu0 %v343_v31  ;;  %v278_v33 = vpop.xlane.xlu0 %277 }
 0x169   :  { %v297_v34 = vmul.f32 0.041666668, %v254_v32  ;;  %v305_v36 = vmul.f32 0.041666668, %v278_v33  ;;  %v335_v38 = vmul.f32 %v840_v29, %v840_v29  ;;  %v338_v41 = vmul.f32 %v837_v28, %v837_v28 }
 0x16b   :  { %v848_v35 = vsub.f32 %v774_v45, %v297_v34  ;;  %v851_v37 = vsub.f32 %v776_v46, %v305_v36  ;;  %v367_v40 = vsel %vm245_vm1, %v335_v38, 0.0  ;;  %v376_v52 = vsel %vm245_vm1, %v338_v41, 0.0 }
 0x16c   :  { %353 = vadd.xlane.f32.xlu1 %v352_v39  ;;  %v263_v42 = vpop.xlane.xlu1 %262  ;;  %368 = vadd.xlane.f32.xlu0 %v367_v40  ;;  %v260_v43 = vpop.xlane.xlu0 %259 }
 0x16d   :  { %v300_v44 = vmul.f32 0.041666668, %v263_v42  ;;  %v299_v47 = vmul.f32 0.041666668, %v260_v43  ;;  %v329_v50 = vmul.f32 %v848_v35, %v848_v35  ;;  %v337_v45 = vmul.f32 %v851_v37, %v851_v37 }
 0x16f   :  { %v861_v46 = vsub.f32 %v780_v48, %v300_v44  ;;  %v864_v51 = vsub.f32 %v782_v49, %v299_v47  ;;  %v349_v53 = vsel %vm245_vm1, %v329_v50, 0.0  ;;  %v373_v63 = vsel %vm245_vm1, %v337_v45, 0.0 }
 0x170   :  { %377 = vadd.xlane.f32.xlu1 %v376_v52  ;;  %v287_v56 = vpop.xlane.xlu1 %286  ;;  %350 = vadd.xlane.f32.xlu0 %v349_v53  ;;  %v284_v57 = vpop.xlane.xlu0 %283 }
 0x171   :  { %v308_v58 = vmul.f32 0.041666668, %v287_v56  ;;  %v307_v59 = vmul.f32 0.041666668, %v284_v57  ;;  %v332_v62 = vmul.f32 %v861_v46, %v861_v46  ;;  %v331_v3 = vmul.f32 %v864_v51, %v864_v51 }
 0x173   :  { %v872_v48 = vsub.f32 %v788_v54, %v308_v58  ;;  %v875_v49 = vsub.f32 %v790_v55, %v307_v59  ;;  %v358_v0 = vsel %vm245_vm1, %v332_v62, 0.0  ;;  %v355_v13 = vsel %vm245_vm1, %v331_v3, 0.0  ;;  %v914_v3 = vld [vmem:[%s1036_s3] ss:$0 sm:$0xff] }
 0x174   :  { %359 = vadd.xlane.f32.xlu1 %v358_v0  ;;  %v269_v4 = vpop.xlane.xlu1 %268  ;;  %374 = vadd.xlane.f32.xlu0 %v373_v63  ;;  %v266_v5 = vpop.xlane.xlu0 %265 }
 0x175   :  { %v302_v6 = vmul.f32 0.041666668, %v269_v4  ;;  %v301_v7 = vmul.f32 0.041666668, %v266_v5  ;;  %v340_v8 = vmul.f32 %v872_v48, %v872_v48  ;;  %v339_v54 = vmul.f32 %v875_v49, %v875_v49 }
 0x177   :  { %v885_v55 = vsub.f32 %v796_v60, %v302_v6  ;;  %v888_v9 = vsub.f32 %v798_v61, %v301_v7  ;;  %v382_v10 = vsel %vm245_vm1, %v340_v8, 0.0  ;;  %v379_v21 = vsel %vm245_vm1, %v339_v54, 0.0  ;;  %v920_v7 = vld [vmem:[%s1037_s4] ss:$0 sm:$0xff] }
 0x178   :  { %383 = vadd.xlane.f32.xlu1 %v382_v10  ;;  %v293_v14 = vpop.xlane.xlu1 %292  ;;  %356 = vadd.xlane.f32.xlu0 %v355_v13  ;;  %v290_v15 = vpop.xlane.xlu0 %289 }
 0x179   :  { %v310_v16 = vmul.f32 0.041666668, %v293_v14  ;;  %v309_v17 = vmul.f32 0.041666668, %v290_v15  ;;  %v334_v20 = vmul.f32 %v885_v55, %v885_v55  ;;  %v333_v23 = vmul.f32 %v888_v9, %v888_v9 }
 0x17b   :  { %v896_v60 = vsub.f32 %v804_v1, %v310_v16  ;;  %v899_v61 = vsub.f32 %v806_v2, %v309_v17  ;;  %v364_v22 = vsel %vm245_vm1, %v334_v20, 0.0  ;;  %v361_v26 = vsel %vm245_vm1, %v333_v23, 0.0 }
 0x17c   :  { %365 = vadd.xlane.f32.xlu1 %v364_v22  ;;  %380 = vadd.xlane.f32.xlu0 %v379_v21 }
 0x17d   :  { %v342_v24 = vmul.f32 %v896_v60, %v896_v60  ;;  %v341_v1 = vmul.f32 %v899_v61, %v899_v61 }
 0x17f   :  { %v388_v25 = vsel %vm245_vm1, %v342_v24, 0.0  ;;  %v385_v2 = vsel %vm245_vm1, %v341_v1, 0.0 }
 0x180   :  { %389 = vadd.xlane.f32.xlu1 %v388_v25  ;;  %362 = vadd.xlane.f32.xlu0 %v361_v26 }
 0x184   :  { %386 = vadd.xlane.f32.xlu0 %v385_v2 }
 0x1ed   :  { %v348_v27 = vpop.xlane.xlu1 %347 }
 0x1ee   :  { %v392_v30 = vmul.f32 0.041666668, %v348_v27 }
 0x1f0   :  { %v408_v31 = vadd.f32 1e-05, %v392_v30 }
 0x1f1   :  { %v372_v32 = vpop.xlane.xlu1 %371  ;;  %v345_v33 = vpop.xlane.xlu0 %344 }
 0x1f2   :  { %608 = vrsqrt.f32 %v408_v31  ;;  %v400_v34 = vmul.f32 0.041666668, %v372_v32  ;;  %v391_v36 = vmul.f32 0.041666668, %v345_v33 }
 0x1f4   :  { %v416_v38 = vadd.f32 1e-05, %v400_v34  ;;  %v407_v39 = vadd.f32 1e-05, %v391_v36 }
 0x1f5   :  { %v354_v40 = vpop.xlane.xlu1 %353  ;;  %v369_v41 = vpop.xlane.xlu0 %368 }
 0x1f6   :  { %610 = vrsqrt.f32 %v416_v38  ;;  %v394_v42 = vmul.f32 0.041666668, %v354_v40  ;;  %v399_v43 = vmul.f32 0.041666668, %v369_v41 }
 0x1f7   :  { %612 = vrsqrt.f32 %v407_v39 }
 0x1f8   :  { %v410_v44 = vadd.f32 1e-05, %v394_v42  ;;  %v415_v47 = vadd.f32 1e-05, %v399_v43 }
 0x1f9   :  { %v378_v50 = vpop.xlane.xlu1 %377  ;;  %v351_v45 = vpop.xlane.xlu0 %350 }
 0x1fa   :  { %614 = vrsqrt.f32 %v410_v44  ;;  %v402_v52 = vmul.f32 0.041666668, %v378_v50  ;;  %v393_v53 = vmul.f32 0.041666668, %v351_v45 }
 0x1fb   :  { %616 = vrsqrt.f32 %v415_v47 }
 0x1fc   :  { %v418_v56 = vadd.f32 1e-05, %v402_v52  ;;  %v409_v57 = vadd.f32 1e-05, %v393_v53 }
 0x1fd   :  { %v360_v58 = vpop.xlane.xlu1 %359  ;;  %v375_v59 = vpop.xlane.xlu0 %374 }
 0x1fe   :  { %618 = vrsqrt.f32 %v418_v56  ;;  %v396_v62 = vmul.f32 0.041666668, %v360_v58  ;;  %v401_v63 = vmul.f32 0.041666668, %v375_v59 }
 0x1ff   :  { %v609_v0 = vpop.eup %608  ;;  %620 = vrsqrt.f32 %v409_v57 }
 0x200   :  { %v440_v4 = vmul.f32 %v609_v0, %v820_v12  ;;  %v412_v5 = vadd.f32 1e-05, %v396_v62  ;;  %v417_v6 = vadd.f32 1e-05, %v401_v63 }
 0x201   :  { %v384_v8 = vpop.xlane.xlu1 %383  ;;  %v357_v54 = vpop.xlane.xlu0 %356 }
 0x202   :  { %v462_v10 = vmul.f32 %v914_v3, %v440_v4  ;;  %622 = vrsqrt.f32 %v412_v5  ;;  %v404_v13 = vmul.f32 0.041666668, %v384_v8  ;;  %v395_v14 = vmul.f32 0.041666668, %v357_v54 }
 0x203   :  { %v611_v15 = vpop.eup %610  ;;  %624 = vrsqrt.f32 %v417_v6 }
 0x204   :  { %v613_v16 = vpop.eup %612  ;;  %v484_v17 = vadd.f32 %v920_v7, %v462_v10  ;;  %v448_v12 = vmul.f32 %v611_v15, %v817_v11  ;;  %v420_v20 = vadd.f32 1e-05, %v404_v13  ;;  %v411_v21 = vadd.f32 1e-05, %v395_v14 }
 0x205   :  { %v439_v22 = vmul.f32 %v613_v16, %v827_v19  ;;  %v366_v23 = vpop.xlane.xlu1 %365  ;;  %v381_v24 = vpop.xlane.xlu0 %380 }
 0x206   :  { %500 = vst.msk [vmem:[%s1038_s5 + $0x8] sm:$0xff] %vm245_vm1, %v484_v17  ;;  %v470_v25 = vmul.f32 %v914_v3, %v448_v12  ;;  %626 = vrsqrt.f32 %v420_v20  ;;  %v398_v26 = vmul.f32 0.041666668, %v366_v23  ;;  %v403_v1 = vmul.f32 0.041666668, %v381_v24 }
 0x207   :  { %v615_v2 = vpop.eup %614  ;;  %v461_v27 = vmul.f32 %v914_v3, %v439_v22  ;;  %628 = vrsqrt.f32 %v411_v21 }
 0x208   :  { %v617_v11 = vpop.eup %616  ;;  %v492_v30 = vadd.f32 %v920_v7, %v470_v25  ;;  %v442_v19 = vmul.f32 %v615_v2, %v824_v18  ;;  %v414_v31 = vadd.f32 1e-05, %v398_v26  ;;  %v419_v32 = vadd.f32 1e-05, %v403_v1 }
 0x209   :  { %v483_v33 = vadd.f32 %v920_v7, %v461_v27  ;;  %v447_v34 = vmul.f32 %v617_v11, %v840_v29  ;;  %v390_v36 = vpop.xlane.xlu1 %389  ;;  %v363_v38 = vpop.xlane.xlu0 %362 }
 0x20a   :  { %508 = vst.msk [vmem:[%s1038_s5 + $0x48] sm:$0xff] %vm245_vm1, %v492_v30  ;;  %v464_v39 = vmul.f32 %v914_v3, %v442_v19  ;;  %630 = vrsqrt.f32 %v414_v31  ;;  %v406_v40 = vmul.f32 0.041666668, %v390_v36  ;;  %v397_v41 = vmul.f32 0.041666668, %v363_v38 }
 0x20b   :  { %v619_v42 = vpop.eup %618  ;;  %499 = vst.msk [vmem:[%s1038_s5] sm:$0xff] %vm245_vm1, %v483_v33  ;;  %v469_v18 = vmul.f32 %v914_v3, %v447_v34  ;;  %632 = vrsqrt.f32 %v419_v32 }
 0x20c   :  { %v621_v29 = vpop.eup %620  ;;  %v486_v43 = vadd.f32 %v920_v7, %v464_v39  ;;  %v450_v44 = vmul.f32 %v619_v42, %v837_v28  ;;  %v422_v47 = vadd.f32 1e-05, %v406_v40  ;;  %v413_v50 = vadd.f32 1e-05, %v397_v41 }
 0x20d   :  { %v491_v45 = vadd.f32 %v920_v7, %v469_v18  ;;  %v441_v52 = vmul.f32 %v621_v29, %v848_v35  ;;  %v387_v53 = vpop.xlane.xlu0 %386 }
 0x20e   :  { %502 = vst.msk [vmem:[%s1038_s5 + $0x18] sm:$0xff] %vm245_vm1, %v486_v43  ;;  %v472_v56 = vmul.f32 %v914_v3, %v450_v44  ;;  %634 = vrsqrt.f32 %v422_v47  ;;  %v405_v57 = vmul.f32 0.041666668, %v387_v53 }
 0x20f   :  { %v623_v58 = vpop.eup %622  ;;  %507 = vst.msk [vmem:[%s1038_s5 + $0x40] sm:$0xff] %vm245_vm1, %v491_v45  ;;  %v463_v28 = vmul.f32 %v914_v3, %v441_v52  ;;  %636 = vrsqrt.f32 %v413_v50 }
 0x210   :  { %v625_v35 = vpop.eup %624  ;;  %v494_v59 = vadd.f32 %v920_v7, %v472_v56  ;;  %v444_v62 = vmul.f32 %v623_v58, %v861_v46  ;;  %v421_v63 = vadd.f32 1e-05, %v405_v57 }
 0x211   :  { %v485_v0 = vadd.f32 %v920_v7, %v463_v28  ;;  %v449_v4 = vmul.f32 %v625_v35, %v851_v37 }
 0x212   :  { %510 = vst.msk [vmem:[%s1038_s5 + $0x58] sm:$0xff] %vm245_vm1, %v494_v59  ;;  %v466_v5 = vmul.f32 %v914_v3, %v444_v62  ;;  %638 = vrsqrt.f32 %v421_v63 }
 0x213   :  { %v627_v6 = vpop.eup %626  ;;  %501 = vst.msk [vmem:[%s1038_s5 + $0x10] sm:$0xff] %vm245_vm1, %v485_v0  ;;  %v471_v46 = vmul.f32 %v914_v3, %v449_v4 }
 0x214   :  { %v629_v8 = vpop.eup %628  ;;  %v488_v54 = vadd.f32 %v920_v7, %v466_v5  ;;  %v452_v37 = vmul.f32 %v627_v6, %v872_v48 }
 0x215   :  { %v493_v10 = vadd.f32 %v920_v7, %v471_v46  ;;  %v443_v13 = vmul.f32 %v629_v8, %v864_v51 }
 0x216   :  { %504 = vst.msk [vmem:[%s1038_s5 + $0x28] sm:$0xff] %vm245_vm1, %v488_v54  ;;  %v474_v14 = vmul.f32 %v914_v3, %v452_v37 }
 0x217   :  { %v631_v15 = vpop.eup %630  ;;  %509 = vst.msk [vmem:[%s1038_s5 + $0x50] sm:$0xff] %vm245_vm1, %v493_v10  ;;  %v465_v16 = vmul.f32 %v914_v3, %v443_v13 }
 0x218   :  { %v633_v48 = vpop.eup %632  ;;  %v496_v17 = vadd.f32 %v920_v7, %v474_v14  ;;  %v446_v51 = vmul.f32 %v631_v15, %v885_v55 }
 0x219   :  { %v487_v12 = vadd.f32 %v920_v7, %v465_v16  ;;  %v451_v20 = vmul.f32 %v633_v48, %v875_v49 }
 0x21a   :  { %512 = vst.msk [vmem:[%s1038_s5 + $0x68] sm:$0xff] %vm245_vm1, %v496_v17  ;;  %v468_v21 = vmul.f32 %v914_v3, %v446_v51 }
 0x21b   :  { %v635_v22 = vpop.eup %634  ;;  %503 = vst.msk [vmem:[%s1038_s5 + $0x20] sm:$0xff] %vm245_vm1, %v487_v12  ;;  %v473_v23 = vmul.f32 %v914_v3, %v451_v20 }
 0x21c   :  { %v637_v55 = vpop.eup %636  ;;  %v490_v24 = vadd.f32 %v920_v7, %v468_v21  ;;  %v454_v49 = vmul.f32 %v635_v22, %v896_v60 }
 0x21d   :  { %v495_v25 = vadd.f32 %v920_v7, %v473_v23  ;;  %v445_v26 = vmul.f32 %v637_v55, %v888_v9 }
 0x21e   :  { %506 = vst.msk [vmem:[%s1038_s5 + $0x38] sm:$0xff] %vm245_vm1, %v490_v24  ;;  %v476_v1 = vmul.f32 %v914_v3, %v454_v49 }
 0x21f   :  { %v639_v2 = vpop.eup %638  ;;  %511 = vst.msk [vmem:[%s1038_s5 + $0x60] sm:$0xff] %vm245_vm1, %v495_v25  ;;  %v467_v27 = vmul.f32 %v914_v3, %v445_v26 }
 0x220   :  { %v498_v60 = vadd.f32 %v920_v7, %v476_v1  ;;  %v453_v11 = vmul.f32 %v639_v2, %v899_v61 }
 0x221   :  { %v489_v9 = vadd.f32 %v920_v7, %v467_v27 }
 0x222   :  { %514 = vst.msk [vmem:[%s1038_s5 + $0x78] sm:$0xff] %vm245_vm1, %v498_v60  ;;  %v475_v30 = vmul.f32 %v914_v3, %v453_v11 }
 0x223   :  { %505 = vst.msk [vmem:[%s1038_s5 + $0x30] sm:$0xff] %vm245_vm1, %v489_v9 }
 0x224   :  { %v497_v19 = vadd.f32 %v920_v7, %v475_v30 }
 0x226   :  { %513 = vst.msk [vmem:[%s1038_s5 + $0x70] sm:$0xff] %vm245_vm1, %v497_v19 }

// kernel: model_forward.8
= control target key start
LH: loop header
LB: loop body
LE: loop exit
PB: predicated region body
PF: predicated region fallthrough
CT: control target
= control target key end

     0   :  { %s4131_s27 = smov 0   ;;  %s4978_s0 = inlined_call_operand.vmem [shape: f32[2,64,24], index: 0, kind: input, shape index: {}]   ;;  %s4979_s1 = inlined_call_operand.vmem [shape: f32[1,24], index: 1, kind: input, shape index: {}]   ;;  %s4980_s2 = inlined_call_operand.vmem [shape: f32[1,24], index: 2, kind: input, shape index: {}]   ;;  %s4981_s3 = inlined_call_operand.vmem [shape: f32[2,24,12], index: 3, kind: input, shape index: {}]   ;;  %s4982_s4 = inlined_call_operand.vmem [shape: f32[2,1,12], index: 4, kind: input, shape index: {}]   ;;  %s4983_s5 = inlined_call_operand.vmem [shape: f32[2,24,12], index: 5, kind: input, shape index: {}]   ;;  %s4984_s6 = inlined_call_operand.vmem [shape: f32[2,1,12], index: 6, kind: input, shape index: {}]   ;;  %s4985_s7 = inlined_call_operand.vmem [shape: f32[2,24,12], index: 7, kind: input, shape index: {}]   ;;  %s4986_s8 = inlined_call_operand.vmem [shape: f32[2,1,12], index: 8, kind: input, shape index: {}]   ;;  %s4987_s9 = inlined_call_operand.vmem [shape: f32[2,64,64], index: 9, kind: input, shape index: {}]   ;;  %s4988_s10 = inlined_call_operand.vmem [shape: f32[2,12,24], index: 10, kind: input, shape index: {}]   ;;  %s4989_s11 = inlined_call_operand.vmem [shape: f32[1,24], index: 11, kind: input, shape index: {}]   ;;  %s4990_s12 = inlined_call_operand.vmem [shape: f32[1,24], index: 12, kind: input, shape index: {}]   ;;  %s4991_s13 = inlined_call_operand.vmem [shape: f32[1,24], index: 13, kind: input, shape index: {}]   ;;  %s4992_s14 = inlined_call_operand.vmem [shape: f32[24,96], index: 14, kind: input, shape index: {}]   ;;  %s4993_s15 = inlined_call_operand.vmem [shape: f32[1,96], index: 15, kind: input, shape index: {}]   ;;  %s4994_s16 = inlined_call_operand.vmem [shape: f32[96,24], index: 16, kind: input, shape index: {}]   ;;  %s4995_s17 = inlined_call_operand.vmem [shape: f32[1,24], index: 17, kind: input, shape index: {}]   ;;  %s4996_s18 = inlined_call_operand.vmem [shape: f32[2,64,24], index: 18, kind: output, shape index: {}]  }
   0x1   :  { %4997 = sst [smem:[#allocation2_spill]] %s4978_s0 }
   0x2   :  { %4998 = sst [smem:[#allocation3_spill]] %s4979_s1 }
   0x3   :  { %4999 = sst [smem:[#allocation4_spill]] %s4980_s2 }
   0x4 LB: > { %s3217_s28 = sadd.s32 4294967295, %s4033_s27   ;;  %p3221_p0 = scmp.ge.s32.totalorder %s4033_s27, 1  ;;  %s4033_s27 = sphi %s4131_s27, %s28_s27  }
   0x5   : > { %p512_p1 = scmp.lt.s32.totalorder %s4033_s27, 3 }
   0x7   : > { %p513_p2 = pnand %p3221_p0, %p512_p1 }
   0x8   : > { %p566_p3 = scmp.lt.s32.totalorder (!%p513_p2), %s3217_s28, 1  ;;  %s5000_s19 = sld [smem:[#allocation2_spill]] (!%p513_p2) }
   0x9   : > { %516 = sbr.rel (%p513_p2) target bundleno = 2980 (0xba4), region = 92  ;;  %s5001_s24 = sld [smem:[#allocation3_spill]] (!%p513_p2) }
   0xa   : > { %s5002_s30 = sld [smem:[#allocation4_spill]] (!%p513_p2) }
   0xe   : > { %s5004_s28 = smov (!%p566_p3, %s3217_s28), 1  ;;  %vm586_vm0 = vcmask 195584   ;;  %v722_v56 = vld [vmem:[%s4981_s3 + $0x10] sm:$0xff]  ;;  %v721_v58 = vld [vmem:[%s4981_s3 + $0x8] sm:$0xff]  ;;  %v720_v60 = vld [vmem:[%s4981_s3] sm:$0xff]  ;;  %vm1105_vm1 = vcmask 97280  }
   0xf   : > { %s3393_s29 = sshll.u32 %s5004_s28, 6  ;;  %v869_v57 = vld [vmem:[%s4983_s5 + $0x10] sm:$0xff]  ;;  %3576 = vmatprep.subr.mxu0 %v722_v56  ;;  %v868_v59 = vld [vmem:[%s4983_s5 + $0x8] sm:$0xff]  ;;  %v867_v61 = vld [vmem:[%s4983_s5] sm:$0xff]  ;;  %vm1259_vm2 = vcmask 523264   ;;  %vm2244_vm3 = vcmask 1043456  }
  0x10   : > { %s4147_s1 = scalar_lea.vmem %s5000_s19, %s3393_s29  ;;  %3594 = vmatprep.subr.mxu1 %v869_v57  ;;  %3577 = vmatpush3.msra.mxu0 %v722_v56  ;;  %v4226_v62 = vld [vmem:[%s4985_s7 + $0x10] sm:$0xff]  ;;  %vm3016_vm12 = vcmask 785408   ;;  %s575_s20 = scalar_lea.vmem %s4996_s18, %s3393_s29 }
  0x11   : > { %v576_v0 = vld [vmem:[%s4147_s1] sm:$0xff]  ;;  %v578_v1 = vld [vmem:[%s4147_s1 + $0x10] sm:$0xff]  ;;  %v577_v2 = vld [vmem:[%s4147_s1 + $0x8] sm:$0xff]  ;;  %3595 = vmatpush3.msra.mxu1 %v869_v57  ;;  %3578 = vmatprep.subr.mxu0 %v721_v58 }
  0x12   : > { %v587_v3 = vsel %vm586_vm0, %v576_v0, 0.0  ;;  %v593_v4 = vsel %vm586_vm0, %v578_v1, 0.0  ;;  %v579_v5 = vld [vmem:[%s4147_s1 + $0x18] sm:$0xff]  ;;  %v590_v6 = vsel %vm586_vm0, %v577_v2, 0.0  ;;  %v580_v8 = vld [vmem:[%s4147_s1 + $0x20] sm:$0xff]  ;;  %v581_v9 = vld [vmem:[%s4147_s1 + $0x28] sm:$0xff]  ;;  %3596 = vmatprep.subr.mxu1 %v868_v59  ;;  %3579 = vmatpush3.msra.mxu0 %v721_v58 }
  0x13   : > { %588 = vadd.xlane.f32.xlu0 %v587_v3  ;;  %594 = vadd.xlane.f32.xlu1 %v593_v4  ;;  %v596_v7 = vsel %vm586_vm0, %v579_v5, 0.0  ;;  %v599_v10 = vsel %vm586_vm0, %v580_v8, 0.0  ;;  %v602_v11 = vsel %vm586_vm0, %v581_v9, 0.0  ;;  %v582_v12 = vld [vmem:[%s4147_s1 + $0x30] sm:$0xff]  ;;  %v583_v13 = vld [vmem:[%s4147_s1 + $0x38] sm:$0xff] }
  0x14   : > { %v605_v14 = vsel %vm586_vm0, %v582_v12, 0.0  ;;  %v608_v15 = vsel %vm586_vm0, %v583_v13, 0.0  ;;  %3597 = vmatpush3.msra.mxu1 %v868_v59  ;;  %3580 = vmatprep.subr.mxu0 %v720_v60 }
  0x15   : > { %3598 = vmatprep.subr.mxu1 %v867_v61  ;;  %3581 = vmatpush3.msra.mxu0 %v720_v60 }
  0x16   : > { %3599 = vmatpush3.msra.mxu1 %v867_v61  ;;  %3612 = vmatprep.subr.mxu0 %v4226_v62  ;;  %v4319_v61 = vld [vmem:[%s4982_s4] ss:$0 sm:$0xff] }
  0x17   : > { %591 = vadd.xlane.f32.xlu0 %v590_v6  ;;  %597 = vadd.xlane.f32.xlu1 %v596_v7 }
  0x1b   : > { %600 = vadd.xlane.f32.xlu0 %v599_v10  ;;  %603 = vadd.xlane.f32.xlu1 %v602_v11 }
  0x1f   : > { %606 = vadd.xlane.f32.xlu0 %v605_v14  ;;  %609 = vadd.xlane.f32.xlu1 %v608_v15 }
  0x9c   : > { %v589_v16 = vpop.xlane.xlu0 %588  ;;  %v595_v17 = vpop.xlane.xlu1 %594 }
  0x9d   : > { %v612_v18 = vmul.f32 0.041666668, %v589_v16  ;;  %v614_v19 = vmul.f32 0.041666668, %v595_v17 }
  0x9f   : > { %v4165_v20 = vsub.f32 %v576_v0, %v612_v18  ;;  %v4167_v21 = vsub.f32 %v578_v1, %v614_v19 }
  0xa0   : > { %v592_v22 = vpop.xlane.xlu0 %591  ;;  %v598_v23 = vpop.xlane.xlu1 %597 }
  0xa1   : > { %v613_v24 = vmul.f32 0.041666668, %v592_v22  ;;  %v615_v25 = vmul.f32 0.041666668, %v598_v23  ;;  %v628_v26 = vmul.f32 %v4165_v20, %v4165_v20  ;;  %v630_v27 = vmul.f32 %v4167_v21, %v4167_v21 }
  0xa3   : > { %v4173_v28 = vsub.f32 %v577_v2, %v613_v24  ;;  %v4175_v29 = vsub.f32 %v579_v5, %v615_v25  ;;  %v636_v30 = vsel %vm586_vm0, %v628_v26, 0.0  ;;  %v642_v33 = vsel %vm586_vm0, %v630_v27, 0.0  ;;  %v3226_v25 = vld [vmem:[%s5001_s24] ss:$0 sm:$0xff] }
  0xa4   : > { %637 = vadd.xlane.f32.xlu0 %v636_v30  ;;  %v601_v31 = vpop.xlane.xlu0 %600  ;;  %v604_v32 = vpop.xlane.xlu1 %603  ;;  %v3227_v30 = vld [vmem:[%s5002_s30] ss:$0 sm:$0xff] }
  0xa5   : > { %v616_v34 = vmul.f32 0.041666668, %v601_v31  ;;  %v617_v35 = vmul.f32 0.041666668, %v604_v32  ;;  %v629_v36 = vmul.f32 %v4173_v28, %v4173_v28  ;;  %v631_v37 = vmul.f32 %v4175_v29, %v4175_v29 }
  0xa7   : > { %v4183_v38 = vsub.f32 %v580_v8, %v616_v34  ;;  %v4185_v39 = vsub.f32 %v581_v9, %v617_v35  ;;  %v639_v40 = vsel %vm586_vm0, %v629_v36, 0.0  ;;  %v645_v43 = vsel %vm586_vm0, %v631_v37, 0.0 }
  0xa8   : > { %643 = vadd.xlane.f32.xlu0 %v642_v33  ;;  %640 = vadd.xlane.f32.xlu1 %v639_v40  ;;  %v607_v41 = vpop.xlane.xlu0 %606  ;;  %v610_v42 = vpop.xlane.xlu1 %609 }
  0xa9   : > { %v618_v44 = vmul.f32 0.041666668, %v607_v41  ;;  %v619_v45 = vmul.f32 0.041666668, %v610_v42  ;;  %v632_v46 = vmul.f32 %v4183_v38, %v4183_v38  ;;  %v633_v47 = vmul.f32 %v4185_v39, %v4185_v39 }
  0xab   : > { %v4193_v48 = vsub.f32 %v582_v12, %v618_v44  ;;  %v4195_v49 = vsub.f32 %v583_v13, %v619_v45  ;;  %v648_v50 = vsel %vm586_vm0, %v632_v46, 0.0  ;;  %v651_v51 = vsel %vm586_vm0, %v633_v47, 0.0 }
  0xac   : > { %646 = vadd.xlane.f32.xlu1 %v645_v43  ;;  %649 = vadd.xlane.f32.xlu0 %v648_v50 }
  0xad   : > { %v634_v52 = vmul.f32 %v4193_v48, %v4193_v48  ;;  %v635_v53 = vmul.f32 %v4195_v49, %v4195_v49 }
  0xaf   : > { %v654_v54 = vsel %vm586_vm0, %v634_v52, 0.0  ;;  %v657_v55 = vsel %vm586_vm0, %v635_v53, 0.0 }
  0xb0   : > { %652 = vadd.xlane.f32.xlu1 %v651_v51  ;;  %655 = vadd.xlane.f32.xlu0 %v654_v54 }
  0xb4   : > { %658 = vadd.xlane.f32.xlu1 %v657_v55 }
 0x12d   : > { %v638_v63 = vpop.xlane.xlu0 %637 }
 0x12e   : > { %v660_v0 = vmul.f32 0.041666668, %v638_v63 }
 0x130   : > { %v668_v1 = vadd.f32 1e-05, %v660_v0 }
 0x131   : > { %v641_v2 = vpop.xlane.xlu1 %640  ;;  %v644_v3 = vpop.xlane.xlu0 %643 }
 0x132   : > { %3891 = vrsqrt.f32 %v668_v1  ;;  %v661_v4 = vmul.f32 0.041666668, %v641_v2  ;;  %v662_v5 = vmul.f32 0.041666668, %v644_v3 }
 0x134   : > { %v669_v6 = vadd.f32 1e-05, %v661_v4  ;;  %v670_v7 = vadd.f32 1e-05, %v662_v5 }
 0x135   : > { %v647_v8 = vpop.xlane.xlu1 %646  ;;  %v650_v9 = vpop.xlane.xlu0 %649 }
 0x136   : > { %3893 = vrsqrt.f32 %v669_v6  ;;  %v663_v10 = vmul.f32 0.041666668, %v647_v8  ;;  %v664_v11 = vmul.f32 0.041666668, %v650_v9 }
 0x137   : > { %3895 = vrsqrt.f32 %v670_v7 }
 0x138   : > { %v671_v12 = vadd.f32 1e-05, %v663_v10  ;;  %v672_v13 = vadd.f32 1e-05, %v664_v11  ;;  %v3237_v10 = vld [vmem:[%s4984_s6] ss:$0 sm:$0xff] }
 0x139   : > { %v653_v14 = vpop.xlane.xlu1 %652  ;;  %v656_v15 = vpop.xlane.xlu0 %655 }
 0x13a   : > { %3897 = vrsqrt.f32 %v671_v12  ;;  %v665_v16 = vmul.f32 0.041666668, %v653_v14  ;;  %v666_v17 = vmul.f32 0.041666668, %v656_v15 }
 0x13b   : > { %3899 = vrsqrt.f32 %v672_v13 }
 0x13c   : > { %v673_v18 = vadd.f32 1e-05, %v665_v16  ;;  %v674_v19 = vadd.f32 1e-05, %v666_v17 }
 0x13d   : > { %v659_v22 = vpop.xlane.xlu1 %658 }
 0x13e   : > { %3901 = vrsqrt.f32 %v673_v18  ;;  %v667_v23 = vmul.f32 0.041666668, %v659_v22 }
 0x13f   : > { %v3892_v24 = vpop.eup %3891  ;;  %3903 = vrsqrt.f32 %v674_v19 }
 0x140   : > { %v684_v26 = vmul.f32 %v3892_v24, %v4165_v20  ;;  %v675_v27 = vadd.f32 1e-05, %v667_v23 }
 0x142   : > { %v698_v31 = vmul.f32 %v3226_v25, %v684_v26  ;;  %3905 = vrsqrt.f32 %v675_v27 }
 0x143   : > { %v3894_v32 = vpop.eup %3893 }
 0x144   : > { %v3896_v33 = vpop.eup %3895  ;;  %v685_v34 = vmul.f32 %v3894_v32, %v4173_v28  ;;  %v4237_v35 = vadd.f32 %v3227_v30, %v698_v31 }
 0x145   : > { %v686_v36 = vmul.f32 %v3896_v33, %v4167_v21  ;;  %v983_v21 = vld [vmem:[%s4985_s7 + $0x8] sm:$0xff] }
 0x146   : > { %v699_v37 = vmul.f32 %v3226_v25, %v685_v34  ;;  %3582 = vmatprep.mubr.msk.f32.mxu0 %vm586_vm0, %v4237_v35  ;;  %3600 = vmatprep.mubr.msk.f32.mxu1 %vm586_vm0, %v4237_v35 }
 0x147   : > { %v3898_v20 = vpop.eup %3897  ;;  %v700_v40 = vmul.f32 %v3226_v25, %v686_v36 }
 0x148   : > { %v3900_v41 = vpop.eup %3899  ;;  %v687_v42 = vmul.f32 %v3898_v20, %v4175_v29  ;;  %v4245_v43 = vadd.f32 %v3227_v30, %v699_v37 }
 0x149   : > { %v688_v28 = vmul.f32 %v3900_v41, %v4183_v38  ;;  %v4248_v44 = vadd.f32 %v3227_v30, %v700_v40 }
 0x14a   : > { %v701_v45 = vmul.f32 %v3226_v25, %v687_v42  ;;  %3583 = vmatmul.mubr.msk.f32.vlgmr.msra.gmra.mxu0 %vm586_vm0, %v4245_v43  ;;  %3601 = vmatmul.mubr.msk.f32.vlgmr.msra.gmra.mxu1 %vm586_vm0, %v4245_v43 }
 0x14b   : > { %v3902_v46 = vpop.eup %3901  ;;  %v702_v47 = vmul.f32 %v3226_v25, %v688_v28  ;;  %3585 = vmatprep.mubr.msk.f32.mxu0 %vm586_vm0, %v4248_v44  ;;  %3603 = vmatprep.mubr.msk.f32.mxu1 %vm586_vm0, %v4248_v44 }
 0x14c   : > { %v3904_v29 = vpop.eup %3903  ;;  %v689_v38 = vmul.f32 %v3902_v46, %v4185_v39  ;;  %v4262_v50 = vadd.f32 %v3227_v30, %v701_v45  ;;  %3613 = vmatpush3.msra.mxu0 %v4226_v62  ;;  %v982_v39 = vld [vmem:[%s4985_s7] sm:$0xff] }
 0x14d   : > { %v690_v51 = vmul.f32 %v3904_v29, %v4193_v48  ;;  %v4266_v52 = vadd.f32 %v3227_v30, %v702_v47  ;;  %3614 = vmatprep.subr.mxu0 %v983_v21  ;;  %v3294_v47 = vld [vmem:[%s4983_s5 + $0x28] sm:$0xff] }
 0x14e   : > { %v703_v53 = vmul.f32 %v3226_v25, %v689_v38  ;;  %3586 = vmatmul.mubr.msk.f32.gmra.mxu0 %vm586_vm0, %v4262_v50  ;;  %3604 = vmatmul.mubr.msk.f32.gmra.mxu1 %vm586_vm0, %v4262_v50 }
 0x14f   : > { %v3906_v54 = vpop.eup %3905  ;;  %v704_v55 = vmul.f32 %v3226_v25, %v690_v51  ;;  %3588 = vmatprep.mubr.msk.f32.mxu0 %vm586_vm0, %v4266_v52  ;;  %3606 = vmatprep.mubr.msk.f32.mxu1 %vm586_vm0, %v4266_v52 }
 0x150   : > { %v691_v48 = vmul.f32 %v3906_v54, %v4195_v49  ;;  %v4280_v56 = vadd.f32 %v3227_v30, %v703_v53  ;;  %3615 = vmatpush3.msra.mxu0 %v983_v21  ;;  %v3293_v54 = vld [vmem:[%s4983_s5 + $0x20] sm:$0xff] }
 0x151   : > { %v4282_v57 = vadd.f32 %v3227_v30, %v704_v55  ;;  %3616 = vmatprep.subr.mxu0 %v982_v39  ;;  %v3292_v55 = vld [vmem:[%s4983_s5 + $0x18] sm:$0xff] }
 0x152   : > { %v705_v58 = vmul.f32 %v3226_v25, %v691_v48  ;;  %3589 = vmatmul.mubr.msk.f32.gmra.mxu0 %vm586_vm0, %v4280_v56  ;;  %3607 = vmatmul.mubr.msk.f32.gmra.mxu1 %vm586_vm0, %v4280_v56 }
 0x153   : > { %3591 = vmatprep.mubr.msk.f32.mxu0 %vm586_vm0, %v4282_v57  ;;  %3609 = vmatprep.mubr.msk.f32.mxu1 %vm586_vm0, %v4282_v57 }
 0x154   : > { %v4292_v49 = vadd.f32 %v3227_v30, %v705_v58  ;;  %3617 = vmatpush3.msra.mxu0 %v982_v39  ;;  %v3246_v30 = vld [vmem:[%s4986_s8] ss:$0 sm:$0xff] }
 0x156   : > { %3592 = vmatmul.mubr.msk.f32.gmra.mxu0 %vm586_vm0, %v4292_v49  ;;  %3610 = vmatmul.mubr.msk.f32.gmra.mxu1 %vm586_vm0, %v4292_v49 }
 0x157   : > { %3618 = vmatprep.mubr.msk.f32.mxu0 %vm586_vm0, %v4237_v35 }
 0x15a   : > { %3619 = vmatmul.mubr.msk.f32.vlgmr.msra.gmra.mxu0 %vm586_vm0, %v4245_v43 }
 0x15b   : > { %3621 = vmatprep.mubr.msk.f32.mxu0 %vm586_vm0, %v4248_v44 }
 0x15e   : > { %3622 = vmatmul.mubr.msk.f32.gmra.mxu0 %vm586_vm0, %v4262_v50 }
 0x15f   : > { %3624 = vmatprep.mubr.msk.f32.mxu0 %vm586_vm0, %v4266_v52 }
 0x162   : > { %3625 = vmatmul.mubr.msk.f32.gmra.mxu0 %vm586_vm0, %v4280_v56 }
 0x163   : > { %3627 = vmatprep.mubr.msk.f32.mxu0 %vm586_vm0, %v4282_v57 }
 0x166   : > { %3628 = vmatmul.mubr.msk.f32.gmra.mxu0 %vm586_vm0, %v4292_v49 }
 0x20a   : > { %v4314_v59 = vpop.f32.mrf.mxu0  ;;  %v3602_v60 = vpop.f32.mrf.mxu1 }
 0x20b   : > { %v949_v20 = vadd.f32 %v3602_v60, %v3237_v10  ;;  %v826_v45 = vadd.f32 %v4314_v59, %v4319_v61 }
 0x20c   : > { %v820_v62 = vpop.f32.mrf.mxu0  ;;  %v943_v63 = vpop.f32.mrf.mxu1 }
 0x20d   : > { %v821_v0 = vadd.f32 %v4319_v61, %v820_v62  ;;  %v944_v42 = vadd.f32 %v3237_v10, %v943_v63  ;;  %v860_v38 = vmul.f32 0.28867513, %v826_v45 }
 0x20e   : > { %v4322_v1 = vpop.f32.mrf.mxu0  ;;  %v3605_v2 = vpop.f32.mrf.mxu1 }
 0x20f   : > { %v859_v3 = vmul.f32 0.28867513, %v821_v0  ;;  %v959_v27 = vadd.f32 %v3605_v2, %v3237_v10  ;;  %v836_v51 = vadd.f32 %v4322_v1, %v4319_v61 }
 0x210   : > { %v4324_v4 = vpop.f32.mrf.mxu0  ;;  %v953_v5 = vpop.f32.mrf.mxu1 }
 0x211   : > { %3646 = vmatprep.mubr.msk.f32.mxu1 %vm1105_vm1, %v859_v3  ;;  %v954_v34 = vadd.f32 %v3237_v10, %v953_v5  ;;  %v831_v46 = vadd.f32 %v4319_v61, %v4324_v4  ;;  %v862_v48 = vmul.f32 0.28867513, %v836_v51  ;;  %v1097_v3 = vld [vmem:[%s4987_s9] sm:$0xff] }
 0x212   : > { %v4327_v6 = vpop.f32.mrf.mxu0  ;;  %v3608_v7 = vpop.f32.mrf.mxu1 }
 0x213   : > { %v969_v19 = vadd.f32 %v3608_v7, %v3237_v10  ;;  %v861_v53 = vmul.f32 0.28867513, %v831_v46  ;;  %v846_v58 = vadd.f32 %v4327_v6, %v4319_v61  ;;  %v1100_v6 = vld [vmem:[%s4987_s9 + $0x18] sm:$0xff] }
 0x214   : > { %v4329_v8 = vpop.f32.mrf.mxu0  ;;  %v963_v9 = vpop.f32.mrf.mxu1 }
 0x215   : > { %v964_v24 = vadd.f32 %v3237_v10, %v963_v9  ;;  %v841_v39 = vadd.f32 %v4319_v61, %v4329_v8  ;;  %v864_v62 = vmul.f32 0.28867513, %v846_v58 }
 0x216   : > { %v4334_v11 = vpop.f32.mrf.mxu0  ;;  %v3611_v12 = vpop.f32.mrf.mxu1 }
 0x217   : > { %v979_v13 = vadd.f32 %v3611_v12, %v3237_v10  ;;  %v863_v59 = vmul.f32 0.28867513, %v841_v39  ;;  %v856_v63 = vadd.f32 %v4334_v11, %v4319_v61 }
 0x218   : > { %v4336_v14 = vpop.f32.mrf.mxu0  ;;  %v973_v15 = vpop.f32.mrf.mxu1 }
 0x219   : > { %v974_v16 = vadd.f32 %v3237_v10, %v973_v15  ;;  %3630 = vmatprep.subr.msk.mxu1 %vm1105_vm1, %v979_v13  ;;  %v851_v60 = vadd.f32 %v4319_v61, %v4336_v14  ;;  %v866_v1 = vmul.f32 0.28867513, %v856_v63  ;;  %v1098_v61 = vld [vmem:[%s4987_s9 + $0x8] sm:$0xff]  ;;  %v1099_v10 = vld [vmem:[%s4987_s9 + $0x10] sm:$0xff] }
 0x21a   : > { %v3620_v17 = vpop.f32.mrf.mxu0  ;;  %3631 = vmatpush3.xpose.msk.msra.mxu1 %vm1105_vm1, %v979_v13  ;;  %v1102_v14 = vld [vmem:[%s4987_s9 + $0x28] sm:$0xff] }
 0x21b   : > { %3632 = vmatprep.subr.msk.mxu1 %vm1105_vm1, %v974_v16  ;;  %v1064_v21 = vadd.f32 %v3620_v17, %v3246_v30  ;;  %v865_v0 = vmul.f32 0.28867513, %v851_v60 }
 0x21c   : > { %v1058_v18 = vpop.f32.mrf.mxu0 }
 0x21d   : > { %v1059_v29 = vadd.f32 %v3246_v30, %v1058_v18  ;;  %v1101_v18 = vld [vmem:[%s4987_s9 + $0x20] sm:$0xff] }
 0x21e   : > { %v3623_v22 = vpop.f32.mrf.mxu0  ;;  %3633 = vmatpush3.xpose.msk.msra.mxu1 %vm1105_vm1, %v974_v16 }
 0x21f   : > { %3634 = vmatprep.subr.msk.mxu1 %vm1105_vm1, %v969_v19  ;;  %v1074_v41 = vadd.f32 %v3623_v22, %v3246_v30 }
 0x220   : > { %v1068_v23 = vpop.f32.mrf.mxu0 }
 0x221   : > { %v1069_v28 = vadd.f32 %v3246_v30, %v1068_v23 }
 0x222   : > { %v3626_v25 = vpop.f32.mrf.mxu0  ;;  %3635 = vmatpush3.xpose.msk.msra.mxu1 %vm1105_vm1, %v969_v19 }
 0x223   : > { %3636 = vmatprep.subr.msk.mxu1 %vm1105_vm1, %v964_v24  ;;  %v1084_v37 = vadd.f32 %v3626_v25, %v3246_v30 }
 0x224   : > { %v1078_v26 = vpop.f32.mrf.mxu0 }
 0x225   : > { %v1079_v40 = vadd.f32 %v3246_v30, %v1078_v26 }
 0x226   : > { %v3629_v31 = vpop.f32.mrf.mxu0  ;;  %3637 = vmatpush3.xpose.msk.msra.mxu1 %vm1105_vm1, %v964_v24  ;;  %v1104_v24 = vld [vmem:[%s4987_s9 + $0x38] sm:$0xff] }
 0x227   : > { %v1094_v32 = vadd.f32 %v3629_v31, %v3246_v30  ;;  %3638 = vmatprep.subr.msk.mxu1 %vm1105_vm1, %v959_v27 }
 0x228   : > { %v1088_v33 = vpop.f32.mrf.mxu0 }
 0x229   : > { %v1089_v36 = vadd.f32 %v3246_v30, %v1088_v33  ;;  %3658 = vmatprep.subr.mxu0 %v1094_v32  ;;  %v1103_v30 = vld [vmem:[%s4987_s9 + $0x30] sm:$0xff] }
 0x22a   : > { %3639 = vmatpush3.xpose.msk.msra.mxu1 %vm1105_vm1, %v959_v27  ;;  %3659 = vmatpush3.msra.mxu0 %v1094_v32 }
 0x22b   : > { %3640 = vmatprep.subr.msk.mxu1 %vm1105_vm1, %v954_v34  ;;  %3660 = vmatprep.subr.mxu0 %v1089_v36 }
 0x22c   : > { %3661 = vmatpush3.msra.mxu0 %v1089_v36 }
 0x22d   : > { %3662 = vmatprep.subr.mxu0 %v1084_v37 }
 0x22e   : > { %3641 = vmatpush3.xpose.msk.msra.mxu1 %vm1105_vm1, %v954_v34  ;;  %3663 = vmatpush3.msra.mxu0 %v1084_v37 }
 0x22f   : > { %3642 = vmatprep.subr.msk.mxu1 %vm1105_vm1, %v949_v20  ;;  %3664 = vmatprep.subr.mxu0 %v1079_v40 }
 0x230   : > { %3665 = vmatpush3.msra.mxu0 %v1079_v40 }
 0x231   : > { %3666 = vmatprep.subr.mxu0 %v1074_v41 }
 0x232   : > { %3643 = vmatpush3.xpose.msk.msra.mxu1 %vm1105_vm1, %v949_v20  ;;  %3667 = vmatpush3.msra.mxu0 %v1074_v41 }
 0x233   : > { %3644 = vmatprep.subr.msk.mxu1 %vm1105_vm1, %v944_v42  ;;  %3668 = vmatprep.subr.mxu0 %v1069_v28 }
 0x234   : > { %3669 = vmatpush3.msra.mxu0 %v1069_v28 }
 0x235   : > { %3670 = vmatprep.subr.mxu0 %v1064_v21 }
 0x236   : > { %3645 = vmatpush3.xpose.msk.msra.mxu1 %vm1105_vm1, %v944_v42  ;;  %3671 = vmatpush3.msra.mxu0 %v1064_v21  ;;  %v3296_v21 = vld [vmem:[%s4984_s6 + $0x1] ss:$0 sm:$0xff] }
 0x237   : > { %3672 = vmatprep.subr.mxu0 %v1059_v29  ;;  %3704 = vmatprep.subr.mxu1 %v3294_v47 }
 0x238   : > { %3673 = vmatpush3.msra.mxu0 %v1059_v29 }
 0x239   : > { %3647 = vmatmul.mubr.msk.f32.vlgmr.msra.gmra.mxu1 %vm1105_vm1, %v860_v38 }
 0x23a   : > { %3649 = vmatprep.mubr.msk.f32.mxu1 %vm1105_vm1, %v861_v53  ;;  %3705 = vmatpush3.msra.mxu1 %v3294_v47 }
 0x23b   : > { %3706 = vmatprep.subr.mxu1 %v3293_v54 }
 0x23c   : > { %3707 = vmatpush3.msra.mxu1 %v3293_v54 }
 0x23d   : > { %3650 = vmatmul.mubr.msk.f32.gmra.mxu1 %vm1105_vm1, %v862_v48  ;;  %3708 = vmatprep.subr.mxu1 %v3292_v55 }
 0x23e   : > { %3652 = vmatprep.mubr.msk.f32.mxu1 %vm1105_vm1, %v863_v59  ;;  %3709 = vmatpush3.msra.mxu1 %v3292_v55 }
 0x241   : > { %3653 = vmatmul.mubr.msk.f32.gmra.mxu1 %vm1105_vm1, %v864_v62 }
 0x242   : > { %3655 = vmatprep.mubr.msk.f32.mxu1 %vm1105_vm1, %v865_v0 }
 0x245   : > { %3656 = vmatmul.mubr.msk.f32.gmra.mxu1 %vm1105_vm1, %v866_v1 }
 0x246   : > { %3710 = vmatprep.mubr.msk.f32.mxu1 %vm586_vm0, %v4237_v35 }
 0x249   : > { %3711 = vmatmul.mubr.msk.f32.vlgmr.msra.gmra.mxu1 %vm586_vm0, %v4245_v43 }
 0x24a   : > { %3713 = vmatprep.mubr.msk.f32.mxu1 %vm586_vm0, %v4248_v44 }
 0x24d   : > { %3714 = vmatmul.mubr.msk.f32.gmra.mxu1 %vm586_vm0, %v4262_v50 }
 0x24e   : > { %3716 = vmatprep.mubr.msk.f32.mxu1 %vm586_vm0, %v4266_v52 }
 0x251   : > { %3717 = vmatmul.mubr.msk.f32.gmra.mxu1 %vm586_vm0, %v4280_v56 }
 0x252   : > { %3719 = vmatprep.mubr.msk.f32.mxu1 %vm586_vm0, %v4282_v57 }
 0x255   : > { %3720 = vmatmul.mubr.msk.f32.gmra.mxu1 %vm586_vm0, %v4292_v49 }
 0x2f9   : > { %v3648_v2 = vpop.f32.mrf.mxu1 }
 0x2fa   : > { %v4409_v4 = vadd.f32 %v3648_v2, %v1098_v61 }
 0x2fb   : > { %v1220_v5 = vpop.f32.mrf.mxu1 }
 0x2fc   : > { %v4414_v7 = vadd.f32 %v1220_v5, %v1097_v3  ;;  %v1263_v8 = vsel %vm1259_vm2, %v4409_v4, -inf }
 0x2fd   : > { %1264 = vmax.xlane.f32.xlu1 %v1263_v8  ;;  %v3651_v9 = vpop.f32.mrf.mxu1 }
 0x2fe   : > { %v4421_v11 = vadd.f32 %v3651_v9, %v1100_v6  ;;  %v1260_v12 = vsel %vm1259_vm2, %v4414_v7, -inf }
 0x2ff   : > { %v1230_v13 = vpop.f32.mrf.mxu1  ;;  %1261 = vmax.xlane.f32.xlu0 %v1260_v12 }
 0x300   : > { %v4428_v15 = vadd.f32 %v1230_v13, %v1099_v10  ;;  %v1269_v16 = vsel %vm1259_vm2, %v4421_v11, -inf }
 0x301   : > { %1270 = vmax.xlane.f32.xlu1 %v1269_v16  ;;  %v3654_v17 = vpop.f32.mrf.mxu1 }
 0x302   : > { %v4435_v19 = vadd.f32 %v3654_v17, %v1102_v14  ;;  %v1266_v22 = vsel %vm1259_vm2, %v4428_v15, -inf }
 0x303   : > { %v1240_v23 = vpop.f32.mrf.mxu1  ;;  %1267 = vmax.xlane.f32.xlu0 %v1266_v22 }
 0x304   : > { %v4442_v25 = vadd.f32 %v1240_v23, %v1101_v18  ;;  %v1275_v26 = vsel %vm1259_vm2, %v4435_v19, -inf }
 0x305   : > { %1276 = vmax.xlane.f32.xlu1 %v1275_v26  ;;  %v3657_v27 = vpop.f32.mrf.mxu1 }
 0x306   : > { %v4449_v31 = vadd.f32 %v3657_v27, %v1104_v24  ;;  %v1272_v32 = vsel %vm1259_vm2, %v4442_v25, -inf }
 0x307   : > { %1273 = vmax.xlane.f32.xlu0 %v1272_v32  ;;  %v1250_v33 = vpop.f32.mrf.mxu1 }
 0x308   : > { %v4453_v34 = vadd.f32 %v1250_v33, %v1103_v30  ;;  %v1281_v36 = vsel %vm1259_vm2, %v4449_v31, -inf }
 0x309   : > { %1282 = vmax.xlane.f32.xlu1 %v1281_v36  ;;  %v3712_v37 = vpop.f32.mrf.mxu1 }
 0x30a   : > { %v1278_v20 = vsel %vm1259_vm2, %v4453_v34, -inf  ;;  %v1688_v55 = vadd.f32 %v3712_v37, %v3296_v21 }
 0x30b   : > { %v1682_v40 = vpop.f32.mrf.mxu1  ;;  %1279 = vmax.xlane.f32.xlu0 %v1278_v20 }
 0x30c   : > { %v1683_v48 = vadd.f32 %v3296_v21, %v1682_v40  ;;  %v3281_v40 = vld [vmem:[%s4981_s3 + $0x28] sm:$0xff] }
 0x30d   : > { %v3715_v41 = vpop.f32.mrf.mxu1  ;;  %3686 = vmatprep.subr.mxu0 %v3281_v40 }
 0x30e   : > { %v1698_v39 = vadd.f32 %v3715_v41, %v3296_v21 }
 0x30f   : > { %v1692_v42 = vpop.f32.mrf.mxu1 }
 0x310   : > { %v1693_v54 = vadd.f32 %v3296_v21, %v1692_v42 }
 0x311   : > { %v3718_v28 = vpop.f32.mrf.mxu1 }
 0x312   : > { %v1708_v51 = vadd.f32 %v3718_v28, %v3296_v21 }
 0x313   : > { %v1702_v45 = vpop.f32.mrf.mxu1 }
 0x314   : > { %v1703_v53 = vadd.f32 %v3296_v21, %v1702_v45 }
 0x315   : > { %v3721_v46 = vpop.f32.mrf.mxu1 }
 0x316   : > { %v1718_v47 = vadd.f32 %v3721_v46, %v3296_v21 }
 0x317   : > { %v1712_v29 = vpop.f32.mrf.mxu1 }
 0x318   : > { %v1713_v38 = vadd.f32 %v3296_v21, %v1712_v29  ;;  %3740 = vmatprep.subr.msk.mxu1 %vm1105_vm1, %v1718_v47 }
 0x319   : > { %3741 = vmatpush3.xpose.msk.msra.mxu1 %vm1105_vm1, %v1718_v47 }
 0x31a   : > { %3742 = vmatprep.subr.msk.mxu1 %vm1105_vm1, %v1713_v38 }
 0x31d   : > { %3743 = vmatpush3.xpose.msk.msra.mxu1 %vm1105_vm1, %v1713_v38 }
 0x31e   : > { %3744 = vmatprep.subr.msk.mxu1 %vm1105_vm1, %v1708_v51 }
 0x321   : > { %3745 = vmatpush3.xpose.msk.msra.mxu1 %vm1105_vm1, %v1708_v51 }
 0x322   : > { %3746 = vmatprep.subr.msk.mxu1 %vm1105_vm1, %v1703_v53 }
 0x325   : > { %3747 = vmatpush3.xpose.msk.msra.mxu1 %vm1105_vm1, %v1703_v53 }
 0x326   : > { %3748 = vmatprep.subr.msk.mxu1 %vm1105_vm1, %v1698_v39 }
 0x329   : > { %3749 = vmatpush3.xpose.msk.msra.mxu1 %vm1105_vm1, %v1698_v39 }
 0x32a   : > { %3750 = vmatprep.subr.msk.mxu1 %vm1105_vm1, %v1693_v54 }
 0x32d   : > { %3751 = vmatpush3.xpose.msk.msra.mxu1 %vm1105_vm1, %v1693_v54 }
 0x32e   : > { %3752 = vmatprep.subr.msk.mxu1 %vm1105_vm1, %v1688_v55 }
 0x331   : > { %3753 = vmatpush3.xpose.msk.msra.mxu1 %vm1105_vm1, %v1688_v55  ;;  %v3280_v55 = vld [vmem:[%s4981_s3 + $0x20] sm:$0xff] }
 0x332   : > { %3754 = vmatprep.subr.msk.mxu1 %vm1105_vm1, %v1683_v48 }
 0x335   : > { %3755 = vmatpush3.xpose.msk.msra.mxu1 %vm1105_vm1, %v1683_v48 }
 0x386   : > { %v1265_v58 = vpop.xlane.xlu1 %1264 }
 0x387   : > { %v1285_v59 = vsub.f32 %v4409_v4, %v1265_v58 }
 0x388   : > { %v1262_v60 = vpop.xlane.xlu0 %1261 }
 0x389   : > { %v1294_v62 = vmul.f32 1.442695, %v1285_v59  ;;  %v1284_v63 = vsub.f32 %v4414_v7, %v1262_v60  ;;  %v3279_v59 = vld [vmem:[%s4981_s3 + $0x18] sm:$0xff] }
 0x38a   : > { %v1271_v0 = vpop.xlane.xlu1 %1270 }
 0x38b   : > { %3907 = vpow2.f32 %v1294_v62  ;;  %v1292_v1 = vmul.f32 1.442695, %v1284_v63  ;;  %v1287_v61 = vsub.f32 %v4421_v11, %v1271_v0  ;;  %v3307_v63 = vld [vmem:[%s4985_s7 + $0x28] sm:$0xff] }
 0x38c   : > { %v1268_v2 = vpop.xlane.xlu0 %1267 }
 0x38d   : > { %3909 = vpow2.f32 %v1292_v1  ;;  %v1298_v3 = vmul.f32 1.442695, %v1287_v61  ;;  %v1286_v5 = vsub.f32 %v4428_v15, %v1268_v2 }
 0x38e   : > { %v1277_v6 = vpop.xlane.xlu1 %1276 }
 0x38f   : > { %3911 = vpow2.f32 %v1298_v3  ;;  %v1296_v8 = vmul.f32 1.442695, %v1286_v5  ;;  %v1289_v9 = vsub.f32 %v4435_v19, %v1277_v6 }
 0x390   : > { %v1274_v4 = vpop.xlane.xlu0 %1273 }
 0x391   : > { %3913 = vpow2.f32 %v1296_v8  ;;  %v1302_v10 = vmul.f32 1.442695, %v1289_v9  ;;  %v1288_v7 = vsub.f32 %v4442_v25, %v1274_v4  ;;  %v3306_v8 = vld [vmem:[%s4985_s7 + $0x20] sm:$0xff]  ;;  %v3305_v9 = vld [vmem:[%s4985_s7 + $0x18] sm:$0xff] }
 0x392   : > { %v1283_v12 = vpop.xlane.xlu1 %1282 }
 0x393   : > { %3915 = vpow2.f32 %v1302_v10  ;;  %v1300_v13 = vmul.f32 1.442695, %v1288_v7  ;;  %v1291_v11 = vsub.f32 %v4449_v31, %v1283_v12 }
 0x394   : > { %v1280_v14 = vpop.xlane.xlu0 %1279 }
 0x395   : > { %3917 = vpow2.f32 %v1300_v13  ;;  %v1306_v16 = vmul.f32 1.442695, %v1291_v11  ;;  %v1290_v15 = vsub.f32 %v4453_v34, %v1280_v14 }
 0x397   : > { %3919 = vpow2.f32 %v1306_v16  ;;  %v1304_v17 = vmul.f32 1.442695, %v1290_v15 }
 0x398   : > { %v3908_v18 = vpop.eup %3907 }
 0x399   : > { %3921 = vpow2.f32 %v1304_v17  ;;  %v1311_v19 = vsel %vm1259_vm2, %v3908_v18, 0.0 }
 0x39a   : > { %v3910_v22 = vpop.eup %3909  ;;  %1312 = vadd.xlane.f32.xlu1 %v1311_v19 }
 0x39b   : > { %v1308_v23 = vsel %vm1259_vm2, %v3910_v22, 0.0 }
 0x39c   : > { %v3912_v24 = vpop.eup %3911  ;;  %1309 = vadd.xlane.f32.xlu0 %v1308_v23 }
 0x39d   : > { %v1317_v25 = vsel %vm1259_vm2, %v3912_v24, 0.0 }
 0x39e   : > { %v3914_v26 = vpop.eup %3913  ;;  %1318 = vadd.xlane.f32.xlu1 %v1317_v25 }
 0x39f   : > { %v1314_v27 = vsel %vm1259_vm2, %v3914_v26, 0.0 }
 0x3a0   : > { %v3916_v30 = vpop.eup %3915  ;;  %1315 = vadd.xlane.f32.xlu0 %v1314_v27 }
 0x3a1   : > { %v1323_v31 = vsel %vm1259_vm2, %v3916_v30, 0.0 }
 0x3a2   : > { %v3918_v32 = vpop.eup %3917  ;;  %1324 = vadd.xlane.f32.xlu1 %v1323_v31 }
 0x3a3   : > { %v1320_v33 = vsel %vm1259_vm2, %v3918_v32, 0.0 }
 0x3a4   : > { %v3920_v34 = vpop.eup %3919  ;;  %1321 = vadd.xlane.f32.xlu0 %v1320_v33 }
 0x3a5   : > { %v1329_v36 = vsel %vm1259_vm2, %v3920_v34, 0.0 }
 0x3a6   : > { %v3922_v37 = vpop.eup %3921  ;;  %1330 = vadd.xlane.f32.xlu1 %v1329_v36 }
 0x3a7   : > { %v1326_v20 = vsel %vm1259_vm2, %v3922_v37, 0.0 }
 0x3a8   : > { %1327 = vadd.xlane.f32.xlu0 %v1326_v20 }
 0x423   : > { %v1313_v41 = vpop.xlane.xlu1 %1312 }
 0x424   : > { %3923 = vrcp.f32 %v1313_v41 }
 0x425   : > { %v1310_v42 = vpop.xlane.xlu0 %1309 }
 0x426   : > { %3925 = vrcp.f32 %v1310_v42 }
 0x427   : > { %v1319_v28 = vpop.xlane.xlu1 %1318 }
 0x428   : > { %3927 = vrcp.f32 %v1319_v28 }
 0x429   : > { %v1316_v45 = vpop.xlane.xlu0 %1315 }
 0x42a   : > { %3929 = vrcp.f32 %v1316_v45 }
 0x42b   : > { %v1325_v21 = vpop.xlane.xlu1 %1324 }
 0x42c   : > { %3931 = vrcp.f32 %v1325_v21 }
 0x42d   : > { %v1322_v46 = vpop.xlane.xlu0 %1321 }
 0x42e   : > { %3933 = vrcp.f32 %v1322_v46 }
 0x42f   : > { %v1331_v47 = vpop.xlane.xlu1 %1330 }
 0x430   : > { %3935 = vrcp.f32 %v1331_v47  ;;  %v3309_v47 = vld [vmem:[%s4986_s8 + $0x1] ss:$0 sm:$0xff] }
 0x431   : > { %v1328_v29 = vpop.xlane.xlu0 %1327  ;;  %v3924_v38 = vpop.eup %3923 }
 0x432   : > { %3937 = vrcp.f32 %v1328_v29  ;;  %v1341_v39 = vmul.f32 %v3924_v38, %v3908_v18 }
 0x433   : > { %v3926_v51 = vpop.eup %3925 }
 0x434   : > { %v1340_v53 = vmul.f32 %v3926_v51, %v3910_v22  ;;  %v1477_v22 = vld [vmem:[%s4988_s10] sm:$0xff] }
 0x435   : > { %v3928_v54 = vpop.eup %3927 }
 0x436   : > { %3674 = vmatprep.mubr.msk.f32.mxu0 %vm1259_vm2, %v1340_v53  ;;  %v1343_v60 = vmul.f32 %v3928_v54, %v3912_v24 }
 0x437   : > { %v3930_v48 = vpop.eup %3929  ;;  %3675 = vmatmul.mubr.msk.f32.vlgmr.msra.gmra.mxu0 %vm1259_vm2, %v1341_v39 }
 0x438   : > { %3687 = vmatpush3.msra.mxu0 %v3281_v40  ;;  %v1342_v58 = vmul.f32 %v3930_v48, %v3914_v26 }
 0x439   : > { %3688 = vmatprep.subr.mxu0 %v3280_v55  ;;  %v3932_v62 = vpop.eup %3931 }
 0x43a   : > { %3677 = vmatprep.mubr.msk.f32.mxu0 %vm1259_vm2, %v1342_v58  ;;  %3689 = vmatpush3.msra.mxu0 %v3280_v55  ;;  %v1345_v61 = vmul.f32 %v3932_v62, %v3916_v30 }
 0x43b   : > { %v3934_v0 = vpop.eup %3933  ;;  %3678 = vmatmul.mubr.msk.f32.gmra.mxu0 %vm1259_vm2, %v1343_v60  ;;  %3690 = vmatprep.subr.mxu0 %v3279_v59  ;;  %v3319_v60 = vld [vmem:[%s4987_s9 + $0x48] sm:$0xff] }
 0x43c   : > { %v1344_v1 = vmul.f32 %v3934_v0, %v3918_v32  ;;  %3691 = vmatpush3.msra.mxu0 %v3279_v59 }
 0x43d   : > { %3722 = vmatprep.subr.mxu0 %v3307_v63  ;;  %v3936_v2 = vpop.eup %3935 }
 0x43e   : > { %3680 = vmatprep.mubr.msk.f32.mxu0 %vm1259_vm2, %v1344_v1  ;;  %v1347_v6 = vmul.f32 %v3936_v2, %v3920_v34 }
 0x43f   : > { %v3938_v3 = vpop.eup %3937  ;;  %3681 = vmatmul.mubr.msk.f32.gmra.mxu0 %vm1259_vm2, %v1345_v61  ;;  %v3321_v61 = vld [vmem:[%s4987_s9 + $0x58] sm:$0xff] }
 0x440   : > { %v1346_v5 = vmul.f32 %v3938_v3, %v3922_v37 }
 0x442   : > { %3683 = vmatprep.mubr.msk.f32.mxu0 %vm1259_vm2, %v1346_v5 }
 0x443   : > { %3684 = vmatmul.mubr.msk.f32.gmra.mxu0 %vm1259_vm2, %v1347_v6  ;;  %v3320_v6 = vld [vmem:[%s4987_s9 + $0x50] sm:$0xff] }
 0x444   : > { %3692 = vmatprep.mubr.msk.f32.mxu0 %vm586_vm0, %v4237_v35 }
 0x447   : > { %3693 = vmatmul.mubr.msk.f32.vlgmr.msra.gmra.mxu0 %vm586_vm0, %v4245_v43 }
 0x448   : > { %3695 = vmatprep.mubr.msk.f32.mxu0 %vm586_vm0, %v4248_v44  ;;  %3723 = vmatpush3.msra.mxu0 %v3307_v63  ;;  %v3318_v63 = vld [vmem:[%s4987_s9 + $0x40] sm:$0xff] }
 0x449   : > { %3724 = vmatprep.subr.mxu0 %v3306_v8 }
 0x44a   : > { %3725 = vmatpush3.msra.mxu0 %v3306_v8 }
 0x44b   : > { %3696 = vmatmul.mubr.msk.f32.gmra.mxu0 %vm586_vm0, %v4262_v50  ;;  %3726 = vmatprep.subr.mxu0 %v3305_v9 }
 0x44c   : > { %3698 = vmatprep.mubr.msk.f32.mxu0 %vm586_vm0, %v4266_v52  ;;  %3727 = vmatpush3.msra.mxu0 %v3305_v9 }
 0x44f   : > { %3699 = vmatmul.mubr.msk.f32.gmra.mxu0 %vm586_vm0, %v4280_v56 }
 0x450   : > { %3701 = vmatprep.mubr.msk.f32.mxu0 %vm586_vm0, %v4282_v57 }
 0x453   : > { %3702 = vmatmul.mubr.msk.f32.gmra.mxu0 %vm586_vm0, %v4292_v49 }
 0x454   : > { %3728 = vmatprep.mubr.msk.f32.mxu0 %vm586_vm0, %v4237_v35  ;;  %v1478_v35 = vld [vmem:[%s4988_s10 + $0x8] sm:$0xf] }
 0x455   : > { %3812 = vmatprep.subr.msk.mxu1 %vm2244_vm3, %v1478_v35 }
 0x457   : > { %3729 = vmatmul.mubr.msk.f32.vlgmr.msra.gmra.mxu0 %vm586_vm0, %v4245_v43 }
 0x458   : > { %3731 = vmatprep.mubr.msk.f32.mxu0 %vm586_vm0, %v4248_v44 }
 0x45b   : > { %3732 = vmatmul.mubr.msk.f32.gmra.mxu0 %vm586_vm0, %v4262_v50 }
 0x45c   : > { %3734 = vmatprep.mubr.msk.f32.mxu0 %vm586_vm0, %v4266_v52 }
 0x45f   : > { %3735 = vmatmul.mubr.msk.f32.gmra.mxu0 %vm586_vm0, %v4280_v56 }
 0x460   : > { %3737 = vmatprep.mubr.msk.f32.mxu0 %vm586_vm0, %v4282_v57  ;;  %v3283_v57 = vld [vmem:[%s4982_s4 + $0x1] ss:$0 sm:$0xff] }
 0x463   : > { %3738 = vmatmul.mubr.msk.f32.gmra.mxu0 %vm586_vm0, %v4292_v49 }
 0x4f7   : > { %v3676_v43 = vpop.f32.mrf.mxu0 }
 0x4f9   : > { %v1438_v44 = vpop.f32.mrf.mxu0 }
 0x4fb   : > { %v3679_v50 = vpop.f32.mrf.mxu0 }
 0x4fd   : > { %v1448_v52 = vpop.f32.mrf.mxu0 }
 0x4ff   : > { %v3682_v4 = vpop.f32.mrf.mxu0 }
 0x501   : > { %v1458_v10 = vpop.f32.mrf.mxu0 }
 0x503   : > { %v4556_v56 = vpop.f32.mrf.mxu0 }
 0x505   : > { %v1468_v7 = vpop.f32.mrf.mxu0 }
 0x507   : > { %v3694_v49 = vpop.f32.mrf.mxu0 }
 0x508   : > { %v1563_v12 = vadd.f32 %v3694_v49, %v3283_v57 }
 0x509   : > { %v1557_v13 = vpop.f32.mrf.mxu0 }
 0x50a   : > { %v1558_v11 = vadd.f32 %v3283_v57, %v1557_v13  ;;  %v1597_v15 = vmul.f32 0.28867513, %v1563_v12 }
 0x50b   : > { %v3697_v14 = vpop.f32.mrf.mxu0 }
 0x50c   : > { %v1596_v16 = vmul.f32 0.28867513, %v1558_v11  ;;  %v1573_v17 = vadd.f32 %v3697_v14, %v3283_v57  ;;  %v3324_v11 = vld [vmem:[%s4987_s9 + $0x70] sm:$0xff] }
 0x50d   : > { %v1567_v18 = vpop.f32.mrf.mxu0 }
 0x50e   : > { %v1568_v19 = vadd.f32 %v3283_v57, %v1567_v18  ;;  %3756 = vmatprep.mubr.msk.f32.mxu1 %vm1105_vm1, %v1596_v16  ;;  %v1599_v25 = vmul.f32 0.28867513, %v1573_v17 }
 0x50f   : > { %v3700_v23 = vpop.f32.mrf.mxu0  ;;  %3757 = vmatmul.mubr.msk.f32.vlgmr.msra.gmra.mxu1 %vm1105_vm1, %v1597_v15 }
 0x510   : > { %v1598_v24 = vmul.f32 0.28867513, %v1568_v19  ;;  %3813 = vmatpush3.msk.msra.mxu1 %vm2244_vm3, %v1478_v35  ;;  %v1583_v26 = vadd.f32 %v3700_v23, %v3283_v57 }
 0x511   : > { %v1577_v27 = vpop.f32.mrf.mxu0  ;;  %3814 = vmatprep.subr.mxu1 %v1477_v22 }
 0x512   : > { %v1578_v30 = vadd.f32 %v3283_v57, %v1577_v27  ;;  %3759 = vmatprep.mubr.msk.f32.mxu1 %vm1105_vm1, %v1598_v24  ;;  %3815 = vmatpush3.msra.mxu1 %v1477_v22  ;;  %v1601_v33 = vmul.f32 0.28867513, %v1583_v26 }
 0x513   : > { %v3703_v31 = vpop.f32.mrf.mxu0  ;;  %3760 = vmatmul.mubr.msk.f32.gmra.mxu1 %vm1105_vm1, %v1599_v25 }
 0x514   : > { %v1600_v32 = vmul.f32 0.28867513, %v1578_v30  ;;  %v1593_v34 = vadd.f32 %v3703_v31, %v3283_v57 }
 0x515   : > { %v1587_v36 = vpop.f32.mrf.mxu0 }
 0x516   : > { %v1588_v37 = vadd.f32 %v3283_v57, %v1587_v36  ;;  %3762 = vmatprep.mubr.msk.f32.mxu1 %vm1105_vm1, %v1600_v32  ;;  %v1603_v41 = vmul.f32 0.28867513, %v1593_v34  ;;  %v3325_v57 = vld [vmem:[%s4987_s9 + $0x78] sm:$0xff] }
 0x517   : > { %v3730_v20 = vpop.f32.mrf.mxu0  ;;  %3763 = vmatmul.mubr.msk.f32.gmra.mxu1 %vm1105_vm1, %v1601_v33 }
 0x518   : > { %v1602_v40 = vmul.f32 0.28867513, %v1588_v37  ;;  %v1805_v58 = vadd.f32 %v3730_v20, %v3309_v47 }
 0x519   : > { %v1799_v42 = vpop.f32.mrf.mxu0 }
 0x51a   : > { %3765 = vmatprep.mubr.msk.f32.mxu1 %vm1105_vm1, %v1602_v40  ;;  %v1800_v59 = vadd.f32 %v3309_v47, %v1799_v42 }
 0x51b   : > { %v3733_v28 = vpop.f32.mrf.mxu0  ;;  %3766 = vmatmul.mubr.msk.f32.gmra.mxu1 %vm1105_vm1, %v1603_v41 }
 0x51c   : > { %3816 = vmatprep.mubr.msk.f32.mxu1 %vm1105_vm1, %v1438_v44  ;;  %v1815_v55 = vadd.f32 %v3733_v28, %v3309_v47 }
 0x51d   : > { %v1809_v45 = vpop.f32.mrf.mxu0 }
 0x51e   : > { %v1810_v48 = vadd.f32 %v3309_v47, %v1809_v45 }
 0x51f   : > { %v3736_v21 = vpop.f32.mrf.mxu0  ;;  %3817 = vmatmul.mubr.msk.f32.vlgmr.msra.gmra.mxu1 %vm1105_vm1, %v3676_v43  ;;  %v3323_v43 = vld [vmem:[%s4987_s9 + $0x68] sm:$0xff] }
 0x520   : > { %3819 = vmatprep.mubr.msk.f32.mxu1 %vm1105_vm1, %v1448_v52  ;;  %v1825_v39 = vadd.f32 %v3736_v21, %v3309_v47 }
 0x521   : > { %v1819_v46 = vpop.f32.mrf.mxu0 }
 0x522   : > { %v1820_v54 = vadd.f32 %v3309_v47, %v1819_v46 }
 0x523   : > { %v3739_v29 = vpop.f32.mrf.mxu0  ;;  %3820 = vmatmul.mubr.msk.f32.gmra.mxu1 %vm1105_vm1, %v3679_v50 }
 0x524   : > { %v1835_v38 = vadd.f32 %v3739_v29, %v3309_v47  ;;  %3822 = vmatprep.mubr.msk.f32.mxu1 %vm1105_vm1, %v1458_v10 }
 0x525   : > { %v1829_v51 = vpop.f32.mrf.mxu0 }
 0x526   : > { %v1830_v53 = vadd.f32 %v3309_v47, %v1829_v51  ;;  %3768 = vmatprep.subr.mxu0 %v1835_v38 }
 0x527   : > { %3769 = vmatpush3.msra.mxu0 %v1835_v38  ;;  %3823 = vmatmul.mubr.msk.f32.gmra.mxu1 %vm1105_vm1, %v3682_v4  ;;  %v3322_v4 = vld [vmem:[%s4987_s9 + $0x60] sm:$0xff] }
 0x528   : > { %3770 = vmatprep.subr.mxu0 %v1830_v53  ;;  %3825 = vmatprep.mubr.msk.f32.mxu1 %vm1105_vm1, %v1468_v7 }
 0x529   : > { %3771 = vmatpush3.msra.mxu0 %v1830_v53 }
 0x52a   : > { %3772 = vmatprep.subr.mxu0 %v1825_v39 }
 0x52b   : > { %3773 = vmatpush3.msra.mxu0 %v1825_v39  ;;  %3826 = vmatmul.mubr.msk.f32.gmra.mxu1 %vm1105_vm1, %v4556_v56 }
 0x52c   : > { %3774 = vmatprep.subr.mxu0 %v1820_v54 }
 0x52d   : > { %3775 = vmatpush3.msra.mxu0 %v1820_v54 }
 0x52e   : > { %3776 = vmatprep.subr.mxu0 %v1815_v55 }
 0x52f   : > { %3777 = vmatpush3.msra.mxu0 %v1815_v55 }
 0x530   : > { %3778 = vmatprep.subr.mxu0 %v1810_v48 }
 0x531   : > { %3779 = vmatpush3.msra.mxu0 %v1810_v48 }
 0x532   : > { %3780 = vmatprep.subr.mxu0 %v1805_v58 }
 0x533   : > { %3781 = vmatpush3.msra.mxu0 %v1805_v58 }
 0x534   : > { %3782 = vmatprep.subr.mxu0 %v1800_v59 }
 0x535   : > { %3783 = vmatpush3.msra.mxu0 %v1800_v59 }
 0x5cf   : > { %v3758_v62 = vpop.f32.mrf.mxu1 }
 0x5d0   : > { %v1967_v0 = vadd.f32 %v3758_v62, %v3319_v60 }
 0x5d1   : > { %v1961_v1 = vpop.f32.mrf.mxu1 }
 0x5d2   : > { %v1962_v2 = vadd.f32 %v3318_v63, %v1961_v1  ;;  %v2003_v3 = vsel %vm1259_vm2, %v1967_v0, -inf }
 0x5d3   : > { %2004 = vmax.xlane.f32.xlu1 %v2003_v3  ;;  %v3761_v5 = vpop.f32.mrf.mxu1 }
 0x5d4   : > { %v1977_v8 = vadd.f32 %v3761_v5, %v3321_v61  ;;  %v2000_v9 = vsel %vm1259_vm2, %v1962_v2, -inf  ;;  %v3351_v5 = vld [vmem:[%s4988_s10 + $0x18] sm:$0xf] }
 0x5d5   : > { %v1971_v35 = vpop.f32.mrf.mxu1  ;;  %2001 = vmax.xlane.f32.xlu0 %v2000_v9  ;;  %3796 = vmatprep.subr.msk.mxu0 %vm2244_vm3, %v3351_v5 }
 0x5d6   : > { %v1972_v44 = vadd.f32 %v3320_v6, %v1971_v35  ;;  %v2009_v50 = vsel %vm1259_vm2, %v1977_v8, -inf }
 0x5d7   : > { %2010 = vmax.xlane.f32.xlu1 %v2009_v50  ;;  %v3764_v52 = vpop.f32.mrf.mxu1 }
 0x5d8   : > { %v1987_v10 = vadd.f32 %v3764_v52, %v3323_v43  ;;  %v2006_v56 = vsel %vm1259_vm2, %v1972_v44, -inf }
 0x5d9   : > { %v1981_v7 = vpop.f32.mrf.mxu1  ;;  %2007 = vmax.xlane.f32.xlu0 %v2006_v56 }
 0x5da   : > { %v1982_v49 = vadd.f32 %v3322_v4, %v1981_v7  ;;  %v2015_v12 = vsel %vm1259_vm2, %v1987_v10, -inf }
 0x5db   : > { %2016 = vmax.xlane.f32.xlu1 %v2015_v12  ;;  %v3767_v13 = vpop.f32.mrf.mxu1 }
 0x5dc   : > { %v1997_v14 = vadd.f32 %v3767_v13, %v3325_v57  ;;  %v2012_v16 = vsel %vm1259_vm2, %v1982_v49, -inf }
 0x5dd   : > { %v1991_v15 = vpop.f32.mrf.mxu1  ;;  %2013 = vmax.xlane.f32.xlu0 %v2012_v16 }
 0x5de   : > { %v1992_v17 = vadd.f32 %v3324_v11, %v1991_v15  ;;  %v2021_v18 = vsel %vm1259_vm2, %v1997_v14, -inf }
 0x5df   : > { %2022 = vmax.xlane.f32.xlu1 %v2021_v18 }
 0x5e0   : > { %v2018_v19 = vsel %vm1259_vm2, %v1992_v17, -inf }
 0x5e1   : > { %2019 = vmax.xlane.f32.xlu0 %v2018_v19 }
 0x65c   : > { %v2005_v22 = vpop.xlane.xlu1 %2004 }
 0x65d   : > { %v2025_v23 = vsub.f32 %v1967_v0, %v2005_v22 }
 0x65e   : > { %v2002_v24 = vpop.xlane.xlu0 %2001 }
 0x65f   : > { %v2034_v25 = vmul.f32 1.442695, %v2025_v23  ;;  %v2024_v26 = vsub.f32 %v1962_v2, %v2002_v24 }
 0x660   : > { %v2011_v27 = vpop.xlane.xlu1 %2010 }
 0x661   : > { %3939 = vpow2.f32 %v2034_v25  ;;  %v2032_v30 = vmul.f32 1.442695, %v2024_v26  ;;  %v2027_v31 = vsub.f32 %v1977_v8, %v2011_v27 }
 0x662   : > { %v2008_v32 = vpop.xlane.xlu0 %2007 }
 0x663   : > { %3941 = vpow2.f32 %v2032_v30  ;;  %v2038_v33 = vmul.f32 1.442695, %v2027_v31  ;;  %v2026_v34 = vsub.f32 %v1972_v44, %v2008_v32 }
 0x664   : > { %v2017_v36 = vpop.xlane.xlu1 %2016 }
 0x665   : > { %3943 = vpow2.f32 %v2038_v33  ;;  %v2036_v37 = vmul.f32 1.442695, %v2026_v34  ;;  %v2029_v20 = vsub.f32 %v1987_v10, %v2017_v36  ;;  %v3818_v34 = vpop.f32.mrf.mxu1 }
 0x666   : > { %v2014_v40 = vpop.xlane.xlu0 %2013 }
 0x667   : > { %3945 = vpow2.f32 %v2036_v37  ;;  %v2042_v41 = vmul.f32 1.442695, %v2029_v20  ;;  %v2028_v42 = vsub.f32 %v1982_v49, %v2014_v40  ;;  %v3350_v49 = vld [vmem:[%s4988_s10 + $0x10] sm:$0xff]  ;;  %v2446_v36 = vpop.f32.mrf.mxu1 }
 0x668   : > { %v2023_v28 = vpop.xlane.xlu1 %2022 }
 0x669   : > { %3947 = vpow2.f32 %v2042_v41  ;;  %v2040_v45 = vmul.f32 1.442695, %v2028_v42  ;;  %v2031_v21 = vsub.f32 %v1997_v14, %v2023_v28  ;;  %v3821_v37 = vpop.f32.mrf.mxu1  ;;  %v3370_v28 = vld [vmem:[%s4989_s11] ss:$0 sm:$0xff] }
 0x66a   : > { %v2020_v46 = vpop.xlane.xlu0 %2019 }
 0x66b   : > { %3949 = vpow2.f32 %v2040_v45  ;;  %v2046_v47 = vmul.f32 1.442695, %v2031_v21  ;;  %v2030_v29 = vsub.f32 %v1992_v17, %v2020_v46  ;;  %v2456_v20 = vpop.f32.mrf.mxu1  ;;  %v4019_v21 = vld [vmem:[%s4147_s1 + $0x8] sm:$0xff] }
 0x66d   : > { %3951 = vpow2.f32 %v2046_v47  ;;  %v2044_v38 = vmul.f32 1.442695, %v2030_v29  ;;  %v3824_v42 = vpop.f32.mrf.mxu1 }
 0x66e   : > { %v3940_v51 = vpop.eup %3939 }
 0x66f   : > { %3953 = vpow2.f32 %v2044_v38  ;;  %v2051_v53 = vsel %vm1259_vm2, %v3940_v51, 0.0 }
 0x670   : > { %v3942_v39 = vpop.eup %3941  ;;  %2052 = vadd.xlane.f32.xlu1 %v2051_v53 }
 0x671   : > { %v2048_v54 = vsel %vm1259_vm2, %v3942_v39, 0.0 }
 0x672   : > { %v3944_v55 = vpop.eup %3943  ;;  %2049 = vadd.xlane.f32.xlu0 %v2048_v54  ;;  %v2466_v54 = vpop.f32.mrf.mxu1 }
 0x673   : > { %v2057_v48 = vsel %vm1259_vm2, %v3944_v55, 0.0 }
 0x674   : > { %v3946_v58 = vpop.eup %3945  ;;  %2058 = vadd.xlane.f32.xlu1 %v2057_v48 }
 0x675   : > { %v2054_v59 = vsel %vm1259_vm2, %v3946_v58, 0.0 }
 0x676   : > { %v3948_v60 = vpop.eup %3947  ;;  %2055 = vadd.xlane.f32.xlu0 %v2054_v59 }
 0x677   : > { %v2063_v62 = vsel %vm1259_vm2, %v3948_v60, 0.0 }
 0x678   : > { %v3950_v63 = vpop.eup %3949  ;;  %2064 = vadd.xlane.f32.xlu1 %v2063_v62 }
 0x679   : > { %v2060_v0 = vsel %vm1259_vm2, %v3950_v63, 0.0 }
 0x67a   : > { %v3952_v1 = vpop.eup %3951  ;;  %2061 = vadd.xlane.f32.xlu0 %v2060_v0 }
 0x67b   : > { %v2069_v61 = vsel %vm1259_vm2, %v3952_v1, 0.0 }
 0x67c   : > { %v3954_v2 = vpop.eup %3953  ;;  %2070 = vadd.xlane.f32.xlu1 %v2069_v61 }
 0x67d   : > { %v2066_v3 = vsel %vm1259_vm2, %v3954_v2, 0.0 }
 0x67e   : > { %2067 = vadd.xlane.f32.xlu0 %v2066_v3 }
 0x6f9   : > { %v2053_v6 = vpop.xlane.xlu1 %2052 }
 0x6fa   : > { %3955 = vrcp.f32 %v2053_v6 }
 0x6fb   : > { %v2050_v8 = vpop.xlane.xlu0 %2049 }
 0x6fc   : > { %3957 = vrcp.f32 %v2050_v8 }
 0x6fd   : > { %v2059_v9 = vpop.xlane.xlu1 %2058 }
 0x6fe   : > { %3959 = vrcp.f32 %v2059_v9  ;;  %v4023_v9 = vld [vmem:[%s4147_s1 + $0x28] sm:$0xff] }
 0x6ff   : > { %v2056_v35 = vpop.xlane.xlu0 %2055 }
 0x700   : > { %3961 = vrcp.f32 %v2056_v35 }
 0x701   : > { %v2065_v43 = vpop.xlane.xlu1 %2064 }
 0x702   : > { %3963 = vrcp.f32 %v2065_v43 }
 0x703   : > { %v2062_v44 = vpop.xlane.xlu0 %2061 }
 0x704   : > { %3965 = vrcp.f32 %v2062_v44 }
 0x705   : > { %v2071_v50 = vpop.xlane.xlu1 %2070 }
 0x706   : > { %3967 = vrcp.f32 %v2071_v50 }
 0x707   : > { %v2068_v52 = vpop.xlane.xlu0 %2067  ;;  %v3956_v4 = vpop.eup %3955 }
 0x708   : > { %3969 = vrcp.f32 %v2068_v52  ;;  %v2081_v7 = vmul.f32 %v3956_v4, %v3940_v51  ;;  %v4020_v51 = vld [vmem:[%s4147_s1] sm:$0xff] }
 0x709   : > { %v3958_v10 = vpop.eup %3957  ;;  %v4024_v4 = vld [vmem:[%s4147_s1 + $0x20] sm:$0xff] }
 0x70a   : > { %v2080_v56 = vmul.f32 %v3958_v10, %v3942_v39 }
 0x70b   : > { %v3960_v57 = vpop.eup %3959 }
 0x70c   : > { %3784 = vmatprep.mubr.msk.f32.mxu0 %vm1259_vm2, %v2080_v56  ;;  %v2083_v11 = vmul.f32 %v3960_v57, %v3944_v55 }
 0x70d   : > { %v3962_v12 = vpop.eup %3961  ;;  %3785 = vmatmul.mubr.msk.f32.vlgmr.msra.gmra.mxu0 %vm1259_vm2, %v2081_v7 }
 0x70e   : > { %v2082_v13 = vmul.f32 %v3962_v12, %v3946_v58  ;;  %3797 = vmatpush3.msk.msra.mxu0 %vm2244_vm3, %v3351_v5  ;;  %v4021_v58 = vld [vmem:[%s4147_s1 + $0x18] sm:$0xff]  ;;  %v3827_v5 = vpop.f32.mrf.mxu1 }
 0x70f   : > { %3798 = vmatprep.subr.mxu0 %v3350_v49  ;;  %v3964_v14 = vpop.eup %3963 }
 0x710   : > { %3787 = vmatprep.mubr.msk.f32.mxu0 %vm1259_vm2, %v2082_v13  ;;  %3799 = vmatpush3.msra.mxu0 %v3350_v49  ;;  %v2085_v17 = vmul.f32 %v3964_v14, %v3948_v60  ;;  %v2476_v57 = vpop.f32.mrf.mxu1  ;;  %v4025_v13 = vld [vmem:[%s4147_s1 + $0x38] sm:$0xff] }
 0x711   : > { %v3966_v16 = vpop.eup %3965  ;;  %3788 = vmatmul.mubr.msk.f32.gmra.mxu0 %vm1259_vm2, %v2083_v11 }
 0x712   : > { %v2084_v15 = vmul.f32 %v3966_v16, %v3950_v63 }
 0x713   : > { %v3968_v18 = vpop.eup %3967 }
 0x714   : > { %3790 = vmatprep.mubr.msk.f32.mxu0 %vm1259_vm2, %v2084_v15  ;;  %v2087_v23 = vmul.f32 %v3968_v18, %v3952_v1  ;;  %v4022_v1 = vld [vmem:[%s4147_s1 + $0x10] sm:$0xff] }
 0x715   : > { %v3970_v19 = vpop.eup %3969  ;;  %3791 = vmatmul.mubr.msk.f32.gmra.mxu0 %vm1259_vm2, %v2085_v17  ;;  %v4026_v17 = vld [vmem:[%s4147_s1 + $0x30] sm:$0xff] }
 0x716   : > { %v2086_v22 = vmul.f32 %v3970_v19, %v3954_v2 }
 0x718   : > { %3793 = vmatprep.mubr.msk.f32.mxu0 %vm1259_vm2, %v2086_v22 }
 0x719   : > { %3794 = vmatmul.mubr.msk.f32.gmra.mxu0 %vm1259_vm2, %v2087_v23 }
 0x7cd   : > { %v3786_v24 = vpop.f32.mrf.mxu0 }
 0x7cf   : > { %v2178_v25 = vpop.f32.mrf.mxu0 }
 0x7d0   : > { %3800 = vmatprep.mubr.msk.f32.mxu0 %vm1105_vm1, %v2178_v25 }
 0x7d1   : > { %v3789_v26 = vpop.f32.mrf.mxu0  ;;  %3801 = vmatmul.mubr.msk.f32.vlgmr.msra.gmra.mxu0 %vm1105_vm1, %v3786_v24 }
 0x7d3   : > { %v2188_v27 = vpop.f32.mrf.mxu0 }
 0x7d4   : > { %3803 = vmatprep.mubr.msk.f32.mxu0 %vm1105_vm1, %v2188_v27 }
 0x7d5   : > { %v3792_v30 = vpop.f32.mrf.mxu0  ;;  %3804 = vmatmul.mubr.msk.f32.gmra.mxu0 %vm1105_vm1, %v3789_v26 }
 0x7d7   : > { %v2198_v31 = vpop.f32.mrf.mxu0 }
 0x7d8   : > { %3806 = vmatprep.mubr.msk.f32.mxu0 %vm1105_vm1, %v2198_v31 }
 0x7d9   : > { %v3795_v32 = vpop.f32.mrf.mxu0  ;;  %3807 = vmatmul.mubr.msk.f32.gmra.mxu0 %vm1105_vm1, %v3792_v30 }
 0x7db   : > { %v2208_v33 = vpop.f32.mrf.mxu0 }
 0x7dc   : > { %3809 = vmatprep.mubr.msk.f32.mxu0 %vm1105_vm1, %v2208_v33 }
 0x7dd   : > { %3810 = vmatmul.mubr.msk.f32.gmra.mxu0 %vm1105_vm1, %v3795_v32 }
 0x891   : > { %v3802_v40 = vpop.f32.mrf.mxu0 }
 0x892   : > { %v2452_v41 = vadd.f32 %v3818_v34, %v3802_v40 }
 0x893   : > { %v2314_v45 = vpop.f32.mrf.mxu0 }
 0x894   : > { %v2486_v46 = vadd.f32 %v4019_v21, %v2452_v41  ;;  %v2447_v47 = vadd.f32 %v2446_v36, %v2314_v45 }
 0x895   : > { %v3805_v29 = vpop.f32.mrf.mxu0 }
 0x896   : > { %v4653_v38 = vadd.f32 %v3370_v28, %v2486_v46  ;;  %v2485_v53 = vadd.f32 %v4020_v51, %v2447_v47  ;;  %v2462_v39 = vadd.f32 %v3821_v37, %v3805_v29 }
 0x897   : > { %v2324_v55 = vpop.f32.mrf.mxu0 }
 0x898   : > { %v4656_v48 = vadd.f32 %v3370_v28, %v2485_v53  ;;  %v2488_v59 = vadd.f32 %v4021_v58, %v2462_v39  ;;  %v2457_v60 = vadd.f32 %v2456_v20, %v2324_v55  ;;  %v2513_v62 = vsel %vm586_vm0, %v4653_v38, 0.0 }
 0x899   : > { %2514 = vadd.xlane.f32.xlu1 %v2513_v62  ;;  %v3808_v63 = vpop.f32.mrf.mxu0 }
 0x89a   : > { %v4661_v0 = vadd.f32 %v3370_v28, %v2488_v59  ;;  %v2487_v61 = vadd.f32 %v4022_v1, %v2457_v60  ;;  %v2472_v2 = vadd.f32 %v3824_v42, %v3808_v63  ;;  %v2510_v3 = vsel %vm586_vm0, %v4656_v48, 0.0 }
 0x89b   : > { %2511 = vadd.xlane.f32.xlu0 %v2510_v3  ;;  %v2334_v6 = vpop.f32.mrf.mxu0 }
 0x89c   : > { %v4666_v8 = vadd.f32 %v3370_v28, %v2487_v61  ;;  %v2490_v35 = vadd.f32 %v4023_v9, %v2472_v2  ;;  %v2467_v43 = vadd.f32 %v2466_v54, %v2334_v6  ;;  %v2519_v44 = vsel %vm586_vm0, %v4661_v0, 0.0 }
 0x89d   : > { %2520 = vadd.xlane.f32.xlu1 %v2519_v44  ;;  %v3811_v50 = vpop.f32.mrf.mxu0 }
 0x89e   : > { %v4671_v52 = vadd.f32 %v3370_v28, %v2490_v35  ;;  %v2489_v10 = vadd.f32 %v4024_v4, %v2467_v43  ;;  %v2482_v56 = vadd.f32 %v3827_v5, %v3811_v50  ;;  %v2516_v7 = vsel %vm586_vm0, %v4666_v8, 0.0  ;;  %v2644_v50 = vld [vmem:[%s4992_s14 + $0x10] sm:$0xff]  ;;  %v2643_v4 = vld [vmem:[%s4992_s14 + $0x8] sm:$0xff] }
 0x89f   : > { %2517 = vadd.xlane.f32.xlu0 %v2516_v7  ;;  %v2344_v49 = vpop.f32.mrf.mxu0  ;;  %3828 = vmatprep.subr.mxu0 %v2644_v50 }
 0x8a0   : > { %v4676_v12 = vadd.f32 %v3370_v28, %v2489_v10  ;;  %v2492_v11 = vadd.f32 %v4025_v13, %v2482_v56  ;;  %v2477_v14 = vadd.f32 %v2476_v57, %v2344_v49  ;;  %v2525_v16 = vsel %vm586_vm0, %v4671_v52, 0.0  ;;  %3829 = vmatpush3.msra.mxu0 %v2644_v50  ;;  %v2642_v10 = vld [vmem:[%s4992_s14] sm:$0xff] }
 0x8a1   : > { %2526 = vadd.xlane.f32.xlu1 %v2525_v16  ;;  %3830 = vmatprep.subr.mxu0 %v2643_v4 }
 0x8a2   : > { %v4681_v15 = vadd.f32 %v3370_v28, %v2492_v11  ;;  %v2491_v18 = vadd.f32 %v4026_v17, %v2477_v14  ;;  %v2522_v19 = vsel %vm586_vm0, %v4676_v12, 0.0  ;;  %3831 = vmatpush3.msra.mxu0 %v2643_v4 }
 0x8a3   : > { %2523 = vadd.xlane.f32.xlu0 %v2522_v19  ;;  %3832 = vmatprep.subr.mxu0 %v2642_v10 }
 0x8a4   : > { %v4686_v22 = vadd.f32 %v3370_v28, %v2491_v18  ;;  %v2531_v23 = vsel %vm586_vm0, %v4681_v15, 0.0  ;;  %3833 = vmatpush3.msra.mxu0 %v2642_v10 }
 0x8a5   : > { %2532 = vadd.xlane.f32.xlu1 %v2531_v23 }
 0x8a6   : > { %v2528_v24 = vsel %vm586_vm0, %v4686_v22, 0.0 }
 0x8a7   : > { %2529 = vadd.xlane.f32.xlu0 %v2528_v24 }
 0x922   : > { %v2515_v25 = vpop.xlane.xlu1 %2514 }
 0x923   : > { %v2535_v26 = vmul.f32 0.041666668, %v2515_v25 }
 0x924   : > { %v2512_v27 = vpop.xlane.xlu0 %2511 }
 0x925   : > { %v4693_v30 = vsub.f32 %v4653_v38, %v2535_v26  ;;  %v2534_v31 = vmul.f32 0.041666668, %v2512_v27 }
 0x926   : > { %v2521_v32 = vpop.xlane.xlu1 %2520 }
 0x927   : > { %v4696_v33 = vsub.f32 %v4656_v48, %v2534_v31  ;;  %v2537_v34 = vmul.f32 0.041666668, %v2521_v32  ;;  %v2551_v36 = vmul.f32 %v4693_v30, %v4693_v30 }
 0x928   : > { %v2518_v37 = vpop.xlane.xlu0 %2517 }
 0x929   : > { %v4701_v20 = vsub.f32 %v4661_v0, %v2537_v34  ;;  %v2536_v40 = vmul.f32 0.041666668, %v2518_v37  ;;  %v2561_v41 = vsel %vm586_vm0, %v2551_v36, 0.0  ;;  %v2550_v42 = vmul.f32 %v4696_v33, %v4696_v33 }
 0x92a   : > { %v2527_v28 = vpop.xlane.xlu1 %2526  ;;  %2562 = vadd.xlane.f32.xlu1 %v2561_v41 }
 0x92b   : > { %v4707_v45 = vsub.f32 %v4666_v8, %v2536_v40  ;;  %v2539_v21 = vmul.f32 0.041666668, %v2527_v28  ;;  %v2558_v46 = vsel %vm586_vm0, %v2550_v42, 0.0  ;;  %v2553_v47 = vmul.f32 %v4701_v20, %v4701_v20 }
 0x92c   : > { %v2524_v29 = vpop.xlane.xlu0 %2523  ;;  %2559 = vadd.xlane.f32.xlu0 %v2558_v46 }
 0x92d   : > { %v4713_v51 = vsub.f32 %v4671_v52, %v2539_v21  ;;  %v2538_v53 = vmul.f32 0.041666668, %v2524_v29  ;;  %v2567_v39 = vsel %vm586_vm0, %v2553_v47, 0.0  ;;  %v2552_v54 = vmul.f32 %v4707_v45, %v4707_v45  ;;  %v3371_v21 = vld [vmem:[%s4990_s12] ss:$0 sm:$0xff] }
 0x92e   : > { %2568 = vadd.xlane.f32.xlu1 %v2567_v39  ;;  %v2533_v55 = vpop.xlane.xlu1 %2532 }
 0x92f   : > { %v4719_v58 = vsub.f32 %v4676_v12, %v2538_v53  ;;  %v2541_v59 = vmul.f32 0.041666668, %v2533_v55  ;;  %v2564_v60 = vsel %vm586_vm0, %v2552_v54, 0.0  ;;  %v2555_v62 = vmul.f32 %v4713_v51, %v4713_v51  ;;  %v3372_v54 = vld [vmem:[%s4991_s13] ss:$0 sm:$0xff] }
 0x930   : > { %2565 = vadd.xlane.f32.xlu0 %v2564_v60  ;;  %v2530_v63 = vpop.xlane.xlu0 %2529 }
 0x931   : > { %v4725_v1 = vsub.f32 %v4681_v15, %v2541_v59  ;;  %v2540_v61 = vmul.f32 0.041666668, %v2530_v63  ;;  %v2573_v2 = vsel %vm586_vm0, %v2555_v62, 0.0  ;;  %v2554_v3 = vmul.f32 %v4719_v58, %v4719_v58 }
 0x932   : > { %2574 = vadd.xlane.f32.xlu1 %v2573_v2 }
 0x933   : > { %v4731_v5 = vsub.f32 %v4686_v22, %v2540_v61  ;;  %v2570_v6 = vsel %vm586_vm0, %v2554_v3, 0.0  ;;  %v2557_v9 = vmul.f32 %v4725_v1, %v4725_v1 }
 0x934   : > { %2571 = vadd.xlane.f32.xlu0 %v2570_v6 }
 0x935   : > { %v2579_v35 = vsel %vm586_vm0, %v2557_v9, 0.0  ;;  %v2556_v43 = vmul.f32 %v4731_v5, %v4731_v5 }
 0x936   : > { %2580 = vadd.xlane.f32.xlu1 %v2579_v35 }
 0x937   : > { %v2576_v44 = vsel %vm586_vm0, %v2556_v43, 0.0 }
 0x938   : > { %2577 = vadd.xlane.f32.xlu0 %v2576_v44 }
 0x9b3   : > { %v2563_v56 = vpop.xlane.xlu1 %2562 }
 0x9b4   : > { %v2583_v7 = vmul.f32 0.041666668, %v2563_v56 }
 0x9b5   : > { %v2560_v57 = vpop.xlane.xlu0 %2559 }
 0x9b6   : > { %v2591_v49 = vadd.f32 1e-05, %v2583_v7  ;;  %v2582_v13 = vmul.f32 0.041666668, %v2560_v57 }
 0x9b7   : > { %v2569_v11 = vpop.xlane.xlu1 %2568 }
 0x9b8   : > { %3971 = vrsqrt.f32 %v2591_v49  ;;  %v2590_v14 = vadd.f32 1e-05, %v2582_v13  ;;  %v2585_v16 = vmul.f32 0.041666668, %v2569_v11  ;;  %v3006_v13 = vld [vmem:[%s4994_s16 + $0x48] sm:$0xff]  ;;  %v3005_v11 = vld [vmem:[%s4994_s16 + $0x40] sm:$0xff] }
 0x9b9   : > { %v2566_v17 = vpop.xlane.xlu0 %2565 }
 0x9ba   : > { %3973 = vrsqrt.f32 %v2590_v14  ;;  %v2593_v18 = vadd.f32 1e-05, %v2585_v16  ;;  %v2584_v19 = vmul.f32 0.041666668, %v2566_v17  ;;  %v3004_v14 = vld [vmem:[%s4994_s16 + $0x38] sm:$0xff]  ;;  %v3003_v16 = vld [vmem:[%s4994_s16 + $0x30] sm:$0xff] }
 0x9bb   : > { %v2575_v23 = vpop.xlane.xlu1 %2574  ;;  %v3002_v17 = vld [vmem:[%s4994_s16 + $0x28] sm:$0xff] }
 0x9bc   : > { %3975 = vrsqrt.f32 %v2593_v18  ;;  %v2592_v24 = vadd.f32 1e-05, %v2584_v19  ;;  %v2587_v25 = vmul.f32 0.041666668, %v2575_v23  ;;  %v3001_v18 = vld [vmem:[%s4994_s16 + $0x20] sm:$0xff]  ;;  %v3000_v19 = vld [vmem:[%s4994_s16 + $0x18] sm:$0xff] }
 0x9bd   : > { %v2572_v26 = vpop.xlane.xlu0 %2571  ;;  %v2999_v23 = vld [vmem:[%s4994_s16 + $0x10] sm:$0xff] }
 0x9be   : > { %3977 = vrsqrt.f32 %v2592_v24  ;;  %v2595_v27 = vadd.f32 1e-05, %v2587_v25  ;;  %v2586_v31 = vmul.f32 0.041666668, %v2572_v26  ;;  %v2998_v24 = vld [vmem:[%s4994_s16 + $0x8] sm:$0xff]  ;;  %v2997_v25 = vld [vmem:[%s4994_s16] sm:$0xff] }
 0x9bf   : > { %v2581_v32 = vpop.xlane.xlu1 %2580  ;;  %v3373_v26 = vld [vmem:[%s4993_s15] ss:$0 sm:$0xff] }
 0x9c0   : > { %3979 = vrsqrt.f32 %v2595_v27  ;;  %v2594_v34 = vadd.f32 1e-05, %v2586_v31  ;;  %v2589_v36 = vmul.f32 0.041666668, %v2581_v32 }
 0x9c1   : > { %v2578_v37 = vpop.xlane.xlu0 %2577 }
 0x9c2   : > { %3981 = vrsqrt.f32 %v2594_v34  ;;  %v2597_v40 = vadd.f32 1e-05, %v2589_v36  ;;  %v2588_v41 = vmul.f32 0.041666668, %v2578_v37 }
 0x9c4   : > { %3983 = vrsqrt.f32 %v2597_v40  ;;  %v2596_v42 = vadd.f32 1e-05, %v2588_v41 }
 0x9c5   : > { %v3972_v28 = vpop.eup %3971 }
 0x9c6   : > { %v2607_v46 = vmul.f32 %v3972_v28, %v4693_v30  ;;  %3985 = vrsqrt.f32 %v2596_v42  ;;  %v4035_v42 = vmov -1.0  }
 0x9c7   : > { %v3974_v47 = vpop.eup %3973 }
 0x9c8   : > { %v2606_v29 = vmul.f32 %v3974_v47, %v4696_v33  ;;  %v2621_v39 = vmul.f32 %v3371_v21, %v2607_v46 }
 0x9c9   : > { %v3976_v53 = vpop.eup %3975 }
 0x9ca   : > { %v2620_v55 = vmul.f32 %v3371_v21, %v2606_v29  ;;  %v2609_v59 = vmul.f32 %v3976_v53, %v4701_v20  ;;  %v2635_v2 = vadd.f32 %v3372_v54, %v2621_v39 }
 0x9cb   : > { %v3978_v60 = vpop.eup %3977 }
 0x9cc   : > { %v2634_v62 = vadd.f32 %v3372_v54, %v2620_v55  ;;  %v2608_v63 = vmul.f32 %v3978_v60, %v4707_v45  ;;  %v2623_v30 = vmul.f32 %v3371_v21, %v2609_v59 }
 0x9cd   : > { %v3980_v61 = vpop.eup %3979 }
 0x9ce   : > { %3834 = vmatprep.mubr.msk.f32.mxu0 %vm586_vm0, %v2634_v62  ;;  %v2622_v3 = vmul.f32 %v3371_v21, %v2608_v63  ;;  %v2611_v33 = vmul.f32 %v3980_v61, %v4713_v51  ;;  %v2637_v20 = vadd.f32 %v3372_v54, %v2623_v30 }
 0x9cf   : > { %v3982_v6 = vpop.eup %3981  ;;  %3835 = vmatmul.mubr.msk.f32.vlgmr.msra.gmra.mxu0 %vm586_vm0, %v2635_v2 }
 0x9d0   : > { %v2636_v9 = vadd.f32 %v3372_v54, %v2622_v3  ;;  %v2610_v35 = vmul.f32 %v3982_v6, %v4719_v58  ;;  %v2625_v44 = vmul.f32 %v3371_v21, %v2611_v33 }
 0x9d1   : > { %v3984_v43 = vpop.eup %3983 }
 0x9d2   : > { %3837 = vmatprep.mubr.msk.f32.mxu0 %vm586_vm0, %v2636_v9  ;;  %v2624_v45 = vmul.f32 %v3371_v21, %v2610_v35  ;;  %v2613_v50 = vmul.f32 %v3984_v43, %v4725_v1  ;;  %v2639_v56 = vadd.f32 %v3372_v54, %v2625_v44  ;;  %v3008_v1 = vld [vmem:[%s4994_s16 + $0x58] sm:$0xff] }
 0x9d3   : > { %v3986_v4 = vpop.eup %3985  ;;  %3838 = vmatmul.mubr.msk.f32.gmra.mxu0 %vm586_vm0, %v2637_v20  ;;  %3846 = vmatprep.subr.mxu1 %v3008_v1 }
 0x9d4   : > { %v2638_v10 = vadd.f32 %v3372_v54, %v2624_v45  ;;  %v2612_v51 = vmul.f32 %v3986_v4, %v4731_v5  ;;  %v2627_v7 = vmul.f32 %v3371_v21, %v2613_v50  ;;  %3847 = vmatpush3.msra.mxu1 %v3008_v1  ;;  %v3007_v5 = vld [vmem:[%s4994_s16 + $0x50] sm:$0xff] }
 0x9d5   : > { %3848 = vmatprep.subr.mxu1 %v3007_v5 }
 0x9d6   : > { %3840 = vmatprep.mubr.msk.f32.mxu0 %vm586_vm0, %v2638_v10  ;;  %v2626_v57 = vmul.f32 %v3371_v21, %v2612_v51  ;;  %v2641_v49 = vadd.f32 %v3372_v54, %v2627_v7  ;;  %3849 = vmatpush3.msra.mxu1 %v3007_v5 }
 0x9d7   : > { %3841 = vmatmul.mubr.msk.f32.gmra.mxu0 %vm586_vm0, %v2639_v56  ;;  %3850 = vmatprep.subr.mxu1 %v3006_v13 }
 0x9d8   : > { %v2640_v58 = vadd.f32 %v3372_v54, %v2626_v57  ;;  %3851 = vmatpush3.msra.mxu1 %v3006_v13 }
 0x9d9   : > { %3852 = vmatprep.subr.mxu1 %v3005_v11 }
 0x9da   : > { %3843 = vmatprep.mubr.msk.f32.mxu0 %vm586_vm0, %v2640_v58  ;;  %3853 = vmatpush3.msra.mxu1 %v3005_v11 }
 0x9db   : > { %3844 = vmatmul.mubr.msk.f32.gmra.mxu0 %vm586_vm0, %v2641_v49  ;;  %3854 = vmatprep.subr.mxu1 %v3004_v14 }
 0x9dc   : > { %3855 = vmatpush3.msra.mxu1 %v3004_v14 }
 0x9dd   : > { %3856 = vmatprep.subr.mxu1 %v3003_v16 }
 0x9de   : > { %3857 = vmatpush3.msra.mxu1 %v3003_v16 }
 0x9df   : > { %3858 = vmatprep.subr.mxu1 %v3002_v17 }
 0x9e0   : > { %3859 = vmatpush3.msra.mxu1 %v3002_v17 }
 0x9e1   : > { %3860 = vmatprep.subr.mxu1 %v3001_v18 }
 0x9e2   : > { %3861 = vmatpush3.msra.mxu1 %v3001_v18 }
 0x9e3   : > { %3862 = vmatprep.subr.mxu1 %v3000_v19 }
 0x9e4   : > { %3863 = vmatpush3.msra.mxu1 %v3000_v19 }
 0x9e5   : > { %3864 = vmatprep.subr.mxu1 %v2999_v23 }
 0x9e6   : > { %3865 = vmatpush3.msra.mxu1 %v2999_v23 }
 0x9e7   : > { %3866 = vmatprep.subr.mxu1 %v2998_v24 }
 0x9e8   : > { %3867 = vmatpush3.msra.mxu1 %v2998_v24 }
 0x9e9   : > { %3868 = vmatprep.subr.mxu1 %v2997_v25 }
 0x9ea   : > { %3869 = vmatpush3.msra.mxu1 %v2997_v25 }
 0xa8f   : > { %v3836_v27 = vpop.f32.mrf.mxu0 }
 0xa90   : > { %v4810_v31 = vadd.f32 %v3836_v27, %v3373_v26 }
 0xa91   : > { %v2742_v32 = vpop.f32.mrf.mxu0 }
 0xa92   : > { %v2790_v34 = vmul.f32 0.70710677, %v4810_v31  ;;  %v4813_v36 = vadd.f32 %v3373_v26, %v2742_v32 }
 0xa93   : > { %v3839_v37 = vpop.f32.mrf.mxu0 }
 0xa94   : > { %vm2798_vm4 = vcmp.ge.f32.partialorder %v2790_v34, 0.0  ;;  %v2789_v40 = vmul.f32 0.70710677, %v4813_v36  ;;  %v4816_v41 = vadd.f32 %v3839_v37, %v3373_v26 }
 0xa95   : > { %v4819_v28 = vsel %vm2798_vm4, 1.0, %v4035_v42  ;;  %v2752_v21 = vpop.f32.mrf.mxu0 }
 0xa96   : > { %v2814_v46 = vmul.f32 %v4819_v28, %v2790_v34  ;;  %vm2797_vm5 = vcmp.ge.f32.partialorder %v2789_v40, 0.0  ;;  %v2792_v47 = vmul.f32 0.70710677, %v4816_v41  ;;  %v4826_v53 = vadd.f32 %v3373_v26, %v2752_v21 }
 0xa97   : > { %v4824_v29 = vsel %vm2797_vm5, 1.0, %v4035_v42  ;;  %v3842_v39 = vpop.f32.mrf.mxu0 }
 0xa98   : > { %v2822_v54 = vmul.f32 0.3275911, %v2814_v46  ;;  %v2813_v55 = vmul.f32 %v4824_v29, %v2789_v40  ;;  %vm2800_vm6 = vcmp.ge.f32.partialorder %v2792_v47, 0.0  ;;  %v2791_v60 = vmul.f32 0.70710677, %v4826_v53 }
 0xa99   : > { %v4830_v59 = vsel %vm2800_vm6, 1.0, %v4035_v42  ;;  %v4833_v62 = vadd.f32 %v3842_v39, %v3373_v26  ;;  %v2762_v63 = vpop.f32.mrf.mxu0  ;;  %v2926_v44 = vsub.f32 0.0, %v2814_v46 }
 0xa9a   : > { %v2830_v61 = vadd.f32 1.0, %v2822_v54  ;;  %v2821_v2 = vmul.f32 0.3275911, %v2813_v55  ;;  %v2816_v30 = vmul.f32 %v4830_v59, %v2792_v47  ;;  %vm2799_vm7 = vcmp.ge.f32.partialorder %v2791_v60, 0.0 }
 0xa9b   : > { %v2794_v3 = vmul.f32 0.70710677, %v4833_v62  ;;  %v4838_v9 = vsel %vm2799_vm7, 1.0, %v4035_v42  ;;  %v3845_v35 = vpop.f32.mrf.mxu0  ;;  %v4845_v10 = vadd.f32 %v3373_v26, %v2762_v63  ;;  %v2934_v58 = vmul.f32 %v2926_v44, %v2814_v46 }
 0xa9c   : > { %3987 = vrcp.f32 %v2830_v61  ;;  %v2829_v33 = vadd.f32 1.0, %v2821_v2  ;;  %v2824_v6 = vmul.f32 0.3275911, %v2816_v30  ;;  %v2815_v43 = vmul.f32 %v4838_v9, %v2791_v60 }
 0xa9d   : > { %vm2802_vm8 = vcmp.ge.f32.partialorder %v2794_v3, 0.0  ;;  %v2772_v56 = vpop.f32.mrf.mxu0  ;;  %v2793_v57 = vmul.f32 0.70710677, %v4845_v10  ;;  %v2925_v49 = vsub.f32 0.0, %v2813_v55  ;;  %v4848_v5 = vadd.f32 %v3845_v35, %v3373_v26 }
 0xa9e   : > { %v4842_v20 = vsel %vm2802_vm8, 1.0, %v4035_v42  ;;  %3989 = vrcp.f32 %v2829_v33  ;;  %v2832_v45 = vadd.f32 1.0, %v2824_v6  ;;  %v2823_v4 = vmul.f32 0.3275911, %v2815_v43 }
 0xa9f   : > { %v2818_v50 = vmul.f32 %v4842_v20, %v2794_v3  ;;  %vm2801_vm9 = vcmp.ge.f32.partialorder %v2793_v57, 0.0  ;;  %v4850_v13 = vadd.f32 %v3373_v26, %v2772_v56  ;;  %v2928_v11 = vsub.f32 0.0, %v2816_v30 }
 0xaa0   : > { %3991 = vrcp.f32 %v2832_v45  ;;  %v2831_v7 = vadd.f32 1.0, %v2823_v4  ;;  %v4853_v14 = vsel %vm2801_vm9, 1.0, %v4035_v42  ;;  %v2796_v17 = vmul.f32 0.70710677, %v4848_v5 }
 0xaa1   : > { %v2826_v51 = vmul.f32 0.3275911, %v2818_v50  ;;  %v2817_v16 = vmul.f32 %v4853_v14, %v2793_v57  ;;  %v2943_v18 = vmul.f32 1.442695, %v2934_v58  ;;  %v2933_v19 = vmul.f32 %v2925_v49, %v2813_v55 }
 0xaa2   : > { %3993 = vrcp.f32 %v2831_v7  ;;  %v2795_v23 = vmul.f32 0.70710677, %v4850_v13  ;;  %vm2804_vm10 = vcmp.ge.f32.partialorder %v2796_v17, 0.0  ;;  %v2936_v27 = vmul.f32 %v2928_v11, %v2816_v30 }
 0xaa3   : > { %v2834_v1 = vadd.f32 1.0, %v2826_v51  ;;  %v2825_v24 = vmul.f32 0.3275911, %v2817_v16  ;;  %v2927_v26 = vsub.f32 0.0, %v2815_v43  ;;  %v4861_v32 = vsel %vm2804_vm10, 1.0, %v4035_v42 }
 0xaa4   : > { %vm2803_vm11 = vcmp.ge.f32.partialorder %v2795_v23, 0.0  ;;  %v2930_v37 = vsub.f32 0.0, %v2818_v50  ;;  %v2820_v21 = vmul.f32 %v4861_v32, %v2796_v17  ;;  %v2941_v46 = vmul.f32 1.442695, %v2933_v19 }
 0xaa5   : > { %3995 = vrcp.f32 %v2834_v1  ;;  %v2833_v40 = vadd.f32 1.0, %v2825_v24  ;;  %v4866_v47 = vsel %vm2803_vm11, 1.0, %v4035_v42  ;;  %v2947_v63 = vmul.f32 1.442695, %v2936_v27 }
 0xaa6   : > { %3997 = vpow2.f32 %v2943_v18  ;;  %v2828_v55 = vmul.f32 0.3275911, %v2820_v21  ;;  %v2935_v61 = vmul.f32 %v2927_v26, %v2815_v43  ;;  %v4872_v2 = vmul.f32 %v4866_v47, %v2795_v23 }
 0xaa7   : > { %3999 = vrcp.f32 %v2833_v40  ;;  %v2938_v33 = vmul.f32 %v2930_v37, %v2818_v50  ;;  %v2929_v6 = vsub.f32 0.0, %v2817_v16  ;;  %v2932_v27 = vsub.f32 0.0, %v2820_v21 }
 0xaa8   : > { %v2836_v42 = vadd.f32 1.0, %v2828_v55  ;;  %4001 = vpow2.f32 %v2941_v46  ;;  %v2827_v45 = vmul.f32 0.3275911, %v4872_v2  ;;  %v2945_v7 = vmul.f32 1.442695, %v2935_v61 }
 0xaa9   : > { %v4858_v25 = vpop.eup %3987  ;;  %v2951_v1 = vmul.f32 1.442695, %v2938_v33  ;;  %v2937_v19 = vmul.f32 %v2929_v6, %v2817_v16  ;;  %v2940_v33 = vmul.f32 %v2932_v27, %v2820_v21 }
 0xaaa   : > { %v2854_v34 = vmul.f32 1.0614054, %v4858_v25  ;;  %4003 = vrcp.f32 %v2836_v42  ;;  %v2835_v57 = vadd.f32 1.0, %v2827_v45  ;;  %v2931_v45 = vsub.f32 0.0, %v4872_v2 }
 0xaab   : > { %v4868_v39 = vpop.eup %3989  ;;  %4005 = vpow2.f32 %v2947_v63  ;;  %v2949_v16 = vmul.f32 1.442695, %v2937_v19 }
 0xaac   : > { %v2862_v54 = vadd.f32 -1.4531521, %v2854_v34  ;;  %v2853_v60 = vmul.f32 1.0614054, %v4868_v39  ;;  %4007 = vrcp.f32 %v2835_v57 }
 0xaad   : > { %v4874_v30 = vpop.eup %3991  ;;  %4009 = vpow2.f32 %v2945_v7 }
 0xaae   : > { %v2870_v3 = vmul.f32 %v4858_v25, %v2862_v54  ;;  %v2861_v35 = vadd.f32 -1.4531521, %v2853_v60  ;;  %v2856_v44 = vmul.f32 1.0614054, %v4874_v30  ;;  %4011 = vpow2.f32 %v2951_v1 }
 0xaaf   : > { %v4879_v51 = vpop.eup %3993  ;;  %4013 = vpow2.f32 %v2949_v16 }
 0xab0   : > { %v2878_v4 = vadd.f32 1.4214138, %v2870_v3  ;;  %v2869_v43 = vmul.f32 %v4868_v39, %v2861_v35  ;;  %v2864_v56 = vadd.f32 -1.4531521, %v2856_v44  ;;  %v2855_v49 = vmul.f32 1.0614054, %v4879_v51 }
 0xab2   : > { %v4882_v58 = vpop.eup %3995  ;;  %v2886_v50 = vmul.f32 %v4858_v25, %v2878_v4  ;;  %v2877_v11 = vadd.f32 1.4214138, %v2869_v43  ;;  %v2872_v17 = vmul.f32 %v4874_v30, %v2864_v56  ;;  %v2863_v24 = vadd.f32 -1.4531521, %v2855_v49 }
 0xab3   : > { %v2858_v18 = vmul.f32 1.0614054, %v4882_v58  ;;  %v3998_v63 = vpop.eup %3997 }
 0xab4   : > { %v2894_v23 = vadd.f32 -0.28449672, %v2886_v50  ;;  %v2885_v26 = vmul.f32 %v4868_v39, %v2877_v11  ;;  %v2880_v34 = vadd.f32 1.4214138, %v2872_v17  ;;  %v2871_v46 = vmul.f32 %v4879_v51, %v2863_v24  ;;  %v4893_v6 = vpop.eup %3999 }
 0xab5   : > { %v2866_v37 = vadd.f32 -1.4531521, %v2858_v18  ;;  %v2857_v56 = vmul.f32 1.0614054, %v4893_v6  ;;  %v4002_v21 = vpop.eup %4001  ;;  %v2955_v17 = vmul.f32 1.442695, %v2940_v33  ;;  %v2939_v24 = vmul.f32 %v2931_v45, %v4872_v2 }
 0xab6   : > { %v2902_v40 = vmul.f32 %v4858_v25, %v2894_v23  ;;  %v2893_v54 = vadd.f32 -0.28449672, %v2885_v26  ;;  %v2888_v55 = vmul.f32 %v4874_v30, %v2880_v34  ;;  %v2879_v3 = vadd.f32 1.4214138, %v2871_v46 }
 0xab7   : > { %v2874_v60 = vmul.f32 %v4882_v58, %v2866_v37  ;;  %v2865_v11 = vadd.f32 -1.4531521, %v2857_v56  ;;  %v4902_v18 = vpop.eup %4003  ;;  %v2781_v46 = vmul.f32 0.5, %v4813_v36  ;;  %4015 = vpow2.f32 %v2955_v17 }
 0xab8   : > { %v2910_v61 = vadd.f32 0.2548296, %v2902_v40  ;;  %v2901_v42 = vmul.f32 %v4868_v39, %v2893_v54  ;;  %v2896_v35 = vadd.f32 -0.28449672, %v2888_v55  ;;  %v2887_v43 = vmul.f32 %v4879_v51, %v2879_v3  ;;  %v4006_v40 = vpop.eup %4005 }
 0xab9   : > { %v2882_v44 = vadd.f32 1.4214138, %v2874_v60  ;;  %v2873_v34 = vmul.f32 %v4893_v6, %v2865_v11  ;;  %v2860_v37 = vmul.f32 1.0614054, %v4902_v18  ;;  %v2953_v45 = vmul.f32 1.442695, %v2939_v24 }
 0xaba   : > { %v2918_v4 = vmul.f32 %v4858_v25, %v2910_v61  ;;  %v2909_v7 = vadd.f32 0.2548296, %v2901_v42  ;;  %v2904_v57 = vmul.f32 %v4874_v30, %v2896_v35  ;;  %v2895_v1 = vadd.f32 -0.28449672, %v2887_v43  ;;  %v4913_v61 = vpop.eup %4007 }
 0xabb   : > { %v2890_v50 = vmul.f32 %v4882_v58, %v2882_v44  ;;  %v2881_v2 = vadd.f32 1.4214138, %v2873_v34  ;;  %v4010_v35 = vpop.eup %4009  ;;  %4017 = vpow2.f32 %v2953_v45 }
 0xabc   : > { %v2958_v49 = vmul.f32 %v3998_v63, %v2918_v4  ;;  %v2917_v19 = vmul.f32 %v4868_v39, %v2909_v7  ;;  %v2912_v25 = vadd.f32 0.2548296, %v2904_v57  ;;  %v2903_v26 = vmul.f32 %v4879_v51, %v2895_v1  ;;  %v4012_v4 = vpop.eup %4011 }
 0xabd   : > { %v2898_v23 = vadd.f32 -0.28449672, %v2890_v50  ;;  %v2868_v63 = vadd.f32 -1.4531521, %v2860_v37  ;;  %v2889_v36 = vmul.f32 %v4893_v6, %v2881_v2  ;;  %v2859_v7 = vmul.f32 1.0614054, %v4913_v61 }
 0xabe   : > { %v2966_v27 = vsub.f32 1.0, %v2958_v49  ;;  %v2957_v54 = vmul.f32 %v4002_v21, %v2917_v19  ;;  %v2920_v55 = vmul.f32 %v4874_v30, %v2912_v25  ;;  %v2911_v16 = vadd.f32 0.2548296, %v2903_v26 }
 0xabf   : > { %v2906_v39 = vmul.f32 %v4882_v58, %v2898_v23  ;;  %v2876_v30 = vmul.f32 %v4902_v18, %v2868_v63  ;;  %v2897_v21 = vadd.f32 -0.28449672, %v2889_v36  ;;  %v2867_v17 = vadd.f32 -1.4531521, %v2859_v7 }
 0xac0   : > { %v2974_v60 = vmul.f32 %v2966_v27, %v4819_v28  ;;  %v2965_v3 = vsub.f32 1.0, %v2957_v54  ;;  %v2960_v33 = vmul.f32 %v4006_v40, %v2920_v55  ;;  %v2919_v44 = vmul.f32 %v4879_v51, %v2911_v16  ;;  %v4014_v27 = vpop.eup %4013 }
 0xac1   : > { %v2914_v42 = vadd.f32 0.2548296, %v2906_v39  ;;  %v2884_v49 = vadd.f32 1.4214138, %v2876_v30  ;;  %v2782_v19 = vmul.f32 0.5, %v4810_v31  ;;  %v2905_v23 = vmul.f32 %v4893_v6, %v2897_v21 }
 0xac2   : > { %v2973_v28 = vmul.f32 %v2965_v3, %v4824_v29  ;;  %v2968_v43 = vsub.f32 1.0, %v2960_v33  ;;  %v2982_v57 = vadd.f32 1.0, %v2974_v60  ;;  %v2959_v50 = vmul.f32 %v4010_v35, %v2919_v44 }
 0xac3   : > { %v2922_v56 = vmul.f32 %v4882_v58, %v2914_v42  ;;  %v2892_v29 = vmul.f32 %v4902_v18, %v2884_v49  ;;  %v2875_v58 = vmul.f32 %v4913_v61, %v2867_v17  ;;  %v2913_v37 = vadd.f32 0.2548296, %v2905_v23 }
 0xac4   : > { %v2981_v1 = vadd.f32 1.0, %v2973_v28  ;;  %v2976_v51 = vmul.f32 %v2968_v43, %v4830_v59  ;;  %v2967_v25 = vsub.f32 1.0, %v2959_v50  ;;  %v2990_v26 = vmul.f32 %v2982_v57, %v2782_v19  ;;  %v4016_v44 = vpop.eup %4015 }
 0xac5   : > { %v2962_v11 = vmul.f32 %v4012_v4, %v2922_v56  ;;  %v2900_v40 = vadd.f32 -0.28449672, %v2892_v29  ;;  %v2883_v55 = vadd.f32 1.4214138, %v2875_v58  ;;  %v2783_v31 = vmul.f32 0.5, %v4826_v53 }
 0xac6   : > { %v2989_v24 = vmul.f32 %v2981_v1, %v2781_v46  ;;  %v2975_v34 = vmul.f32 %v2967_v25, %v4838_v9  ;;  %v2984_v59 = vadd.f32 1.0, %v2976_v51  ;;  %v2921_v60 = vmul.f32 %v4893_v6, %v2913_v37 }
 0xac7   : > { %v2970_v54 = vsub.f32 1.0, %v2962_v11  ;;  %v2908_v46 = vmul.f32 %v4902_v18, %v2900_v40  ;;  %v2784_v16 = vmul.f32 0.5, %v4816_v41  ;;  %v2891_v9 = vmul.f32 %v4913_v61, %v2883_v55 }
 0xac8   : > { %3870 = vmatprep.mubr.msk.f32.mxu1 %vm3016_vm12, %v2989_v24  ;;  %v2983_v39 = vadd.f32 1.0, %v2975_v34  ;;  %v2961_v63 = vmul.f32 %v4014_v27, %v2921_v60  ;;  %v2785_v28 = vmul.f32 0.5, %v4845_v10  ;;  %v2786_v56 = vmul.f32 0.5, %v4833_v62 }
 0xac9   : > { %3871 = vmatmul.mubr.msk.f32.vlgmr.msra.gmra.mxu1 %vm3016_vm12, %v2990_v26  ;;  %v2916_v3 = vadd.f32 0.2548296, %v2908_v46  ;;  %v2992_v33 = vmul.f32 %v2984_v59, %v2784_v16  ;;  %v2978_v42 = vmul.f32 %v2970_v54, %v4842_v20  ;;  %v2899_v35 = vadd.f32 -0.28449672, %v2891_v9 }
 0xaca   : > { %v2991_v2 = vmul.f32 %v2983_v39, %v2783_v31  ;;  %v2969_v53 = vsub.f32 1.0, %v2961_v63  ;;  %v2787_v51 = vmul.f32 0.5, %v4850_v13 }
 0xacb   : > { %v2924_v36 = vmul.f32 %v4902_v18, %v2916_v3  ;;  %v2907_v6 = vmul.f32 %v4913_v61, %v2899_v35  ;;  %v2986_v45 = vadd.f32 1.0, %v2978_v42  ;;  %v4018_v18 = vpop.eup %4017 }
 0xacc   : > { %3873 = vmatprep.mubr.msk.f32.mxu1 %vm3016_vm12, %v2991_v2  ;;  %v2977_v41 = vmul.f32 %v2969_v53, %v4853_v14 }
 0xacd   : > { %3874 = vmatmul.mubr.msk.f32.gmra.mxu1 %vm3016_vm12, %v2992_v33  ;;  %v2964_v30 = vmul.f32 %v4016_v44, %v2924_v36  ;;  %v2915_v4 = vadd.f32 0.2548296, %v2907_v6  ;;  %v2994_v50 = vmul.f32 %v2986_v45, %v2786_v56 }
 0xace   : > { %v2985_v43 = vadd.f32 1.0, %v2977_v41 }
 0xacf   : > { %v2972_v20 = vsub.f32 1.0, %v2964_v30  ;;  %v2923_v7 = vmul.f32 %v4913_v61, %v2915_v4  ;;  %v2788_v61 = vmul.f32 0.5, %v4848_v5 }
 0xad0   : > { %v2993_v57 = vmul.f32 %v2985_v43, %v2785_v28 }
 0xad1   : > { %v2963_v21 = vmul.f32 %v4018_v18, %v2923_v7  ;;  %v2980_v49 = vmul.f32 %v2972_v20, %v4861_v32  ;;  %v3382_v32 = vld [vmem:[%s4995_s17] ss:$0 sm:$0xff] }
 0xad2   : > { %3876 = vmatprep.mubr.msk.f32.mxu1 %vm3016_vm12, %v2993_v57 }
 0xad3   : > { %v2971_v14 = vsub.f32 1.0, %v2963_v21  ;;  %3877 = vmatmul.mubr.msk.f32.gmra.mxu1 %vm3016_vm12, %v2994_v50  ;;  %v2988_v1 = vadd.f32 1.0, %v2980_v49 }
 0xad5   : > { %v2979_v10 = vmul.f32 %v2971_v14, %v4866_v47  ;;  %v2996_v17 = vmul.f32 %v2988_v1, %v2788_v61 }
 0xad7   : > { %v2987_v62 = vadd.f32 1.0, %v2979_v10 }
 0xad9   : > { %v2995_v11 = vmul.f32 %v2987_v62, %v2787_v51 }
 0xadb   : > { %3879 = vmatprep.mubr.msk.f32.mxu1 %vm3016_vm12, %v2995_v11 }
 0xadc   : > { %3880 = vmatmul.mubr.msk.f32.gmra.mxu1 %vm3016_vm12, %v2996_v17 }
 0xb89   : > { %v3872_v19 = vpop.f32.mrf.mxu1 }
 0xb8a   : > { %v3113_v25 = vadd.f32 %v3872_v19, %v3382_v32 }
 0xb8b   : > { %v3107_v13 = vpop.f32.mrf.mxu1 }
 0xb8c   : > { %v3147_v5 = vadd.f32 %v3113_v25, %v4653_v38  ;;  %v3108_v47 = vadd.f32 %v3382_v32, %v3107_v13 }
 0xb8d   : > { %v3875_v29 = vpop.f32.mrf.mxu1 }
 0xb8e   : > { %3155 = vst.msk [vmem:[%s575_s20 + $0x8] sm:$0xff] %vm586_vm0, %v3147_v5  ;;  %v3146_v23 = vadd.f32 %v3108_v47, %v4656_v48  ;;  %v3123_v24 = vadd.f32 %v3875_v29, %v3382_v32 }
 0xb8f   : > { %v3117_v58 = vpop.f32.mrf.mxu1 }
 0xb90   : > { %3154 = vst.msk [vmem:[%s575_s20] sm:$0xff] %vm586_vm0, %v3146_v23  ;;  %v3149_v27 = vadd.f32 %v3123_v24, %v4661_v0  ;;  %v3118_v26 = vadd.f32 %v3382_v32, %v3117_v58 }
 0xb92   : > { %3157 = vst.msk [vmem:[%s575_s20 + $0x18] sm:$0xff] %vm586_vm0, %v3149_v27  ;;  %v3148_v34 = vadd.f32 %v3118_v26, %v4666_v8 }
 0xb93   : > { %v3878_v38 = vpop.f32.mrf.mxu1 }
 0xb94   : > { %3156 = vst.msk [vmem:[%s575_s20 + $0x10] sm:$0xff] %vm586_vm0, %v3148_v34  ;;  %v3133_v37 = vadd.f32 %v3878_v38, %v3382_v32 }
 0xb95   : > { %v3127_v40 = vpop.f32.mrf.mxu1 }
 0xb96   : > { %v3151_v59 = vadd.f32 %v3133_v37, %v4671_v52  ;;  %v3128_v48 = vadd.f32 %v3382_v32, %v3127_v40 }
 0xb98   : > { %3159 = vst.msk [vmem:[%s575_s20 + $0x28] sm:$0xff] %vm586_vm0, %v3151_v59  ;;  %v3150_v54 = vadd.f32 %v3128_v48, %v4676_v12 }
 0xb9a   : > { %3158 = vst.msk [vmem:[%s575_s20 + $0x20] sm:$0xff] %vm586_vm0, %v3150_v54 }
 0xb9c   : > { %v3881_v0 = vpop.f32.mrf.mxu1 }
 0xb9d   : > { %v3143_v55 = vadd.f32 %v3881_v0, %v3382_v32 }
 0xb9e   : > { %v3137_v31 = vpop.f32.mrf.mxu1 }
 0xb9f   : > { %v3153_v39 = vadd.f32 %v3143_v55, %v4681_v15  ;;  %v3138_v8 = vadd.f32 %v3382_v32, %v3137_v31 }
 0xba1   : > { %3161 = vst.msk [vmem:[%s575_s20 + $0x38] sm:$0xff] %vm586_vm0, %v3153_v39  ;;  %v3152_v60 = vadd.f32 %v3138_v8, %v4686_v22 }
 0xba3   : > { %3160 = vst.msk [vmem:[%s575_s20 + $0x30] sm:$0xff] %vm586_vm0, %v3152_v60 }
 0xba4 PF: > { %s28_s27 = sadd.s32 1, %s4033_s27  }
 0xba5   : > { %p25_p4 = scmp.ge.s32.totalorder %s28_s27, 4  }
 0xba7   :  { %27 = sbr.rel (!%p25_p4) target bundleno = 4 (0x4), region = 130 }

// kernel: model_forward.10
= control target key start
LH: loop header
LB: loop body
LE: loop exit
PB: predicated region body
PF: predicated region fallthrough
CT: control target
= control target key end

     0   :  { %vm23_vm0 = vcmask 785408   ;;  %vm206_vm1 = vcmask 392192   ;;  %s422_s0 = inlined_call_operand.vmem [shape: f32[32,96], index: 0, kind: input, shape index: {}]   ;;  %s423_s3 = inlined_call_operand.vmem [shape: f32[96,48], index: 3, kind: input, shape index: {}]   ;;  %s424_s1 = inlined_call_operand.vmem [shape: f32[1,96], index: 1, kind: input, shape index: {}]   ;;  %s425_s2 = inlined_call_operand.vmem [shape: f32[1,96], index: 2, kind: input, shape index: {}]   ;;  %s426_s4 = inlined_call_operand.vmem [shape: f32[32,48], index: 4, kind: output, shape index: {}]  }
   0x1   :  { %v17_v0 = vld [vmem:[%s422_s0] sm:$0xff]  ;;  %v18_v1 = vld [vmem:[%s422_s0 + $0x8] sm:$0xff]  ;;  %v19_v2 = vld [vmem:[%s422_s0 + $0x10] sm:$0xff] }
   0x2   :  { %v24_v3 = vsel %vm23_vm0, %v17_v0, 0.0  ;;  %v27_v4 = vsel %vm23_vm0, %v18_v1, 0.0  ;;  %v20_v5 = vld [vmem:[%s422_s0 + $0x18] sm:$0xff]  ;;  %v30_v6 = vsel %vm23_vm0, %v19_v2, 0.0  ;;  %v107_v29 = vld [vmem:[%s423_s3 + $0x50] sm:$0xff]  ;;  %v106_v30 = vld [vmem:[%s423_s3 + $0x48] sm:$0xff] }
   0x3   :  { %25 = vadd.xlane.f32.xlu0 %v24_v3  ;;  %28 = vadd.xlane.f32.xlu1 %v27_v4  ;;  %v33_v7 = vsel %vm23_vm0, %v20_v5, 0.0  ;;  %v108_v28 = vld [vmem:[%s423_s3 + $0x58] sm:$0xff]  ;;  %v105_v31 = vld [vmem:[%s423_s3 + $0x40] sm:$0xff]  ;;  %v103_v33 = vld [vmem:[%s423_s3 + $0x30] sm:$0xff] }
   0x4   :  { %237 = vmatprep.subr.mxu0 %v108_v28  ;;  %267 = vmatprep.subr.mxu1 %v108_v28  ;;  %v104_v32 = vld [vmem:[%s423_s3 + $0x38] sm:$0xff]  ;;  %v102_v34 = vld [vmem:[%s423_s3 + $0x28] sm:$0xff]  ;;  %v101_v35 = vld [vmem:[%s423_s3 + $0x20] sm:$0xff] }
   0x5   :  { %238 = vmatpush3.msra.mxu0 %v108_v28  ;;  %279 = vmatpush3.msra.mxu1 %v108_v28  ;;  %v100_v36 = vld [vmem:[%s423_s3 + $0x18] sm:$0xff]  ;;  %v99_v37 = vld [vmem:[%s423_s3 + $0x10] sm:$0xff]  ;;  %v98_v38 = vld [vmem:[%s423_s3 + $0x8] sm:$0xff] }
   0x6   :  { %239 = vmatprep.subr.mxu0 %v107_v29  ;;  %268 = vmatprep.subr.mxu1 %v107_v29  ;;  %v97_v39 = vld [vmem:[%s423_s3] sm:$0xff] }
   0x7   :  { %31 = vadd.xlane.f32.xlu0 %v30_v6  ;;  %34 = vadd.xlane.f32.xlu1 %v33_v7  ;;  %v215_v53 = vld [vmem:[%s424_s1] ss:$0 sm:$0xff] }
   0x8   :  { %240 = vmatpush3.msra.mxu0 %v107_v29  ;;  %280 = vmatpush3.msra.mxu1 %v107_v29  ;;  %v216_v55 = vld [vmem:[%s425_s2] ss:$0 sm:$0xff] }
   0x9   :  { %241 = vmatprep.subr.mxu0 %v106_v30  ;;  %269 = vmatprep.subr.mxu1 %v106_v30 }
   0xa   :  { %242 = vmatpush3.msra.mxu0 %v106_v30  ;;  %281 = vmatpush3.msra.mxu1 %v106_v30 }
   0xb   :  { %243 = vmatprep.subr.mxu0 %v105_v31  ;;  %270 = vmatprep.subr.mxu1 %v105_v31 }
   0xc   :  { %244 = vmatpush3.msra.mxu0 %v105_v31  ;;  %282 = vmatpush3.msra.mxu1 %v105_v31 }
   0xd   :  { %245 = vmatprep.subr.mxu0 %v104_v32  ;;  %271 = vmatprep.subr.mxu1 %v104_v32 }
   0xe   :  { %246 = vmatpush3.msra.mxu0 %v104_v32  ;;  %283 = vmatpush3.msra.mxu1 %v104_v32 }
   0xf   :  { %247 = vmatprep.subr.mxu0 %v103_v33  ;;  %272 = vmatprep.subr.mxu1 %v103_v33 }
  0x10   :  { %248 = vmatpush3.msra.mxu0 %v103_v33  ;;  %284 = vmatpush3.msra.mxu1 %v103_v33 }
  0x11   :  { %249 = vmatprep.subr.mxu0 %v102_v34  ;;  %273 = vmatprep.subr.mxu1 %v102_v34 }
  0x12   :  { %250 = vmatpush3.msra.mxu0 %v102_v34  ;;  %285 = vmatpush3.msra.mxu1 %v102_v34 }
  0x13   :  { %251 = vmatprep.subr.mxu0 %v101_v35  ;;  %274 = vmatprep.subr.mxu1 %v101_v35 }
  0x14   :  { %252 = vmatpush3.msra.mxu0 %v101_v35  ;;  %286 = vmatpush3.msra.mxu1 %v101_v35 }
  0x15   :  { %253 = vmatprep.subr.mxu0 %v100_v36  ;;  %275 = vmatprep.subr.mxu1 %v100_v36 }
  0x16   :  { %254 = vmatpush3.msra.mxu0 %v100_v36  ;;  %287 = vmatpush3.msra.mxu1 %v100_v36 }
  0x17   :  { %255 = vmatprep.subr.mxu0 %v99_v37  ;;  %276 = vmatprep.subr.mxu1 %v99_v37 }
  0x18   :  { %256 = vmatpush3.msra.mxu0 %v99_v37  ;;  %288 = vmatpush3.msra.mxu1 %v99_v37 }
  0x19   :  { %257 = vmatprep.subr.mxu0 %v98_v38  ;;  %277 = vmatprep.subr.mxu1 %v98_v38 }
  0x1a   :  { %258 = vmatpush3.msra.mxu0 %v98_v38  ;;  %289 = vmatpush3.msra.mxu1 %v98_v38 }
  0x1b   :  { %259 = vmatprep.subr.mxu0 %v97_v39  ;;  %278 = vmatprep.subr.mxu1 %v97_v39 }
  0x1c   :  { %260 = vmatpush3.msra.mxu0 %v97_v39  ;;  %290 = vmatpush3.msra.mxu1 %v97_v39 }
  0x8c   :  { %v26_v8 = vpop.xlane.xlu0 %25  ;;  %v29_v9 = vpop.xlane.xlu1 %28 }
  0x8d   :  { %v37_v10 = vmul.f32 0.010416667, %v26_v8  ;;  %v38_v11 = vmul.f32 0.010416667, %v29_v9 }
  0x8f   :  { %v340_v12 = vsub.f32 %v17_v0, %v37_v10  ;;  %v342_v13 = vsub.f32 %v18_v1, %v38_v11 }
  0x90   :  { %v32_v14 = vpop.xlane.xlu0 %31  ;;  %v35_v15 = vpop.xlane.xlu1 %34 }
  0x91   :  { %v39_v16 = vmul.f32 0.010416667, %v32_v14  ;;  %v40_v17 = vmul.f32 0.010416667, %v35_v15  ;;  %v45_v18 = vmul.f32 %v340_v12, %v340_v12  ;;  %v46_v19 = vmul.f32 %v342_v13, %v342_v13 }
  0x93   :  { %v348_v20 = vsub.f32 %v19_v2, %v39_v16  ;;  %v350_v21 = vsub.f32 %v20_v5, %v40_v17  ;;  %v49_v22 = vsel %vm23_vm0, %v45_v18, 0.0  ;;  %v52_v23 = vsel %vm23_vm0, %v46_v19, 0.0 }
  0x94   :  { %50 = vadd.xlane.f32.xlu0 %v49_v22 }
  0x95   :  { %v47_v24 = vmul.f32 %v348_v20, %v348_v20  ;;  %v48_v25 = vmul.f32 %v350_v21, %v350_v21 }
  0x97   :  { %v55_v26 = vsel %vm23_vm0, %v47_v24, 0.0  ;;  %v58_v27 = vsel %vm23_vm0, %v48_v25, 0.0 }
  0x98   :  { %53 = vadd.xlane.f32.xlu0 %v52_v23  ;;  %56 = vadd.xlane.f32.xlu1 %v55_v26 }
  0x9c   :  { %59 = vadd.xlane.f32.xlu1 %v58_v27 }
 0x11d   :  { %v51_v40 = vpop.xlane.xlu0 %50 }
 0x11e   :  { %v61_v41 = vmul.f32 0.010416667, %v51_v40 }
 0x120   :  { %v65_v42 = vadd.f32 1e-05, %v61_v41 }
 0x121   :  { %v57_v43 = vpop.xlane.xlu1 %56  ;;  %v54_v44 = vpop.xlane.xlu0 %53 }
 0x122   :  { %291 = vrsqrt.f32 %v65_v42  ;;  %v63_v45 = vmul.f32 0.010416667, %v57_v43  ;;  %v62_v46 = vmul.f32 0.010416667, %v54_v44 }
 0x124   :  { %v67_v47 = vadd.f32 1e-05, %v63_v45  ;;  %v66_v48 = vadd.f32 1e-05, %v62_v46 }
 0x125   :  { %v60_v49 = vpop.xlane.xlu1 %59 }
 0x126   :  { %293 = vrsqrt.f32 %v67_v47  ;;  %v64_v50 = vmul.f32 0.010416667, %v60_v49 }
 0x127   :  { %295 = vrsqrt.f32 %v66_v48 }
 0x128   :  { %v68_v51 = vadd.f32 1e-05, %v64_v50 }
 0x12a   :  { %297 = vrsqrt.f32 %v68_v51 }
 0x12f   :  { %v292_v52 = vpop.eup %291 }
 0x130   :  { %v73_v54 = vmul.f32 %v292_v52, %v340_v12 }
 0x132   :  { %v83_v56 = vmul.f32 %v215_v53, %v73_v54 }
 0x133   :  { %v294_v57 = vpop.eup %293 }
 0x134   :  { %v296_v58 = vpop.eup %295  ;;  %v93_v59 = vadd.f32 %v216_v55, %v83_v56  ;;  %v75_v60 = vmul.f32 %v294_v57, %v348_v20 }
 0x135   :  { %v74_v61 = vmul.f32 %v296_v58, %v342_v13 }
 0x136   :  { %261 = vmatprep.mubr.msk.f32.mxu0 %vm23_vm0, %v93_v59  ;;  %v85_v62 = vmul.f32 %v215_v53, %v75_v60 }
 0x137   :  { %v298_v63 = vpop.eup %297  ;;  %v84_v0 = vmul.f32 %v215_v53, %v74_v61 }
 0x138   :  { %v95_v1 = vadd.f32 %v216_v55, %v85_v62  ;;  %v76_v2 = vmul.f32 %v298_v63, %v350_v21 }
 0x139   :  { %v94_v3 = vadd.f32 %v216_v55, %v84_v0 }
 0x13a   :  { %264 = vmatprep.mubr.msk.f32.mxu1 %vm23_vm0, %v95_v1  ;;  %v86_v4 = vmul.f32 %v215_v53, %v76_v2 }
 0x13b   :  { %262 = vmatmul.mubr.msk.f32.vlgmr.msra.gmra.mxu0 %vm23_vm0, %v94_v3 }
 0x13c   :  { %v96_v5 = vadd.f32 %v216_v55, %v86_v4 }
 0x13e   :  { %265 = vmatmul.mubr.msk.f32.vlgmr.msra.gmra.mxu1 %vm23_vm0, %v96_v5 }
 0x1fb   :  { %v263_v6 = vpop.f32.mrf.mxu0 }
 0x1fc   :  { %208 = vst.msk [vmem:[%s426_s4 + $0x8] sm:$0xff] %vm206_vm1, %v263_v6 }
 0x1fd   :  { %v187_v7 = vpop.f32.mrf.mxu0 }
 0x1fe   :  { %207 = vst.msk [vmem:[%s426_s4] sm:$0xff] %vm206_vm1, %v187_v7  ;;  %v266_v8 = vpop.f32.mrf.mxu1 }
 0x1ff   :  { %210 = vst.msk [vmem:[%s426_s4 + $0x18] sm:$0xff] %vm206_vm1, %v266_v8 }
 0x200   :  { %v197_v9 = vpop.f32.mrf.mxu1 }
 0x201   :  { %209 = vst.msk [vmem:[%s426_s4 + $0x10] sm:$0xff] %vm206_vm1, %v197_v9 }

// kernel: model_forward.13
= control target key start
LH: loop header
LB: loop body
LE: loop exit
PB: predicated region body
PF: predicated region fallthrough
CT: control target
= control target key end

     0   :  { %s1584_s26 = smov 0   ;;  %s1789_s0 = inlined_call_operand.vmem [shape: f32[2,16,48], index: 0, kind: input, shape index: {}]   ;;  %s1790_s1 = inlined_call_operand.vmem [shape: f32[2,1,10], index: 1, kind: input, shape index: {}]   ;;  %s1791_s2 = inlined_call_operand.vmem [shape: f32[1,48], index: 2, kind: input, shape index: {}]   ;;  %s1792_s3 = inlined_call_operand.vmem [shape: f32[1,48], index: 3, kind: input, shape index: {}]   ;;  %s1793_s4 = inlined_call_operand.vmem [shape: f32[48,10], index: 4, kind: input, shape index: {}]   ;;  %s1794_s5 = inlined_call_operand.vmem [shape: f32[1,10], index: 5, kind: input, shape index: {}]   ;;  %s1795_s6 = inlined_call_operand.vmem [shape: f32[10,40], index: 6, kind: input, shape index: {}]   ;;  %s1796_s7 = inlined_call_operand.vmem [shape: f32[1,40], index: 7, kind: input, shape index: {}]   ;;  %s1797_s8 = inlined_call_operand.vmem [shape: f32[40,10], index: 8, kind: input, shape index: {}]   ;;  %s1798_s9 = inlined_call_operand.vmem [shape: f32[1,10], index: 9, kind: input, shape index: {}]   ;;  %s1799_s10 = inlined_call_operand.vmem [shape: f32[10,80], index: 10, kind: input, shape index: {}]   ;;  %s1800_s11 = inlined_call_operand.vmem [shape: f32[10,80], index: 11, kind: input, shape index: {}]   ;;  %s1801_s12 = inlined_call_operand.vmem [shape: f32[1,80], index: 12, kind: input, shape index: {}]   ;;  %s1802_s13 = inlined_call_operand.vmem [shape: f32[80,20], index: 13, kind: input, shape index: {}]   ;;  %s1803_s14 = inlined_call_operand.vmem [shape: f32[1,20], index: 14, kind: input, shape index: {}]   ;;  %s1804_s15 = inlined_call_operand.vmem [shape: f32[20,1], index: 15, kind: input, shape index: {}]   ;;  %s1805_s16 = inlined_call_operand.<no memory space> [shape: f32[1,1], index: 16, kind: input, shape index: {}]   ;;  %s1806_s17 = inlined_call_operand.vmem [shape: f32[2,1,1], index: 17, kind: output, shape index: {}]  }
   0x1   :  { %1807 = sst [smem:[#allocation3_spill]] %s1789_s0  ;;  %v22_v0 = vstv %s1805_s16 }
   0x2   :  { %1808 = sst [smem:[#allocation4_spill]] %s1790_s1  ;;  %23 = vst [vmem:[#allocation2] sm:$0x1] %v22_v0 }
   0x3 LB: > { %s1307_s27 = sadd.s32 4294967295, %s1486_s26   ;;  %p1311_p0 = scmp.ge.s32.totalorder %s1486_s26, 1  ;;  %s1486_s26 = sphi %s1584_s26, %s29_s26  }
   0x4   : > { %p497_p1 = scmp.lt.s32.totalorder %s1486_s26, 3 }
   0x6   : > { %p498_p2 = pnand %p1311_p0, %p497_p1 }
   0x7   : > { %p550_p3 = scmp.lt.s32.totalorder (!%p498_p2), %s1307_s27, 1  ;;  %s1809_s1 = sld [smem:[#allocation3_spill]] (!%p498_p2) }
   0x8   : > { %501 = sbr.rel (%p498_p2) target bundleno = 1228 (0x4cc), region = 88  ;;  %s1810_s23 = sld [smem:[#allocation4_spill]] (!%p498_p2) }
   0xd   : > { %v703_v1 = vld [vmem:[%s1795_s6 + $0x8] sm:$0x3]  ;;  %vm709_vm0 = vcmask 1041408   ;;  %v1488_v2 = vmov 0.0   ;;  %v702_v3 = vld [vmem:[%s1795_s6] sm:$0xff]  ;;  %s1812_s27 = smov (!%p550_p3, %s1307_s27), 1 }
   0xe   : > { %1383 = vmatprep.subr.mxu1 %v1488_v2  ;;  %1368 = vmatprep.subr.mxu0 %v1488_v2  ;;  %vm1489_vm1 = vmmov 0   ;;  %s1330_s30 = sshll.u32 %s1812_s27, 4  ;;  %vm565_vm2 = vcmask 392192   ;;  %vm705_vm3 = vcmask 80896   ;;  %s557_s24 = scalar_lea.vmem %s1810_s23, %s1812_s27  ;;  %v814_v9 = vld [vmem:[%s1797_s8 + $0x20] sm:$0xff]  ;;  %v813_v10 = vld [vmem:[%s1797_s8 + $0x18] sm:$0xff] }
   0xf   : > { %1384 = vmatpush3.msk.msra.mxu1 %vm709_vm0, %v703_v1  ;;  %1387 = vmatprep.mubr.msk.f32.mxu1 %vm1489_vm1, %v1488_v2  ;;  %s554_s20 = scalar_lea.vmem %s1809_s1, %s1330_s30  ;;  %v701_v6 = vld [vmem:[%s557_s24] sm:$0x1]  ;;  %v812_v11 = vld [vmem:[%s1797_s8 + $0x10] sm:$0xff]  ;;  %v811_v12 = vld [vmem:[%s1797_s8 + $0x8] sm:$0xff]  ;;  %v1490_v35 = vmov -1.0   ;;  %vm816_vm5 = vcmask 326656   ;;  %s560_s29 = scalar_lea.vmem %s1806_s17, %s1812_s27 }
  0x10   : > { %1385 = vmatprep.subr.mxu1 %v1488_v2  ;;  %1380 = vmatprep.mubr.msk.f32.mxu0 %vm1489_vm1, %v1488_v2  ;;  %v561_v4 = vld [vmem:[%s554_s20] sm:$0xff]  ;;  %v562_v5 = vld [vmem:[%s554_s20 + $0x8] sm:$0xff]  ;;  %v623_v26 = vld [vmem:[%s1793_s4 + $0x18] sm:$0xff]  ;;  %vm1169_vm6 = vcmask 1043456   ;;  %vm1087_vm8 = vcmask 654336   ;;  %vm1165_vm9 = vcmask 162816  }
  0x11   : > { %1386 = vmatpush3.msra.mxu1 %v702_v3  ;;  %v566_v7 = vsel %vm565_vm2, %v561_v4, 0.0  ;;  %v569_v8 = vsel %vm565_vm2, %v562_v5, 0.0  ;;  %v810_v13 = vld [vmem:[%s1797_s8] sm:$0xff]  ;;  %v625_v24 = vld [vmem:[%s1793_s4 + $0x28] sm:$0xff]  ;;  %v622_v27 = vld [vmem:[%s1793_s4 + $0x10] sm:$0xff]  ;;  %vm1249_vm10 = vcmask 0  }
  0x12   : > { %1390 = vmatprep.subr.mxu1 %v1488_v2  ;;  %1388 = vmatmul.mubr.msk.f32.vlgmr.msra.gmra.mxu1 %vm705_vm3, %v701_v6  ;;  %v624_v25 = vld [vmem:[%s1793_s4 + $0x20] sm:$0xff]  ;;  %v621_v28 = vld [vmem:[%s1793_s4 + $0x8] sm:$0xff] }
  0x13   : > { %567 = vadd.xlane.f32.xlu0 %v566_v7  ;;  %1400 = vmatprep.mubr.msk.f32.mxu1 %vm1489_vm1, %v1488_v2  ;;  %v620_v29 = vld [vmem:[%s1793_s4] sm:$0xff] }
  0x14   : > { %1391 = vmatpush3.msra.mxu1 %v814_v9  ;;  %1369 = vmatpush3.msra.mxu0 %v625_v24  ;;  %v704_v30 = vld [vmem:[%s1796_s7] sm:$0x1] }
  0x15   : > { %1392 = vmatprep.subr.mxu1 %v1488_v2  ;;  %1370 = vmatprep.subr.mxu0 %v1488_v2 }
  0x16   : > { %1393 = vmatpush3.msra.mxu1 %v813_v10  ;;  %1371 = vmatpush3.msra.mxu0 %v624_v25  ;;  %v815_v25 = vld [vmem:[%s1798_s9] sm:$0x1] }
  0x17   : > { %570 = vadd.xlane.f32.xlu0 %v569_v8  ;;  %1394 = vmatprep.subr.mxu1 %v1488_v2  ;;  %v1315_v8 = vld [vmem:[%s1792_s3] ss:$0 sm:$0xff] }
  0x18   : > { %1395 = vmatpush3.msra.mxu1 %v812_v11  ;;  %1372 = vmatprep.subr.mxu0 %v1488_v2 }
  0x19   : > { %1396 = vmatprep.subr.mxu1 %v1488_v2  ;;  %1373 = vmatpush3.msra.mxu0 %v623_v26 }
  0x1a   : > { %1397 = vmatpush3.msra.mxu1 %v811_v12  ;;  %1374 = vmatprep.subr.mxu0 %v1488_v2 }
  0x1b   : > { %1398 = vmatprep.subr.mxu1 %v1488_v2  ;;  %1375 = vmatpush3.msra.mxu0 %v622_v27 }
  0x1c   : > { %1399 = vmatpush3.msra.mxu1 %v810_v13  ;;  %1376 = vmatprep.subr.mxu0 %v1488_v2 }
  0x1d   : > { %1403 = vmatprep.subr.mxu1 %v1488_v2  ;;  %1377 = vmatpush3.msra.mxu0 %v621_v28 }
  0x1e   : > { %1378 = vmatprep.subr.mxu0 %v1488_v2 }
  0x1f   : > { %1379 = vmatpush3.msra.mxu0 %v620_v29  ;;  %v892_v29 = vld [vmem:[%s1799_s10 + $0x8] sm:$0x3] }
  0x20   : > { %1417 = vmatprep.subr.mxu0 %v1488_v2 }
  0x9c   : > { %v568_v14 = vpop.xlane.xlu0 %567 }
  0x9d   : > { %v573_v15 = vmul.f32 0.020833334, %v568_v14 }
  0x9f   : > { %v1642_v16 = vsub.f32 %v561_v4, %v573_v15  ;;  %v1314_v4 = vld [vmem:[%s1791_s2] ss:$0 sm:$0xff] }
  0xa0   : > { %v571_v17 = vpop.xlane.xlu0 %570 }
  0xa1   : > { %v574_v18 = vmul.f32 0.020833334, %v571_v17  ;;  %v577_v19 = vmul.f32 %v1642_v16, %v1642_v16  ;;  %v893_v17 = vld [vmem:[%s1800_s11] sm:$0xff] }
  0xa3   : > { %v1646_v20 = vsub.f32 %v562_v5, %v574_v18  ;;  %v579_v21 = vsel %vm565_vm2, %v577_v19, 0.0 }
  0xa4   : > { %580 = vadd.xlane.f32.xlu1 %v579_v21 }
  0xa5   : > { %v578_v22 = vmul.f32 %v1646_v20, %v1646_v20 }
  0xa7   : > { %v582_v23 = vsel %vm565_vm2, %v578_v22, 0.0 }
  0xa8   : > { %583 = vadd.xlane.f32.xlu1 %v582_v23 }
  0xd2   : > { %v779_v31 = vpop.f32.mrf.mxu1 }
  0xd3   : > { %v780_v32 = vadd.f32 %v779_v31, %v704_v30  ;;  %v891_v31 = vld [vmem:[%s1799_s10] sm:$0xff] }
  0xd4   : > { %v1389_v33 = vpop.f32.mrf.mxu1 }
  0xd5   : > { %v784_v34 = vmul.f32 0.70710677, %v780_v32  ;;  %v783_v56 = vmul.f32 0.5, %v780_v32  ;;  %v626_v32 = vld [vmem:[%s1794_s5] sm:$0x1] }
  0xd7   : > { %vm785_vm4 = vcmp.ge.f32.partialorder %v784_v34, 0.0 }
  0xd8   : > { %v786_v36 = vsel %vm785_vm4, 1.0, %v1490_v35 }
  0xd9   : > { %v787_v37 = vmul.f32 %v786_v36, %v784_v34 }
  0xdb   : > { %v788_v38 = vmul.f32 0.3275911, %v787_v37  ;;  %v801_v40 = vsub.f32 0.0, %v787_v37 }
  0xdd   : > { %v789_v39 = vadd.f32 1.0, %v788_v38  ;;  %v802_v41 = vmul.f32 %v801_v40, %v787_v37  ;;  %v1085_v38 = vld [vmem:[%s1802_s13 + $0x48] sm:$0xff]  ;;  %v1083_v40 = vld [vmem:[%s1802_s13 + $0x38] sm:$0xff] }
  0xdf   : > { %1460 = vrcp.f32 %v789_v39  ;;  %v803_v42 = vmul.f32 1.442695, %v802_v41  ;;  %v1084_v39 = vld [vmem:[%s1802_s13 + $0x40] sm:$0xff]  ;;  %v1082_v41 = vld [vmem:[%s1802_s13 + $0x30] sm:$0xff] }
  0xe1   : > { %1462 = vpow2.f32 %v803_v42  ;;  %v1081_v42 = vld [vmem:[%s1802_s13 + $0x28] sm:$0xff] }
  0xec   : > { %v1461_v43 = vpop.eup %1460 }
  0xed   : > { %v792_v44 = vmul.f32 1.0614054, %v1461_v43 }
  0xee   : > { %v1463_v52 = vpop.eup %1462 }
  0xef   : > { %v793_v45 = vadd.f32 -1.4531521, %v792_v44  ;;  %v1080_v44 = vld [vmem:[%s1802_s13 + $0x20] sm:$0xff] }
  0xf1   : > { %v794_v46 = vmul.f32 %v1461_v43, %v793_v45 }
  0xf3   : > { %v795_v47 = vadd.f32 1.4214138, %v794_v46  ;;  %v1079_v46 = vld [vmem:[%s1802_s13 + $0x18] sm:$0xff] }
  0xf5   : > { %v796_v48 = vmul.f32 %v1461_v43, %v795_v47  ;;  %v1078_v47 = vld [vmem:[%s1802_s13 + $0x10] sm:$0xff] }
  0xf7   : > { %v797_v49 = vadd.f32 -0.28449672, %v796_v48  ;;  %v1077_v48 = vld [vmem:[%s1802_s13 + $0x8] sm:$0xff] }
  0xf9   : > { %v798_v50 = vmul.f32 %v1461_v43, %v797_v49  ;;  %v1076_v49 = vld [vmem:[%s1802_s13] sm:$0xff] }
  0xfb   : > { %v799_v51 = vadd.f32 0.2548296, %v798_v50  ;;  %v1163_v50 = vld [vmem:[%s1804_s15 + $0x10] sm:$0xf] }
  0xfd   : > { %v800_v53 = vmul.f32 %v1461_v43, %v799_v51 }
  0xff   : > { %v805_v54 = vmul.f32 %v1463_v52, %v800_v53  ;;  %v1047_v52 = vld [vmem:[%s1801_s12] sm:$0x1] }
 0x101   : > { %v806_v55 = vsub.f32 1.0, %v805_v54 }
 0x103   : > { %v807_v57 = vmul.f32 %v806_v55, %v786_v36 }
 0x105   : > { %v808_v58 = vadd.f32 1.0, %v807_v57 }
 0x107   : > { %v809_v59 = vmul.f32 %v808_v58, %v783_v56 }
 0x109   : > { %1401 = vmatmul.mubr.msk.f32.vlgmr.msra.gmra.mxu1 %vm816_vm5, %v809_v59 }
 0x10a   : > { %1407 = vmatprep.mubr.msk.f32.mxu1 %vm1489_vm1, %v1488_v2 }
 0x12d   : > { %v581_v60 = vpop.xlane.xlu1 %580 }
 0x12e   : > { %v585_v61 = vmul.f32 0.020833334, %v581_v60 }
 0x130   : > { %v587_v62 = vadd.f32 1e-05, %v585_v61 }
 0x131   : > { %v584_v63 = vpop.xlane.xlu1 %583 }
 0x132   : > { %1464 = vrsqrt.f32 %v587_v62  ;;  %v586_v0 = vmul.f32 0.020833334, %v584_v63 }
 0x134   : > { %v588_v1 = vadd.f32 1e-05, %v586_v0 }
 0x136   : > { %1466 = vrsqrt.f32 %v588_v1 }
 0x13f   : > { %v1465_v3 = vpop.eup %1464 }
 0x140   : > { %v591_v5 = vmul.f32 %v1465_v3, %v1642_v16  ;;  %v894_v16 = vld [vmem:[%s1800_s11 + $0x8] sm:$0x3] }
 0x141   : > { %1404 = vmatpush3.msk.msra.mxu1 %vm709_vm0, %v894_v16 }
 0x142   : > { %v599_v6 = vmul.f32 %v1314_v4, %v591_v5  ;;  %1405 = vmatprep.subr.mxu1 %v1488_v2 }
 0x143   : > { %v1467_v7 = vpop.eup %1466  ;;  %1406 = vmatpush3.msra.mxu1 %v893_v17  ;;  %v1162_v17 = vld [vmem:[%s1804_s15 + $0x8] sm:$0xff] }
 0x144   : > { %v592_v9 = vmul.f32 %v1467_v7, %v1646_v20  ;;  %v607_v11 = vadd.f32 %v1315_v8, %v599_v6  ;;  %1410 = vmatprep.subr.mxu1 %v1488_v2 }
 0x146   : > { %v600_v10 = vmul.f32 %v1314_v4, %v592_v9  ;;  %v609_v13 = vsel %vm565_vm2, %v607_v11, 0.0 }
 0x148   : > { %v608_v12 = vadd.f32 %v1315_v8, %v600_v10 }
 0x14a   : > { %v610_v14 = vsel %vm565_vm2, %v608_v12, 0.0 }
 0x14b   : > { %v611_v15 = vadd.f32 %v610_v14, %v609_v13 }
 0x14d   : > { %v612_v18 = vrot.slane %v611_v15, 4 }
 0x14f   : > { %v613_v19 = vadd.f32 %v612_v18, %v611_v15  ;;  %v1161_v18 = vld [vmem:[%s1804_s15] sm:$0xff] }
 0x151   : > { %v614_v20 = vrot.slane %v613_v19, 2 }
 0x153   : > { %v615_v21 = vadd.f32 %v614_v20, %v613_v19  ;;  %v1086_v19 = vld [vmem:[%s1803_s14] sm:$0x1] }
 0x155   : > { %v616_v22 = vrot.slane %v615_v21, 1 }
 0x157   : > { %v617_v23 = vadd.f32 %v616_v22, %v615_v21 }
 0x159   : > { %v619_v24 = vmul.f32 0.0625, %v617_v23  ;;  %v1164_v23 = vld [vmem:[#allocation2] sm:$0x1] }
 0x15b   : > { %1381 = vmatmul.mubr.msk.f32.vlgmr.msra.gmra.mxu0 %vm565_vm2, %v619_v24 }
 0x15c   : > { %1437 = vmatprep.mubr.msk.f32.mxu0 %vm1489_vm1, %v1488_v2  ;;  %1418 = vmatpush3.msra.mxu0 %v1085_v38 }
 0x15d   : > { %1419 = vmatprep.subr.mxu0 %v1488_v2 }
 0x15e   : > { %1420 = vmatpush3.msra.mxu0 %v1084_v39 }
 0x15f   : > { %1421 = vmatprep.subr.mxu0 %v1488_v2 }
 0x160   : > { %1422 = vmatpush3.msra.mxu0 %v1083_v40 }
 0x161   : > { %1423 = vmatprep.subr.mxu0 %v1488_v2 }
 0x162   : > { %1424 = vmatpush3.msra.mxu0 %v1082_v41 }
 0x163   : > { %1425 = vmatprep.subr.mxu0 %v1488_v2 }
 0x164   : > { %1426 = vmatpush3.msra.mxu0 %v1081_v42 }
 0x165   : > { %1427 = vmatprep.subr.mxu0 %v1488_v2 }
 0x166   : > { %1428 = vmatpush3.msra.mxu0 %v1080_v44 }
 0x167   : > { %1429 = vmatprep.subr.mxu0 %v1488_v2 }
 0x168   : > { %1430 = vmatpush3.msra.mxu0 %v1079_v46 }
 0x169   : > { %1431 = vmatprep.subr.mxu0 %v1488_v2 }
 0x16a   : > { %1432 = vmatpush3.msra.mxu0 %v1078_v47 }
 0x16b   : > { %1433 = vmatprep.subr.mxu0 %v1488_v2 }
 0x16c   : > { %1434 = vmatpush3.msra.mxu0 %v1077_v48 }
 0x16d   : > { %1435 = vmatprep.subr.mxu0 %v1488_v2 }
 0x16e   : > { %1436 = vmatpush3.msra.mxu0 %v1076_v49 }
 0x1c9   : > { %v886_v26 = vpop.f32.mrf.mxu1 }
 0x1ca   : > { %v887_v27 = vadd.f32 %v886_v26, %v815_v25 }
 0x1cb   : > { %v1402_v28 = vpop.f32.mrf.mxu1 }
 0x1cc   : > { %1468 = vtanh.f32 %v887_v27 }
 0x1d9   : > { %v1469_v30 = vpop.eup %1468 }
 0x1da   : > { %1408 = vmatmul.mubr.msk.f32.vlgmr.msra.gmra.mxu1 %vm705_vm3, %v1469_v30 }
 0x1db   : > { %1411 = vmatpush3.msk.msra.mxu1 %vm709_vm0, %v892_v29  ;;  %1414 = vmatprep.mubr.msk.f32.mxu1 %vm1489_vm1, %v1488_v2 }
 0x1dc   : > { %1412 = vmatprep.subr.mxu1 %v1488_v2 }
 0x1dd   : > { %1413 = vmatpush3.msra.mxu1 %v891_v31 }
 0x1de   : > { %1440 = vmatprep.subr.mxu1 %v1488_v2 }
 0x21b   : > { %v696_v33 = vpop.f32.mrf.mxu0 }
 0x21c   : > { %v697_v34 = vadd.f32 %v696_v33, %v626_v32 }
 0x21d   : > { %v1382_v36 = vpop.f32.mrf.mxu0 }
 0x21e   : > { %1470 = vtanh.f32 %v697_v34 }
 0x22b   : > { %v1471_v37 = vpop.eup %1470 }
 0x22c   : > { %1415 = vmatmul.mubr.msk.f32.vlgmr.msra.gmra.mxu1 %vm705_vm3, %v1471_v37 }
 0x22d   : > { %1446 = vmatprep.mubr.msk.f32.mxu1 %vm1489_vm1, %v1488_v2  ;;  %1441 = vmatpush3.msk.msra.mxu1 %vm1169_vm6, %v1163_v50 }
 0x22e   : > { %1442 = vmatprep.subr.mxu1 %v1488_v2 }
 0x22f   : > { %1443 = vmatpush3.msra.mxu1 %v1162_v17 }
 0x230   : > { %1444 = vmatprep.subr.mxu1 %v1488_v2 }
 0x231   : > { %1445 = vmatpush3.msra.mxu1 %v1161_v18 }
 0x29a   : > { %v967_v43 = vpop.f32.mrf.mxu1 }
 0x29c   : > { %v1409_v45 = vpop.f32.mrf.mxu1 }
 0x2ec   : > { %v1043_v51 = vpop.f32.mrf.mxu1 }
 0x2ed   : > { %v1044_v53 = vadd.f32 %v1043_v51, %v967_v43 }
 0x2ee   : > { %v1416_v54 = vpop.f32.mrf.mxu1 }
 0x2ef   : > { %v1048_v55 = vadd.f32 %v1047_v52, %v1044_v53 }
 0x2f1   : > { %v1050_v56 = vmul.f32 0.70710677, %v1048_v55  ;;  %v1049_v14 = vmul.f32 0.5, %v1048_v55 }
 0x2f3   : > { %vm1051_vm7 = vcmp.ge.f32.partialorder %v1050_v56, 0.0 }
 0x2f4   : > { %v1052_v57 = vsel %vm1051_vm7, 1.0, %v1490_v35 }
 0x2f5   : > { %v1053_v58 = vmul.f32 %v1052_v57, %v1050_v56 }
 0x2f7   : > { %v1054_v59 = vmul.f32 0.3275911, %v1053_v58  ;;  %v1067_v61 = vsub.f32 0.0, %v1053_v58 }
 0x2f9   : > { %v1055_v60 = vadd.f32 1.0, %v1054_v59  ;;  %v1068_v62 = vmul.f32 %v1067_v61, %v1053_v58 }
 0x2fb   : > { %1472 = vrcp.f32 %v1055_v60  ;;  %v1069_v1 = vmul.f32 1.442695, %v1068_v62 }
 0x2fd   : > { %1474 = vpow2.f32 %v1069_v1 }
 0x308   : > { %v1473_v63 = vpop.eup %1472 }
 0x309   : > { %v1058_v0 = vmul.f32 1.0614054, %v1473_v63 }
 0x30a   : > { %v1475_v11 = vpop.eup %1474 }
 0x30b   : > { %v1059_v3 = vadd.f32 -1.4531521, %v1058_v0 }
 0x30d   : > { %v1060_v4 = vmul.f32 %v1473_v63, %v1059_v3 }
 0x30f   : > { %v1061_v5 = vadd.f32 1.4214138, %v1060_v4 }
 0x311   : > { %v1062_v6 = vmul.f32 %v1473_v63, %v1061_v5 }
 0x313   : > { %v1063_v7 = vadd.f32 -0.28449672, %v1062_v6 }
 0x315   : > { %v1064_v8 = vmul.f32 %v1473_v63, %v1063_v7 }
 0x317   : > { %v1065_v9 = vadd.f32 0.2548296, %v1064_v8 }
 0x319   : > { %v1066_v10 = vmul.f32 %v1473_v63, %v1065_v9 }
 0x31b   : > { %v1071_v35 = vmul.f32 %v1475_v11, %v1066_v10 }
 0x31d   : > { %v1072_v12 = vsub.f32 1.0, %v1071_v35 }
 0x31f   : > { %v1073_v13 = vmul.f32 %v1072_v12, %v1052_v57 }
 0x321   : > { %v1074_v15 = vadd.f32 1.0, %v1073_v13 }
 0x323   : > { %v1075_v16 = vmul.f32 %v1074_v15, %v1049_v14 }
 0x325   : > { %1438 = vmatmul.mubr.msk.f32.vlgmr.msra.gmra.mxu0 %vm1087_vm8, %v1075_v16 }
 0x3e5   : > { %v1157_v20 = vpop.f32.mrf.mxu0 }
 0x3e6   : > { %v1158_v21 = vadd.f32 %v1157_v20, %v1086_v19 }
 0x3e7   : > { %v1439_v22 = vpop.f32.mrf.mxu0 }
 0x3e8   : > { %1447 = vmatmul.mubr.msk.f32.vlgmr.msra.gmra.mxu1 %vm1165_vm9, %v1158_v21 }
 0x4a8   : > { %v1239_v24 = vpop.f32.mrf.mxu1 }
 0x4a9   : > { %v1240_v25 = vadd.f32 %v1239_v24, %v1164_v23 }
 0x4aa   : > { %v1448_v26 = vpop.f32.mrf.mxu1 }
 0x4ab   : > { %v1327_v2 = vmul.f32 -1.442695, %v1240_v25 }
 0x4ad   : > { %1476 = vpow2.f32 %v1327_v2 }
 0x4ba   : > { %v1477_v27 = vpop.eup %1476 }
 0x4bb   : > { %v1246_v28 = vadd.f32 1.0, %v1477_v27 }
 0x4bd   : > { %1478 = vrcp.f32 %v1246_v28 }
 0x4ca   : > { %v1479_v29 = vpop.eup %1478 }
 0x4cb   : > { %1250 = vst.msk [vmem:[%s560_s29] sm:$0x1] %vm1249_vm10, %v1479_v29 }
 0x4cc PF: > { %s29_s26 = sadd.s32 1, %s1486_s26  }
 0x4cd   : > { %p26_p4 = scmp.ge.s32.totalorder %s29_s26, 4  }
 0x4cf   :  { %28 = sbr.rel (!%p26_p4) target bundleno = 3 (0x3), region = 121 }

// kernel: model_forward.11
= control target key start
LH: loop header
LB: loop body
LE: loop exit
PB: predicated region body
PF: predicated region fallthrough
CT: control target
= control target key end

     0   :  { %s4030_s27 = smov 0   ;;  %s4712_s0 = inlined_call_operand.vmem [shape: f32[2,16,48], index: 0, kind: input, shape index: {}]   ;;  %s4713_s1 = inlined_call_operand.vmem [shape: f32[1,48], index: 1, kind: input, shape index: {}]   ;;  %s4714_s2 = inlined_call_operand.vmem [shape: f32[1,48], index: 2, kind: input, shape index: {}]   ;;  %s4715_s3 = inlined_call_operand.vmem [shape: f32[4,48,12], index: 3, kind: input, shape index: {}]   ;;  %s4716_s4 = inlined_call_operand.vmem [shape: f32[4,1,12], index: 4, kind: input, shape index: {}]   ;;  %s4717_s5 = inlined_call_operand.vmem [shape: f32[4,48,12], index: 5, kind: input, shape index: {}]   ;;  %s4718_s6 = inlined_call_operand.vmem [shape: f32[4,1,12], index: 6, kind: input, shape index: {}]   ;;  %s4719_s7 = inlined_call_operand.vmem [shape: f32[4,48,12], index: 7, kind: input, shape index: {}]   ;;  %s4720_s8 = inlined_call_operand.vmem [shape: f32[4,1,12], index: 8, kind: input, shape index: {}]   ;;  %s4721_s9 = inlined_call_operand.vmem [shape: f32[4,16,16], index: 9, kind: input, shape index: {}]   ;;  %s4722_s10 = inlined_call_operand.vmem [shape: f32[4,12,48], index: 10, kind: input, shape index: {}]   ;;  %s4723_s11 = inlined_call_operand.vmem [shape: f32[1,48], index: 11, kind: input, shape index: {}]   ;;  %s4724_s12 = inlined_call_operand.vmem [shape: f32[1,48], index: 12, kind: input, shape index: {}]   ;;  %s4725_s13 = inlined_call_operand.vmem [shape: f32[1,48], index: 13, kind: input, shape index: {}]   ;;  %s4726_s14 = inlined_call_operand.vmem [shape: f32[48,192], index: 14, kind: input, shape index: {}]   ;;  %s4727_s15 = inlined_call_operand.vmem [shape: f32[1,192], index: 15, kind: input, shape index: {}]   ;;  %s4728_s16 = inlined_call_operand.vmem [shape: f32[192,48], index: 16, kind: input, shape index: {}]   ;;  %s4729_s17 = inlined_call_operand.vmem [shape: f32[1,48], index: 17, kind: input, shape index: {}]   ;;  %s4730_s18 = inlined_call_operand.vmem [shape: f32[2,16,48], index: 18, kind: output, shape index: {}]  }
   0x1   :  { %4731 = sst [smem:[#allocation2_spill]] %s4712_s0 }
   0x2   :  { %4732 = sst [smem:[#allocation3_spill]] %s4713_s1 }
   0x3   :  { %4733 = sst [smem:[#allocation4_spill]] %s4714_s2 }
   0x4 LB: > { %s3279_s28 = sadd.s32 4294967295, %s3931_s27   ;;  %p3283_p0 = scmp.ge.s32.totalorder %s3931_s27, 1  ;;  %s3931_s27 = sphi %s4030_s27, %s28_s27  }
   0x5   : > { %p512_p1 = scmp.lt.s32.totalorder %s3931_s27, 3 }
   0x7   : > { %p513_p2 = pnand %p3283_p0, %p512_p1 }
   0x8   : > { %p566_p3 = scmp.lt.s32.totalorder (!%p513_p2), %s3279_s28, 1  ;;  %s4734_s19 = sld [smem:[#allocation2_spill]] (!%p513_p2) }
   0x9   : > { %516 = sbr.rel (%p513_p2) target bundleno = 4776 (0x12a8), region = 92  ;;  %s4735_s24 = sld [smem:[#allocation3_spill]] (!%p513_p2) }
   0xa   : > { %s4736_s30 = sld [smem:[#allocation4_spill]] (!%p513_p2) }
   0xe   : > { %s4738_s28 = smov (!%p566_p3, %s3279_s28), 1  ;;  %vm580_vm0 = vcmask 392192   ;;  %v629_v14 = vld [vmem:[%s4715_s3 + $0x28] sm:$0xff]  ;;  %v628_v15 = vld [vmem:[%s4715_s3 + $0x20] sm:$0xff]  ;;  %v627_v16 = vld [vmem:[%s4715_s3 + $0x18] sm:$0xff]  ;;  %vm898_vm1 = vcmask 97280  }
   0xf   : > { %s3447_s29 = sshll.u32 %s4738_s28, 4  ;;  %3593 = vmatprep.subr.mxu0 %v629_v14  ;;  %v626_v17 = vld [vmem:[%s4715_s3 + $0x10] sm:$0xff]  ;;  %v625_v18 = vld [vmem:[%s4715_s3 + $0x8] sm:$0xff]  ;;  %v624_v19 = vld [vmem:[%s4715_s3] sm:$0xff]  ;;  %vm986_vm2 = vcmask 130048   ;;  %vm1566_vm3 = vcmask 1043456  }
  0x10   : > { %s4046_s1 = scalar_lea.vmem %s4734_s19, %s3447_s29  ;;  %3594 = vmatpush3.msra.mxu0 %v629_v14  ;;  %v725_v20 = vld [vmem:[%s4717_s5 + $0x28] sm:$0xff]  ;;  %v3288_v28 = vld [vmem:[%s4735_s24] ss:$0 sm:$0xff]  ;;  %v723_v38 = vld [vmem:[%s4717_s5 + $0x18] sm:$0xff]  ;;  %vm3138_vm8 = vcmask 523264  }
  0x11   : > { %v576_v0 = vld [vmem:[%s4046_s1] sm:$0xff]  ;;  %v577_v1 = vld [vmem:[%s4046_s1 + $0x8] sm:$0xff]  ;;  %3595 = vmatprep.subr.mxu0 %v628_v15  ;;  %v722_v39 = vld [vmem:[%s4717_s5 + $0x10] sm:$0xff] }
  0x12   : > { %v581_v2 = vsel %vm580_vm0, %v576_v0, 0.0  ;;  %v584_v3 = vsel %vm580_vm0, %v577_v1, 0.0  ;;  %3596 = vmatpush3.msra.mxu0 %v628_v15  ;;  %v3289_v30 = vld [vmem:[%s4736_s30] ss:$0 sm:$0xff]  ;;  %v721_v40 = vld [vmem:[%s4717_s5 + $0x8] sm:$0xff]  ;;  %v811_v44 = vld [vmem:[%s4719_s7 + $0x18] sm:$0xff]  ;;  %s575_s30 = scalar_lea.vmem %s4730_s18, %s3447_s29 }
  0x13   : > { %582 = vadd.xlane.f32.xlu0 %v581_v2  ;;  %3597 = vmatprep.subr.mxu0 %v627_v16  ;;  %v724_v37 = vld [vmem:[%s4717_s5 + $0x20] sm:$0xff]  ;;  %v813_v42 = vld [vmem:[%s4719_s7 + $0x28] sm:$0xff]  ;;  %v810_v45 = vld [vmem:[%s4719_s7 + $0x10] sm:$0xff] }
  0x14   : > { %3598 = vmatpush3.msra.mxu0 %v627_v16  ;;  %v720_v41 = vld [vmem:[%s4717_s5] sm:$0xff]  ;;  %v809_v46 = vld [vmem:[%s4719_s7 + $0x8] sm:$0xff]  ;;  %v3310_v59 = vld [vmem:[%s4715_s3 + $0x58] sm:$0xff] }
  0x15   : > { %3599 = vmatprep.subr.mxu0 %v626_v17  ;;  %v812_v43 = vld [vmem:[%s4719_s7 + $0x20] sm:$0xff]  ;;  %v3309_v62 = vld [vmem:[%s4715_s3 + $0x50] sm:$0xff] }
  0x16   : > { %3600 = vmatpush3.msra.mxu0 %v626_v17  ;;  %v808_v47 = vld [vmem:[%s4719_s7] sm:$0xff] }
  0x17   : > { %585 = vadd.xlane.f32.xlu0 %v584_v3  ;;  %3601 = vmatprep.subr.mxu0 %v625_v18  ;;  %v3290_v49 = vld [vmem:[%s4716_s4] ss:$0 sm:$0xff] }
  0x18   : > { %3602 = vmatpush3.msra.mxu0 %v625_v18  ;;  %v3293_v53 = vld [vmem:[%s4718_s6] ss:$0 sm:$0xff] }
  0x19   : > { %3603 = vmatprep.subr.mxu0 %v624_v19  ;;  %v3296_v61 = vld [vmem:[%s4720_s8] ss:$0 sm:$0xff] }
  0x1a   : > { %3604 = vmatpush3.msra.mxu0 %v624_v19  ;;  %v3307_v3 = vld [vmem:[%s4715_s3 + $0x40] sm:$0xff] }
  0x1b   : > { %3608 = vmatprep.subr.mxu0 %v725_v20  ;;  %v896_v15 = vld [vmem:[%s4721_s9] sm:$0xff] }
  0x9c   : > { %v583_v4 = vpop.xlane.xlu0 %582 }
  0x9d   : > { %v588_v5 = vmul.f32 0.020833334, %v583_v4 }
  0x9f   : > { %v590_v6 = vsub.f32 %v576_v0, %v588_v5  ;;  %v3308_v0 = vld [vmem:[%s4715_s3 + $0x48] sm:$0xff]  ;;  %v3306_v5 = vld [vmem:[%s4715_s3 + $0x38] sm:$0xff] }
  0xa0   : > { %v586_v7 = vpop.xlane.xlu0 %585 }
  0xa1   : > { %v589_v8 = vmul.f32 0.020833334, %v586_v7  ;;  %v592_v9 = vmul.f32 %v590_v6, %v590_v6  ;;  %v3330_v7 = vld [vmem:[%s4719_s7 + $0x58] sm:$0xff] }
  0xa3   : > { %v591_v10 = vsub.f32 %v577_v1, %v589_v8  ;;  %v594_v11 = vsel %vm580_vm0, %v592_v9, 0.0  ;;  %v3329_v8 = vld [vmem:[%s4719_s7 + $0x50] sm:$0xff]  ;;  %v3328_v9 = vld [vmem:[%s4719_s7 + $0x48] sm:$0xff] }
  0xa4   : > { %595 = vadd.xlane.f32.xlu1 %v594_v11  ;;  %v3326_v11 = vld [vmem:[%s4719_s7 + $0x38] sm:$0xff] }
  0xa5   : > { %v593_v12 = vmul.f32 %v591_v10, %v591_v10 }
  0xa7   : > { %v597_v13 = vsel %vm580_vm0, %v593_v12, 0.0  ;;  %v3325_v12 = vld [vmem:[%s4719_s7 + $0x30] sm:$0xff] }
  0xa8   : > { %598 = vadd.xlane.f32.xlu1 %v597_v13  ;;  %v897_v13 = vld [vmem:[%s4721_s9 + $0x8] sm:$0xff] }
 0x12d   : > { %v596_v21 = vpop.xlane.xlu1 %595 }
 0x12e   : > { %v600_v22 = vmul.f32 0.020833334, %v596_v21  ;;  %v3312_v21 = vld [vmem:[%s4716_s4 + $0x1] ss:$0 sm:$0xff] }
 0x130   : > { %v602_v23 = vadd.f32 1e-05, %v600_v22 }
 0x131   : > { %v599_v24 = vpop.xlane.xlu1 %598 }
 0x132   : > { %3867 = vrsqrt.f32 %v602_v23  ;;  %v601_v25 = vmul.f32 0.020833334, %v599_v24 }
 0x134   : > { %v603_v26 = vadd.f32 1e-05, %v601_v25 }
 0x136   : > { %3869 = vrsqrt.f32 %v603_v26 }
 0x13f   : > { %v3868_v27 = vpop.eup %3867 }
 0x140   : > { %v606_v29 = vmul.f32 %v3868_v27, %v590_v6  ;;  %v3305_v6 = vld [vmem:[%s4715_s3 + $0x30] sm:$0xff] }
 0x142   : > { %v614_v31 = vmul.f32 %v3288_v28, %v606_v29 }
 0x143   : > { %v3870_v32 = vpop.eup %3869 }
 0x144   : > { %v4081_v33 = vadd.f32 %v3289_v30, %v614_v31  ;;  %v607_v34 = vmul.f32 %v3870_v32, %v591_v10  ;;  %v3327_v10 = vld [vmem:[%s4719_s7 + $0x40] sm:$0xff] }
 0x146   : > { %v615_v35 = vmul.f32 %v3288_v28, %v607_v34  ;;  %3605 = vmatprep.mubr.msk.f32.mxu0 %vm580_vm0, %v4081_v33 }
 0x148   : > { %v4085_v36 = vadd.f32 %v3289_v30, %v615_v35  ;;  %v3320_v35 = vld [vmem:[%s4717_s5 + $0x58] sm:$0xff] }
 0x14a   : > { %3606 = vmatmul.mubr.msk.f32.vlgmr.msra.gmra.mxu0 %vm580_vm0, %v4085_v36 }
 0x14b   : > { %3609 = vmatpush3.msra.mxu0 %v725_v20  ;;  %3620 = vmatprep.mubr.msk.f32.mxu0 %vm580_vm0, %v4081_v33 }
 0x14c   : > { %3610 = vmatprep.subr.mxu0 %v724_v37 }
 0x14d   : > { %3611 = vmatpush3.msra.mxu0 %v724_v37 }
 0x14e   : > { %3612 = vmatprep.subr.mxu0 %v723_v38 }
 0x14f   : > { %3613 = vmatpush3.msra.mxu0 %v723_v38 }
 0x150   : > { %3614 = vmatprep.subr.mxu0 %v722_v39 }
 0x151   : > { %3615 = vmatpush3.msra.mxu0 %v722_v39 }
 0x152   : > { %3616 = vmatprep.subr.mxu0 %v721_v40 }
 0x153   : > { %3617 = vmatpush3.msra.mxu0 %v721_v40 }
 0x154   : > { %3618 = vmatprep.subr.mxu0 %v720_v41 }
 0x155   : > { %3619 = vmatpush3.msra.mxu0 %v720_v41 }
 0x156   : > { %3621 = vmatmul.mubr.msk.f32.vlgmr.msra.gmra.mxu0 %vm580_vm0, %v4085_v36  ;;  %3623 = vmatprep.subr.mxu0 %v813_v42 }
 0x157   : > { %3624 = vmatpush3.msra.mxu0 %v813_v42  ;;  %3635 = vmatprep.mubr.msk.f32.mxu0 %vm580_vm0, %v4081_v33 }
 0x158   : > { %3625 = vmatprep.subr.mxu0 %v812_v43 }
 0x159   : > { %3626 = vmatpush3.msra.mxu0 %v812_v43  ;;  %v3319_v43 = vld [vmem:[%s4717_s5 + $0x50] sm:$0xff] }
 0x15a   : > { %3627 = vmatprep.subr.mxu0 %v811_v44 }
 0x15b   : > { %3628 = vmatpush3.msra.mxu0 %v811_v44  ;;  %v3318_v44 = vld [vmem:[%s4717_s5 + $0x48] sm:$0xff] }
 0x15c   : > { %3629 = vmatprep.subr.mxu0 %v810_v45 }
 0x15d   : > { %3630 = vmatpush3.msra.mxu0 %v810_v45  ;;  %v3317_v45 = vld [vmem:[%s4717_s5 + $0x40] sm:$0xff] }
 0x15e   : > { %3631 = vmatprep.subr.mxu0 %v809_v46 }
 0x15f   : > { %3632 = vmatpush3.msra.mxu0 %v809_v46 }
 0x160   : > { %3633 = vmatprep.subr.mxu0 %v808_v47 }
 0x161   : > { %3634 = vmatpush3.msra.mxu0 %v808_v47  ;;  %v3316_v47 = vld [vmem:[%s4717_s5 + $0x38] sm:$0xff] }
 0x162   : > { %3636 = vmatmul.mubr.msk.f32.vlgmr.msra.gmra.mxu0 %vm580_vm0, %v4085_v36 }
 0x20a   : > { %v3607_v48 = vpop.f32.mrf.mxu0 }
 0x20b   : > { %v715_v58 = vadd.f32 %v3607_v48, %v3290_v49 }
 0x20c   : > { %v709_v50 = vpop.f32.mrf.mxu0 }
 0x20d   : > { %v710_v51 = vadd.f32 %v3290_v49, %v709_v50  ;;  %v719_v60 = vmul.f32 0.28867513, %v715_v58  ;;  %v3315_v49 = vld [vmem:[%s4717_s5 + $0x30] sm:$0xff] }
 0x20f   : > { %v718_v52 = vmul.f32 0.28867513, %v710_v51 }
 0x211   : > { %3642 = vmatprep.mubr.msk.f32.mxu0 %vm898_vm1, %v718_v52 }
 0x216   : > { %v3622_v54 = vpop.f32.mrf.mxu0 }
 0x217   : > { %v805_v55 = vadd.f32 %v3622_v54, %v3293_v53 }
 0x218   : > { %v799_v56 = vpop.f32.mrf.mxu0 }
 0x219   : > { %v800_v57 = vadd.f32 %v3293_v53, %v799_v56  ;;  %3638 = vmatprep.subr.msk.mxu0 %vm898_vm1, %v805_v55  ;;  %v3322_v53 = vld [vmem:[%s4718_s6 + $0x1] ss:$0 sm:$0xff] }
 0x21a   : > { %3639 = vmatpush3.xpose.msk.msra.mxu0 %vm898_vm1, %v805_v55 }
 0x21b   : > { %3640 = vmatprep.subr.msk.mxu0 %vm898_vm1, %v800_v57 }
 0x21e   : > { %3641 = vmatpush3.xpose.msk.msra.mxu0 %vm898_vm1, %v800_v57 }
 0x21f   : > { %3652 = vmatprep.subr.mxu0 %v3310_v59 }
 0x221   : > { %3643 = vmatmul.mubr.msk.f32.vlgmr.msra.gmra.mxu0 %vm898_vm1, %v719_v60 }
 0x222   : > { %v3637_v63 = vpop.f32.mrf.mxu0  ;;  %3653 = vmatpush3.msra.mxu0 %v3310_v59  ;;  %3664 = vmatprep.mubr.msk.f32.mxu0 %vm580_vm0, %v4081_v33  ;;  %v3332_v59 = vld [vmem:[%s4720_s8 + $0x1] ss:$0 sm:$0xff] }
 0x223   : > { %v893_v1 = vadd.f32 %v3637_v63, %v3296_v61  ;;  %3654 = vmatprep.subr.mxu0 %v3309_v62 }
 0x224   : > { %v887_v2 = vpop.f32.mrf.mxu0  ;;  %3655 = vmatpush3.msra.mxu0 %v3309_v62 }
 0x225   : > { %v888_v4 = vadd.f32 %v3296_v61, %v887_v2  ;;  %3645 = vmatprep.subr.mxu1 %v893_v1  ;;  %3656 = vmatprep.subr.mxu0 %v3308_v0  ;;  %v3335_v2 = vld [vmem:[%s4721_s9 + $0x10] sm:$0xff] }
 0x226   : > { %3646 = vmatpush3.msra.mxu1 %v893_v1  ;;  %3657 = vmatpush3.msra.mxu0 %v3308_v0  ;;  %v3336_v0 = vld [vmem:[%s4721_s9 + $0x18] sm:$0xff] }
 0x227   : > { %3647 = vmatprep.subr.mxu1 %v888_v4  ;;  %3658 = vmatprep.subr.mxu0 %v3307_v3 }
 0x228   : > { %3648 = vmatpush3.msra.mxu1 %v888_v4  ;;  %3659 = vmatpush3.msra.mxu0 %v3307_v3 }
 0x229   : > { %3660 = vmatprep.subr.mxu0 %v3306_v5  ;;  %3667 = vmatprep.subr.mxu1 %v3320_v35 }
 0x22a   : > { %3661 = vmatpush3.msra.mxu0 %v3306_v5 }
 0x22b   : > { %3662 = vmatprep.subr.mxu0 %v3305_v6 }
 0x22c   : > { %3663 = vmatpush3.msra.mxu0 %v3305_v6 }
 0x22d   : > { %3665 = vmatmul.mubr.msk.f32.vlgmr.msra.gmra.mxu0 %vm580_vm0, %v4085_v36  ;;  %3682 = vmatprep.subr.mxu0 %v3330_v7 }
 0x22e   : > { %3683 = vmatpush3.msra.mxu0 %v3330_v7  ;;  %3694 = vmatprep.mubr.msk.f32.mxu0 %vm580_vm0, %v4081_v33 }
 0x22f   : > { %3684 = vmatprep.subr.mxu0 %v3329_v8 }
 0x230   : > { %3685 = vmatpush3.msra.mxu0 %v3329_v8 }
 0x231   : > { %3686 = vmatprep.subr.mxu0 %v3328_v9 }
 0x232   : > { %3687 = vmatpush3.msra.mxu0 %v3328_v9 }
 0x233   : > { %3688 = vmatprep.subr.mxu0 %v3327_v10 }
 0x234   : > { %3689 = vmatpush3.msra.mxu0 %v3327_v10 }
 0x235   : > { %3690 = vmatprep.subr.mxu0 %v3326_v11 }
 0x236   : > { %3691 = vmatpush3.msra.mxu0 %v3326_v11 }
 0x237   : > { %3692 = vmatprep.subr.mxu0 %v3325_v12 }
 0x238   : > { %3693 = vmatpush3.msra.mxu0 %v3325_v12 }
 0x239   : > { %3695 = vmatmul.mubr.msk.f32.vlgmr.msra.gmra.mxu0 %vm580_vm0, %v4085_v36 }
 0x2e1   : > { %v3644_v14 = vpop.f32.mrf.mxu0 }
 0x2e2   : > { %v983_v16 = vadd.f32 %v3644_v14, %v897_v13 }
 0x2e3   : > { %v977_v17 = vpop.f32.mrf.mxu0 }
 0x2e4   : > { %v978_v18 = vadd.f32 %v977_v17, %v896_v15  ;;  %v990_v19 = vsel %vm986_vm2, %v983_v16, -inf }
 0x2e5   : > { %991 = vmax.xlane.f32.xlu1 %v990_v19  ;;  %v3344_v19 = vld [vmem:[%s4722_s10 + $0x18] sm:$0xf] }
 0x2e6   : > { %v987_v20 = vsel %vm986_vm2, %v978_v18, -inf  ;;  %3711 = vmatprep.subr.msk.mxu0 %vm1566_vm3, %v3344_v19 }
 0x2e7   : > { %988 = vmax.xlane.f32.xlu0 %v987_v20  ;;  %3712 = vmatpush3.msk.msra.mxu0 %vm1566_vm3, %v3344_v19 }
 0x2ed   : > { %v3666_v22 = vpop.f32.mrf.mxu0 }
 0x2ee   : > { %v4200_v23 = vadd.f32 %v3666_v22, %v3312_v21 }
 0x2ef   : > { %v1173_v46 = vpop.f32.mrf.mxu0 }
 0x2f0   : > { %v1174_v48 = vadd.f32 %v3312_v21, %v1173_v46  ;;  %v1183_v62 = vmul.f32 0.28867513, %v4200_v23 }
 0x2f2   : > { %v1182_v50 = vmul.f32 0.28867513, %v1174_v48  ;;  %v3375_v48 = vld [vmem:[%s4719_s7 + $0x80] sm:$0xff] }
 0x2f9   : > { %v3696_v58 = vpop.f32.mrf.mxu0 }
 0x2fa   : > { %v1361_v60 = vadd.f32 %v3696_v58, %v3332_v59 }
 0x2fb   : > { %v1355_v61 = vpop.f32.mrf.mxu0 }
 0x2fc   : > { %v1356_v63 = vadd.f32 %v3332_v59, %v1355_v61  ;;  %v3358_v59 = vld [vmem:[%s4716_s4 + $0x2] ss:$0 sm:$0xff] }
 0x36e   : > { %v992_v24 = vpop.xlane.xlu1 %991 }
 0x36f   : > { %v994_v25 = vsub.f32 %v983_v16, %v992_v24 }
 0x370   : > { %v989_v26 = vpop.xlane.xlu0 %988 }
 0x371   : > { %v997_v27 = vmul.f32 1.442695, %v994_v25  ;;  %v993_v28 = vsub.f32 %v978_v18, %v989_v26  ;;  %v1091_v18 = vld [vmem:[%s4722_s10 + $0x8] sm:$0xf]  ;;  %v1090_v26 = vld [vmem:[%s4722_s10] sm:$0xff] }
 0x373   : > { %3871 = vpow2.f32 %v997_v27  ;;  %v995_v29 = vmul.f32 1.442695, %v993_v28  ;;  %v3366_v27 = vld [vmem:[%s4717_s5 + $0x88] sm:$0xff]  ;;  %v3365_v28 = vld [vmem:[%s4717_s5 + $0x80] sm:$0xff] }
 0x375   : > { %3873 = vpow2.f32 %v995_v29  ;;  %v3364_v29 = vld [vmem:[%s4717_s5 + $0x78] sm:$0xff] }
 0x380   : > { %v3872_v30 = vpop.eup %3871 }
 0x381   : > { %v1002_v31 = vsel %vm986_vm2, %v3872_v30, 0.0 }
 0x382   : > { %v3874_v32 = vpop.eup %3873  ;;  %1003 = vadd.xlane.f32.xlu1 %v1002_v31  ;;  %v3362_v31 = vld [vmem:[%s4717_s5 + $0x68] sm:$0xff] }
 0x383   : > { %v999_v34 = vsel %vm986_vm2, %v3874_v32, 0.0 }
 0x384   : > { %1000 = vadd.xlane.f32.xlu0 %v999_v34  ;;  %v3343_v34 = vld [vmem:[%s4722_s10 + $0x10] sm:$0xff] }
 0x385   : > { %3713 = vmatprep.subr.mxu0 %v3343_v34 }
 0x386   : > { %3714 = vmatpush3.msra.mxu0 %v3343_v34  ;;  %v3398_v34 = vld [vmem:[%s4715_s3 + $0xb0] sm:$0xff] }
 0x40b   : > { %v1004_v37 = vpop.xlane.xlu1 %1003 }
 0x40c   : > { %3875 = vrcp.f32 %v1004_v37 }
 0x40d   : > { %v1001_v38 = vpop.xlane.xlu0 %1000 }
 0x40e   : > { %3877 = vrcp.f32 %v1001_v38 }
 0x419   : > { %v3876_v39 = vpop.eup %3875 }
 0x41a   : > { %v1008_v42 = vmul.f32 %v3876_v39, %v3872_v30  ;;  %v3363_v30 = vld [vmem:[%s4717_s5 + $0x70] sm:$0xff]  ;;  %v3355_v39 = vld [vmem:[%s4715_s3 + $0x80] sm:$0xff] }
 0x41b   : > { %v3878_v40 = vpop.eup %3877 }
 0x41c   : > { %v1007_v41 = vmul.f32 %v3878_v40, %v3874_v32  ;;  %v3361_v32 = vld [vmem:[%s4717_s5 + $0x60] sm:$0xff]  ;;  %v3354_v40 = vld [vmem:[%s4715_s3 + $0x78] sm:$0xff] }
 0x41e   : > { %3649 = vmatprep.mubr.msk.f32.mxu1 %vm986_vm2, %v1007_v41  ;;  %v3353_v41 = vld [vmem:[%s4715_s3 + $0x70] sm:$0xff] }
 0x41f   : > { %3650 = vmatmul.mubr.msk.f32.vlgmr.msra.gmra.mxu1 %vm986_vm2, %v1008_v42  ;;  %v3352_v42 = vld [vmem:[%s4715_s3 + $0x68] sm:$0xff] }
 0x420   : > { %3668 = vmatpush3.msra.mxu1 %v3320_v35  ;;  %3679 = vmatprep.mubr.msk.f32.mxu1 %vm580_vm0, %v4081_v33  ;;  %v3356_v35 = vld [vmem:[%s4715_s3 + $0x88] sm:$0xff] }
 0x421   : > { %3669 = vmatprep.subr.mxu1 %v3319_v43  ;;  %3725 = vmatprep.subr.mxu0 %v3356_v35 }
 0x422   : > { %3670 = vmatpush3.msra.mxu1 %v3319_v43 }
 0x423   : > { %3671 = vmatprep.subr.mxu1 %v3318_v44 }
 0x424   : > { %3672 = vmatpush3.msra.mxu1 %v3318_v44  ;;  %v3351_v44 = vld [vmem:[%s4715_s3 + $0x60] sm:$0xff] }
 0x425   : > { %3673 = vmatprep.subr.mxu1 %v3317_v45 }
 0x426   : > { %3674 = vmatpush3.msra.mxu1 %v3317_v45  ;;  %v3376_v45 = vld [vmem:[%s4719_s7 + $0x88] sm:$0xff] }
 0x427   : > { %3675 = vmatprep.subr.mxu1 %v3316_v47 }
 0x428   : > { %3676 = vmatpush3.msra.mxu1 %v3316_v47  ;;  %v3368_v47 = vld [vmem:[%s4718_s6 + $0x2] ss:$0 sm:$0xff] }
 0x429   : > { %3677 = vmatprep.subr.mxu1 %v3315_v49 }
 0x42a   : > { %3678 = vmatpush3.msra.mxu1 %v3315_v49 }
 0x42b   : > { %3680 = vmatmul.mubr.msk.f32.vlgmr.msra.gmra.mxu1 %vm580_vm0, %v4085_v36 }
 0x42c   : > { %3701 = vmatprep.mubr.msk.f32.mxu1 %vm898_vm1, %v1182_v50 }
 0x4df   : > { %v4229_v51 = vpop.f32.mrf.mxu1 }
 0x4e1   : > { %v4231_v52 = vpop.f32.mrf.mxu1 }
 0x4eb   : > { %v3681_v54 = vpop.f32.mrf.mxu1 }
 0x4ec   : > { %v1271_v55 = vadd.f32 %v3681_v54, %v3322_v53  ;;  %v3373_v54 = vld [vmem:[%s4719_s7 + $0x70] sm:$0xff] }
 0x4ed   : > { %v1265_v56 = vpop.f32.mrf.mxu1 }
 0x4ee   : > { %v1266_v57 = vadd.f32 %v3322_v53, %v1265_v56  ;;  %3697 = vmatprep.subr.msk.mxu1 %vm898_vm1, %v1271_v55  ;;  %v3371_v56 = vld [vmem:[%s4719_s7 + $0x60] sm:$0xff] }
 0x4ef   : > { %3698 = vmatpush3.xpose.msk.msra.mxu1 %vm898_vm1, %v1271_v55  ;;  %v3372_v55 = vld [vmem:[%s4719_s7 + $0x68] sm:$0xff] }
 0x4f0   : > { %3699 = vmatprep.subr.msk.mxu1 %vm898_vm1, %v1266_v57 }
 0x4f3   : > { %3700 = vmatpush3.xpose.msk.msra.mxu1 %vm898_vm1, %v1266_v57 }
 0x4f4   : > { %3704 = vmatprep.subr.mxu1 %v1361_v60 }
 0x4f6   : > { %3702 = vmatmul.mubr.msk.f32.vlgmr.msra.gmra.mxu1 %vm898_vm1, %v1183_v62 }
 0x4f7   : > { %3705 = vmatpush3.msra.mxu1 %v1361_v60 }
 0x4f8   : > { %3706 = vmatprep.subr.mxu1 %v1356_v63 }
 0x4f9   : > { %3707 = vmatpush3.msra.mxu1 %v1356_v63 }
 0x4fa   : > { %3718 = vmatprep.subr.msk.mxu1 %vm1566_vm3, %v1091_v18 }
 0x5b6   : > { %v3703_v1 = vpop.f32.mrf.mxu1 }
 0x5b7   : > { %v1451_v3 = vadd.f32 %v3703_v1, %v3336_v0 }
 0x5b8   : > { %v1445_v4 = vpop.f32.mrf.mxu1 }
 0x5b9   : > { %v1446_v5 = vadd.f32 %v3335_v2, %v1445_v4  ;;  %v1457_v6 = vsel %vm986_vm2, %v1451_v3, -inf  ;;  %v3378_v2 = vld [vmem:[%s4720_s8 + $0x2] ss:$0 sm:$0xff] }
 0x5ba   : > { %1458 = vmax.xlane.f32.xlu1 %v1457_v6 }
 0x5bb   : > { %v1454_v7 = vsel %vm986_vm2, %v1446_v5, -inf }
 0x5bc   : > { %1455 = vmax.xlane.f32.xlu0 %v1454_v7  ;;  %v3382_v7 = vld [vmem:[%s4721_s9 + $0x28] sm:$0xff] }
 0x643   : > { %v1459_v8 = vpop.xlane.xlu1 %1458 }
 0x644   : > { %v1461_v9 = vsub.f32 %v1451_v3, %v1459_v8 }
 0x645   : > { %v1456_v10 = vpop.xlane.xlu0 %1455 }
 0x646   : > { %v1464_v11 = vmul.f32 1.442695, %v1461_v9  ;;  %v1460_v12 = vsub.f32 %v1446_v5, %v1456_v10  ;;  %v3381_v9 = vld [vmem:[%s4721_s9 + $0x20] sm:$0xff] }
 0x648   : > { %3879 = vpow2.f32 %v1464_v11  ;;  %v1462_v13 = vmul.f32 1.442695, %v1460_v12 }
 0x64a   : > { %3881 = vpow2.f32 %v1462_v13 }
 0x655   : > { %v3880_v14 = vpop.eup %3879 }
 0x656   : > { %v1469_v15 = vsel %vm986_vm2, %v3880_v14, 0.0 }
 0x657   : > { %v3882_v16 = vpop.eup %3881  ;;  %1470 = vadd.xlane.f32.xlu1 %v1469_v15 }
 0x658   : > { %v1466_v17 = vsel %vm986_vm2, %v3882_v16, 0.0 }
 0x659   : > { %1467 = vadd.xlane.f32.xlu0 %v1466_v17 }
 0x6e0   : > { %v1471_v20 = vpop.xlane.xlu1 %1470 }
 0x6e1   : > { %3883 = vrcp.f32 %v1471_v20 }
 0x6e2   : > { %v1468_v21 = vpop.xlane.xlu0 %1467 }
 0x6e3   : > { %3885 = vrcp.f32 %v1468_v21 }
 0x6ee   : > { %v3884_v22 = vpop.eup %3883 }
 0x6ef   : > { %v1475_v25 = vmul.f32 %v3884_v22, %v3880_v14 }
 0x6f0   : > { %v3886_v23 = vpop.eup %3885 }
 0x6f1   : > { %v1474_v24 = vmul.f32 %v3886_v23, %v3882_v16 }
 0x6f3   : > { %3708 = vmatprep.mubr.msk.f32.mxu1 %vm986_vm2, %v1474_v24 }
 0x6f4   : > { %3709 = vmatmul.mubr.msk.f32.vlgmr.msra.gmra.mxu1 %vm986_vm2, %v1475_v25  ;;  %v3399_v25 = vld [vmem:[%s4715_s3 + $0xb8] sm:$0xff] }
 0x6f5   : > { %3719 = vmatpush3.msk.msra.mxu1 %vm1566_vm3, %v1091_v18  ;;  %3722 = vmatprep.mubr.msk.f32.mxu1 %vm898_vm1, %v4231_v52 }
 0x6f6   : > { %3720 = vmatprep.subr.mxu1 %v1090_v26 }
 0x6f7   : > { %3721 = vmatpush3.msra.mxu1 %v1090_v26  ;;  %v3390_v26 = vld [vmem:[%s4722_s10 + $0x28] sm:$0xf] }
 0x6f8   : > { %3740 = vmatprep.subr.mxu1 %v3366_v27  ;;  %3723 = vmatmul.mubr.msk.f32.vlgmr.msra.gmra.mxu1 %vm898_vm1, %v4229_v51  ;;  %v3374_v51 = vld [vmem:[%s4719_s7 + $0x78] sm:$0xff] }
 0x6f9   : > { %3741 = vmatpush3.msra.mxu1 %v3366_v27  ;;  %3752 = vmatprep.mubr.msk.f32.mxu1 %vm580_vm0, %v4081_v33 }
 0x6fa   : > { %3742 = vmatprep.subr.mxu1 %v3365_v28 }
 0x6fb   : > { %3743 = vmatpush3.msra.mxu1 %v3365_v28 }
 0x6fc   : > { %3744 = vmatprep.subr.mxu1 %v3364_v29 }
 0x6fd   : > { %3745 = vmatpush3.msra.mxu1 %v3364_v29 }
 0x6fe   : > { %3746 = vmatprep.subr.mxu1 %v3363_v30 }
 0x6ff   : > { %3747 = vmatpush3.msra.mxu1 %v3363_v30 }
 0x700   : > { %3748 = vmatprep.subr.mxu1 %v3362_v31 }
 0x701   : > { %3749 = vmatpush3.msra.mxu1 %v3362_v31 }
 0x702   : > { %3750 = vmatprep.subr.mxu1 %v3361_v32 }
 0x703   : > { %3751 = vmatpush3.msra.mxu1 %v3361_v32 }
 0x704   : > { %3753 = vmatmul.mubr.msk.f32.vlgmr.msra.gmra.mxu1 %vm580_vm0, %v4085_v36 }
 0x7b4   : > { %v3710_v37 = vpop.f32.mrf.mxu1 }
 0x7b6   : > { %v1548_v38 = vpop.f32.mrf.mxu1 }
 0x7b7   : > { %3715 = vmatprep.mubr.msk.f32.mxu0 %vm898_vm1, %v1548_v38  ;;  %v3395_v38 = vld [vmem:[%s4715_s3 + $0x98] sm:$0xff] }
 0x7b8   : > { %3716 = vmatmul.mubr.msk.f32.vlgmr.msra.gmra.mxu0 %vm898_vm1, %v3710_v37  ;;  %v4318_v43 = vpop.f32.mrf.mxu1  ;;  %v3396_v37 = vld [vmem:[%s4715_s3 + $0xa0] sm:$0xff] }
 0x7b9   : > { %3726 = vmatpush3.msra.mxu0 %v3356_v35  ;;  %3737 = vmatprep.mubr.msk.f32.mxu0 %vm580_vm0, %v4081_v33  ;;  %v3397_v35 = vld [vmem:[%s4715_s3 + $0xa8] sm:$0xff] }
 0x7ba   : > { %3727 = vmatprep.subr.mxu0 %v3355_v39  ;;  %v4326_v46 = vpop.f32.mrf.mxu1 }
 0x7bb   : > { %3728 = vmatpush3.msra.mxu0 %v3355_v39  ;;  %v3394_v39 = vld [vmem:[%s4715_s3 + $0x90] sm:$0xff] }
 0x7bc   : > { %3729 = vmatprep.subr.mxu0 %v3354_v40 }
 0x7bd   : > { %3730 = vmatpush3.msra.mxu0 %v3354_v40  ;;  %v3419_v40 = vld [vmem:[%s4719_s7 + $0xb8] sm:$0xff] }
 0x7be   : > { %3731 = vmatprep.subr.mxu0 %v3353_v41 }
 0x7bf   : > { %3732 = vmatpush3.msra.mxu0 %v3353_v41  ;;  %v3418_v41 = vld [vmem:[%s4719_s7 + $0xb0] sm:$0xff] }
 0x7c0   : > { %3733 = vmatprep.subr.mxu0 %v3352_v42 }
 0x7c1   : > { %3734 = vmatpush3.msra.mxu0 %v3352_v42  ;;  %v3417_v42 = vld [vmem:[%s4719_s7 + $0xa8] sm:$0xff] }
 0x7c2   : > { %3735 = vmatprep.subr.mxu0 %v3351_v44 }
 0x7c3   : > { %3736 = vmatpush3.msra.mxu0 %v3351_v44  ;;  %v3416_v44 = vld [vmem:[%s4719_s7 + $0xa0] sm:$0xff] }
 0x7c4   : > { %3738 = vmatmul.mubr.msk.f32.vlgmr.msra.gmra.mxu0 %vm580_vm0, %v4085_v36  ;;  %v3754_v49 = vpop.f32.mrf.mxu1  ;;  %3755 = vmatprep.subr.mxu0 %v3376_v45 }
 0x7c5   : > { %v1908_v50 = vadd.f32 %v3754_v49, %v3368_v47  ;;  %3756 = vmatpush3.msra.mxu0 %v3376_v45  ;;  %3767 = vmatprep.mubr.msk.f32.mxu0 %vm580_vm0, %v4081_v33  ;;  %v3415_v45 = vld [vmem:[%s4719_s7 + $0x98] sm:$0xff] }
 0x7c6   : > { %v1902_v52 = vpop.f32.mrf.mxu1  ;;  %3757 = vmatprep.subr.mxu0 %v3375_v48  ;;  %v3409_v49 = vld [vmem:[%s4717_s5 + $0xb8] sm:$0xff] }
 0x7c7   : > { %v1903_v53 = vadd.f32 %v3368_v47, %v1902_v52  ;;  %3758 = vmatpush3.msra.mxu0 %v3375_v48  ;;  %3770 = vmatprep.subr.msk.mxu1 %vm898_vm1, %v1908_v50  ;;  %v3414_v47 = vld [vmem:[%s4719_s7 + $0x90] sm:$0xff]  ;;  %v3389_v48 = vld [vmem:[%s4722_s10 + $0x20] sm:$0xff] }
 0x7c8   : > { %3759 = vmatprep.subr.mxu0 %v3374_v51  ;;  %3771 = vmatpush3.xpose.msk.msra.mxu1 %vm898_vm1, %v1908_v50  ;;  %v3408_v52 = vld [vmem:[%s4717_s5 + $0xb0] sm:$0xff] }
 0x7c9   : > { %3760 = vmatpush3.msra.mxu0 %v3374_v51  ;;  %3772 = vmatprep.subr.msk.mxu1 %vm898_vm1, %v1903_v53 }
 0x7ca   : > { %3761 = vmatprep.subr.mxu0 %v3373_v54 }
 0x7cb   : > { %3762 = vmatpush3.msra.mxu0 %v3373_v54  ;;  %v3406_v54 = vld [vmem:[%s4717_s5 + $0xa0] sm:$0xff] }
 0x7cc   : > { %3763 = vmatprep.subr.mxu0 %v3372_v55  ;;  %3773 = vmatpush3.xpose.msk.msra.mxu1 %vm898_vm1, %v1903_v53  ;;  %v3407_v53 = vld [vmem:[%s4717_s5 + $0xa8] sm:$0xff] }
 0x7cd   : > { %3764 = vmatpush3.msra.mxu0 %v3372_v55  ;;  %v3405_v55 = vld [vmem:[%s4717_s5 + $0x98] sm:$0xff] }
 0x7ce   : > { %3765 = vmatprep.subr.mxu0 %v3371_v56 }
 0x7cf   : > { %3766 = vmatpush3.msra.mxu0 %v3371_v56  ;;  %v3404_v56 = vld [vmem:[%s4717_s5 + $0x90] sm:$0xff] }
 0x7d0   : > { %3768 = vmatmul.mubr.msk.f32.vlgmr.msra.gmra.mxu0 %vm580_vm0, %v4085_v36  ;;  %3784 = vmatprep.subr.msk.mxu0 %vm1566_vm3, %v3390_v26 }
 0x7d1   : > { %3785 = vmatpush3.msk.msra.mxu0 %vm1566_vm3, %v3390_v26 }
 0x7d2   : > { %3786 = vmatprep.subr.mxu0 %v3389_v48 }
 0x7d3   : > { %3787 = vmatpush3.msra.mxu0 %v3389_v48  ;;  %v3923_v48 = vld [vmem:[%s4046_s1 + $0x8] sm:$0xff] }
 0x7d4   : > { %3806 = vmatprep.subr.mxu0 %v3409_v49 }
 0x878   : > { %v4356_v57 = vpop.f32.mrf.mxu0 }
 0x87a   : > { %v4358_v58 = vpop.f32.mrf.mxu0 }
 0x884   : > { %v3739_v60 = vpop.f32.mrf.mxu0 }
 0x885   : > { %v1816_v61 = vadd.f32 %v3739_v60, %v3358_v59 }
 0x886   : > { %v1810_v62 = vpop.f32.mrf.mxu0 }
 0x887   : > { %v1811_v63 = vadd.f32 %v3358_v59, %v1810_v62  ;;  %v1820_v1 = vmul.f32 0.28867513, %v1816_v61 }
 0x889   : > { %v1819_v0 = vmul.f32 0.28867513, %v1811_v63 }
 0x88b   : > { %3774 = vmatprep.mubr.msk.f32.mxu1 %vm898_vm1, %v1819_v0  ;;  %v1726_v0 = vadd.f32 %v4318_v43, %v4356_v57 }
 0x88c   : > { %3775 = vmatmul.mubr.msk.f32.vlgmr.msra.gmra.mxu1 %vm898_vm1, %v1820_v1 }
 0x890   : > { %v3769_v3 = vpop.f32.mrf.mxu0 }
 0x891   : > { %v1998_v4 = vadd.f32 %v3769_v3, %v3378_v2 }
 0x892   : > { %v1992_v5 = vpop.f32.mrf.mxu0 }
 0x893   : > { %v1993_v6 = vadd.f32 %v3378_v2, %v1992_v5  ;;  %3777 = vmatprep.subr.mxu1 %v1998_v4  ;;  %v1721_v2 = vadd.f32 %v4326_v46, %v4358_v58  ;;  %v3421_v46 = vld [vmem:[%s4720_s8 + $0x3] ss:$0 sm:$0xff] }
 0x894   : > { %3778 = vmatpush3.msra.mxu1 %v1998_v4 }
 0x895   : > { %3779 = vmatprep.subr.mxu1 %v1993_v6 }
 0x896   : > { %3780 = vmatpush3.msra.mxu1 %v1993_v6  ;;  %v3411_v6 = vld [vmem:[%s4718_s6 + $0x3] ss:$0 sm:$0xff] }
 0x897   : > { %3791 = vmatprep.subr.mxu1 %v3399_v25 }
 0x94c   : > { %v3776_v8 = vpop.f32.mrf.mxu1 }
 0x94d   : > { %v2088_v10 = vadd.f32 %v3776_v8, %v3382_v7 }
 0x94e   : > { %v2082_v11 = vpop.f32.mrf.mxu1 }
 0x94f   : > { %v2083_v12 = vadd.f32 %v3381_v9, %v2082_v11  ;;  %v2094_v13 = vsel %vm986_vm2, %v2088_v10, -inf }
 0x950   : > { %2095 = vmax.xlane.f32.xlu1 %v2094_v13 }
 0x951   : > { %v2091_v14 = vsel %vm986_vm2, %v2083_v12, -inf }
 0x952   : > { %2092 = vmax.xlane.f32.xlu0 %v2091_v14  ;;  %v3424_v14 = vld [vmem:[%s4721_s9 + $0x30] sm:$0xff] }
 0x9d9   : > { %v2096_v15 = vpop.xlane.xlu1 %2095 }
 0x9da   : > { %v2098_v16 = vsub.f32 %v2088_v10, %v2096_v15 }
 0x9db   : > { %v2093_v17 = vpop.xlane.xlu0 %2092 }
 0x9dc   : > { %v2101_v18 = vmul.f32 1.442695, %v2098_v16  ;;  %v2097_v19 = vsub.f32 %v2083_v12, %v2093_v17  ;;  %v3425_v12 = vld [vmem:[%s4721_s9 + $0x38] sm:$0xff] }
 0x9de   : > { %3887 = vpow2.f32 %v2101_v18  ;;  %v2099_v20 = vmul.f32 1.442695, %v2097_v19 }
 0x9e0   : > { %3889 = vpow2.f32 %v2099_v20 }
 0x9eb   : > { %v3888_v21 = vpop.eup %3887 }
 0x9ec   : > { %v2106_v22 = vsel %vm986_vm2, %v3888_v21, 0.0 }
 0x9ed   : > { %v3890_v23 = vpop.eup %3889  ;;  %2107 = vadd.xlane.f32.xlu1 %v2106_v22 }
 0x9ee   : > { %v2103_v24 = vsel %vm986_vm2, %v3890_v23, 0.0 }
 0x9ef   : > { %2104 = vadd.xlane.f32.xlu0 %v2103_v24 }
 0xa76   : > { %v2108_v27 = vpop.xlane.xlu1 %2107 }
 0xa77   : > { %3891 = vrcp.f32 %v2108_v27 }
 0xa78   : > { %v2105_v28 = vpop.xlane.xlu0 %2104 }
 0xa79   : > { %3893 = vrcp.f32 %v2105_v28 }
 0xa84   : > { %v3892_v29 = vpop.eup %3891 }
 0xa85   : > { %v2112_v32 = vmul.f32 %v3892_v29, %v3888_v21 }
 0xa86   : > { %v3894_v30 = vpop.eup %3893 }
 0xa87   : > { %v2111_v31 = vmul.f32 %v3894_v30, %v3890_v23  ;;  %v3433_v30 = vld [vmem:[%s4722_s10 + $0x38] sm:$0xf] }
 0xa89   : > { %3781 = vmatprep.mubr.msk.f32.mxu1 %vm986_vm2, %v2111_v31 }
 0xa8a   : > { %3782 = vmatmul.mubr.msk.f32.vlgmr.msra.gmra.mxu1 %vm986_vm2, %v2112_v32 }
 0xa8b   : > { %3792 = vmatpush3.msra.mxu1 %v3399_v25  ;;  %3803 = vmatprep.mubr.msk.f32.mxu1 %vm580_vm0, %v4081_v33 }
 0xa8c   : > { %3793 = vmatprep.subr.mxu1 %v3398_v34 }
 0xa8d   : > { %3794 = vmatpush3.msra.mxu1 %v3398_v34 }
 0xa8e   : > { %3795 = vmatprep.subr.mxu1 %v3397_v35 }
 0xa8f   : > { %3796 = vmatpush3.msra.mxu1 %v3397_v35 }
 0xa90   : > { %3797 = vmatprep.subr.mxu1 %v3396_v37 }
 0xa91   : > { %3798 = vmatpush3.msra.mxu1 %v3396_v37 }
 0xa92   : > { %3799 = vmatprep.subr.mxu1 %v3395_v38 }
 0xa93   : > { %3800 = vmatpush3.msra.mxu1 %v3395_v38 }
 0xa94   : > { %3801 = vmatprep.subr.mxu1 %v3394_v39 }
 0xa95   : > { %3802 = vmatpush3.msra.mxu1 %v3394_v39  ;;  %v3432_v39 = vld [vmem:[%s4722_s10 + $0x30] sm:$0xff] }
 0xa96   : > { %3804 = vmatmul.mubr.msk.f32.vlgmr.msra.gmra.mxu1 %vm580_vm0, %v4085_v36  ;;  %3821 = vmatprep.subr.mxu1 %v3419_v40 }
 0xa97   : > { %3822 = vmatpush3.msra.mxu1 %v3419_v40  ;;  %3833 = vmatprep.mubr.msk.f32.mxu1 %vm580_vm0, %v4081_v33 }
 0xa98   : > { %3823 = vmatprep.subr.mxu1 %v3418_v41 }
 0xa99   : > { %3824 = vmatpush3.msra.mxu1 %v3418_v41 }
 0xa9a   : > { %3825 = vmatprep.subr.mxu1 %v3417_v42 }
 0xa9b   : > { %3826 = vmatpush3.msra.mxu1 %v3417_v42 }
 0xa9c   : > { %3827 = vmatprep.subr.mxu1 %v3416_v44 }
 0xa9d   : > { %3828 = vmatpush3.msra.mxu1 %v3416_v44 }
 0xa9e   : > { %3829 = vmatprep.subr.mxu1 %v3415_v45 }
 0xa9f   : > { %3830 = vmatpush3.msra.mxu1 %v3415_v45  ;;  %v3437_v45 = vld [vmem:[%s4723_s11] ss:$0 sm:$0xff] }
 0xaa0   : > { %3831 = vmatprep.subr.mxu1 %v3414_v47 }
 0xaa1   : > { %3832 = vmatpush3.msra.mxu1 %v3414_v47 }
 0xaa2   : > { %3834 = vmatmul.mubr.msk.f32.vlgmr.msra.gmra.mxu1 %vm580_vm0, %v4085_v36  ;;  %3850 = vmatprep.subr.msk.mxu1 %vm1566_vm3, %v3433_v30 }
 0xaa3   : > { %3851 = vmatpush3.msk.msra.mxu1 %vm1566_vm3, %v3433_v30  ;;  %v3120_v30 = vld [vmem:[%s4728_s16 + $0x68] sm:$0xff] }
 0xaa4   : > { %3852 = vmatprep.subr.mxu1 %v3432_v39 }
 0xaa5   : > { %3853 = vmatpush3.msra.mxu1 %v3432_v39  ;;  %v3113_v39 = vld [vmem:[%s4728_s16 + $0x30] sm:$0xff] }
 0xb4a   : > { %v3783_v50 = vpop.f32.mrf.mxu1 }
 0xb4c   : > { %v2185_v51 = vpop.f32.mrf.mxu1 }
 0xb4d   : > { %3788 = vmatprep.mubr.msk.f32.mxu0 %vm898_vm1, %v2185_v51 }
 0xb4e   : > { %3789 = vmatmul.mubr.msk.f32.vlgmr.msra.gmra.mxu0 %vm898_vm1, %v3783_v50 }
 0xb4f   : > { %3807 = vmatpush3.msra.mxu0 %v3409_v49  ;;  %3818 = vmatprep.mubr.msk.f32.mxu0 %vm580_vm0, %v4081_v33  ;;  %v3401_v33 = vld [vmem:[%s4716_s4 + $0x3] ss:$0 sm:$0xff] }
 0xb50   : > { %3808 = vmatprep.subr.mxu0 %v3408_v52 }
 0xb51   : > { %3809 = vmatpush3.msra.mxu0 %v3408_v52  ;;  %v3924_v52 = vld [vmem:[%s4046_s1] sm:$0xff] }
 0xb52   : > { %3810 = vmatprep.subr.mxu0 %v3407_v53 }
 0xb53   : > { %3811 = vmatpush3.msra.mxu0 %v3407_v53 }
 0xb54   : > { %3812 = vmatprep.subr.mxu0 %v3406_v54 }
 0xb55   : > { %3813 = vmatpush3.msra.mxu0 %v3406_v54 }
 0xb56   : > { %v3805_v59 = vpop.f32.mrf.mxu1  ;;  %3814 = vmatprep.subr.mxu0 %v3405_v55 }
 0xb57   : > { %v2370_v60 = vadd.f32 %v3805_v59, %v3401_v33  ;;  %3815 = vmatpush3.msra.mxu0 %v3405_v55 }
 0xb58   : > { %v2364_v61 = vpop.f32.mrf.mxu1  ;;  %3816 = vmatprep.subr.mxu0 %v3404_v56 }
 0xb59   : > { %v2365_v62 = vadd.f32 %v3401_v33, %v2364_v61  ;;  %3817 = vmatpush3.msra.mxu0 %v3404_v56  ;;  %v2374_v10 = vmul.f32 0.28867513, %v2370_v60 }
 0xb5a   : > { %3819 = vmatmul.mubr.msk.f32.vlgmr.msra.gmra.mxu0 %vm580_vm0, %v4085_v36 }
 0xb5b   : > { %v2373_v63 = vmul.f32 0.28867513, %v2365_v62 }
 0xb5d   : > { %3840 = vmatprep.mubr.msk.f32.mxu0 %vm898_vm1, %v2373_v63 }
 0xb62   : > { %v3835_v43 = vpop.f32.mrf.mxu1 }
 0xb63   : > { %v2552_v57 = vadd.f32 %v3835_v43, %v3421_v46  ;;  %v2896_v43 = vld [vmem:[%s4726_s14 + $0x20] sm:$0xff] }
 0xb64   : > { %v2546_v58 = vpop.f32.mrf.mxu1 }
 0xb65   : > { %v2547_v11 = vadd.f32 %v3421_v46, %v2546_v58  ;;  %v2895_v46 = vld [vmem:[%s4726_s14 + $0x18] sm:$0xff]  ;;  %v2893_v58 = vld [vmem:[%s4726_s14 + $0x8] sm:$0xff] }
 0xc0e   : > { %v3790_v1 = vpop.f32.mrf.mxu0 }
 0xc0f   : > { %v4464_v3 = vadd.f32 %v3790_v1, %v1726_v0 }
 0xc10   : > { %v2272_v4 = vpop.f32.mrf.mxu0 }
 0xc11   : > { %v4466_v5 = vadd.f32 %v2272_v4, %v1721_v2  ;;  %v2903_v4 = vld [vmem:[%s4726_s14 + $0x58] sm:$0xff] }
 0xc1a   : > { %v3820_v36 = vpop.f32.mrf.mxu0 }
 0xc1b   : > { %v2462_v7 = vadd.f32 %v3820_v36, %v3411_v6  ;;  %v2900_v36 = vld [vmem:[%s4726_s14 + $0x40] sm:$0xff] }
 0xc1c   : > { %v2456_v8 = vpop.f32.mrf.mxu0 }
 0xc1d   : > { %v2457_v9 = vadd.f32 %v3411_v6, %v2456_v8  ;;  %3836 = vmatprep.subr.msk.mxu0 %vm898_vm1, %v2462_v7  ;;  %v2901_v6 = vld [vmem:[%s4726_s14 + $0x48] sm:$0xff]  ;;  %v2898_v8 = vld [vmem:[%s4726_s14 + $0x30] sm:$0xff] }
 0xc1e   : > { %3837 = vmatpush3.xpose.msk.msra.mxu0 %vm898_vm1, %v2462_v7  ;;  %v2899_v7 = vld [vmem:[%s4726_s14 + $0x38] sm:$0xff] }
 0xc1f   : > { %3838 = vmatprep.subr.msk.mxu0 %vm898_vm1, %v2457_v9 }
 0xc22   : > { %3839 = vmatpush3.xpose.msk.msra.mxu0 %vm898_vm1, %v2457_v9  ;;  %v2897_v9 = vld [vmem:[%s4726_s14 + $0x28] sm:$0xff] }
 0xc23   : > { %3843 = vmatprep.subr.mxu0 %v2552_v57 }
 0xc25   : > { %3841 = vmatmul.mubr.msk.f32.vlgmr.msra.gmra.mxu0 %vm898_vm1, %v2374_v10  ;;  %v3933_v10 = vmov 0.0  }
 0xc26   : > { %3844 = vmatpush3.msra.mxu0 %v2552_v57  ;;  %v2894_v57 = vld [vmem:[%s4726_s14 + $0x10] sm:$0xff]  ;;  %3145 = vmatprep.subr.mxu1 %v3933_v10 }
 0xc27   : > { %3845 = vmatprep.subr.mxu0 %v2547_v11 }
 0xc28   : > { %3846 = vmatpush3.msra.mxu0 %v2547_v11  ;;  %v2892_v11 = vld [vmem:[%s4726_s14] sm:$0xff] }
 0xc29   : > { %2942 = vmatprep.subr.mxu0 %v2903_v4 }
 0xce5   : > { %v3842_v13 = vpop.f32.mrf.mxu0 }
 0xce6   : > { %v2642_v15 = vadd.f32 %v3842_v13, %v3425_v12 }
 0xce7   : > { %v2636_v16 = vpop.f32.mrf.mxu0 }
 0xce8   : > { %v2637_v17 = vadd.f32 %v3424_v14, %v2636_v16  ;;  %v2648_v18 = vsel %vm986_vm2, %v2642_v15, -inf }
 0xce9   : > { %2649 = vmax.xlane.f32.xlu1 %v2648_v18 }
 0xcea   : > { %v2645_v19 = vsel %vm986_vm2, %v2637_v17, -inf }
 0xceb   : > { %2646 = vmax.xlane.f32.xlu0 %v2645_v19 }
 0xd72   : > { %v2650_v20 = vpop.xlane.xlu1 %2649 }
 0xd73   : > { %v2652_v21 = vsub.f32 %v2642_v15, %v2650_v20 }
 0xd74   : > { %v2647_v22 = vpop.xlane.xlu0 %2646 }
 0xd75   : > { %v2655_v23 = vmul.f32 1.442695, %v2652_v21  ;;  %v2651_v24 = vsub.f32 %v2637_v17, %v2647_v22  ;;  %v3438_v22 = vld [vmem:[%s4724_s12] ss:$0 sm:$0xff] }
 0xd77   : > { %3895 = vpow2.f32 %v2655_v23  ;;  %v2653_v25 = vmul.f32 1.442695, %v2651_v24  ;;  %v3439_v24 = vld [vmem:[%s4725_s13] ss:$0 sm:$0xff] }
 0xd79   : > { %3897 = vpow2.f32 %v2653_v25 }
 0xd84   : > { %v3896_v26 = vpop.eup %3895 }
 0xd85   : > { %v2660_v27 = vsel %vm986_vm2, %v3896_v26, 0.0 }
 0xd86   : > { %v3898_v28 = vpop.eup %3897  ;;  %2661 = vadd.xlane.f32.xlu1 %v2660_v27 }
 0xd87   : > { %v2657_v29 = vsel %vm986_vm2, %v3898_v28, 0.0 }
 0xd88   : > { %2658 = vadd.xlane.f32.xlu0 %v2657_v29  ;;  %v3121_v29 = vld [vmem:[%s4728_s16 + $0x70] sm:$0xff] }
 0xe0f   : > { %v2662_v31 = vpop.xlane.xlu1 %2661 }
 0xe10   : > { %3899 = vrcp.f32 %v2662_v31  ;;  %v3119_v31 = vld [vmem:[%s4728_s16 + $0x60] sm:$0xff] }
 0xe11   : > { %v2659_v32 = vpop.xlane.xlu0 %2658 }
 0xe12   : > { %3901 = vrcp.f32 %v2659_v32  ;;  %v3118_v32 = vld [vmem:[%s4728_s16 + $0x58] sm:$0xff] }
 0xe1d   : > { %v3900_v34 = vpop.eup %3899 }
 0xe1e   : > { %v2666_v38 = vmul.f32 %v3900_v34, %v3896_v26  ;;  %v3117_v34 = vld [vmem:[%s4728_s16 + $0x50] sm:$0xff] }
 0xe1f   : > { %v3902_v35 = vpop.eup %3901 }
 0xe20   : > { %v2665_v37 = vmul.f32 %v3902_v35, %v3898_v28  ;;  %v3122_v28 = vld [vmem:[%s4728_s16 + $0x78] sm:$0xff]  ;;  %v3116_v35 = vld [vmem:[%s4728_s16 + $0x48] sm:$0xff] }
 0xe22   : > { %3847 = vmatprep.mubr.msk.f32.mxu0 %vm986_vm2, %v2665_v37  ;;  %v3115_v37 = vld [vmem:[%s4728_s16 + $0x40] sm:$0xff] }
 0xe23   : > { %3848 = vmatmul.mubr.msk.f32.vlgmr.msra.gmra.mxu0 %vm986_vm2, %v2666_v38  ;;  %v3114_v38 = vld [vmem:[%s4728_s16 + $0x38] sm:$0xff] }
 0xe24   : > { %2986 = vmatprep.mubr.f32.mxu0 %v3933_v10 }
 0xee3   : > { %v3849_v40 = vpop.f32.mrf.mxu0 }
 0xee5   : > { %v2739_v41 = vpop.f32.mrf.mxu0 }
 0xee6   : > { %3854 = vmatprep.mubr.msk.f32.mxu1 %vm898_vm1, %v2739_v41  ;;  %v3111_v41 = vld [vmem:[%s4728_s16 + $0x20] sm:$0xff] }
 0xee7   : > { %3855 = vmatmul.mubr.msk.f32.vlgmr.msra.gmra.mxu1 %vm898_vm1, %v3849_v40  ;;  %v3112_v40 = vld [vmem:[%s4728_s16 + $0x28] sm:$0xff] }
 0xee8   : > { %3146 = vmatpush1.msra.mxu1 %v3122_v28 }
 0xee9   : > { %3147 = vmatprep.subr.mxu1 %v3933_v10 }
 0xeea   : > { %3148 = vmatpush1.msra.mxu1 %v3121_v29 }
 0xeeb   : > { %3149 = vmatprep.subr.mxu1 %v3933_v10 }
 0xeec   : > { %3150 = vmatpush1.msra.mxu1 %v3120_v30 }
 0xeed   : > { %3151 = vmatprep.subr.mxu1 %v3933_v10 }
 0xeee   : > { %3152 = vmatpush1.msra.mxu1 %v3119_v31 }
 0xeef   : > { %3153 = vmatprep.subr.mxu1 %v3933_v10 }
 0xef0   : > { %3154 = vmatpush1.msra.mxu1 %v3118_v32 }
 0xef1   : > { %3155 = vmatprep.subr.mxu1 %v3933_v10 }
 0xef2   : > { %3156 = vmatpush1.msra.mxu1 %v3117_v34 }
 0xef3   : > { %3157 = vmatprep.subr.mxu1 %v3933_v10 }
 0xef4   : > { %3158 = vmatpush1.msra.mxu1 %v3116_v35 }
 0xef5   : > { %3159 = vmatprep.subr.mxu1 %v3933_v10 }
 0xef6   : > { %3160 = vmatpush1.msra.mxu1 %v3115_v37 }
 0xef7   : > { %3161 = vmatprep.subr.mxu1 %v3933_v10 }
 0xef8   : > { %3162 = vmatpush1.msra.mxu1 %v3114_v38 }
 0xef9   : > { %3163 = vmatprep.subr.mxu1 %v3933_v10 }
 0xefa   : > { %3164 = vmatpush1.msra.mxu1 %v3113_v39 }
 0xefb   : > { %3165 = vmatprep.subr.mxu1 %v3933_v10 }
 0xefc   : > { %3166 = vmatpush1.msra.mxu1 %v3112_v40 }
 0xefd   : > { %3167 = vmatprep.subr.mxu1 %v3933_v10 }
 0xefe   : > { %3168 = vmatpush1.msra.mxu1 %v3111_v41 }
 0xeff   : > { %3169 = vmatprep.subr.mxu1 %v3933_v10 }
 0xfa7   : > { %v3856_v42 = vpop.f32.mrf.mxu1 }
 0xfa8   : > { %v2836_v44 = vadd.f32 %v3856_v42, %v4464_v3  ;;  %v3110_v42 = vld [vmem:[%s4728_s16 + $0x18] sm:$0xff] }
 0xfa9   : > { %v2826_v47 = vpop.f32.mrf.mxu1  ;;  %3170 = vmatpush1.msra.mxu1 %v3110_v42 }
 0xfaa   : > { %v2838_v49 = vadd.f32 %v3923_v48, %v2836_v44  ;;  %v2835_v50 = vadd.f32 %v2826_v47, %v4466_v5  ;;  %v2902_v5 = vld [vmem:[%s4726_s14 + $0x50] sm:$0xff]  ;;  %3171 = vmatprep.subr.mxu1 %v3933_v10  ;;  %v3107_v47 = vld [vmem:[%s4728_s16] sm:$0xff]  ;;  %v3130_v48 = vld [vmem:[%s4728_s16 + $0xb8] sm:$0xff] }
 0xfab   : > { %2943 = vmatpush1.msra.mxu0 %v2902_v5  ;;  %v3109_v44 = vld [vmem:[%s4728_s16 + $0x10] sm:$0xff] }
 0xfac   : > { %v4507_v51 = vadd.f32 %v3437_v45, %v2838_v49  ;;  %v2837_v53 = vadd.f32 %v3924_v52, %v2835_v50  ;;  %2944 = vmatprep.subr.mxu0 %v2901_v6  ;;  %3172 = vmatpush1.msra.mxu1 %v3109_v44  ;;  %v3129_v49 = vld [vmem:[%s4728_s16 + $0xb0] sm:$0xff]  ;;  %v3128_v50 = vld [vmem:[%s4728_s16 + $0xa8] sm:$0xff]  ;;  %v3127_v52 = vld [vmem:[%s4728_s16 + $0xa0] sm:$0xff] }
 0xfad   : > { %2945 = vmatpush1.msra.mxu0 %v2900_v36  ;;  %3173 = vmatprep.subr.mxu1 %v3933_v10 }
 0xfae   : > { %v4510_v54 = vadd.f32 %v3437_v45, %v2837_v53  ;;  %v2853_v55 = vsel %vm580_vm0, %v4507_v51, 0.0  ;;  %2946 = vmatprep.subr.mxu0 %v2899_v7  ;;  %v3108_v45 = vld [vmem:[%s4728_s16 + $0x8] sm:$0xff]  ;;  %v3126_v53 = vld [vmem:[%s4728_s16 + $0x98] sm:$0xff] }
 0xfaf   : > { %2854 = vadd.xlane.f32.xlu1 %v2853_v55  ;;  %2947 = vmatpush1.msra.mxu0 %v2898_v8  ;;  %v3125_v55 = vld [vmem:[%s4728_s16 + $0x90] sm:$0xff] }
 0xfb0   : > { %v2850_v33 = vsel %vm580_vm0, %v4510_v54, 0.0  ;;  %2948 = vmatprep.subr.mxu0 %v2897_v9  ;;  %3174 = vmatpush1.msra.mxu1 %v3108_v45  ;;  %v3934_v9 = vmov -1.0  }
 0xfb1   : > { %2851 = vadd.xlane.f32.xlu0 %v2850_v33  ;;  %2949 = vmatpush1.msra.mxu0 %v2896_v43  ;;  %v3124_v33 = vld [vmem:[%s4728_s16 + $0x88] sm:$0xff] }
 0xfb2   : > { %2950 = vmatprep.subr.mxu0 %v2895_v46  ;;  %3175 = vmatprep.subr.mxu1 %v3933_v10 }
 0xfb3   : > { %2951 = vmatpush1.msra.mxu0 %v2894_v57  ;;  %3176 = vmatpush1.msra.mxu1 %v3107_v47 }
 0xfb4   : > { %2952 = vmatprep.subr.mxu0 %v2893_v58  ;;  %3193 = vmatprep.subr.mxu1 %v3933_v10 }
 0xfb5   : > { %2953 = vmatpush1.msra.mxu0 %v2892_v11  ;;  %3194 = vmatpush2.msra.mxu1 %v3130_v48 }
 0xfb6   : > { %3195 = vmatprep.subr.mxu1 %v3933_v10 }
 0xfb7   : > { %3196 = vmatpush2.msra.mxu1 %v3129_v49 }
 0xfb8   : > { %3197 = vmatprep.subr.mxu1 %v3933_v10 }
 0xfb9   : > { %3198 = vmatpush2.msra.mxu1 %v3128_v50 }
 0xfba   : > { %3199 = vmatprep.subr.mxu1 %v3933_v10 }
 0xfbb   : > { %3200 = vmatpush2.msra.mxu1 %v3127_v52 }
 0xfbc   : > { %3201 = vmatprep.subr.mxu1 %v3933_v10 }
 0xfbd   : > { %3202 = vmatpush2.msra.mxu1 %v3126_v53 }
 0xfbe   : > { %3203 = vmatprep.subr.mxu1 %v3933_v10 }
 0xfbf   : > { %3204 = vmatpush2.msra.mxu1 %v3125_v55 }
 0xfc0   : > { %3205 = vmatprep.subr.mxu1 %v3933_v10 }
 0xfc1   : > { %3206 = vmatpush2.msra.mxu1 %v3124_v33 }
 0xfc2   : > { %3207 = vmatprep.subr.mxu1 %v3933_v10 }
0x1038   : > { %v2855_v56 = vpop.xlane.xlu1 %2854 }
0x1039   : > { %v2857_v59 = vmul.f32 0.020833334, %v2855_v56  ;;  %v3123_v56 = vld [vmem:[%s4728_s16 + $0x80] sm:$0xff] }
0x103a   : > { %v2852_v60 = vpop.xlane.xlu0 %2851  ;;  %3208 = vmatpush2.msra.mxu1 %v3123_v56 }
0x103b   : > { %v2859_v61 = vsub.f32 %v4507_v51, %v2857_v59  ;;  %v2856_v62 = vmul.f32 0.020833334, %v2852_v60  ;;  %v2906_v59 = vlaneseq }
0x103d   : > { %v2858_v63 = vsub.f32 %v4510_v54, %v2856_v62  ;;  %v2861_v0 = vmul.f32 %v2859_v61, %v2859_v61  ;;  %v2907_v60 = vshrl.u32 %v2906_v59, 7  ;;  %v2904_v62 = vld [vmem:[%s4727_s15] sm:$0x3] }
0x103f   : > { %v2865_v1 = vsel %vm580_vm0, %v2861_v0, 0.0  ;;  %v2860_v2 = vmul.f32 %v2858_v63, %v2858_v63 }
0x1040   : > { %2866 = vadd.xlane.f32.xlu1 %v2865_v1 }
0x1041   : > { %v2862_v3 = vsel %vm580_vm0, %v2860_v2, 0.0 }
0x1042   : > { %2863 = vadd.xlane.f32.xlu0 %v2862_v3 }
0x10c9   : > { %v2867_v12 = vpop.xlane.xlu1 %2866 }
0x10ca   : > { %v2869_v13 = vmul.f32 0.020833334, %v2867_v12 }
0x10cb   : > { %v2864_v14 = vpop.xlane.xlu0 %2863 }
0x10cc   : > { %v2871_v15 = vadd.f32 1e-05, %v2869_v13  ;;  %v2868_v16 = vmul.f32 0.020833334, %v2864_v14 }
0x10ce   : > { %3903 = vrsqrt.f32 %v2871_v15  ;;  %v2870_v17 = vadd.f32 1e-05, %v2868_v16 }
0x10d0   : > { %3905 = vrsqrt.f32 %v2870_v17 }
0x10db   : > { %v3904_v18 = vpop.eup %3903 }
0x10dc   : > { %v2875_v21 = vmul.f32 %v3904_v18, %v2859_v61  ;;  %v2908_v61 = vsub.s32 0, %v2907_v60 }
0x10dd   : > { %v3906_v19 = vpop.eup %3905 }
0x10de   : > { %v2874_v20 = vmul.f32 %v3906_v19, %v2858_v63  ;;  %v2883_v26 = vmul.f32 %v3438_v22, %v2875_v21  ;;  %v2912_v63 = vsub.s32 1, %v2907_v60  ;;  %v2909_v0 = vrot.slane %v2904_v62, %v2908_v61 }
0x10e0   : > { %v2882_v23 = vmul.f32 %v3438_v22, %v2874_v20  ;;  %v2891_v27 = vadd.f32 %v3439_v24, %v2883_v26  ;;  %v2913_v1 = vrot.slane %v2904_v62, %v2912_v63 }
0x10e2   : > { %v2890_v25 = vadd.f32 %v3439_v24, %v2882_v23 }
0x10e4   : > { %3440 = vmatmul.mubr.msk.f32.vlgmr.msra.gmra.mxu0 %vm580_vm0, %v2890_v25 }
0x10e5   : > { %2992 = vmatprep.mubr.f32.mxu0 %v3933_v10 }
0x10e8   : > { %3441 = vmatmul.mubr.msk.f32.gmra.mxu0 %vm580_vm0, %v2891_v27 }
0x11a4   : > { %v2988_v2 = vpop.f32.mrf.mxu0 }
0x11a5   : > { %v4665_v3 = vadd.f32 %v2988_v2, %v2909_v0 }
0x11a6   : > { %v2990_v4 = vpop.f32.mrf.mxu0 }
0x11a7   : > { %v3003_v5 = vmul.f32 0.70710677, %v4665_v3  ;;  %v4668_v6 = vadd.f32 %v2990_v4, %v2913_v1 }
0x11a8   : > { %v2994_v36 = vpop.f32.mrf.mxu0 }
0x11a9   : > { %vm3007_vm4 = vcmp.ge.f32.partialorder %v3003_v5, 0.0  ;;  %v3004_v7 = vmul.f32 0.70710677, %v4668_v6  ;;  %v4671_v8 = vadd.f32 %v2994_v36, %v2909_v0 }
0x11aa   : > { %v4673_v43 = vsel %vm3007_vm4, 1.0, %v3934_v9  ;;  %v2996_v46 = vpop.f32.mrf.mxu0 }
0x11ab   : > { %v3015_v57 = vmul.f32 %v4673_v43, %v3003_v5  ;;  %vm3008_vm5 = vcmp.ge.f32.partialorder %v3004_v7, 0.0  ;;  %v3005_v58 = vmul.f32 0.70710677, %v4671_v8  ;;  %v4679_v11 = vadd.f32 %v2996_v46, %v2913_v1 }
0x11ac   : > { %v4677_v10 = vsel %vm3008_vm5, 1.0, %v3934_v9 }
0x11ad   : > { %v3019_v12 = vmul.f32 0.3275911, %v3015_v57  ;;  %v3016_v13 = vmul.f32 %v4677_v10, %v3004_v7  ;;  %vm3009_vm6 = vcmp.ge.f32.partialorder %v3005_v58, 0.0  ;;  %v3006_v15 = vmul.f32 0.70710677, %v4679_v11 }
0x11ae   : > { %v4682_v14 = vsel %vm3009_vm6, 1.0, %v3934_v9  ;;  %v3071_v25 = vsub.f32 0.0, %v3015_v57 }
0x11af   : > { %v3023_v16 = vadd.f32 1.0, %v3019_v12  ;;  %v3020_v17 = vmul.f32 0.3275911, %v3016_v13  ;;  %v3017_v18 = vmul.f32 %v4682_v14, %v3005_v58  ;;  %vm3010_vm7 = vcmp.ge.f32.partialorder %v3006_v15, 0.0 }
0x11b0   : > { %v4686_v21 = vsel %vm3010_vm7, 1.0, %v3934_v9  ;;  %v3072_v27 = vsub.f32 0.0, %v3016_v13  ;;  %v3075_v28 = vmul.f32 %v3071_v25, %v3015_v57 }
0x11b1   : > { %3907 = vrcp.f32 %v3023_v16  ;;  %v3024_v19 = vadd.f32 1.0, %v3020_v17  ;;  %v3021_v20 = vmul.f32 0.3275911, %v3017_v18  ;;  %v3018_v22 = vmul.f32 %v4686_v21, %v3006_v15 }
0x11b2   : > { %v3073_v29 = vsub.f32 0.0, %v3017_v18  ;;  %v3076_v31 = vmul.f32 %v3072_v27, %v3016_v13  ;;  %v3079_v34 = vmul.f32 1.442695, %v3075_v28 }
0x11b3   : > { %3909 = vrcp.f32 %v3024_v19  ;;  %v3025_v23 = vadd.f32 1.0, %v3021_v20  ;;  %v3022_v24 = vmul.f32 0.3275911, %v3018_v22  ;;  %v3074_v35 = vsub.f32 0.0, %v3018_v22 }
0x11b4   : > { %v3077_v37 = vmul.f32 %v3073_v29, %v3017_v18  ;;  %v3081_v41 = vmul.f32 1.442695, %v3076_v31 }
0x11b5   : > { %3911 = vrcp.f32 %v3025_v23  ;;  %v3026_v26 = vadd.f32 1.0, %v3022_v24  ;;  %v3078_v45 = vmul.f32 %v3074_v35, %v3018_v22 }
0x11b6   : > { %v3083_v48 = vmul.f32 1.442695, %v3077_v37 }
0x11b7   : > { %3913 = vrcp.f32 %v3026_v26  ;;  %v3085_v59 = vmul.f32 1.442695, %v3078_v45 }
0x11b8   : > { %3915 = vpow2.f32 %v3079_v34 }
0x11b9   : > { %3917 = vpow2.f32 %v3081_v41 }
0x11ba   : > { %3919 = vpow2.f32 %v3083_v48 }
0x11bb   : > { %3921 = vpow2.f32 %v3085_v59 }
0x11be   : > { %v3908_v30 = vpop.eup %3907 }
0x11bf   : > { %v3035_v32 = vmul.f32 1.0614054, %v3908_v30 }
0x11c0   : > { %v3910_v38 = vpop.eup %3909 }
0x11c1   : > { %v3039_v39 = vadd.f32 -1.4531521, %v3035_v32  ;;  %v3036_v40 = vmul.f32 1.0614054, %v3910_v38 }
0x11c2   : > { %v3912_v42 = vpop.eup %3911 }
0x11c3   : > { %v3043_v44 = vmul.f32 %v3908_v30, %v3039_v39  ;;  %v3040_v47 = vadd.f32 -1.4531521, %v3036_v40  ;;  %v3037_v49 = vmul.f32 1.0614054, %v3912_v42 }
0x11c4   : > { %v3914_v52 = vpop.eup %3913 }
0x11c5   : > { %v3047_v50 = vadd.f32 1.4214138, %v3043_v44  ;;  %v3044_v53 = vmul.f32 %v3910_v38, %v3040_v47  ;;  %v3041_v55 = vadd.f32 -1.4531521, %v3037_v49  ;;  %v3038_v56 = vmul.f32 1.0614054, %v3914_v52  ;;  %v3916_v13 = vpop.eup %3915 }
0x11c6   : > { %v3918_v22 = vpop.eup %3917 }
0x11c7   : > { %v3051_v33 = vmul.f32 %v3908_v30, %v3047_v50  ;;  %v3048_v60 = vadd.f32 1.4214138, %v3044_v53  ;;  %v3045_v61 = vmul.f32 %v3912_v42, %v3041_v55  ;;  %v3042_v63 = vadd.f32 -1.4531521, %v3038_v56  ;;  %v3920_v27 = vpop.eup %3919 }
0x11c8   : > { %v3922_v34 = vpop.eup %3921 }
0x11c9   : > { %v3055_v62 = vadd.f32 -0.28449672, %v3051_v33  ;;  %v3052_v0 = vmul.f32 %v3910_v38, %v3048_v60  ;;  %v3049_v1 = vadd.f32 1.4214138, %v3045_v61  ;;  %v3046_v4 = vmul.f32 %v3914_v52, %v3042_v63 }
0x11cb   : > { %v3059_v2 = vmul.f32 %v3908_v30, %v3055_v62  ;;  %v3056_v5 = vadd.f32 -0.28449672, %v3052_v0  ;;  %v3053_v36 = vmul.f32 %v3912_v42, %v3049_v1  ;;  %v3050_v9 = vadd.f32 1.4214138, %v3046_v4 }
0x11cd   : > { %v3063_v7 = vadd.f32 0.2548296, %v3059_v2  ;;  %v3060_v46 = vmul.f32 %v3910_v38, %v3056_v5  ;;  %v3057_v57 = vadd.f32 -0.28449672, %v3053_v36  ;;  %v3054_v12 = vmul.f32 %v3914_v52, %v3050_v9 }
0x11cf   : > { %v3067_v58 = vmul.f32 %v3908_v30, %v3063_v7  ;;  %v3064_v15 = vadd.f32 0.2548296, %v3060_v46  ;;  %v3061_v16 = vmul.f32 %v3912_v42, %v3057_v57  ;;  %v3058_v18 = vadd.f32 -0.28449672, %v3054_v12 }
0x11d1   : > { %v3087_v17 = vmul.f32 %v3916_v13, %v3067_v58  ;;  %v3068_v19 = vmul.f32 %v3910_v38, %v3064_v15  ;;  %v3065_v20 = vadd.f32 0.2548296, %v3061_v16  ;;  %v3062_v24 = vmul.f32 %v3914_v52, %v3058_v18 }
0x11d2   : > { %v3000_v38 = vmul.f32 0.5, %v4668_v6  ;;  %v3001_v6 = vmul.f32 0.5, %v4671_v8 }
0x11d3   : > { %v3091_v23 = vsub.f32 1.0, %v3087_v17  ;;  %v3088_v25 = vmul.f32 %v3918_v22, %v3068_v19  ;;  %v3069_v26 = vmul.f32 %v3912_v42, %v3065_v20  ;;  %v3066_v29 = vadd.f32 0.2548296, %v3062_v24 }
0x11d4   : > { %v2999_v42 = vmul.f32 0.5, %v4665_v3  ;;  %v3442_v3 = vld [vmem:[%s4729_s17] ss:$0 sm:$0xff] }
0x11d5   : > { %v3095_v28 = vmul.f32 %v3091_v23, %v4673_v43  ;;  %v3092_v31 = vsub.f32 1.0, %v3088_v25  ;;  %v3089_v32 = vmul.f32 %v3920_v27, %v3069_v26  ;;  %v3070_v30 = vmul.f32 %v3914_v52, %v3066_v29 }
0x11d7   : > { %v3096_v35 = vmul.f32 %v3092_v31, %v4677_v10  ;;  %v3093_v37 = vsub.f32 1.0, %v3089_v32  ;;  %v3099_v39 = vadd.f32 1.0, %v3095_v28  ;;  %v3090_v40 = vmul.f32 %v3922_v34, %v3070_v30 }
0x11d8   : > { %v3002_v10 = vmul.f32 0.5, %v4679_v11 }
0x11d9   : > { %v3100_v41 = vadd.f32 1.0, %v3096_v35  ;;  %v3097_v44 = vmul.f32 %v3093_v37, %v4682_v14  ;;  %v3094_v45 = vsub.f32 1.0, %v3090_v40  ;;  %v3103_v47 = vmul.f32 %v3099_v39, %v2999_v42 }
0x11db   : > { %v3104_v43 = vmul.f32 %v3100_v41, %v3000_v38  ;;  %v3098_v48 = vmul.f32 %v3094_v45, %v4686_v21  ;;  %v3101_v49 = vadd.f32 1.0, %v3097_v44 }
0x11dd   : > { %3443 = vmatprep.mubr.msk.f32.mxu1 %vm3138_vm8, %v3104_v43  ;;  %v3102_v50 = vadd.f32 1.0, %v3098_v48  ;;  %v3105_v53 = vmul.f32 %v3101_v49, %v3001_v6 }
0x11de   : > { %3210 = vmatmul.mubr.f32.vlgmr.msra.gmra.mxu1 %v3103_v47 }
0x11df   : > { %v3106_v52 = vmul.f32 %v3102_v50, %v3002_v10 }
0x11e1   : > { %3444 = vmatprep.mubr.msk.f32.mxu1 %vm3138_vm8, %v3106_v52 }
0x11e2   : > { %3215 = vmatmul.mubr.f32.gmra.mxu1 %v3105_v53 }
0x129e   : > { %v3211_v14 = vpop.f32.mrf.mxu1 }
0x129f   : > { %v3212_v55 = vadd.f32 %v3442_v3, %v3211_v14 }
0x12a0   : > { %v3213_v11 = vpop.f32.mrf.mxu1 }
0x12a1   : > { %v3220_v21 = vadd.f32 %v3212_v55, %v4510_v54 }
0x12a2   : > { %v3216_v8 = vpop.f32.mrf.mxu1 }
0x12a3   : > { %3222 = vst.msk [vmem:[%s575_s30] sm:$0xff] %vm580_vm0, %v3220_v21  ;;  %v3217_v33 = vadd.f32 %v3442_v3, %v3216_v8 }
0x12a4   : > { %v3218_v56 = vpop.f32.mrf.mxu1 }
0x12a5   : > { %v3221_v59 = vadd.f32 %v3217_v33, %v4507_v51 }
0x12a7   : > { %3223 = vst.msk [vmem:[%s575_s30 + $0x8] sm:$0xff] %vm580_vm0, %v3221_v59 }
0x12a8 PF: > { %s28_s27 = sadd.s32 1, %s3931_s27  }
0x12a9   : > { %p25_p4 = scmp.ge.s32.totalorder %s28_s27, 4  }
0x12ab   :  { %27 = sbr.rel (!%p25_p4) target bundleno = 4 (0x4), region = 146 }

</bundles_post_ra>
